<compile_context>
chip_gen: v6e
topology: v6e:2x2x1
jax: 0.10.0
libtpu: 0.0.40
codegen_flags: <defaults>
</compile_context>

<pallas_src>
import functools

import jax
import jax.numpy as jnp
from jax import lax
from jax.experimental import pallas as pl
from jax.experimental.pallas import tpu as pltpu


def _image_pred_kernel(x_ref, w1_ref, b1_ref, wfc1t_ref, wfc2_ref, wsa_ref,
                       w2_ref, b2_ref, xout_ref, pred_ref, pad_ref,
                       *, B, H, W, C, Cr):
    HW = H * W
    f32 = jnp.float32
    bf16 = jnp.bfloat16

    # ---- conv1: 3x3, pad 1, bias, LeakyReLU(0.01) ---------------------------
    # Zero only the 1-pixel halo strips; the interior is fully rewritten each step.
    # NOTE: done every step (cheap). A program_id==0 guard would be UNSAFE under
    # dimension_semantics=("parallel",) on v7x (second core starts at pid != 0).
    z_row = jnp.zeros((B, 1, W + 2, C), f32)
    z_col = jnp.zeros((B, H + 2, 1, C), f32)
    pad_ref[:, 0:1, :, :] = z_row
    pad_ref[:, H + 1:H + 2, :, :] = z_row
    pad_ref[:, :, 0:1, :] = z_col
    pad_ref[:, :, W + 1:W + 2, :] = z_col
    pad_ref[:, 1:H + 1, 1:W + 1, :] = x_ref[...]

    def im2col_bf16():
        # One K = 9*C bf16 MXU operand. Per-patch bf16 cast: the f32 9C-wide
        # staging matrix is never materialized (halves the largest intermediate).
        patches = [pad_ref[:, kh:kh + H, kw:kw + W, :].astype(bf16).reshape(B * HW, C)
                   for kh in range(3) for kw in range(3)]
        return jnp.concatenate(patches, axis=1)                  # (B*HW, 9C) bf16

    acc = jnp.dot(im2col_bf16(), w1_ref[...], preferred_element_type=f32)
    acc = acc + b1_ref[...]                                      # (B*HW, C) f32
    a1 = jnp.where(acc > 0, acc, 0.01 * acc)                     # LeakyReLU(0.01)

    # ---- channel attention (Cr = C // 16 is tiny; keep on the VPU) ----------
    a1_b = a1.reshape(B, HW, C)
    avg = jnp.mean(a1_b, axis=1)                                 # (B, C)
    mx = jnp.max(a1_b, axis=1)                                   # (B, C)

    def fc(v):                                                   # (B, C) -> (B, C)
        o = jnp.zeros((B, C), f32)
        for j in range(Cr):
            hj = jnp.sum(v * wfc1t_ref[j:j + 1, :], axis=1, keepdims=True)  # (B, 1)
            hj = jnp.maximum(hj, 0.0)                            # ReLU
            o = o + hj * wfc2_ref[j:j + 1, :]                    # (B, C)
        return o

    ca = jax.nn.sigmoid(fc(avg) + fc(mx))                        # (B, C)
    x2 = (a1_b * ca[:, None, :]).reshape(B, H, W, C)

    # ---- spatial attention: 7x7 conv on [mean_c, max_c], pad 3 --------------
    # TODO(synk): for large H,W flatten HW onto lanes (pltpu.roll + boundary masks)
    # so the 49-tap accumulation is lane-dense; at 16x16 this phase is negligible.
    m_avg = jnp.mean(x2, axis=3)                                 # (B, H, W)
    m_max = jnp.max(x2, axis=3)

    def pad_hw(a, p):  # (H+6)x(W+6) maps are tiny; concat padding is noise here
        zr = jnp.zeros((B, p, W), f32)
        a = jnp.concatenate([zr, a, zr], axis=1)
        zc = jnp.zeros((B, H + 2 * p, p), f32)
        return jnp.concatenate([zc, a, zc], axis=2)

    avg_p = pad_hw(m_avg, 3)                                     # (B, H+6, W+6)
    max_p = pad_hw(m_max, 3)
    # Hoist the 7 lane shifts; reuse across kh (7x less XLU work than 49 slices).
    avg_cols = [avg_p[:, :, kw:kw + W] for kw in range(7)]
    max_cols = [max_p[:, :, kw:kw + W] for kw in range(7)]
    sacc = jnp.zeros((B, H, W), f32)
    for kh in range(7):
        for kw in range(7):
            w_a = wsa_ref[(kh * 7 + kw) * 2 + 0]                 # scalars from SMEM
            w_m = wsa_ref[(kh * 7 + kw) * 2 + 1]
            sacc = sacc + avg_cols[kw][:, kh:kh + H, :] * w_a \
                        + max_cols[kw][:, kh:kh + H, :] * w_m
    sa = jax.nn.sigmoid(sacc)                                    # (B, H, W)
    x3 = x2 * sa[:, :, :, None]                                  # (B, H, W, C) f32

    # ---- x_out: lane-dense (C, HW) — single whole-block transpose + store ----
    xout_ref[...] = jnp.transpose(x3.reshape(B, HW, C), (0, 2, 1))

    # ---- conv2: 3x3, pad 1, C->3, bias, Sigmoid ------------------------------
    # Reuse the same pad scratch: its halo is still zero, only the interior changes.
    pad_ref[:, 1:H + 1, 1:W + 1, :] = x3
    acc2 = jnp.dot(im2col_bf16(), w2_ref[...], preferred_element_type=f32)  # (B*HW, 3)
    # Bias add + sigmoid in the transposed lane-dense (B, 3, HW) layout.
    acc2_t = jnp.transpose(acc2.reshape(B, HW, 3), (0, 2, 1))    # (B, 3, HW)
    pred_ref[...] = jax.nn.sigmoid(acc2_t + b2_ref[...])         # b2_ref: (3, 1)


def image_pred_forward(x_nchw, params, *, batch_block=8):
    """Returns (x, pred) in NCHW, matching PyTorch ImagePred.forward."""
    w1, b1, wfc1, wfc2, wsa, w2, b2 = params
    x = jnp.transpose(x_nchw, (0, 2, 3, 1)).astype(jnp.float32)  # NHWC
    N, H, W, C = x.shape
    Cr = wfc1.shape[1]
    HW = H * W

    # Images per grid step: big enough to amortize per-step overhead (v5e/v6e),
    # but keep >= 2 grid steps when N >= 2 so both v7x TensorCores get work.
    B = max(1, min(batch_block, N if N < 2 else N // 2))

    # Keep the per-step live set under a conservative VMEM budget (v7x: 64 MiB phys).
    def vmem_bytes(b):
        blk_in = b * H * W * C * 4                      # input block
        pad = b * (H + 2) * (W + 2) * C * 4             # halo scratch (f32)
        pmat = b * HW * 9 * C * 2                       # bf16 im2col matrix
        outs = b * C * HW * 4 + b * 3 * HW * 4          # output blocks
        interm = 5 * b * HW * C * 4                     # a1 / x2 / x3 / acc / misc
        wts = (9 * C * C + 9 * C * 3) * 2 + 8 * C * 4
        return 2 * (blk_in + outs) + pad + pmat + interm + wts

    VMEM_BUDGET = 44 * 1024 * 1024
    while B > 1 and vmem_bytes(B) > VMEM_BUDGET:
        B = max(1, B // 2)
    vmem_limit = int(max(32 * 1024 * 1024,
                         min(56 * 1024 * 1024, 1.5 * vmem_bytes(B))))

    Np = ((N + B - 1) // B) * B
    if Np != N:
        x = jnp.pad(x, ((0, Np - N), (0, 0), (0, 0), (0, 0)))

    # flattened-tap conv weights (MXU operands in bf16, f32 accumulate in-kernel)
    w1_m = w1.reshape(9 * C, C).astype(jnp.bfloat16)
    w2_m = w2.reshape(9 * C, 3).astype(jnp.bfloat16)
    wfc1t = jnp.transpose(wfc1).astype(jnp.float32)              # (Cr, C)
    wfc2_m = wfc2.astype(jnp.float32)                            # (Cr, C)
    wsa_flat = wsa.reshape(-1).astype(jnp.float32)               # (7*7*2,) -> SMEM
    b1_2d = b1.reshape(1, C).astype(jnp.float32)
    b2_2d = b2.reshape(3, 1).astype(jnp.float32)                 # column vector for (B,3,HW)

    kernel = functools.partial(_image_pred_kernel, B=B, H=H, W=W, C=C, Cr=Cr)
    # Note: for large images (e.g. 256x256), add a spatial tile axis over H with a
    # 2-row halo; the VMEM budgeting above then bounds B per tile.
    grid_spec = pltpu.PrefetchScalarGridSpec(
        num_scalar_prefetch=0,
        grid=(Np // B,),
        in_specs=[
            pl.BlockSpec((B, H, W, C), lambda n: (n, 0, 0, 0)),  # x (unpadded)
            pl.BlockSpec((9 * C, C), lambda n: (0, 0)),          # conv1 weight (bf16)
            pl.BlockSpec((1, C), lambda n: (0, 0)),              # conv1 bias
            pl.BlockSpec((Cr, C), lambda n: (0, 0)),             # CA fc1 (transposed)
            pl.BlockSpec((Cr, C), lambda n: (0, 0)),             # CA fc2
            pl.BlockSpec(memory_space=pltpu.MemorySpace.SMEM),   # SA 7x7x2 scalars
            pl.BlockSpec((9 * C, 3), lambda n: (0, 0)),          # conv2 weight (bf16)
            pl.BlockSpec((3, 1), lambda n: (0, 0)),              # conv2 bias (column)
        ],
        out_specs=[
            pl.BlockSpec((B, C, HW), lambda n: (n, 0, 0)),       # x_out, lane-dense
            pl.BlockSpec((B, 3, HW), lambda n: (n, 0, 0)),       # pred, lane-dense
        ],
        scratch_shapes=[pltpu.VMEM((B, H + 2, W + 2, C), jnp.float32)],
    )
    x_out, pred = pl.pallas_call(
        kernel,
        out_shape=(jax.ShapeDtypeStruct((Np, C, HW), jnp.float32),
                   jax.ShapeDtypeStruct((Np, 3, HW), jnp.float32)),
        grid_spec=grid_spec,
        compiler_params=pltpu.CompilerParams(
            dimension_semantics=("parallel",),   # independent images -> v7x megacore
            vmem_limit_bytes=vmem_limit),
    )(x, w1_m, b1_2d, wfc1t, wfc2_m, wsa_flat, w2_m, b2_2d)

    x_out = x_out[:N].reshape(N, C, H, W)
    pred = pred[:N].reshape(N, 3, H, W)
    return x_out, pred


# -------------------- pure-JAX reference (for validation) --------------------
def ref_forward(x_nchw, params):
    w1, b1, wfc1, wfc2, wsa, w2, b2 = params
    x = jnp.transpose(x_nchw, (0, 2, 3, 1)).astype(jnp.float32)

    def conv(a, w, p):
        return lax.conv_general_dilated(
            a, w, (1, 1), [(p, p), (p, p)],
            dimension_numbers=("NHWC", "HWIO", "NHWC"),
            precision=lax.Precision.HIGHEST)

    a1 = conv(x, w1, 1) + b1
    a1 = jnp.where(a1 > 0, a1, 0.01 * a1)
    avg = a1.mean(axis=(1, 2))
    mx = a1.max(axis=(1, 2))
    fc = lambda v: jnp.maximum(v @ wfc1, 0.0) @ wfc2
    ca = jax.nn.sigmoid(fc(avg) + fc(mx))
    x2 = a1 * ca[:, None, None, :]
    s = jnp.stack([x2.mean(axis=3), x2.max(axis=3)], axis=3)
    sa = jax.nn.sigmoid(conv(s, wsa[..., None], 3))
    x3 = x2 * sa
    pred = jax.nn.sigmoid(conv(x3, w2, 1) + b2)
    return jnp.transpose(x3, (0, 3, 1, 2)), jnp.transpose(pred, (0, 3, 1, 2))


if __name__ == "__main__":
    # inChannels must be >= 16 (ChannelAttention ratio=16).
    N, C, H, Wd = 2, 32, 16, 16
    Cr = C // 16

    key = jax.random.PRNGKey(0)
    ks = jax.random.split(key, 8)

    def xavier(k, shape, fan_in, fan_out):
        lim = (6.0 / (fan_in + fan_out)) ** 0.5
        return jax.random.uniform(k, shape, jnp.float32, -lim, lim)

    # deterministic synthetic parameters (shapes implied by ImagePred.__init__)
    w1 = xavier(ks[0], (3, 3, C, C), 9 * C, 9 * C)       # conv1 weight (HWIO)
    b1 = 0.05 * jax.random.normal(ks[1], (C,), jnp.float32)
    wfc1 = xavier(ks[2], (C, Cr), C, Cr)                 # CA fc layer 1 (1x1 conv)
    wfc2 = xavier(ks[3], (Cr, C), Cr, C)                 # CA fc layer 2 (1x1 conv)
    wsa = xavier(ks[4], (7, 7, 2), 2 * 49, 49)           # SA 7x7 conv (HWI, 1 out ch)
    w2 = xavier(ks[5], (3, 3, C, 3), 9 * C, 9 * 3)       # conv2 weight (HWIO)
    b2 = 0.05 * jax.random.normal(ks[6], (3,), jnp.float32)
    params = (w1, b1, wfc1, wfc2, wsa, w2, b2)

    x_nchw = jax.random.normal(ks[7], (N, C, H, Wd), jnp.float32)

    x_out, pred = image_pred_forward(x_nchw, params)
    jax.block_until_ready((x_out, pred))

    x_ref, p_ref = ref_forward(x_nchw, params)
    assert x_out.shape == (N, C, H, Wd) and pred.shape == (N, 3, H, Wd)
    # tolerance accounts for bf16 MXU operands (f32 accumulation)
    assert jnp.allclose(x_out, x_ref, atol=3e-2, rtol=3e-2)
    assert jnp.allclose(pred, p_ref, atol=3e-2, rtol=3e-2)
    print("KERNEL_OK")
</pallas_src>

<mosaic_0001>
module attributes {stable_mosaic.version = 11 : i64} {
  func.func @_image_pred_kernel(%arg0: i32, %arg1: memref<1x16x16x32xf32, #tpu.memory_space<vmem>>, %arg2: memref<288x32xbf16, #tpu.memory_space<vmem>>, %arg3: memref<1x32xf32, #tpu.memory_space<vmem>>, %arg4: memref<2x32xf32, #tpu.memory_space<vmem>>, %arg5: memref<2x32xf32, #tpu.memory_space<vmem>>, %arg6: memref<98xf32, #tpu.memory_space<smem>>, %arg7: memref<288x3xbf16, #tpu.memory_space<vmem>>, %arg8: memref<3x1xf32, #tpu.memory_space<vmem>>, %arg9: memref<1x32x256xf32, #tpu.memory_space<vmem>>, %arg10: memref<1x3x256xf32, #tpu.memory_space<vmem>>, %arg11: memref<1x18x18x32xf32, #tpu.memory_space<vmem>>) attributes {dimension_semantics = [#tpu.dimension_semantics<parallel>], iteration_bounds = array<i64: 2>, scalar_prefetch = 0 : i64, scratch_operands = 1 : i64, tpu.core_type = #tpu.core_type<tc>, window_params = [{transform_indices = @transform_0, window_bounds = array<i64: 1, 16, 16, 32>}, {pipeline_mode = #tpu.pipeline_mode<synchronous>, transform_indices = @transform_1, window_bounds = array<i64: 288, 32>}, {pipeline_mode = #tpu.pipeline_mode<synchronous>, transform_indices = @transform_2, window_bounds = array<i64: 1, 32>}, {pipeline_mode = #tpu.pipeline_mode<synchronous>, transform_indices = @transform_3, window_bounds = array<i64: 2, 32>}, {pipeline_mode = #tpu.pipeline_mode<synchronous>, transform_indices = @transform_4, window_bounds = array<i64: 2, 32>}, {transform_indices = @transform_5, window_bounds = array<i64: 98>}, {pipeline_mode = #tpu.pipeline_mode<synchronous>, transform_indices = @transform_6, window_bounds = array<i64: 288, 3>}, {pipeline_mode = #tpu.pipeline_mode<synchronous>, transform_indices = @transform_7, window_bounds = array<i64: 3, 1>}, {transform_indices = @transform_8, window_bounds = array<i64: 1, 32, 256>}, {transform_indices = @transform_9, window_bounds = array<i64: 1, 3, 256>}]} {
    %cst = arith.constant 0.000000e+00 : f32
    %0 = vector.broadcast %cst : f32 to vector<1x1x18x32xf32>
    %cst_0 = arith.constant 0.000000e+00 : f32
    %1 = vector.broadcast %cst_0 : f32 to vector<1x18x1x32xf32>
    %c0 = arith.constant 0 : index
    %c0_1 = arith.constant 0 : index
    %c0_2 = arith.constant 0 : index
    %c0_3 = arith.constant 0 : index
    %2 = vector.load %arg11[%c0, %c0_1, %c0_2, %c0_3] : memref<1x18x18x32xf32, #tpu.memory_space<vmem>>, vector<1x1x18x32xf32>
    tpu.vector_store %arg11[%c0, %c0_1, %c0_2, %c0_3], %0 {strides = array<i32>} : memref<1x18x18x32xf32, #tpu.memory_space<vmem>>, vector<1x1x18x32xf32>,
    %c0_4 = arith.constant 0 : index
    %c17 = arith.constant 17 : index
    %c0_5 = arith.constant 0 : index
    %c0_6 = arith.constant 0 : index
    %3 = vector.load %arg11[%c0_4, %c17, %c0_5, %c0_6] : memref<1x18x18x32xf32, #tpu.memory_space<vmem>>, vector<1x1x18x32xf32>
    tpu.vector_store %arg11[%c0_4, %c17, %c0_5, %c0_6], %0 {strides = array<i32>} : memref<1x18x18x32xf32, #tpu.memory_space<vmem>>, vector<1x1x18x32xf32>,
    %c0_7 = arith.constant 0 : index
    %c0_8 = arith.constant 0 : index
    %c0_9 = arith.constant 0 : index
    %c0_10 = arith.constant 0 : index
    %4 = vector.load %arg11[%c0_7, %c0_8, %c0_9, %c0_10] : memref<1x18x18x32xf32, #tpu.memory_space<vmem>>, vector<1x18x1x32xf32>
    tpu.vector_store %arg11[%c0_7, %c0_8, %c0_9, %c0_10], %1 {strides = array<i32>} : memref<1x18x18x32xf32, #tpu.memory_space<vmem>>, vector<1x18x1x32xf32>,
    %c0_11 = arith.constant 0 : index
    %c0_12 = arith.constant 0 : index
    %c17_13 = arith.constant 17 : index
    %c0_14 = arith.constant 0 : index
    %5 = vector.load %arg11[%c0_11, %c0_12, %c17_13, %c0_14] : memref<1x18x18x32xf32, #tpu.memory_space<vmem>>, vector<1x18x1x32xf32>
    tpu.vector_store %arg11[%c0_11, %c0_12, %c17_13, %c0_14], %1 {strides = array<i32>} : memref<1x18x18x32xf32, #tpu.memory_space<vmem>>, vector<1x18x1x32xf32>,
    %c0_15 = arith.constant 0 : index
    %c0_16 = arith.constant 0 : index
    %c0_17 = arith.constant 0 : index
    %c0_18 = arith.constant 0 : index
    %6 = vector.load %arg1[%c0_15, %c0_16, %c0_17, %c0_18] : memref<1x16x16x32xf32, #tpu.memory_space<vmem>>, vector<1x16x16x32xf32>
    %c0_19 = arith.constant 0 : index
    %c1 = arith.constant 1 : index
    %c1_20 = arith.constant 1 : index
    %c0_21 = arith.constant 0 : index
    %7 = vector.load %arg11[%c0_19, %c1, %c1_20, %c0_21] : memref<1x18x18x32xf32, #tpu.memory_space<vmem>>, vector<1x16x16x32xf32>
    tpu.vector_store %arg11[%c0_19, %c1, %c1_20, %c0_21], %6 {strides = array<i32>} : memref<1x18x18x32xf32, #tpu.memory_space<vmem>>, vector<1x16x16x32xf32>,
    %c0_22 = arith.constant 0 : index
    %c0_23 = arith.constant 0 : index
    %c0_24 = arith.constant 0 : index
    %c0_25 = arith.constant 0 : index
    %8 = vector.load %arg11[%c0_22, %c0_23, %c0_24, %c0_25] : memref<1x18x18x32xf32, #tpu.memory_space<vmem>>, vector<1x16x16x32xf32>
    %9 = arith.truncf %8 : vector<1x16x16x32xf32> to vector<1x16x16x32xbf16>
    %10 = vector.shape_cast %9 : vector<1x16x16x32xbf16> to vector<256x32xbf16>
    %c0_26 = arith.constant 0 : index
    %c0_27 = arith.constant 0 : index
    %c1_28 = arith.constant 1 : index
    %c0_29 = arith.constant 0 : index
    %11 = vector.load %arg11[%c0_26, %c0_27, %c1_28, %c0_29] : memref<1x18x18x32xf32, #tpu.memory_space<vmem>>, vector<1x16x16x32xf32>
    %12 = arith.truncf %11 : vector<1x16x16x32xf32> to vector<1x16x16x32xbf16>
    %13 = vector.shape_cast %12 : vector<1x16x16x32xbf16> to vector<256x32xbf16>
    %c0_30 = arith.constant 0 : index
    %c0_31 = arith.constant 0 : index
    %c2 = arith.constant 2 : index
    %c0_32 = arith.constant 0 : index
    %14 = vector.load %arg11[%c0_30, %c0_31, %c2, %c0_32] : memref<1x18x18x32xf32, #tpu.memory_space<vmem>>, vector<1x16x16x32xf32>
    %15 = arith.truncf %14 : vector<1x16x16x32xf32> to vector<1x16x16x32xbf16>
    %16 = vector.shape_cast %15 : vector<1x16x16x32xbf16> to vector<256x32xbf16>
    %c0_33 = arith.constant 0 : index
    %c1_34 = arith.constant 1 : index
    %c0_35 = arith.constant 0 : index
    %c0_36 = arith.constant 0 : index
    %17 = vector.load %arg11[%c0_33, %c1_34, %c0_35, %c0_36] : memref<1x18x18x32xf32, #tpu.memory_space<vmem>>, vector<1x16x16x32xf32>
    %18 = arith.truncf %17 : vector<1x16x16x32xf32> to vector<1x16x16x32xbf16>
    %19 = vector.shape_cast %18 : vector<1x16x16x32xbf16> to vector<256x32xbf16>
    %c0_37 = arith.constant 0 : index
    %c1_38 = arith.constant 1 : index
    %c1_39 = arith.constant 1 : index
    %c0_40 = arith.constant 0 : index
    %20 = vector.load %arg11[%c0_37, %c1_38, %c1_39, %c0_40] : memref<1x18x18x32xf32, #tpu.memory_space<vmem>>, vector<1x16x16x32xf32>
    %21 = arith.truncf %20 : vector<1x16x16x32xf32> to vector<1x16x16x32xbf16>
    %22 = vector.shape_cast %21 : vector<1x16x16x32xbf16> to vector<256x32xbf16>
    %c0_41 = arith.constant 0 : index
    %c1_42 = arith.constant 1 : index
    %c2_43 = arith.constant 2 : index
    %c0_44 = arith.constant 0 : index
    %23 = vector.load %arg11[%c0_41, %c1_42, %c2_43, %c0_44] : memref<1x18x18x32xf32, #tpu.memory_space<vmem>>, vector<1x16x16x32xf32>
    %24 = arith.truncf %23 : vector<1x16x16x32xf32> to vector<1x16x16x32xbf16>
    %25 = vector.shape_cast %24 : vector<1x16x16x32xbf16> to vector<256x32xbf16>
    %c0_45 = arith.constant 0 : index
    %c2_46 = arith.constant 2 : index
    %c0_47 = arith.constant 0 : index
    %c0_48 = arith.constant 0 : index
    %26 = vector.load %arg11[%c0_45, %c2_46, %c0_47, %c0_48] : memref<1x18x18x32xf32, #tpu.memory_space<vmem>>, vector<1x16x16x32xf32>
    %27 = arith.truncf %26 : vector<1x16x16x32xf32> to vector<1x16x16x32xbf16>
    %28 = vector.shape_cast %27 : vector<1x16x16x32xbf16> to vector<256x32xbf16>
    %c0_49 = arith.constant 0 : index
    %c2_50 = arith.constant 2 : index
    %c1_51 = arith.constant 1 : index
    %c0_52 = arith.constant 0 : index
    %29 = vector.load %arg11[%c0_49, %c2_50, %c1_51, %c0_52] : memref<1x18x18x32xf32, #tpu.memory_space<vmem>>, vector<1x16x16x32xf32>
    %30 = arith.truncf %29 : vector<1x16x16x32xf32> to vector<1x16x16x32xbf16>
    %31 = vector.shape_cast %30 : vector<1x16x16x32xbf16> to vector<256x32xbf16>
    %c0_53 = arith.constant 0 : index
    %c2_54 = arith.constant 2 : index
    %c2_55 = arith.constant 2 : index
    %c0_56 = arith.constant 0 : index
    %32 = vector.load %arg11[%c0_53, %c2_54, %c2_55, %c0_56] : memref<1x18x18x32xf32, #tpu.memory_space<vmem>>, vector<1x16x16x32xf32>
    %33 = arith.truncf %32 : vector<1x16x16x32xf32> to vector<1x16x16x32xbf16>
    %34 = vector.shape_cast %33 : vector<1x16x16x32xbf16> to vector<256x32xbf16>
    %35 = tpu.concatenate %10, %13, %16, %19, %22, %25, %28, %31, %34 in 1 : vector<256x32xbf16>, vector<256x32xbf16>, vector<256x32xbf16>, vector<256x32xbf16>, vector<256x32xbf16>, vector<256x32xbf16>, vector<256x32xbf16>, vector<256x32xbf16>, vector<256x32xbf16> -> vector<256x288xbf16>
    %c0_57 = arith.constant 0 : index
    %c0_58 = arith.constant 0 : index
    %36 = vector.load %arg2[%c0_57, %c0_58] : memref<288x32xbf16, #tpu.memory_space<vmem>>, vector<288x32xbf16>
    %cst_59 = arith.constant dense<0.000000e+00> : vector<256x32xf32>
    %37 = tpu.matmul %35, %36, %cst_59 {dimension_numbers = #tpu.dot_dimension_numbers<[1], [0], [0], [1], [0, 0, 1, 1], [], []>} : vector<256x288xbf16>, vector<288x32xbf16>, vector<256x32xf32> -> vector<256x32xf32>
    %c0_60 = arith.constant 0 : index
    %c0_61 = arith.constant 0 : index
    %38 = vector.load %arg3[%c0_60, %c0_61] : memref<1x32xf32, #tpu.memory_space<vmem>>, vector<1x32xf32>
    %39 = vector.broadcast %38 : vector<1x32xf32> to vector<256x32xf32>
    %40 = arith.addf %37, %39 : vector<256x32xf32>
    %cst_62 = arith.constant 0.000000e+00 : f32
    %41 = vector.broadcast %cst_62 : f32 to vector<256x32xf32>
    %42 = arith.cmpf ogt, %40, %41 : vector<256x32xf32>
    %cst_63 = arith.constant 0.00999999977 : f32
    %43 = vector.broadcast %cst_63 : f32 to vector<256x32xf32>
    %44 = arith.mulf %43, %40 : vector<256x32xf32>
    %45 = arith.select %42, %40, %44 : vector<256x32xi1>, vector<256x32xf32>
    %46 = vector.shape_cast %45 : vector<256x32xf32> to vector<1x256x32xf32>
    %cst_64 = arith.constant dense<0.000000e+00> : vector<1x32xf32>
    %47 = vector.multi_reduction <add>, %46, %cst_64 [1] : vector<1x256x32xf32> to vector<1x32xf32>
    %cst_65 = arith.constant 2.560000e+02 : f32
    %48 = vector.broadcast %cst_65 : f32 to vector<1x32xf32>
    %49 = arith.divf %47, %48 : vector<1x32xf32>
    %cst_66 = arith.constant dense<0xFF800000> : vector<1x32xf32>
    %50 = vector.multi_reduction <maximumf>, %46, %cst_66 [1] : vector<1x256x32xf32> to vector<1x32xf32>
    %cst_67 = arith.constant 0.000000e+00 : f32
    %51 = vector.broadcast %cst_67 : f32 to vector<1x32xf32>
    %c0_68 = arith.constant 0 : index
    %c0_69 = arith.constant 0 : index
    %52 = vector.load %arg4[%c0_68, %c0_69] : memref<2x32xf32, #tpu.memory_space<vmem>>, vector<1x32xf32>
    %53 = arith.mulf %49, %52 : vector<1x32xf32>
    %cst_70 = arith.constant dense<0.000000e+00> : vector<1xf32>
    %54 = vector.multi_reduction <add>, %53, %cst_70 [1] : vector<1x32xf32> to vector<1xf32>
    %55 = vector.shape_cast %54 : vector<1xf32> to vector<1x1xf32>
    %cst_71 = arith.constant 0.000000e+00 : f32
    %56 = vector.broadcast %cst_71 : f32 to vector<1x1xf32>
    %57 = arith.maximumf %55, %56 : vector<1x1xf32>
    %c0_72 = arith.constant 0 : index
    %c0_73 = arith.constant 0 : index
    %58 = vector.load %arg5[%c0_72, %c0_73] : memref<2x32xf32, #tpu.memory_space<vmem>>, vector<1x32xf32>
    %59 = vector.broadcast %57 : vector<1x1xf32> to vector<1x32xf32>
    %60 = arith.mulf %59, %58 : vector<1x32xf32>
    %61 = arith.addf %51, %60 : vector<1x32xf32>
    %c1_74 = arith.constant 1 : index
    %c0_75 = arith.constant 0 : index
    %62 = vector.load %arg4[%c1_74, %c0_75] : memref<2x32xf32, #tpu.memory_space<vmem>>, vector<1x32xf32>
    %63 = arith.mulf %49, %62 : vector<1x32xf32>
    %cst_76 = arith.constant dense<0.000000e+00> : vector<1xf32>
    %64 = vector.multi_reduction <add>, %63, %cst_76 [1] : vector<1x32xf32> to vector<1xf32>
    %65 = vector.shape_cast %64 : vector<1xf32> to vector<1x1xf32>
    %cst_77 = arith.constant 0.000000e+00 : f32
    %66 = vector.broadcast %cst_77 : f32 to vector<1x1xf32>
    %67 = arith.maximumf %65, %66 : vector<1x1xf32>
    %c1_78 = arith.constant 1 : index
    %c0_79 = arith.constant 0 : index
    %68 = vector.load %arg5[%c1_78, %c0_79] : memref<2x32xf32, #tpu.memory_space<vmem>>, vector<1x32xf32>
    %69 = vector.broadcast %67 : vector<1x1xf32> to vector<1x32xf32>
    %70 = arith.mulf %69, %68 : vector<1x32xf32>
    %71 = arith.addf %61, %70 : vector<1x32xf32>
    %cst_80 = arith.constant 0.000000e+00 : f32
    %72 = vector.broadcast %cst_80 : f32 to vector<1x32xf32>
    %c0_81 = arith.constant 0 : index
    %c0_82 = arith.constant 0 : index
    %73 = vector.load %arg4[%c0_81, %c0_82] : memref<2x32xf32, #tpu.memory_space<vmem>>, vector<1x32xf32>
    %74 = arith.mulf %50, %73 : vector<1x32xf32>
    %cst_83 = arith.constant dense<0.000000e+00> : vector<1xf32>
    %75 = vector.multi_reduction <add>, %74, %cst_83 [1] : vector<1x32xf32> to vector<1xf32>
    %76 = vector.shape_cast %75 : vector<1xf32> to vector<1x1xf32>
    %cst_84 = arith.constant 0.000000e+00 : f32
    %77 = vector.broadcast %cst_84 : f32 to vector<1x1xf32>
    %78 = arith.maximumf %76, %77 : vector<1x1xf32>
    %c0_85 = arith.constant 0 : index
    %c0_86 = arith.constant 0 : index
    %79 = vector.load %arg5[%c0_85, %c0_86] : memref<2x32xf32, #tpu.memory_space<vmem>>, vector<1x32xf32>
    %80 = vector.broadcast %78 : vector<1x1xf32> to vector<1x32xf32>
    %81 = arith.mulf %80, %79 : vector<1x32xf32>
    %82 = arith.addf %72, %81 : vector<1x32xf32>
    %c1_87 = arith.constant 1 : index
    %c0_88 = arith.constant 0 : index
    %83 = vector.load %arg4[%c1_87, %c0_88] : memref<2x32xf32, #tpu.memory_space<vmem>>, vector<1x32xf32>
    %84 = arith.mulf %50, %83 : vector<1x32xf32>
    %cst_89 = arith.constant dense<0.000000e+00> : vector<1xf32>
    %85 = vector.multi_reduction <add>, %84, %cst_89 [1] : vector<1x32xf32> to vector<1xf32>
    %86 = vector.shape_cast %85 : vector<1xf32> to vector<1x1xf32>
    %cst_90 = arith.constant 0.000000e+00 : f32
    %87 = vector.broadcast %cst_90 : f32 to vector<1x1xf32>
    %88 = arith.maximumf %86, %87 : vector<1x1xf32>
    %c1_91 = arith.constant 1 : index
    %c0_92 = arith.constant 0 : index
    %89 = vector.load %arg5[%c1_91, %c0_92] : memref<2x32xf32, #tpu.memory_space<vmem>>, vector<1x32xf32>
    %90 = vector.broadcast %88 : vector<1x1xf32> to vector<1x32xf32>
    %91 = arith.mulf %90, %89 : vector<1x32xf32>
    %92 = arith.addf %82, %91 : vector<1x32xf32>
    %93 = arith.addf %71, %92 : vector<1x32xf32>
    %94 = arith.negf %93 : vector<1x32xf32>
    %95 = math.exp %94 : vector<1x32xf32>
    %cst_93 = arith.constant 1.000000e+00 : f32
    %96 = vector.broadcast %cst_93 : f32 to vector<1x32xf32>
    %97 = arith.addf %96, %95 : vector<1x32xf32>
    %98 = arith.divf %96, %97 : vector<1x32xf32>
    %99 = vector.shape_cast %98 : vector<1x32xf32> to vector<1x1x32xf32>
    %100 = vector.broadcast %99 : vector<1x1x32xf32> to vector<1x256x32xf32>
    %101 = arith.mulf %46, %100 : vector<1x256x32xf32>
    %102 = vector.shape_cast %101 : vector<1x256x32xf32> to vector<1x16x16x32xf32>
    %cst_94 = arith.constant dense<0.000000e+00> : vector<1x16x16xf32>
    %103 = vector.multi_reduction <add>, %102, %cst_94 [3] : vector<1x16x16x32xf32> to vector<1x16x16xf32>
    %cst_95 = arith.constant 3.200000e+01 : f32
    %104 = vector.broadcast %cst_95 : f32 to vector<1x16x16xf32>
    %105 = arith.divf %103, %104 : vector<1x16x16xf32>
    %cst_96 = arith.constant dense<0xFF800000> : vector<1x16x16xf32>
    %106 = vector.multi_reduction <maximumf>, %102, %cst_96 [3] : vector<1x16x16x32xf32> to vector<1x16x16xf32>
    %cst_97 = arith.constant 0.000000e+00 : f32
    %107 = vector.broadcast %cst_97 : f32 to vector<1x3x16xf32>
    %108 = tpu.concatenate %107, %105, %107 in 1 : vector<1x3x16xf32>, vector<1x16x16xf32>, vector<1x3x16xf32> -> vector<1x22x16xf32>
    %cst_98 = arith.constant 0.000000e+00 : f32
    %109 = vector.broadcast %cst_98 : f32 to vector<1x22x3xf32>
    %110 = tpu.concatenate %109, %108, %109 in 2 : vector<1x22x3xf32>, vector<1x22x16xf32>, vector<1x22x3xf32> -> vector<1x22x22xf32>
    %cst_99 = arith.constant 0.000000e+00 : f32
    %111 = vector.broadcast %cst_99 : f32 to vector<1x3x16xf32>
    %112 = tpu.concatenate %111, %106, %111 in 1 : vector<1x3x16xf32>, vector<1x16x16xf32>, vector<1x3x16xf32> -> vector<1x22x16xf32>
    %cst_100 = arith.constant 0.000000e+00 : f32
    %113 = vector.broadcast %cst_100 : f32 to vector<1x22x3xf32>
    %114 = tpu.concatenate %113, %112, %113 in 2 : vector<1x22x3xf32>, vector<1x22x16xf32>, vector<1x22x3xf32> -> vector<1x22x22xf32>
    %115 = vector.extract_strided_slice %110 {offsets = [0, 0, 0], sizes = [1, 22, 16], strides = [1, 1, 1]} : vector<1x22x22xf32> to vector<1x22x16xf32>
    %116 = vector.extract_strided_slice %110 {offsets = [0, 0, 1], sizes = [1, 22, 16], strides = [1, 1, 1]} : vector<1x22x22xf32> to vector<1x22x16xf32>
    %117 = vector.extract_strided_slice %110 {offsets = [0, 0, 2], sizes = [1, 22, 16], strides = [1, 1, 1]} : vector<1x22x22xf32> to vector<1x22x16xf32>
    %118 = vector.extract_strided_slice %110 {offsets = [0, 0, 3], sizes = [1, 22, 16], strides = [1, 1, 1]} : vector<1x22x22xf32> to vector<1x22x16xf32>
    %119 = vector.extract_strided_slice %110 {offsets = [0, 0, 4], sizes = [1, 22, 16], strides = [1, 1, 1]} : vector<1x22x22xf32> to vector<1x22x16xf32>
    %120 = vector.extract_strided_slice %110 {offsets = [0, 0, 5], sizes = [1, 22, 16], strides = [1, 1, 1]} : vector<1x22x22xf32> to vector<1x22x16xf32>
    %121 = vector.extract_strided_slice %110 {offsets = [0, 0, 6], sizes = [1, 22, 16], strides = [1, 1, 1]} : vector<1x22x22xf32> to vector<1x22x16xf32>
    %122 = vector.extract_strided_slice %114 {offsets = [0, 0, 0], sizes = [1, 22, 16], strides = [1, 1, 1]} : vector<1x22x22xf32> to vector<1x22x16xf32>
    %123 = vector.extract_strided_slice %114 {offsets = [0, 0, 1], sizes = [1, 22, 16], strides = [1, 1, 1]} : vector<1x22x22xf32> to vector<1x22x16xf32>
    %124 = vector.extract_strided_slice %114 {offsets = [0, 0, 2], sizes = [1, 22, 16], strides = [1, 1, 1]} : vector<1x22x22xf32> to vector<1x22x16xf32>
    %125 = vector.extract_strided_slice %114 {offsets = [0, 0, 3], sizes = [1, 22, 16], strides = [1, 1, 1]} : vector<1x22x22xf32> to vector<1x22x16xf32>
    %126 = vector.extract_strided_slice %114 {offsets = [0, 0, 4], sizes = [1, 22, 16], strides = [1, 1, 1]} : vector<1x22x22xf32> to vector<1x22x16xf32>
    %127 = vector.extract_strided_slice %114 {offsets = [0, 0, 5], sizes = [1, 22, 16], strides = [1, 1, 1]} : vector<1x22x22xf32> to vector<1x22x16xf32>
    %128 = vector.extract_strided_slice %114 {offsets = [0, 0, 6], sizes = [1, 22, 16], strides = [1, 1, 1]} : vector<1x22x22xf32> to vector<1x22x16xf32>
    %cst_101 = arith.constant 0.000000e+00 : f32
    %129 = vector.broadcast %cst_101 : f32 to vector<1x16x16xf32>
    %c0_102 = arith.constant 0 : index
    %130 = memref.load %arg6[%c0_102] : memref<98xf32, #tpu.memory_space<smem>>
    %c1_103 = arith.constant 1 : index
    %131 = memref.load %arg6[%c1_103] : memref<98xf32, #tpu.memory_space<smem>>
    %132 = vector.extract_strided_slice %115 {offsets = [0, 0, 0], sizes = [1, 16, 16], strides = [1, 1, 1]} : vector<1x22x16xf32> to vector<1x16x16xf32>
    %133 = vector.broadcast %130 : f32 to vector<1x16x16xf32>
    %134 = arith.mulf %132, %133 : vector<1x16x16xf32>
    %135 = arith.addf %129, %134 : vector<1x16x16xf32>
    %136 = vector.extract_strided_slice %122 {offsets = [0, 0, 0], sizes = [1, 16, 16], strides = [1, 1, 1]} : vector<1x22x16xf32> to vector<1x16x16xf32>
    %137 = vector.broadcast %131 : f32 to vector<1x16x16xf32>
    %138 = arith.mulf %136, %137 : vector<1x16x16xf32>
    %139 = arith.addf %135, %138 : vector<1x16x16xf32>
    %c2_104 = arith.constant 2 : index
    %140 = memref.load %arg6[%c2_104] : memref<98xf32, #tpu.memory_space<smem>>
    %c3 = arith.constant 3 : index
    %141 = memref.load %arg6[%c3] : memref<98xf32, #tpu.memory_space<smem>>
    %142 = vector.extract_strided_slice %116 {offsets = [0, 0, 0], sizes = [1, 16, 16], strides = [1, 1, 1]} : vector<1x22x16xf32> to vector<1x16x16xf32>
    %143 = vector.broadcast %140 : f32 to vector<1x16x16xf32>
    %144 = arith.mulf %142, %143 : vector<1x16x16xf32>
    %145 = arith.addf %139, %144 : vector<1x16x16xf32>
    %146 = vector.extract_strided_slice %123 {offsets = [0, 0, 0], sizes = [1, 16, 16], strides = [1, 1, 1]} : vector<1x22x16xf32> to vector<1x16x16xf32>
    %147 = vector.broadcast %141 : f32 to vector<1x16x16xf32>
    %148 = arith.mulf %146, %147 : vector<1x16x16xf32>
    %149 = arith.addf %145, %148 : vector<1x16x16xf32>
    %c4 = arith.constant 4 : index
    %150 = memref.load %arg6[%c4] : memref<98xf32, #tpu.memory_space<smem>>
    %c5 = arith.constant 5 : index
    %151 = memref.load %arg6[%c5] : memref<98xf32, #tpu.memory_space<smem>>
    %152 = vector.extract_strided_slice %117 {offsets = [0, 0, 0], sizes = [1, 16, 16], strides = [1, 1, 1]} : vector<1x22x16xf32> to vector<1x16x16xf32>
    %153 = vector.broadcast %150 : f32 to vector<1x16x16xf32>
    %154 = arith.mulf %152, %153 : vector<1x16x16xf32>
    %155 = arith.addf %149, %154 : vector<1x16x16xf32>
    %156 = vector.extract_strided_slice %124 {offsets = [0, 0, 0], sizes = [1, 16, 16], strides = [1, 1, 1]} : vector<1x22x16xf32> to vector<1x16x16xf32>
    %157 = vector.broadcast %151 : f32 to vector<1x16x16xf32>
    %158 = arith.mulf %156, %157 : vector<1x16x16xf32>
    %159 = arith.addf %155, %158 : vector<1x16x16xf32>
    %c6 = arith.constant 6 : index
    %160 = memref.load %arg6[%c6] : memref<98xf32, #tpu.memory_space<smem>>
    %c7 = arith.constant 7 : index
    %161 = memref.load %arg6[%c7] : memref<98xf32, #tpu.memory_space<smem>>
    %162 = vector.extract_strided_slice %118 {offsets = [0, 0, 0], sizes = [1, 16, 16], strides = [1, 1, 1]} : vector<1x22x16xf32> to vector<1x16x16xf32>
    %163 = vector.broadcast %160 : f32 to vector<1x16x16xf32>
    %164 = arith.mulf %162, %163 : vector<1x16x16xf32>
    %165 = arith.addf %159, %164 : vector<1x16x16xf32>
    %166 = vector.extract_strided_slice %125 {offsets = [0, 0, 0], sizes = [1, 16, 16], strides = [1, 1, 1]} : vector<1x22x16xf32> to vector<1x16x16xf32>
    %167 = vector.broadcast %161 : f32 to vector<1x16x16xf32>
    %168 = arith.mulf %166, %167 : vector<1x16x16xf32>
    %169 = arith.addf %165, %168 : vector<1x16x16xf32>
    %c8 = arith.constant 8 : index
    %170 = memref.load %arg6[%c8] : memref<98xf32, #tpu.memory_space<smem>>
    %c9 = arith.constant 9 : index
    %171 = memref.load %arg6[%c9] : memref<98xf32, #tpu.memory_space<smem>>
    %172 = vector.extract_strided_slice %119 {offsets = [0, 0, 0], sizes = [1, 16, 16], strides = [1, 1, 1]} : vector<1x22x16xf32> to vector<1x16x16xf32>
    %173 = vector.broadcast %170 : f32 to vector<1x16x16xf32>
    %174 = arith.mulf %172, %173 : vector<1x16x16xf32>
    %175 = arith.addf %169, %174 : vector<1x16x16xf32>
    %176 = vector.extract_strided_slice %126 {offsets = [0, 0, 0], sizes = [1, 16, 16], strides = [1, 1, 1]} : vector<1x22x16xf32> to vector<1x16x16xf32>
    %177 = vector.broadcast %171 : f32 to vector<1x16x16xf32>
    %178 = arith.mulf %176, %177 : vector<1x16x16xf32>
    %179 = arith.addf %175, %178 : vector<1x16x16xf32>
    %c10 = arith.constant 10 : index
    %180 = memref.load %arg6[%c10] : memref<98xf32, #tpu.memory_space<smem>>
    %c11 = arith.constant 11 : index
    %181 = memref.load %arg6[%c11] : memref<98xf32, #tpu.memory_space<smem>>
    %182 = vector.extract_strided_slice %120 {offsets = [0, 0, 0], sizes = [1, 16, 16], strides = [1, 1, 1]} : vector<1x22x16xf32> to vector<1x16x16xf32>
    %183 = vector.broadcast %180 : f32 to vector<1x16x16xf32>
    %184 = arith.mulf %182, %183 : vector<1x16x16xf32>
    %185 = arith.addf %179, %184 : vector<1x16x16xf32>
    %186 = vector.extract_strided_slice %127 {offsets = [0, 0, 0], sizes = [1, 16, 16], strides = [1, 1, 1]} : vector<1x22x16xf32> to vector<1x16x16xf32>
    %187 = vector.broadcast %181 : f32 to vector<1x16x16xf32>
    %188 = arith.mulf %186, %187 : vector<1x16x16xf32>
    %189 = arith.addf %185, %188 : vector<1x16x16xf32>
    %c12 = arith.constant 12 : index
    %190 = memref.load %arg6[%c12] : memref<98xf32, #tpu.memory_space<smem>>
    %c13 = arith.constant 13 : index
    %191 = memref.load %arg6[%c13] : memref<98xf32, #tpu.memory_space<smem>>
    %192 = vector.extract_strided_slice %121 {offsets = [0, 0, 0], sizes = [1, 16, 16], strides = [1, 1, 1]} : vector<1x22x16xf32> to vector<1x16x16xf32>
    %193 = vector.broadcast %190 : f32 to vector<1x16x16xf32>
    %194 = arith.mulf %192, %193 : vector<1x16x16xf32>
    %195 = arith.addf %189, %194 : vector<1x16x16xf32>
    %196 = vector.extract_strided_slice %128 {offsets = [0, 0, 0], sizes = [1, 16, 16], strides = [1, 1, 1]} : vector<1x22x16xf32> to vector<1x16x16xf32>
    %197 = vector.broadcast %191 : f32 to vector<1x16x16xf32>
    %198 = arith.mulf %196, %197 : vector<1x16x16xf32>
    %199 = arith.addf %195, %198 : vector<1x16x16xf32>
    %c14 = arith.constant 14 : index
    %200 = memref.load %arg6[%c14] : memref<98xf32, #tpu.memory_space<smem>>
    %c15 = arith.constant 15 : index
    %201 = memref.load %arg6[%c15] : memref<98xf32, #tpu.memory_space<smem>>
    %202 = vector.extract_strided_slice %115 {offsets = [0, 1, 0], sizes = [1, 16, 16], strides = [1, 1, 1]} : vector<1x22x16xf32> to vector<1x16x16xf32>
    %203 = vector.broadcast %200 : f32 to vector<1x16x16xf32>
    %204 = arith.mulf %202, %203 : vector<1x16x16xf32>
    %205 = arith.addf %199, %204 : vector<1x16x16xf32>
    %206 = vector.extract_strided_slice %122 {offsets = [0, 1, 0], sizes = [1, 16, 16], strides = [1, 1, 1]} : vector<1x22x16xf32> to vector<1x16x16xf32>
    %207 = vector.broadcast %201 : f32 to vector<1x16x16xf32>
    %208 = arith.mulf %206, %207 : vector<1x16x16xf32>
    %209 = arith.addf %205, %208 : vector<1x16x16xf32>
    %c16 = arith.constant 16 : index
    %210 = memref.load %arg6[%c16] : memref<98xf32, #tpu.memory_space<smem>>
    %c17_105 = arith.constant 17 : index
    %211 = memref.load %arg6[%c17_105] : memref<98xf32, #tpu.memory_space<smem>>
    %212 = vector.extract_strided_slice %116 {offsets = [0, 1, 0], sizes = [1, 16, 16], strides = [1, 1, 1]} : vector<1x22x16xf32> to vector<1x16x16xf32>
    %213 = vector.broadcast %210 : f32 to vector<1x16x16xf32>
    %214 = arith.mulf %212, %213 : vector<1x16x16xf32>
    %215 = arith.addf %209, %214 : vector<1x16x16xf32>
    %216 = vector.extract_strided_slice %123 {offsets = [0, 1, 0], sizes = [1, 16, 16], strides = [1, 1, 1]} : vector<1x22x16xf32> to vector<1x16x16xf32>
    %217 = vector.broadcast %211 : f32 to vector<1x16x16xf32>
    %218 = arith.mulf %216, %217 : vector<1x16x16xf32>
    %219 = arith.addf %215, %218 : vector<1x16x16xf32>
    %c18 = arith.constant 18 : index
    %220 = memref.load %arg6[%c18] : memref<98xf32, #tpu.memory_space<smem>>
    %c19 = arith.constant 19 : index
    %221 = memref.load %arg6[%c19] : memref<98xf32, #tpu.memory_space<smem>>
    %222 = vector.extract_strided_slice %117 {offsets = [0, 1, 0], sizes = [1, 16, 16], strides = [1, 1, 1]} : vector<1x22x16xf32> to vector<1x16x16xf32>
    %223 = vector.broadcast %220 : f32 to vector<1x16x16xf32>
    %224 = arith.mulf %222, %223 : vector<1x16x16xf32>
    %225 = arith.addf %219, %224 : vector<1x16x16xf32>
    %226 = vector.extract_strided_slice %124 {offsets = [0, 1, 0], sizes = [1, 16, 16], strides = [1, 1, 1]} : vector<1x22x16xf32> to vector<1x16x16xf32>
    %227 = vector.broadcast %221 : f32 to vector<1x16x16xf32>
    %228 = arith.mulf %226, %227 : vector<1x16x16xf32>
    %229 = arith.addf %225, %228 : vector<1x16x16xf32>
    %c20 = arith.constant 20 : index
    %230 = memref.load %arg6[%c20] : memref<98xf32, #tpu.memory_space<smem>>
    %c21 = arith.constant 21 : index
    %231 = memref.load %arg6[%c21] : memref<98xf32, #tpu.memory_space<smem>>
    %232 = vector.extract_strided_slice %118 {offsets = [0, 1, 0], sizes = [1, 16, 16], strides = [1, 1, 1]} : vector<1x22x16xf32> to vector<1x16x16xf32>
    %233 = vector.broadcast %230 : f32 to vector<1x16x16xf32>
    %234 = arith.mulf %232, %233 : vector<1x16x16xf32>
    %235 = arith.addf %229, %234 : vector<1x16x16xf32>
    %236 = vector.extract_strided_slice %125 {offsets = [0, 1, 0], sizes = [1, 16, 16], strides = [1, 1, 1]} : vector<1x22x16xf32> to vector<1x16x16xf32>
    %237 = vector.broadcast %231 : f32 to vector<1x16x16xf32>
    %238 = arith.mulf %236, %237 : vector<1x16x16xf32>
    %239 = arith.addf %235, %238 : vector<1x16x16xf32>
    %c22 = arith.constant 22 : index
    %240 = memref.load %arg6[%c22] : memref<98xf32, #tpu.memory_space<smem>>
    %c23 = arith.constant 23 : index
    %241 = memref.load %arg6[%c23] : memref<98xf32, #tpu.memory_space<smem>>
    %242 = vector.extract_strided_slice %119 {offsets = [0, 1, 0], sizes = [1, 16, 16], strides = [1, 1, 1]} : vector<1x22x16xf32> to vector<1x16x16xf32>
    %243 = vector.broadcast %240 : f32 to vector<1x16x16xf32>
    %244 = arith.mulf %242, %243 : vector<1x16x16xf32>
    %245 = arith.addf %239, %244 : vector<1x16x16xf32>
    %246 = vector.extract_strided_slice %126 {offsets = [0, 1, 0], sizes = [1, 16, 16], strides = [1, 1, 1]} : vector<1x22x16xf32> to vector<1x16x16xf32>
    %247 = vector.broadcast %241 : f32 to vector<1x16x16xf32>
    %248 = arith.mulf %246, %247 : vector<1x16x16xf32>
    %249 = arith.addf %245, %248 : vector<1x16x16xf32>
    %c24 = arith.constant 24 : index
    %250 = memref.load %arg6[%c24] : memref<98xf32, #tpu.memory_space<smem>>
    %c25 = arith.constant 25 : index
    %251 = memref.load %arg6[%c25] : memref<98xf32, #tpu.memory_space<smem>>
    %252 = vector.extract_strided_slice %120 {offsets = [0, 1, 0], sizes = [1, 16, 16], strides = [1, 1, 1]} : vector<1x22x16xf32> to vector<1x16x16xf32>
    %253 = vector.broadcast %250 : f32 to vector<1x16x16xf32>
    %254 = arith.mulf %252, %253 : vector<1x16x16xf32>
    %255 = arith.addf %249, %254 : vector<1x16x16xf32>
    %256 = vector.extract_strided_slice %127 {offsets = [0, 1, 0], sizes = [1, 16, 16], strides = [1, 1, 1]} : vector<1x22x16xf32> to vector<1x16x16xf32>
    %257 = vector.broadcast %251 : f32 to vector<1x16x16xf32>
    %258 = arith.mulf %256, %257 : vector<1x16x16xf32>
    %259 = arith.addf %255, %258 : vector<1x16x16xf32>
    %c26 = arith.constant 26 : index
    %260 = memref.load %arg6[%c26] : memref<98xf32, #tpu.memory_space<smem>>
    %c27 = arith.constant 27 : index
    %261 = memref.load %arg6[%c27] : memref<98xf32, #tpu.memory_space<smem>>
    %262 = vector.extract_strided_slice %121 {offsets = [0, 1, 0], sizes = [1, 16, 16], strides = [1, 1, 1]} : vector<1x22x16xf32> to vector<1x16x16xf32>
    %263 = vector.broadcast %260 : f32 to vector<1x16x16xf32>
    %264 = arith.mulf %262, %263 : vector<1x16x16xf32>
    %265 = arith.addf %259, %264 : vector<1x16x16xf32>
    %266 = vector.extract_strided_slice %128 {offsets = [0, 1, 0], sizes = [1, 16, 16], strides = [1, 1, 1]} : vector<1x22x16xf32> to vector<1x16x16xf32>
    %267 = vector.broadcast %261 : f32 to vector<1x16x16xf32>
    %268 = arith.mulf %266, %267 : vector<1x16x16xf32>
    %269 = arith.addf %265, %268 : vector<1x16x16xf32>
    %c28 = arith.constant 28 : index
    %270 = memref.load %arg6[%c28] : memref<98xf32, #tpu.memory_space<smem>>
    %c29 = arith.constant 29 : index
    %271 = memref.load %arg6[%c29] : memref<98xf32, #tpu.memory_space<smem>>
    %272 = vector.extract_strided_slice %115 {offsets = [0, 2, 0], sizes = [1, 16, 16], strides = [1, 1, 1]} : vector<1x22x16xf32> to vector<1x16x16xf32>
    %273 = vector.broadcast %270 : f32 to vector<1x16x16xf32>
    %274 = arith.mulf %272, %273 : vector<1x16x16xf32>
    %275 = arith.addf %269, %274 : vector<1x16x16xf32>
    %276 = vector.extract_strided_slice %122 {offsets = [0, 2, 0], sizes = [1, 16, 16], strides = [1, 1, 1]} : vector<1x22x16xf32> to vector<1x16x16xf32>
    %277 = vector.broadcast %271 : f32 to vector<1x16x16xf32>
    %278 = arith.mulf %276, %277 : vector<1x16x16xf32>
    %279 = arith.addf %275, %278 : vector<1x16x16xf32>
    %c30 = arith.constant 30 : index
    %280 = memref.load %arg6[%c30] : memref<98xf32, #tpu.memory_space<smem>>
    %c31 = arith.constant 31 : index
    %281 = memref.load %arg6[%c31] : memref<98xf32, #tpu.memory_space<smem>>
    %282 = vector.extract_strided_slice %116 {offsets = [0, 2, 0], sizes = [1, 16, 16], strides = [1, 1, 1]} : vector<1x22x16xf32> to vector<1x16x16xf32>
    %283 = vector.broadcast %280 : f32 to vector<1x16x16xf32>
    %284 = arith.mulf %282, %283 : vector<1x16x16xf32>
    %285 = arith.addf %279, %284 : vector<1x16x16xf32>
    %286 = vector.extract_strided_slice %123 {offsets = [0, 2, 0], sizes = [1, 16, 16], strides = [1, 1, 1]} : vector<1x22x16xf32> to vector<1x16x16xf32>
    %287 = vector.broadcast %281 : f32 to vector<1x16x16xf32>
    %288 = arith.mulf %286, %287 : vector<1x16x16xf32>
    %289 = arith.addf %285, %288 : vector<1x16x16xf32>
    %c32 = arith.constant 32 : index
    %290 = memref.load %arg6[%c32] : memref<98xf32, #tpu.memory_space<smem>>
    %c33 = arith.constant 33 : index
    %291 = memref.load %arg6[%c33] : memref<98xf32, #tpu.memory_space<smem>>
    %292 = vector.extract_strided_slice %117 {offsets = [0, 2, 0], sizes = [1, 16, 16], strides = [1, 1, 1]} : vector<1x22x16xf32> to vector<1x16x16xf32>
    %293 = vector.broadcast %290 : f32 to vector<1x16x16xf32>
    %294 = arith.mulf %292, %293 : vector<1x16x16xf32>
    %295 = arith.addf %289, %294 : vector<1x16x16xf32>
    %296 = vector.extract_strided_slice %124 {offsets = [0, 2, 0], sizes = [1, 16, 16], strides = [1, 1, 1]} : vector<1x22x16xf32> to vector<1x16x16xf32>
    %297 = vector.broadcast %291 : f32 to vector<1x16x16xf32>
    %298 = arith.mulf %296, %297 : vector<1x16x16xf32>
    %299 = arith.addf %295, %298 : vector<1x16x16xf32>
    %c34 = arith.constant 34 : index
    %300 = memref.load %arg6[%c34] : memref<98xf32, #tpu.memory_space<smem>>
    %c35 = arith.constant 35 : index
    %301 = memref.load %arg6[%c35] : memref<98xf32, #tpu.memory_space<smem>>
    %302 = vector.extract_strided_slice %118 {offsets = [0, 2, 0], sizes = [1, 16, 16], strides = [1, 1, 1]} : vector<1x22x16xf32> to vector<1x16x16xf32>
    %303 = vector.broadcast %300 : f32 to vector<1x16x16xf32>
    %304 = arith.mulf %302, %303 : vector<1x16x16xf32>
    %305 = arith.addf %299, %304 : vector<1x16x16xf32>
    %306 = vector.extract_strided_slice %125 {offsets = [0, 2, 0], sizes = [1, 16, 16], strides = [1, 1, 1]} : vector<1x22x16xf32> to vector<1x16x16xf32>
    %307 = vector.broadcast %301 : f32 to vector<1x16x16xf32>
    %308 = arith.mulf %306, %307 : vector<1x16x16xf32>
    %309 = arith.addf %305, %308 : vector<1x16x16xf32>
    %c36 = arith.constant 36 : index
    %310 = memref.load %arg6[%c36] : memref<98xf32, #tpu.memory_space<smem>>
    %c37 = arith.constant 37 : index
    %311 = memref.load %arg6[%c37] : memref<98xf32, #tpu.memory_space<smem>>
    %312 = vector.extract_strided_slice %119 {offsets = [0, 2, 0], sizes = [1, 16, 16], strides = [1, 1, 1]} : vector<1x22x16xf32> to vector<1x16x16xf32>
    %313 = vector.broadcast %310 : f32 to vector<1x16x16xf32>
    %314 = arith.mulf %312, %313 : vector<1x16x16xf32>
    %315 = arith.addf %309, %314 : vector<1x16x16xf32>
    %316 = vector.extract_strided_slice %126 {offsets = [0, 2, 0], sizes = [1, 16, 16], strides = [1, 1, 1]} : vector<1x22x16xf32> to vector<1x16x16xf32>
    %317 = vector.broadcast %311 : f32 to vector<1x16x16xf32>
    %318 = arith.mulf %316, %317 : vector<1x16x16xf32>
    %319 = arith.addf %315, %318 : vector<1x16x16xf32>
    %c38 = arith.constant 38 : index
    %320 = memref.load %arg6[%c38] : memref<98xf32, #tpu.memory_space<smem>>
    %c39 = arith.constant 39 : index
    %321 = memref.load %arg6[%c39] : memref<98xf32, #tpu.memory_space<smem>>
    %322 = vector.extract_strided_slice %120 {offsets = [0, 2, 0], sizes = [1, 16, 16], strides = [1, 1, 1]} : vector<1x22x16xf32> to vector<1x16x16xf32>
    %323 = vector.broadcast %320 : f32 to vector<1x16x16xf32>
    %324 = arith.mulf %322, %323 : vector<1x16x16xf32>
    %325 = arith.addf %319, %324 : vector<1x16x16xf32>
    %326 = vector.extract_strided_slice %127 {offsets = [0, 2, 0], sizes = [1, 16, 16], strides = [1, 1, 1]} : vector<1x22x16xf32> to vector<1x16x16xf32>
    %327 = vector.broadcast %321 : f32 to vector<1x16x16xf32>
    %328 = arith.mulf %326, %327 : vector<1x16x16xf32>
    %329 = arith.addf %325, %328 : vector<1x16x16xf32>
    %c40 = arith.constant 40 : index
    %330 = memref.load %arg6[%c40] : memref<98xf32, #tpu.memory_space<smem>>
    %c41 = arith.constant 41 : index
    %331 = memref.load %arg6[%c41] : memref<98xf32, #tpu.memory_space<smem>>
    %332 = vector.extract_strided_slice %121 {offsets = [0, 2, 0], sizes = [1, 16, 16], strides = [1, 1, 1]} : vector<1x22x16xf32> to vector<1x16x16xf32>
    %333 = vector.broadcast %330 : f32 to vector<1x16x16xf32>
    %334 = arith.mulf %332, %333 : vector<1x16x16xf32>
    %335 = arith.addf %329, %334 : vector<1x16x16xf32>
    %336 = vector.extract_strided_slice %128 {offsets = [0, 2, 0], sizes = [1, 16, 16], strides = [1, 1, 1]} : vector<1x22x16xf32> to vector<1x16x16xf32>
    %337 = vector.broadcast %331 : f32 to vector<1x16x16xf32>
    %338 = arith.mulf %336, %337 : vector<1x16x16xf32>
    %339 = arith.addf %335, %338 : vector<1x16x16xf32>
    %c42 = arith.constant 42 : index
    %340 = memref.load %arg6[%c42] : memref<98xf32, #tpu.memory_space<smem>>
    %c43 = arith.constant 43 : index
    %341 = memref.load %arg6[%c43] : memref<98xf32, #tpu.memory_space<smem>>
    %342 = vector.extract_strided_slice %115 {offsets = [0, 3, 0], sizes = [1, 16, 16], strides = [1, 1, 1]} : vector<1x22x16xf32> to vector<1x16x16xf32>
    %343 = vector.broadcast %340 : f32 to vector<1x16x16xf32>
    %344 = arith.mulf %342, %343 : vector<1x16x16xf32>
    %345 = arith.addf %339, %344 : vector<1x16x16xf32>
    %346 = vector.extract_strided_slice %122 {offsets = [0, 3, 0], sizes = [1, 16, 16], strides = [1, 1, 1]} : vector<1x22x16xf32> to vector<1x16x16xf32>
    %347 = vector.broadcast %341 : f32 to vector<1x16x16xf32>
    %348 = arith.mulf %346, %347 : vector<1x16x16xf32>
    %349 = arith.addf %345, %348 : vector<1x16x16xf32>
    %c44 = arith.constant 44 : index
    %350 = memref.load %arg6[%c44] : memref<98xf32, #tpu.memory_space<smem>>
    %c45 = arith.constant 45 : index
    %351 = memref.load %arg6[%c45] : memref<98xf32, #tpu.memory_space<smem>>
    %352 = vector.extract_strided_slice %116 {offsets = [0, 3, 0], sizes = [1, 16, 16], strides = [1, 1, 1]} : vector<1x22x16xf32> to vector<1x16x16xf32>
    %353 = vector.broadcast %350 : f32 to vector<1x16x16xf32>
    %354 = arith.mulf %352, %353 : vector<1x16x16xf32>
    %355 = arith.addf %349, %354 : vector<1x16x16xf32>
    %356 = vector.extract_strided_slice %123 {offsets = [0, 3, 0], sizes = [1, 16, 16], strides = [1, 1, 1]} : vector<1x22x16xf32> to vector<1x16x16xf32>
    %357 = vector.broadcast %351 : f32 to vector<1x16x16xf32>
    %358 = arith.mulf %356, %357 : vector<1x16x16xf32>
    %359 = arith.addf %355, %358 : vector<1x16x16xf32>
    %c46 = arith.constant 46 : index
    %360 = memref.load %arg6[%c46] : memref<98xf32, #tpu.memory_space<smem>>
    %c47 = arith.constant 47 : index
    %361 = memref.load %arg6[%c47] : memref<98xf32, #tpu.memory_space<smem>>
    %362 = vector.extract_strided_slice %117 {offsets = [0, 3, 0], sizes = [1, 16, 16], strides = [1, 1, 1]} : vector<1x22x16xf32> to vector<1x16x16xf32>
    %363 = vector.broadcast %360 : f32 to vector<1x16x16xf32>
    %364 = arith.mulf %362, %363 : vector<1x16x16xf32>
    %365 = arith.addf %359, %364 : vector<1x16x16xf32>
    %366 = vector.extract_strided_slice %124 {offsets = [0, 3, 0], sizes = [1, 16, 16], strides = [1, 1, 1]} : vector<1x22x16xf32> to vector<1x16x16xf32>
    %367 = vector.broadcast %361 : f32 to vector<1x16x16xf32>
    %368 = arith.mulf %366, %367 : vector<1x16x16xf32>
    %369 = arith.addf %365, %368 : vector<1x16x16xf32>
    %c48 = arith.constant 48 : index
    %370 = memref.load %arg6[%c48] : memref<98xf32, #tpu.memory_space<smem>>
    %c49 = arith.constant 49 : index
    %371 = memref.load %arg6[%c49] : memref<98xf32, #tpu.memory_space<smem>>
    %372 = vector.extract_strided_slice %118 {offsets = [0, 3, 0], sizes = [1, 16, 16], strides = [1, 1, 1]} : vector<1x22x16xf32> to vector<1x16x16xf32>
    %373 = vector.broadcast %370 : f32 to vector<1x16x16xf32>
    %374 = arith.mulf %372, %373 : vector<1x16x16xf32>
    %375 = arith.addf %369, %374 : vector<1x16x16xf32>
    %376 = vector.extract_strided_slice %125 {offsets = [0, 3, 0], sizes = [1, 16, 16], strides = [1, 1, 1]} : vector<1x22x16xf32> to vector<1x16x16xf32>
    %377 = vector.broadcast %371 : f32 to vector<1x16x16xf32>
    %378 = arith.mulf %376, %377 : vector<1x16x16xf32>
    %379 = arith.addf %375, %378 : vector<1x16x16xf32>
    %c50 = arith.constant 50 : index
    %380 = memref.load %arg6[%c50] : memref<98xf32, #tpu.memory_space<smem>>
    %c51 = arith.constant 51 : index
    %381 = memref.load %arg6[%c51] : memref<98xf32, #tpu.memory_space<smem>>
    %382 = vector.extract_strided_slice %119 {offsets = [0, 3, 0], sizes = [1, 16, 16], strides = [1, 1, 1]} : vector<1x22x16xf32> to vector<1x16x16xf32>
    %383 = vector.broadcast %380 : f32 to vector<1x16x16xf32>
    %384 = arith.mulf %382, %383 : vector<1x16x16xf32>
    %385 = arith.addf %379, %384 : vector<1x16x16xf32>
    %386 = vector.extract_strided_slice %126 {offsets = [0, 3, 0], sizes = [1, 16, 16], strides = [1, 1, 1]} : vector<1x22x16xf32> to vector<1x16x16xf32>
    %387 = vector.broadcast %381 : f32 to vector<1x16x16xf32>
    %388 = arith.mulf %386, %387 : vector<1x16x16xf32>
    %389 = arith.addf %385, %388 : vector<1x16x16xf32>
    %c52 = arith.constant 52 : index
    %390 = memref.load %arg6[%c52] : memref<98xf32, #tpu.memory_space<smem>>
    %c53 = arith.constant 53 : index
    %391 = memref.load %arg6[%c53] : memref<98xf32, #tpu.memory_space<smem>>
    %392 = vector.extract_strided_slice %120 {offsets = [0, 3, 0], sizes = [1, 16, 16], strides = [1, 1, 1]} : vector<1x22x16xf32> to vector<1x16x16xf32>
    %393 = vector.broadcast %390 : f32 to vector<1x16x16xf32>
    %394 = arith.mulf %392, %393 : vector<1x16x16xf32>
    %395 = arith.addf %389, %394 : vector<1x16x16xf32>
    %396 = vector.extract_strided_slice %127 {offsets = [0, 3, 0], sizes = [1, 16, 16], strides = [1, 1, 1]} : vector<1x22x16xf32> to vector<1x16x16xf32>
    %397 = vector.broadcast %391 : f32 to vector<1x16x16xf32>
    %398 = arith.mulf %396, %397 : vector<1x16x16xf32>
    %399 = arith.addf %395, %398 : vector<1x16x16xf32>
    %c54 = arith.constant 54 : index
    %400 = memref.load %arg6[%c54] : memref<98xf32, #tpu.memory_space<smem>>
    %c55 = arith.constant 55 : index
    %401 = memref.load %arg6[%c55] : memref<98xf32, #tpu.memory_space<smem>>
    %402 = vector.extract_strided_slice %121 {offsets = [0, 3, 0], sizes = [1, 16, 16], strides = [1, 1, 1]} : vector<1x22x16xf32> to vector<1x16x16xf32>
    %403 = vector.broadcast %400 : f32 to vector<1x16x16xf32>
    %404 = arith.mulf %402, %403 : vector<1x16x16xf32>
    %405 = arith.addf %399, %404 : vector<1x16x16xf32>
    %406 = vector.extract_strided_slice %128 {offsets = [0, 3, 0], sizes = [1, 16, 16], strides = [1, 1, 1]} : vector<1x22x16xf32> to vector<1x16x16xf32>
    %407 = vector.broadcast %401 : f32 to vector<1x16x16xf32>
    %408 = arith.mulf %406, %407 : vector<1x16x16xf32>
    %409 = arith.addf %405, %408 : vector<1x16x16xf32>
    %c56 = arith.constant 56 : index
    %410 = memref.load %arg6[%c56] : memref<98xf32, #tpu.memory_space<smem>>
    %c57 = arith.constant 57 : index
    %411 = memref.load %arg6[%c57] : memref<98xf32, #tpu.memory_space<smem>>
    %412 = vector.extract_strided_slice %115 {offsets = [0, 4, 0], sizes = [1, 16, 16], strides = [1, 1, 1]} : vector<1x22x16xf32> to vector<1x16x16xf32>
    %413 = vector.broadcast %410 : f32 to vector<1x16x16xf32>
    %414 = arith.mulf %412, %413 : vector<1x16x16xf32>
    %415 = arith.addf %409, %414 : vector<1x16x16xf32>
    %416 = vector.extract_strided_slice %122 {offsets = [0, 4, 0], sizes = [1, 16, 16], strides = [1, 1, 1]} : vector<1x22x16xf32> to vector<1x16x16xf32>
    %417 = vector.broadcast %411 : f32 to vector<1x16x16xf32>
    %418 = arith.mulf %416, %417 : vector<1x16x16xf32>
    %419 = arith.addf %415, %418 : vector<1x16x16xf32>
    %c58 = arith.constant 58 : index
    %420 = memref.load %arg6[%c58] : memref<98xf32, #tpu.memory_space<smem>>
    %c59 = arith.constant 59 : index
    %421 = memref.load %arg6[%c59] : memref<98xf32, #tpu.memory_space<smem>>
    %422 = vector.extract_strided_slice %116 {offsets = [0, 4, 0], sizes = [1, 16, 16], strides = [1, 1, 1]} : vector<1x22x16xf32> to vector<1x16x16xf32>
    %423 = vector.broadcast %420 : f32 to vector<1x16x16xf32>
    %424 = arith.mulf %422, %423 : vector<1x16x16xf32>
    %425 = arith.addf %419, %424 : vector<1x16x16xf32>
    %426 = vector.extract_strided_slice %123 {offsets = [0, 4, 0], sizes = [1, 16, 16], strides = [1, 1, 1]} : vector<1x22x16xf32> to vector<1x16x16xf32>
    %427 = vector.broadcast %421 : f32 to vector<1x16x16xf32>
    %428 = arith.mulf %426, %427 : vector<1x16x16xf32>
    %429 = arith.addf %425, %428 : vector<1x16x16xf32>
    %c60 = arith.constant 60 : index
    %430 = memref.load %arg6[%c60] : memref<98xf32, #tpu.memory_space<smem>>
    %c61 = arith.constant 61 : index
    %431 = memref.load %arg6[%c61] : memref<98xf32, #tpu.memory_space<smem>>
    %432 = vector.extract_strided_slice %117 {offsets = [0, 4, 0], sizes = [1, 16, 16], strides = [1, 1, 1]} : vector<1x22x16xf32> to vector<1x16x16xf32>
    %433 = vector.broadcast %430 : f32 to vector<1x16x16xf32>
    %434 = arith.mulf %432, %433 : vector<1x16x16xf32>
    %435 = arith.addf %429, %434 : vector<1x16x16xf32>
    %436 = vector.extract_strided_slice %124 {offsets = [0, 4, 0], sizes = [1, 16, 16], strides = [1, 1, 1]} : vector<1x22x16xf32> to vector<1x16x16xf32>
    %437 = vector.broadcast %431 : f32 to vector<1x16x16xf32>
    %438 = arith.mulf %436, %437 : vector<1x16x16xf32>
    %439 = arith.addf %435, %438 : vector<1x16x16xf32>
    %c62 = arith.constant 62 : index
    %440 = memref.load %arg6[%c62] : memref<98xf32, #tpu.memory_space<smem>>
    %c63 = arith.constant 63 : index
    %441 = memref.load %arg6[%c63] : memref<98xf32, #tpu.memory_space<smem>>
    %442 = vector.extract_strided_slice %118 {offsets = [0, 4, 0], sizes = [1, 16, 16], strides = [1, 1, 1]} : vector<1x22x16xf32> to vector<1x16x16xf32>
    %443 = vector.broadcast %440 : f32 to vector<1x16x16xf32>
    %444 = arith.mulf %442, %443 : vector<1x16x16xf32>
    %445 = arith.addf %439, %444 : vector<1x16x16xf32>
    %446 = vector.extract_strided_slice %125 {offsets = [0, 4, 0], sizes = [1, 16, 16], strides = [1, 1, 1]} : vector<1x22x16xf32> to vector<1x16x16xf32>
    %447 = vector.broadcast %441 : f32 to vector<1x16x16xf32>
    %448 = arith.mulf %446, %447 : vector<1x16x16xf32>
    %449 = arith.addf %445, %448 : vector<1x16x16xf32>
    %c64 = arith.constant 64 : index
    %450 = memref.load %arg6[%c64] : memref<98xf32, #tpu.memory_space<smem>>
    %c65 = arith.constant 65 : index
    %451 = memref.load %arg6[%c65] : memref<98xf32, #tpu.memory_space<smem>>
    %452 = vector.extract_strided_slice %119 {offsets = [0, 4, 0], sizes = [1, 16, 16], strides = [1, 1, 1]} : vector<1x22x16xf32> to vector<1x16x16xf32>
    %453 = vector.broadcast %450 : f32 to vector<1x16x16xf32>
    %454 = arith.mulf %452, %453 : vector<1x16x16xf32>
    %455 = arith.addf %449, %454 : vector<1x16x16xf32>
    %456 = vector.extract_strided_slice %126 {offsets = [0, 4, 0], sizes = [1, 16, 16], strides = [1, 1, 1]} : vector<1x22x16xf32> to vector<1x16x16xf32>
    %457 = vector.broadcast %451 : f32 to vector<1x16x16xf32>
    %458 = arith.mulf %456, %457 : vector<1x16x16xf32>
    %459 = arith.addf %455, %458 : vector<1x16x16xf32>
    %c66 = arith.constant 66 : index
    %460 = memref.load %arg6[%c66] : memref<98xf32, #tpu.memory_space<smem>>
    %c67 = arith.constant 67 : index
    %461 = memref.load %arg6[%c67] : memref<98xf32, #tpu.memory_space<smem>>
    %462 = vector.extract_strided_slice %120 {offsets = [0, 4, 0], sizes = [1, 16, 16], strides = [1, 1, 1]} : vector<1x22x16xf32> to vector<1x16x16xf32>
    %463 = vector.broadcast %460 : f32 to vector<1x16x16xf32>
    %464 = arith.mulf %462, %463 : vector<1x16x16xf32>
    %465 = arith.addf %459, %464 : vector<1x16x16xf32>
    %466 = vector.extract_strided_slice %127 {offsets = [0, 4, 0], sizes = [1, 16, 16], strides = [1, 1, 1]} : vector<1x22x16xf32> to vector<1x16x16xf32>
    %467 = vector.broadcast %461 : f32 to vector<1x16x16xf32>
    %468 = arith.mulf %466, %467 : vector<1x16x16xf32>
    %469 = arith.addf %465, %468 : vector<1x16x16xf32>
    %c68 = arith.constant 68 : index
    %470 = memref.load %arg6[%c68] : memref<98xf32, #tpu.memory_space<smem>>
    %c69 = arith.constant 69 : index
    %471 = memref.load %arg6[%c69] : memref<98xf32, #tpu.memory_space<smem>>
    %472 = vector.extract_strided_slice %121 {offsets = [0, 4, 0], sizes = [1, 16, 16], strides = [1, 1, 1]} : vector<1x22x16xf32> to vector<1x16x16xf32>
    %473 = vector.broadcast %470 : f32 to vector<1x16x16xf32>
    %474 = arith.mulf %472, %473 : vector<1x16x16xf32>
    %475 = arith.addf %469, %474 : vector<1x16x16xf32>
    %476 = vector.extract_strided_slice %128 {offsets = [0, 4, 0], sizes = [1, 16, 16], strides = [1, 1, 1]} : vector<1x22x16xf32> to vector<1x16x16xf32>
    %477 = vector.broadcast %471 : f32 to vector<1x16x16xf32>
    %478 = arith.mulf %476, %477 : vector<1x16x16xf32>
    %479 = arith.addf %475, %478 : vector<1x16x16xf32>
    %c70 = arith.constant 70 : index
    %480 = memref.load %arg6[%c70] : memref<98xf32, #tpu.memory_space<smem>>
    %c71 = arith.constant 71 : index
    %481 = memref.load %arg6[%c71] : memref<98xf32, #tpu.memory_space<smem>>
    %482 = vector.extract_strided_slice %115 {offsets = [0, 5, 0], sizes = [1, 16, 16], strides = [1, 1, 1]} : vector<1x22x16xf32> to vector<1x16x16xf32>
    %483 = vector.broadcast %480 : f32 to vector<1x16x16xf32>
    %484 = arith.mulf %482, %483 : vector<1x16x16xf32>
    %485 = arith.addf %479, %484 : vector<1x16x16xf32>
    %486 = vector.extract_strided_slice %122 {offsets = [0, 5, 0], sizes = [1, 16, 16], strides = [1, 1, 1]} : vector<1x22x16xf32> to vector<1x16x16xf32>
    %487 = vector.broadcast %481 : f32 to vector<1x16x16xf32>
    %488 = arith.mulf %486, %487 : vector<1x16x16xf32>
    %489 = arith.addf %485, %488 : vector<1x16x16xf32>
    %c72 = arith.constant 72 : index
    %490 = memref.load %arg6[%c72] : memref<98xf32, #tpu.memory_space<smem>>
    %c73 = arith.constant 73 : index
    %491 = memref.load %arg6[%c73] : memref<98xf32, #tpu.memory_space<smem>>
    %492 = vector.extract_strided_slice %116 {offsets = [0, 5, 0], sizes = [1, 16, 16], strides = [1, 1, 1]} : vector<1x22x16xf32> to vector<1x16x16xf32>
    %493 = vector.broadcast %490 : f32 to vector<1x16x16xf32>
    %494 = arith.mulf %492, %493 : vector<1x16x16xf32>
    %495 = arith.addf %489, %494 : vector<1x16x16xf32>
    %496 = vector.extract_strided_slice %123 {offsets = [0, 5, 0], sizes = [1, 16, 16], strides = [1, 1, 1]} : vector<1x22x16xf32> to vector<1x16x16xf32>
    %497 = vector.broadcast %491 : f32 to vector<1x16x16xf32>
    %498 = arith.mulf %496, %497 : vector<1x16x16xf32>
    %499 = arith.addf %495, %498 : vector<1x16x16xf32>
    %c74 = arith.constant 74 : index
    %500 = memref.load %arg6[%c74] : memref<98xf32, #tpu.memory_space<smem>>
    %c75 = arith.constant 75 : index
    %501 = memref.load %arg6[%c75] : memref<98xf32, #tpu.memory_space<smem>>
    %502 = vector.extract_strided_slice %117 {offsets = [0, 5, 0], sizes = [1, 16, 16], strides = [1, 1, 1]} : vector<1x22x16xf32> to vector<1x16x16xf32>
    %503 = vector.broadcast %500 : f32 to vector<1x16x16xf32>
    %504 = arith.mulf %502, %503 : vector<1x16x16xf32>
    %505 = arith.addf %499, %504 : vector<1x16x16xf32>
    %506 = vector.extract_strided_slice %124 {offsets = [0, 5, 0], sizes = [1, 16, 16], strides = [1, 1, 1]} : vector<1x22x16xf32> to vector<1x16x16xf32>
    %507 = vector.broadcast %501 : f32 to vector<1x16x16xf32>
    %508 = arith.mulf %506, %507 : vector<1x16x16xf32>
    %509 = arith.addf %505, %508 : vector<1x16x16xf32>
    %c76 = arith.constant 76 : index
    %510 = memref.load %arg6[%c76] : memref<98xf32, #tpu.memory_space<smem>>
    %c77 = arith.constant 77 : index
    %511 = memref.load %arg6[%c77] : memref<98xf32, #tpu.memory_space<smem>>
    %512 = vector.extract_strided_slice %118 {offsets = [0, 5, 0], sizes = [1, 16, 16], strides = [1, 1, 1]} : vector<1x22x16xf32> to vector<1x16x16xf32>
    %513 = vector.broadcast %510 : f32 to vector<1x16x16xf32>
    %514 = arith.mulf %512, %513 : vector<1x16x16xf32>
    %515 = arith.addf %509, %514 : vector<1x16x16xf32>
    %516 = vector.extract_strided_slice %125 {offsets = [0, 5, 0], sizes = [1, 16, 16], strides = [1, 1, 1]} : vector<1x22x16xf32> to vector<1x16x16xf32>
    %517 = vector.broadcast %511 : f32 to vector<1x16x16xf32>
    %518 = arith.mulf %516, %517 : vector<1x16x16xf32>
    %519 = arith.addf %515, %518 : vector<1x16x16xf32>
    %c78 = arith.constant 78 : index
    %520 = memref.load %arg6[%c78] : memref<98xf32, #tpu.memory_space<smem>>
    %c79 = arith.constant 79 : index
    %521 = memref.load %arg6[%c79] : memref<98xf32, #tpu.memory_space<smem>>
    %522 = vector.extract_strided_slice %119 {offsets = [0, 5, 0], sizes = [1, 16, 16], strides = [1, 1, 1]} : vector<1x22x16xf32> to vector<1x16x16xf32>
    %523 = vector.broadcast %520 : f32 to vector<1x16x16xf32>
    %524 = arith.mulf %522, %523 : vector<1x16x16xf32>
    %525 = arith.addf %519, %524 : vector<1x16x16xf32>
    %526 = vector.extract_strided_slice %126 {offsets = [0, 5, 0], sizes = [1, 16, 16], strides = [1, 1, 1]} : vector<1x22x16xf32> to vector<1x16x16xf32>
    %527 = vector.broadcast %521 : f32 to vector<1x16x16xf32>
    %528 = arith.mulf %526, %527 : vector<1x16x16xf32>
    %529 = arith.addf %525, %528 : vector<1x16x16xf32>
    %c80 = arith.constant 80 : index
    %530 = memref.load %arg6[%c80] : memref<98xf32, #tpu.memory_space<smem>>
    %c81 = arith.constant 81 : index
    %531 = memref.load %arg6[%c81] : memref<98xf32, #tpu.memory_space<smem>>
    %532 = vector.extract_strided_slice %120 {offsets = [0, 5, 0], sizes = [1, 16, 16], strides = [1, 1, 1]} : vector<1x22x16xf32> to vector<1x16x16xf32>
    %533 = vector.broadcast %530 : f32 to vector<1x16x16xf32>
    %534 = arith.mulf %532, %533 : vector<1x16x16xf32>
    %535 = arith.addf %529, %534 : vector<1x16x16xf32>
    %536 = vector.extract_strided_slice %127 {offsets = [0, 5, 0], sizes = [1, 16, 16], strides = [1, 1, 1]} : vector<1x22x16xf32> to vector<1x16x16xf32>
    %537 = vector.broadcast %531 : f32 to vector<1x16x16xf32>
    %538 = arith.mulf %536, %537 : vector<1x16x16xf32>
    %539 = arith.addf %535, %538 : vector<1x16x16xf32>
    %c82 = arith.constant 82 : index
    %540 = memref.load %arg6[%c82] : memref<98xf32, #tpu.memory_space<smem>>
    %c83 = arith.constant 83 : index
    %541 = memref.load %arg6[%c83] : memref<98xf32, #tpu.memory_space<smem>>
    %542 = vector.extract_strided_slice %121 {offsets = [0, 5, 0], sizes = [1, 16, 16], strides = [1, 1, 1]} : vector<1x22x16xf32> to vector<1x16x16xf32>
    %543 = vector.broadcast %540 : f32 to vector<1x16x16xf32>
    %544 = arith.mulf %542, %543 : vector<1x16x16xf32>
    %545 = arith.addf %539, %544 : vector<1x16x16xf32>
    %546 = vector.extract_strided_slice %128 {offsets = [0, 5, 0], sizes = [1, 16, 16], strides = [1, 1, 1]} : vector<1x22x16xf32> to vector<1x16x16xf32>
    %547 = vector.broadcast %541 : f32 to vector<1x16x16xf32>
    %548 = arith.mulf %546, %547 : vector<1x16x16xf32>
    %549 = arith.addf %545, %548 : vector<1x16x16xf32>
    %c84 = arith.constant 84 : index
    %550 = memref.load %arg6[%c84] : memref<98xf32, #tpu.memory_space<smem>>
    %c85 = arith.constant 85 : index
    %551 = memref.load %arg6[%c85] : memref<98xf32, #tpu.memory_space<smem>>
    %552 = vector.extract_strided_slice %115 {offsets = [0, 6, 0], sizes = [1, 16, 16], strides = [1, 1, 1]} : vector<1x22x16xf32> to vector<1x16x16xf32>
    %553 = vector.broadcast %550 : f32 to vector<1x16x16xf32>
    %554 = arith.mulf %552, %553 : vector<1x16x16xf32>
    %555 = arith.addf %549, %554 : vector<1x16x16xf32>
    %556 = vector.extract_strided_slice %122 {offsets = [0, 6, 0], sizes = [1, 16, 16], strides = [1, 1, 1]} : vector<1x22x16xf32> to vector<1x16x16xf32>
    %557 = vector.broadcast %551 : f32 to vector<1x16x16xf32>
    %558 = arith.mulf %556, %557 : vector<1x16x16xf32>
    %559 = arith.addf %555, %558 : vector<1x16x16xf32>
    %c86 = arith.constant 86 : index
    %560 = memref.load %arg6[%c86] : memref<98xf32, #tpu.memory_space<smem>>
    %c87 = arith.constant 87 : index
    %561 = memref.load %arg6[%c87] : memref<98xf32, #tpu.memory_space<smem>>
    %562 = vector.extract_strided_slice %116 {offsets = [0, 6, 0], sizes = [1, 16, 16], strides = [1, 1, 1]} : vector<1x22x16xf32> to vector<1x16x16xf32>
    %563 = vector.broadcast %560 : f32 to vector<1x16x16xf32>
    %564 = arith.mulf %562, %563 : vector<1x16x16xf32>
    %565 = arith.addf %559, %564 : vector<1x16x16xf32>
    %566 = vector.extract_strided_slice %123 {offsets = [0, 6, 0], sizes = [1, 16, 16], strides = [1, 1, 1]} : vector<1x22x16xf32> to vector<1x16x16xf32>
    %567 = vector.broadcast %561 : f32 to vector<1x16x16xf32>
    %568 = arith.mulf %566, %567 : vector<1x16x16xf32>
    %569 = arith.addf %565, %568 : vector<1x16x16xf32>
    %c88 = arith.constant 88 : index
    %570 = memref.load %arg6[%c88] : memref<98xf32, #tpu.memory_space<smem>>
    %c89 = arith.constant 89 : index
    %571 = memref.load %arg6[%c89] : memref<98xf32, #tpu.memory_space<smem>>
    %572 = vector.extract_strided_slice %117 {offsets = [0, 6, 0], sizes = [1, 16, 16], strides = [1, 1, 1]} : vector<1x22x16xf32> to vector<1x16x16xf32>
    %573 = vector.broadcast %570 : f32 to vector<1x16x16xf32>
    %574 = arith.mulf %572, %573 : vector<1x16x16xf32>
    %575 = arith.addf %569, %574 : vector<1x16x16xf32>
    %576 = vector.extract_strided_slice %124 {offsets = [0, 6, 0], sizes = [1, 16, 16], strides = [1, 1, 1]} : vector<1x22x16xf32> to vector<1x16x16xf32>
    %577 = vector.broadcast %571 : f32 to vector<1x16x16xf32>
    %578 = arith.mulf %576, %577 : vector<1x16x16xf32>
    %579 = arith.addf %575, %578 : vector<1x16x16xf32>
    %c90 = arith.constant 90 : index
    %580 = memref.load %arg6[%c90] : memref<98xf32, #tpu.memory_space<smem>>
    %c91 = arith.constant 91 : index
    %581 = memref.load %arg6[%c91] : memref<98xf32, #tpu.memory_space<smem>>
    %582 = vector.extract_strided_slice %118 {offsets = [0, 6, 0], sizes = [1, 16, 16], strides = [1, 1, 1]} : vector<1x22x16xf32> to vector<1x16x16xf32>
    %583 = vector.broadcast %580 : f32 to vector<1x16x16xf32>
    %584 = arith.mulf %582, %583 : vector<1x16x16xf32>
    %585 = arith.addf %579, %584 : vector<1x16x16xf32>
    %586 = vector.extract_strided_slice %125 {offsets = [0, 6, 0], sizes = [1, 16, 16], strides = [1, 1, 1]} : vector<1x22x16xf32> to vector<1x16x16xf32>
    %587 = vector.broadcast %581 : f32 to vector<1x16x16xf32>
    %588 = arith.mulf %586, %587 : vector<1x16x16xf32>
    %589 = arith.addf %585, %588 : vector<1x16x16xf32>
    %c92 = arith.constant 92 : index
    %590 = memref.load %arg6[%c92] : memref<98xf32, #tpu.memory_space<smem>>
    %c93 = arith.constant 93 : index
    %591 = memref.load %arg6[%c93] : memref<98xf32, #tpu.memory_space<smem>>
    %592 = vector.extract_strided_slice %119 {offsets = [0, 6, 0], sizes = [1, 16, 16], strides = [1, 1, 1]} : vector<1x22x16xf32> to vector<1x16x16xf32>
    %593 = vector.broadcast %590 : f32 to vector<1x16x16xf32>
    %594 = arith.mulf %592, %593 : vector<1x16x16xf32>
    %595 = arith.addf %589, %594 : vector<1x16x16xf32>
    %596 = vector.extract_strided_slice %126 {offsets = [0, 6, 0], sizes = [1, 16, 16], strides = [1, 1, 1]} : vector<1x22x16xf32> to vector<1x16x16xf32>
    %597 = vector.broadcast %591 : f32 to vector<1x16x16xf32>
    %598 = arith.mulf %596, %597 : vector<1x16x16xf32>
    %599 = arith.addf %595, %598 : vector<1x16x16xf32>
    %c94 = arith.constant 94 : index
    %600 = memref.load %arg6[%c94] : memref<98xf32, #tpu.memory_space<smem>>
    %c95 = arith.constant 95 : index
    %601 = memref.load %arg6[%c95] : memref<98xf32, #tpu.memory_space<smem>>
    %602 = vector.extract_strided_slice %120 {offsets = [0, 6, 0], sizes = [1, 16, 16], strides = [1, 1, 1]} : vector<1x22x16xf32> to vector<1x16x16xf32>
    %603 = vector.broadcast %600 : f32 to vector<1x16x16xf32>
    %604 = arith.mulf %602, %603 : vector<1x16x16xf32>
    %605 = arith.addf %599, %604 : vector<1x16x16xf32>
    %606 = vector.extract_strided_slice %127 {offsets = [0, 6, 0], sizes = [1, 16, 16], strides = [1, 1, 1]} : vector<1x22x16xf32> to vector<1x16x16xf32>
    %607 = vector.broadcast %601 : f32 to vector<1x16x16xf32>
    %608 = arith.mulf %606, %607 : vector<1x16x16xf32>
    %609 = arith.addf %605, %608 : vector<1x16x16xf32>
    %c96 = arith.constant 96 : index
    %610 = memref.load %arg6[%c96] : memref<98xf32, #tpu.memory_space<smem>>
    %c97 = arith.constant 97 : index
    %611 = memref.load %arg6[%c97] : memref<98xf32, #tpu.memory_space<smem>>
    %612 = vector.extract_strided_slice %121 {offsets = [0, 6, 0], sizes = [1, 16, 16], strides = [1, 1, 1]} : vector<1x22x16xf32> to vector<1x16x16xf32>
    %613 = vector.broadcast %610 : f32 to vector<1x16x16xf32>
    %614 = arith.mulf %612, %613 : vector<1x16x16xf32>
    %615 = arith.addf %609, %614 : vector<1x16x16xf32>
    %616 = vector.extract_strided_slice %128 {offsets = [0, 6, 0], sizes = [1, 16, 16], strides = [1, 1, 1]} : vector<1x22x16xf32> to vector<1x16x16xf32>
    %617 = vector.broadcast %611 : f32 to vector<1x16x16xf32>
    %618 = arith.mulf %616, %617 : vector<1x16x16xf32>
    %619 = arith.addf %615, %618 : vector<1x16x16xf32>
    %620 = arith.negf %619 : vector<1x16x16xf32>
    %621 = math.exp %620 : vector<1x16x16xf32>
    %cst_106 = arith.constant 1.000000e+00 : f32
    %622 = vector.broadcast %cst_106 : f32 to vector<1x16x16xf32>
    %623 = arith.addf %622, %621 : vector<1x16x16xf32>
    %624 = arith.divf %622, %623 : vector<1x16x16xf32>
    %625 = vector.shape_cast %624 : vector<1x16x16xf32> to vector<1x16x16x1xf32>
    %626 = vector.broadcast %625 : vector<1x16x16x1xf32> to vector<1x16x16x32xf32>
    %627 = arith.mulf %102, %626 : vector<1x16x16x32xf32>
    %628 = vector.shape_cast %627 : vector<1x16x16x32xf32> to vector<1x256x32xf32>
    %629 = tpu.transpose %628, [0, 2, 1] : vector<1x256x32xf32> -> vector<1x32x256xf32>
    %c0_107 = arith.constant 0 : index
    %c0_108 = arith.constant 0 : index
    %c0_109 = arith.constant 0 : index
    %630 = vector.load %arg9[%c0_107, %c0_108, %c0_109] : memref<1x32x256xf32, #tpu.memory_space<vmem>>, vector<1x32x256xf32>
    tpu.vector_store %arg9[%c0_107, %c0_108, %c0_109], %629 {strides = array<i32>} : memref<1x32x256xf32, #tpu.memory_space<vmem>>, vector<1x32x256xf32>,
    %c0_110 = arith.constant 0 : index
    %c1_111 = arith.constant 1 : index
    %c1_112 = arith.constant 1 : index
    %c0_113 = arith.constant 0 : index
    %631 = vector.load %arg11[%c0_110, %c1_111, %c1_112, %c0_113] : memref<1x18x18x32xf32, #tpu.memory_space<vmem>>, vector<1x16x16x32xf32>
    tpu.vector_store %arg11[%c0_110, %c1_111, %c1_112, %c0_113], %627 {strides = array<i32>} : memref<1x18x18x32xf32, #tpu.memory_space<vmem>>, vector<1x16x16x32xf32>,
    %c0_114 = arith.constant 0 : index
    %c0_115 = arith.constant 0 : index
    %c0_116 = arith.constant 0 : index
    %c0_117 = arith.constant 0 : index
    %632 = vector.load %arg11[%c0_114, %c0_115, %c0_116, %c0_117] : memref<1x18x18x32xf32, #tpu.memory_space<vmem>>, vector<1x16x16x32xf32>
    %633 = arith.truncf %632 : vector<1x16x16x32xf32> to vector<1x16x16x32xbf16>
    %634 = vector.shape_cast %633 : vector<1x16x16x32xbf16> to vector<256x32xbf16>
    %c0_118 = arith.constant 0 : index
    %c0_119 = arith.constant 0 : index
    %c1_120 = arith.constant 1 : index
    %c0_121 = arith.constant 0 : index
    %635 = vector.load %arg11[%c0_118, %c0_119, %c1_120, %c0_121] : memref<1x18x18x32xf32, #tpu.memory_space<vmem>>, vector<1x16x16x32xf32>
    %636 = arith.truncf %635 : vector<1x16x16x32xf32> to vector<1x16x16x32xbf16>
    %637 = vector.shape_cast %636 : vector<1x16x16x32xbf16> to vector<256x32xbf16>
    %c0_122 = arith.constant 0 : index
    %c0_123 = arith.constant 0 : index
    %c2_124 = arith.constant 2 : index
    %c0_125 = arith.constant 0 : index
    %638 = vector.load %arg11[%c0_122, %c0_123, %c2_124, %c0_125] : memref<1x18x18x32xf32, #tpu.memory_space<vmem>>, vector<1x16x16x32xf32>
    %639 = arith.truncf %638 : vector<1x16x16x32xf32> to vector<1x16x16x32xbf16>
    %640 = vector.shape_cast %639 : vector<1x16x16x32xbf16> to vector<256x32xbf16>
    %c0_126 = arith.constant 0 : index
    %c1_127 = arith.constant 1 : index
    %c0_128 = arith.constant 0 : index
    %c0_129 = arith.constant 0 : index
    %641 = vector.load %arg11[%c0_126, %c1_127, %c0_128, %c0_129] : memref<1x18x18x32xf32, #tpu.memory_space<vmem>>, vector<1x16x16x32xf32>
    %642 = arith.truncf %641 : vector<1x16x16x32xf32> to vector<1x16x16x32xbf16>
    %643 = vector.shape_cast %642 : vector<1x16x16x32xbf16> to vector<256x32xbf16>
    %c0_130 = arith.constant 0 : index
    %c1_131 = arith.constant 1 : index
    %c1_132 = arith.constant 1 : index
    %c0_133 = arith.constant 0 : index
    %644 = vector.load %arg11[%c0_130, %c1_131, %c1_132, %c0_133] : memref<1x18x18x32xf32, #tpu.memory_space<vmem>>, vector<1x16x16x32xf32>
    %645 = arith.truncf %644 : vector<1x16x16x32xf32> to vector<1x16x16x32xbf16>
    %646 = vector.shape_cast %645 : vector<1x16x16x32xbf16> to vector<256x32xbf16>
    %c0_134 = arith.constant 0 : index
    %c1_135 = arith.constant 1 : index
    %c2_136 = arith.constant 2 : index
    %c0_137 = arith.constant 0 : index
    %647 = vector.load %arg11[%c0_134, %c1_135, %c2_136, %c0_137] : memref<1x18x18x32xf32, #tpu.memory_space<vmem>>, vector<1x16x16x32xf32>
    %648 = arith.truncf %647 : vector<1x16x16x32xf32> to vector<1x16x16x32xbf16>
    %649 = vector.shape_cast %648 : vector<1x16x16x32xbf16> to vector<256x32xbf16>
    %c0_138 = arith.constant 0 : index
    %c2_139 = arith.constant 2 : index
    %c0_140 = arith.constant 0 : index
    %c0_141 = arith.constant 0 : index
    %650 = vector.load %arg11[%c0_138, %c2_139, %c0_140, %c0_141] : memref<1x18x18x32xf32, #tpu.memory_space<vmem>>, vector<1x16x16x32xf32>
    %651 = arith.truncf %650 : vector<1x16x16x32xf32> to vector<1x16x16x32xbf16>
    %652 = vector.shape_cast %651 : vector<1x16x16x32xbf16> to vector<256x32xbf16>
    %c0_142 = arith.constant 0 : index
    %c2_143 = arith.constant 2 : index
    %c1_144 = arith.constant 1 : index
    %c0_145 = arith.constant 0 : index
    %653 = vector.load %arg11[%c0_142, %c2_143, %c1_144, %c0_145] : memref<1x18x18x32xf32, #tpu.memory_space<vmem>>, vector<1x16x16x32xf32>
    %654 = arith.truncf %653 : vector<1x16x16x32xf32> to vector<1x16x16x32xbf16>
    %655 = vector.shape_cast %654 : vector<1x16x16x32xbf16> to vector<256x32xbf16>
    %c0_146 = arith.constant 0 : index
    %c2_147 = arith.constant 2 : index
    %c2_148 = arith.constant 2 : index
    %c0_149 = arith.constant 0 : index
    %656 = vector.load %arg11[%c0_146, %c2_147, %c2_148, %c0_149] : memref<1x18x18x32xf32, #tpu.memory_space<vmem>>, vector<1x16x16x32xf32>
    %657 = arith.truncf %656 : vector<1x16x16x32xf32> to vector<1x16x16x32xbf16>
    %658 = vector.shape_cast %657 : vector<1x16x16x32xbf16> to vector<256x32xbf16>
    %659 = tpu.concatenate %634, %637, %640, %643, %646, %649, %652, %655, %658 in 1 : vector<256x32xbf16>, vector<256x32xbf16>, vector<256x32xbf16>, vector<256x32xbf16>, vector<256x32xbf16>, vector<256x32xbf16>, vector<256x32xbf16>, vector<256x32xbf16>, vector<256x32xbf16> -> vector<256x288xbf16>
    %c0_150 = arith.constant 0 : index
    %c0_151 = arith.constant 0 : index
    %660 = vector.load %arg7[%c0_150, %c0_151] : memref<288x3xbf16, #tpu.memory_space<vmem>>, vector<288x3xbf16>
    %cst_152 = arith.constant dense<0.000000e+00> : vector<256x3xf32>
    %661 = tpu.matmul %659, %660, %cst_152 {dimension_numbers = #tpu.dot_dimension_numbers<[1], [0], [0], [1], [0, 0, 1, 1], [], []>} : vector<256x288xbf16>, vector<288x3xbf16>, vector<256x3xf32> -> vector<256x3xf32>
    %662 = vector.shape_cast %661 : vector<256x3xf32> to vector<1x256x3xf32>
    %663 = tpu.transpose %662, [0, 2, 1] : vector<1x256x3xf32> -> vector<1x3x256xf32>
    %c0_153 = arith.constant 0 : index
    %c0_154 = arith.constant 0 : index
    %664 = vector.load %arg8[%c0_153, %c0_154] : memref<3x1xf32, #tpu.memory_space<vmem>>, vector<3x1xf32>
    %665 = vector.shape_cast %664 : vector<3x1xf32> to vector<1x3x1xf32>
    %666 = vector.broadcast %665 : vector<1x3x1xf32> to vector<1x3x256xf32>
    %667 = arith.addf %663, %666 : vector<1x3x256xf32>
    %668 = arith.negf %667 : vector<1x3x256xf32>
    %669 = math.exp %668 : vector<1x3x256xf32>
    %cst_155 = arith.constant 1.000000e+00 : f32
    %670 = vector.broadcast %cst_155 : f32 to vector<1x3x256xf32>
    %671 = arith.addf %670, %669 : vector<1x3x256xf32>
    %672 = arith.divf %670, %671 : vector<1x3x256xf32>
    %c0_156 = arith.constant 0 : index
    %c0_157 = arith.constant 0 : index
    %c0_158 = arith.constant 0 : index
    %673 = vector.load %arg10[%c0_156, %c0_157, %c0_158] : memref<1x3x256xf32, #tpu.memory_space<vmem>>, vector<1x3x256xf32>
    tpu.vector_store %arg10[%c0_156, %c0_157, %c0_158], %672 {strides = array<i32>} : memref<1x3x256xf32, #tpu.memory_space<vmem>>, vector<1x3x256xf32>,
    return
  }
  func.func @transform_0(%arg0: i32) -> (i32, i32, i32, i32) {
    %c0_i32 = arith.constant 0 : i32
    %c0_i32_0 = arith.constant 0 : i32
    %c0_i32_1 = arith.constant 0 : i32
    %c0_i32_2 = arith.constant 0 : i32
    return %arg0, %c0_i32, %c0_i32_0, %c0_i32_1 : i32, i32, i32, i32
  }
  func.func @transform_1(%arg0: i32) -> (i32, i32) {
    %c0_i32 = arith.constant 0 : i32
    %c0_i32_0 = arith.constant 0 : i32
    %c0_i32_1 = arith.constant 0 : i32
    return %c0_i32, %c0_i32_0 : i32, i32
  }
  func.func @transform_2(%arg0: i32) -> (i32, i32) {
    %c0_i32 = arith.constant 0 : i32
    %c0_i32_0 = arith.constant 0 : i32
    %c0_i32_1 = arith.constant 0 : i32
    return %c0_i32, %c0_i32_0 : i32, i32
  }
  func.func @transform_3(%arg0: i32) -> (i32, i32) {
    %c0_i32 = arith.constant 0 : i32
    %c0_i32_0 = arith.constant 0 : i32
    %c0_i32_1 = arith.constant 0 : i32
    return %c0_i32, %c0_i32_0 : i32, i32
  }
  func.func @transform_4(%arg0: i32) -> (i32, i32) {
    %c0_i32 = arith.constant 0 : i32
    %c0_i32_0 = arith.constant 0 : i32
    %c0_i32_1 = arith.constant 0 : i32
    return %c0_i32, %c0_i32_0 : i32, i32
  }
  func.func @transform_5(%arg0: i32) -> i32 {
    %c0_i32 = arith.constant 0 : i32
    %c0_i32_0 = arith.constant 0 : i32
    return %c0_i32 : i32
  }
  func.func @transform_6(%arg0: i32) -> (i32, i32) {
    %c0_i32 = arith.constant 0 : i32
    %c0_i32_0 = arith.constant 0 : i32
    %c0_i32_1 = arith.constant 0 : i32
    return %c0_i32, %c0_i32_0 : i32, i32
  }
  func.func @transform_7(%arg0: i32) -> (i32, i32) {
    %c0_i32 = arith.constant 0 : i32
    %c0_i32_0 = arith.constant 0 : i32
    %c0_i32_1 = arith.constant 0 : i32
    return %c0_i32, %c0_i32_0 : i32, i32
  }
  func.func @transform_8(%arg0: i32) -> (i32, i32, i32) {
    %c0_i32 = arith.constant 0 : i32
    %c0_i32_0 = arith.constant 0 : i32
    %c0_i32_1 = arith.constant 0 : i32
    return %arg0, %c0_i32, %c0_i32_0 : i32, i32, i32
  }
  func.func @transform_9(%arg0: i32) -> (i32, i32, i32) {
    %c0_i32 = arith.constant 0 : i32
    %c0_i32_0 = arith.constant 0 : i32
    %c0_i32_1 = arith.constant 0 : i32
    return %arg0, %c0_i32, %c0_i32_0 : i32, i32, i32
  }
}

</mosaic_0001>

<bundles_post_ra>
// kernel: tpu_custom_call.1
= control target key start
LH: loop header
LB: loop body
LE: loop exit
PB: predicated region body
PF: predicated region fallthrough
CT: control target
= control target key end

     0   :  { %s12510_s0 = inlined_call_operand.hbm [shape: f32[2,16,16,32], index: 0, kind: input, shape index: {}]   ;;  %s12511_s1 = inlined_call_operand.vmem [shape: bf16[288,32], index: 1, kind: input, shape index: {}]   ;;  %s12512_s2 = inlined_call_operand.vmem [shape: f32[1,32], index: 2, kind: input, shape index: {}]   ;;  %s12513_s3 = inlined_call_operand.vmem [shape: f32[2,32], index: 3, kind: input, shape index: {}]   ;;  %s12514_s4 = inlined_call_operand.vmem [shape: f32[2,32], index: 4, kind: input, shape index: {}]   ;;  %s12515_s5 = inlined_call_operand.vmem [shape: f32[98], index: 5, kind: input, shape index: {}]   ;;  %s12516_s6 = inlined_call_operand.vmem [shape: bf16[288,3], index: 6, kind: input, shape index: {}]   ;;  %s12517_s7 = inlined_call_operand.vmem [shape: f32[3,1], index: 7, kind: input, shape index: {}]   ;;  %s12518_s8 = inlined_call_operand.hbm [shape: f32[2,32,256], index: 8, kind: output, shape index: {0}]   ;;  %s12519_s9 = inlined_call_operand.vmem [shape: f32[2,3,256], index: 9, kind: output, shape index: {1}]  }
   0x1   :  { %12729 = sst [smem:[#allocation155_spill]] %s12510_s0 }
   0x2   :  { %12730 = sst [smem:[#allocation156_spill]] %s12511_s1 }
   0x3   :  { %12731 = sst [smem:[#allocation157_spill]] %s12512_s2 }
   0x4   :  { %12732 = sst [smem:[#allocation158_spill]] %s12513_s3 }
   0x5   :  { %12733 = sst [smem:[#allocation159_spill]] %s12514_s4 }
   0x6   :  { %12734 = sst [smem:[#allocation160_spill]] %s12515_s5 }
   0x7   :  { %12735 = sst [smem:[#allocation161_spill]] %s12516_s6 }
   0x8   :  { %12736 = sst [smem:[#allocation162_spill]] %s12517_s7 }
   0x9   :  { %12737 = sst [smem:[#allocation163_spill]] %s12518_s8 }
   0xa   :  { %12738 = sst [smem:[#allocation164_spill]] %s12519_s9 }
   0xb   :  { %15 = vsyncpa [#allocation4], 0 }
   0xc   :  { %17 = vsyncpa [#allocation4 + $0x1], 0 }
   0xd   :  { %18 = vsyncpa [#allocation6], 0 }
   0xe   :  { %19 = vsyncpa [#allocation5], 0 }
   0xf   :  { %21 = vsyncpa [#allocation5 + $0x1], 0  ;;  %s7736_s30 = smov 0   ;;  %s7738_s10 = smov 0  }
  0x10   :  { %s7740_s11 = smov 0   ;;  %s7742_s12 = smov 0  }
  0x11 LB: > { %12739 = sst [smem:[#allocation12_spill]] %s7653_s30  ;;  %s7757_s13 = sadd.s32 4294967295, %s7665_s12   ;;  %s7665_s12 = sphi %s7742_s12, %s13320_s12   ;;  %s7661_s11 = sphi %s7740_s11, %s13323_s11   ;;  %s7657_s10 = sphi %s7738_s10, %s13322_s10   ;;  %s7653_s30 = sphi %s7736_s30, %s13321_s30  }
  0x12   : > { %12740 = sst [smem:[#allocation13_spill]] %s7657_s10  ;;  %s6896_s14 = sadd.s32 4294967294, %s7665_s12  }
  0x13   : > { %12741 = sst [smem:[#allocation14_spill]] %s7661_s11  ;;  %s7761_s15 = sadd.s32 1, %s7665_s12  }
  0x14   : > { %12742 = sst [smem:[#allocation15_spill]] %s7665_s12  ;;  %s34_s16 = sadd.s32 1, %s7661_s11 }
  0x15   : > { %12743 = sst [smem:[#allocation16_spill]] %s7757_s13  ;;  %s31_s17 = ssub.s32 %s7665_s12, %s7761_s15 }
  0x16   : > { %12744 = sst [smem:[#allocation17_spill]] %s7761_s15  ;;  %p41_p0 = scmp.ne.s32.totalorder %s7661_s11, %s7657_s10 }
  0x17   : > { %p32_p1 = scmp.eq.s32.totalorder %s31_s17, 0  ;;  %p42_p2 = scmp.eq.s32.totalorder %s7665_s12, 0 }
  0x18   : > { %p47_p3 = scmp.ne.s32.totalorder %s7657_s10, %s7653_s30  ;;  %p12521_p4 = scmp.eq.s32.totalorder %s7757_s13, 0 }
  0x19   : > { %s7773_s18 = scalar_select %p32_p1, %s7661_s11, %s34_s16  }
  0x1a   : > { %p7775_p5 = por %p42_p2, %p41_p0  ;;  %p7781_p6 = por %p12521_p4, %p47_p3 }
  0x1b   : > { %12745 = sst [smem:[#allocation18_spill]] %s7773_s18  ;;  %p218_p7 = scmp.eq.s32.totalorder %s7757_s13, 1 }
  0x1c   : > { %s12747_s20 = scalar_select %p7781_p6, 1, 0 }
  0x1d   : > { %p224_p8 = scmp.eq.s32.totalorder %s6896_s14, 1  ;;  %p6897_p9 = scmp.ge.s32.totalorder %s7665_s12, 1 }
  0x1e   : > { %p257_p10 = scmp.lt.s32.totalorder %s7665_s12, 3  ;;  %p7788_p11 = por %p218_p7, %p41_p0 }
  0x1f   : > { %p7792_p12 = por %p224_p8, %p47_p3  ;;  %s12753_s5 = sld [smem:[#allocation160_spill]] }
  0x20   : > { %s12748_s21 = scalar_select %p7788_p11, 1, 0 }
  0x21   : > { %s12750_s22 = scalar_select %p7792_p12, 1, 0 }
  0x22   : > { %12749 = sst [smem:[#allocation19_spill]] %s12748_s21  ;;  %p7796_p13 = pnand %p6897_p9, %p257_p10 }
  0x23   : > { %12751 = sst [smem:[#allocation20_spill]] %s12750_s22  ;;  %p7445_p2 = scmp.lt.s32.totalorder %s7665_s12, 2 }
  0x24   : > { %s12752_s23 = scalar_select %p7796_p13, 1, 0 }
  0x25   : > { %s282_s26 = sshll.u32 %s12753_s5, 4  ;;  %p7432_p1 = pneg %p7796_p13  ;;  %s283_s26 = int_to_ptr.vmem [resolvable:$true] %s282_s26 }
  0x26   : > { %s299_s28 = sand.u32 1, %s7661_s11   ;;  %p7816_p3 = pnand %p7445_p2, %p7775_p5 }
  0x27   : > { %p7809_p7 = pnand %p7432_p1, %p12521_p4  ;;  %s6900_s14 = sshll.u32 %s299_s28, 8 }
  0x28   : > { %s7554_s16 = scalar_lea.vmem %s283_s26, 16  ;;  %p7562_p12 = scmp.lt.s32.totalorder %s283_s26, %s283_s26 }
  0x29   : > { %p7555_p8 = scmp.ne.s32.totalorder %s283_s26, %s7554_s16  ;;  %p7556_p9 = pneg %p7809_p7 }
  0x2a   : > { %p7563_p11 = scmp.lt.s32.totalorder %s7554_s16, %s7554_s16 }
  0x2b   : > { %p7557_p10 = pnand %p7556_p9, %p7555_p8 }
  0x2c   : > { %p7564_p1 = por %p7563_p11, %p7562_p12 }
  0x2d   : > { %p7558_p0 = pneg %p7557_p10 }
  0x2f   : > { %p7565_p4 = pnand %p7564_p1, %p7558_p0 }
  0x31   : > { %7568 = shalt.err (!%p7565_p4)
}
  0x32   : > { %s7667_s17 = smov [#allocation7]   ;;  %s7085_s19 = sshll.u32 %s7665_s12, 12 }
  0x33   : > { %7435 = dma.vmem_to_smem (!%p7809_p7), %s283_s26, 16, %s7667_s17, [#allocation6]  }
  0x34   : > { %s303_s24 = scalar_lea.vmem [#allocation3], %s6900_s14  ;;  %s12756_s0 = sld [smem:[#allocation155_spill]] }
  0x35   : > { %s310_s25 = sshll.u32 %s303_s24, 4  ;;  %s7832_s16 = scalar_lea.sflag [#allocation4], %s299_s28  ;;  %s7830_s25 = int_to_ptr.vmem [resolvable:$true] %s310_s25 }
  0x36   : > { %p7571_p5 = pneg %p7816_p3 }
  0x3a   : > { %s7828_s11 = scalar_lea.hbm %s12756_s0, %s7085_s19  ;;  %s7574_s14 = scalar_lea.hbm %s12756_s0, 8192 }
  0x3b   : > { %s7569_s15 = scalar_lea.hbm %s7828_s11, 4096  ;;  %p7575_p0 = scmp.lt.s32.totalorder %s7828_s11, %s12756_s0 }
  0x3c   : > { %p7570_p4 = scmp.ne.s32.totalorder %s7828_s11, %s7569_s15  ;;  %p7576_p2 = scmp.lt.s32.totalorder %s7574_s14, %s7569_s15 }
  0x3e   : > { %p7572_p11 = pnand %p7571_p5, %p7570_p4  ;;  %p7577_p7 = por %p7576_p2, %p7575_p0 }
  0x40   : > { %p7573_p12 = pneg %p7572_p11 }
  0x42   : > { %p7578_p8 = pnand %p7577_p7, %p7573_p12 }
  0x44   : > { %7581 = shalt.err (!%p7578_p8)
}
  0x45   : > { %s7582_s28 = scalar_lea.vmem %s7830_s25, 4096  ;;  %s7668_s17 = smov [#allocation3]  }
  0x46   : > { %p7583_p9 = scmp.ne.s32.totalorder %s7830_s25, %s7582_s28  ;;  %s7587_s19 = sshll.u32 %s7668_s17, 4  ;;  %s7588_s19 = int_to_ptr.vmem [resolvable:$false] %s7587_s19 }
  0x47   : > { %s7589_s24 = scalar_lea.vmem %s7588_s19, 8192  ;;  %p7590_p4 = scmp.lt.s32.totalorder %s7830_s25, %s7588_s19 }
  0x48   : > { %p7585_p10 = pnand %p7583_p9, %p7571_p5  ;;  %p7591_p11 = scmp.lt.s32.totalorder %s7589_s24, %s7582_s28 }
  0x4a   : > { %p7586_p1 = pneg %p7585_p10  ;;  %p7592_p6 = por %p7591_p11, %p7590_p4 }
  0x4c   : > { %p7593_p13 = pnand %p7592_p6, %p7586_p1 }
  0x4e   : > { %7596 = shalt.err (!%p7593_p13)
}
  0x4f   : > { %s7669_s15 = smov 128   ;;  %s7670_s26 = smov 8  }
  0x50   : > { %7439 = dma.hbm_to_vmem [thread:$0]  (!%p7816_p3), %s7828_s11, 4096, %s7830_s25, %s7832_s16, %s7669_s15, %s7669_s15, %s7670_s26  }
  0x51   : > { %p12757_p5 = scmp.ne.s32.totalorder %s12752_s23, 0 }
  0x53   : > { %322 = sbr.rel (%p12757_p5) target bundleno = 2449 (0x991), region = 52 }
  0x58   : > { %s7856_s27 = sand.u32 1, %s7657_s10   ;;  %p12759_p6 = scmp.ne.s32.totalorder %s12747_s20, 0 }
  0x59   : > { %12758 = sst [smem:[#allocation21_spill]] %s7856_s27  ;;  %s6904_s14 = sshll.u32 %s7856_s27, 8 }
  0x5a   : > { %s325_s5 = scalar_lea.sflag [#allocation4], %s7856_s27  ;;  %s7860_s18 = scalar_lea.vmem [#allocation3], %s6904_s14 }
  0x5b   : > { %7640 = dma.done.wait (%p12759_p6), %s325_s5, 4096  }
  0x5c   : > { %7642 = vsyncadd (%p12759_p6), %s325_s5, 4294963200  ;;  %p12760_p13 = scmp.eq.s32.totalorder %s7757_s13, 0 }
  0x5e   : > { %7644 = dma.done.wait (%p12760_p13), [#allocation6], 16   ;;  %p12761_p3 = pmov %p12760_p13 }
  0x60   : > { %7646 = vsyncadd (%p12761_p3), [#allocation6], 4294967280 }
  0x61   : > { %337 = sfence }
  0x62   : > { %vm379_vm0 = vcmask 261120   ;;  %vm388_vm1 = vcmask 253952   ;;  %v427_v0 = vld [vmem:[%s7860_s18 + $0x10] sm:$0xff]  ;;  %v428_v1 = vld [vmem:[%s7860_s18 + $0x18] sm:$0xff]  ;;  %v7671_v2 = vmov 0.0   ;;  %v425_v3 = vld [vmem:[%s7860_s18] sm:$0xff] }
  0x63   : > { %391 = vst.msk [vmem:[#allocation2 + $0x30] sm:$0x1] %vm388_vm1, %v7671_v2  ;;  %390 = vst.msk [vmem:[#allocation2 + $0x18] sm:$0x1] %vm388_vm1, %v7671_v2  ;;  %v426_v4 = vld [vmem:[%s7860_s18 + $0x8] sm:$0xff]  ;;  %vm382_vm2 = vcmask 254976  }
  0x64   : > { %460 = vst.msk [vmem:[#allocation2 + $0x31] sm:$0xff] %vm379_vm0, %v427_v0  ;;  %461 = vst.msk [vmem:[#allocation2 + $0x39] sm:$0xff] %vm379_vm0, %v428_v1  ;;  %v429_v5 = vld [vmem:[%s7860_s18 + $0x20] sm:$0xff]  ;;  %v430_v6 = vld [vmem:[%s7860_s18 + $0x28] sm:$0xff]  ;;  %s12762_s1 = sld [smem:[#allocation156_spill]]  ;;  %s12548_s23 = smov 64  }
  0x65   : > { %380 = vst.msk [vmem:[#allocation2] sm:$0xff] %vm379_vm0, %v7671_v2  ;;  %381 = vst.msk [vmem:[#allocation2 + $0x8] sm:$0xff] %vm379_vm0, %v7671_v2  ;;  %v431_v7 = vld [vmem:[%s7860_s18 + $0x30] sm:$0xff]  ;;  %v432_v8 = vld [vmem:[%s7860_s18 + $0x38] sm:$0xff]  ;;  %s12546_s29 = smov 32   ;;  %s12544_s25 = smov 96  }
  0x66   : > { %385 = vst.msk [vmem:[#allocation2 + $0x198] sm:$0xff] %vm379_vm0, %v7671_v2  ;;  %386 = vst.msk [vmem:[#allocation2 + $0x1a0] sm:$0xff] %vm379_vm0, %v7671_v2  ;;  %v433_v9 = vld [vmem:[%s7860_s18 + $0x40] sm:$0xff]  ;;  %v434_v10 = vld [vmem:[%s7860_s18 + $0x48] sm:$0xff]  ;;  %vm1259_vm3 = vcmask 523264   ;;  %vm1292_vm4 = vcmask 785408  }
  0x67   : > { %392 = vst.msk [vmem:[#allocation2 + $0x48] sm:$0x1] %vm388_vm1, %v7671_v2  ;;  %393 = vst.msk [vmem:[#allocation2 + $0x60] sm:$0x1] %vm388_vm1, %v7671_v2  ;;  %v435_v11 = vld [vmem:[%s7860_s18 + $0x50] sm:$0xff]  ;;  %v436_v12 = vld [vmem:[%s7860_s18 + $0x58] sm:$0xff] }
  0x68   : > { %394 = vst.msk [vmem:[#allocation2 + $0x78] sm:$0x1] %vm388_vm1, %v7671_v2  ;;  %395 = vst.msk [vmem:[#allocation2 + $0x90] sm:$0x1] %vm388_vm1, %v7671_v2  ;;  %v437_v13 = vld [vmem:[%s7860_s18 + $0x60] sm:$0xff]  ;;  %v438_v14 = vld [vmem:[%s7860_s18 + $0x68] sm:$0xff] }
  0x69   : > { %396 = vst.msk [vmem:[#allocation2 + $0xa8] sm:$0x1] %vm388_vm1, %v7671_v2  ;;  %397 = vst.msk [vmem:[#allocation2 + $0xc0] sm:$0x1] %vm388_vm1, %v7671_v2  ;;  %v439_v15 = vld [vmem:[%s7860_s18 + $0x70] sm:$0xff]  ;;  %v440_v16 = vld [vmem:[%s7860_s18 + $0x78] sm:$0xff] }
  0x6a   : > { %398 = vst.msk [vmem:[#allocation2 + $0xd8] sm:$0x1] %vm388_vm1, %v7671_v2  ;;  %399 = vst.msk [vmem:[#allocation2 + $0xf0] sm:$0x1] %vm388_vm1, %v7671_v2  ;;  %v441_v17 = vld [vmem:[%s7860_s18 + $0x80] sm:$0xff]  ;;  %v442_v18 = vld [vmem:[%s7860_s18 + $0x88] sm:$0xff] }
  0x6b   : > { %400 = vst.msk [vmem:[#allocation2 + $0x108] sm:$0x1] %vm388_vm1, %v7671_v2  ;;  %401 = vst.msk [vmem:[#allocation2 + $0x120] sm:$0x1] %vm388_vm1, %v7671_v2  ;;  %v7498_v19 = vld [vmem:[%s12762_s1 + $0x78] sm:$0xff]   ;;  %v779_v20 = vld [vmem:[#allocation2 + $0x30] sm:$0xff] }
  0x6c   : > { %402 = vst.msk [vmem:[#allocation2 + $0x138] sm:$0x1] %vm388_vm1, %v7671_v2  ;;  %403 = vst.msk [vmem:[#allocation2 + $0x150] sm:$0x1] %vm388_vm1, %v7671_v2  ;;  %v780_v21 = vld [vmem:[#allocation2 + $0x38] sm:$0xff]  ;;  %v538_v22 = vld [vmem:[#allocation2 + $0x1] sm:$0xff]  ;;  %7088 = vmatprep.subr.bf16.mxu0 %v7498_v19 }
  0x6d   : > { %404 = vst.msk [vmem:[#allocation2 + $0x168] sm:$0x1] %vm388_vm1, %v7671_v2  ;;  %405 = vst.msk [vmem:[#allocation2 + $0x180] sm:$0x1] %vm388_vm1, %v7671_v2  ;;  %v7949_v23 = vpack.c.bf16 %v780_v21, %v779_v20  ;;  %v732_v34 = vld [vmem:[#allocation2 + $0x32] sm:$0xff]  ;;  %v586_v41 = vld [vmem:[#allocation2 + $0x2] sm:$0xff] }
  0x6e   : > { %408 = vst.msk [vmem:[#allocation2 + $0x29] sm:$0x1] %vm388_vm1, %v7671_v2  ;;  %409 = vst.msk [vmem:[#allocation2 + $0x41] sm:$0x1] %vm388_vm1, %v7671_v2  ;;  %v827_v35 = vld [vmem:[#allocation2 + $0x31] sm:$0xff]  ;;  %v828_v36 = vld [vmem:[#allocation2 + $0x39] sm:$0xff] }
  0x6f   : > { %410 = vst.msk [vmem:[#allocation2 + $0x59] sm:$0x1] %vm388_vm1, %v7671_v2  ;;  %411 = vst.msk [vmem:[#allocation2 + $0x71] sm:$0x1] %vm388_vm1, %v7671_v2  ;;  %1131 = vrot.lane.b32.xlu1 %v7949_v23, %s12548_s23  ;;  %v7961_v40 = vpack.c.bf16 %v828_v36, %v827_v35  ;;  %v7499_v51 = vld [vmem:[%s12762_s1 + $0x38] sm:$0xff]   ;;  %v443_v52 = vld [vmem:[%s7860_s18 + $0x90] sm:$0xff] }
  0x70   : > { %412 = vst.msk [vmem:[#allocation2 + $0x89] sm:$0x1] %vm388_vm1, %v7671_v2  ;;  %413 = vst.msk [vmem:[#allocation2 + $0xa1] sm:$0x1] %vm388_vm1, %v7671_v2  ;;  %v444_v54 = vld [vmem:[%s7860_s18 + $0x98] sm:$0xff]  ;;  %7089 = vmatpush3.bf16.msra.mxu0 %v7499_v51  ;;  %v7500_v55 = vld [vmem:[%s12762_s1 + $0x70] sm:$0xff]  }
  0x71   : > { %414 = vst.msk [vmem:[#allocation2 + $0xb9] sm:$0x1] %vm388_vm1, %v7671_v2  ;;  %415 = vst.msk [vmem:[#allocation2 + $0xd1] sm:$0x1] %vm388_vm1, %v7671_v2  ;;  %v7501_v56 = vld [vmem:[%s12762_s1 + $0x30] sm:$0xff]   ;;  %7090 = vmatprep.subr.bf16.mxu0 %v7500_v55  ;;  %v7502_v58 = vld [vmem:[%s12762_s1 + $0x68] sm:$0xff]  }
  0x72   : > { %416 = vst.msk [vmem:[#allocation2 + $0xe9] sm:$0x1] %vm388_vm1, %v7671_v2  ;;  %417 = vst.msk [vmem:[#allocation2 + $0x101] sm:$0x1] %vm388_vm1, %v7671_v2  ;;  %v7503_v61 = vld [vmem:[%s12762_s1 + $0x28] sm:$0xff]   ;;  %v7504_v62 = vld [vmem:[%s12762_s1 + $0x60] sm:$0xff]  }
  0x73   : > { %418 = vst.msk [vmem:[#allocation2 + $0x119] sm:$0x1] %vm388_vm1, %v7671_v2  ;;  %419 = vst.msk [vmem:[#allocation2 + $0x131] sm:$0x1] %vm388_vm1, %v7671_v2  ;;  %v445_v63 = vld [vmem:[%s7860_s18 + $0xa0] sm:$0xff]  ;;  %v446_v0 = vld [vmem:[%s7860_s18 + $0xa8] sm:$0xff] }
  0x74   : > { %420 = vst.msk [vmem:[#allocation2 + $0x149] sm:$0x1] %vm388_vm1, %v7671_v2  ;;  %421 = vst.msk [vmem:[#allocation2 + $0x161] sm:$0x1] %vm388_vm1, %v7671_v2  ;;  %7091 = vmatpush3.bf16.msra.mxu0 %v7501_v56  ;;  %v7511_v20 = vld [vmem:[%s12762_s1 + $0x8] sm:$0xff]   ;;  %v455_v35 = vld [vmem:[%s7860_s18 + $0xf0] sm:$0xff] }
  0x75   : > { %422 = vst.msk [vmem:[#allocation2 + $0x179] sm:$0x1] %vm388_vm1, %v7671_v2  ;;  %423 = vst.msk [vmem:[#allocation2 + $0x191] sm:$0x1] %vm388_vm1, %v7671_v2  ;;  %v733_v37 = vld [vmem:[#allocation2 + $0x3a] sm:$0xff]  ;;  %7092 = vmatprep.subr.bf16.mxu0 %v7502_v58  ;;  %v456_v36 = vld [vmem:[%s7860_s18 + $0xf8] sm:$0xff] }
  0x76   : > { %458 = vst.msk [vmem:[#allocation2 + $0x19] sm:$0xff] %vm379_vm0, %v425_v3  ;;  %459 = vst.msk [vmem:[#allocation2 + $0x21] sm:$0xff] %vm379_vm0, %v426_v4  ;;  %v763_v38 = vpack.c.bf16 %v733_v37, %v732_v34  ;;  %v7505_v4 = vld [vmem:[%s12762_s1 + $0x20] sm:$0xff]   ;;  %v454_v34 = vld [vmem:[%s7860_s18 + $0xe8] sm:$0xff]  ;;  %s12763_s2 = sld [smem:[#allocation157_spill]]  ;;  %s7675_s20 = smov 3  }
  0x77   : > { %389 = vst.msk [vmem:[#allocation2] sm:$0x1] %vm388_vm1, %v7671_v2  ;;  %406 = vst.msk [vmem:[#allocation2 + $0x198] sm:$0x1] %vm388_vm1, %v7671_v2  ;;  %s12766_s3 = sld [smem:[#allocation158_spill]]  ;;  %s12552_s19 = smov 126  }
  0x78   : > { %383 = vst.msk [vmem:[#allocation2 + $0x10] sm:$0x3] %vm382_vm2, %v7671_v2  ;;  %387 = vst.msk [vmem:[#allocation2 + $0x1a8] sm:$0x3] %vm382_vm2, %v7671_v2  ;;  %7352 = vmatprep.mubr.msk.bf16.mxu1 %vm379_vm0, %v763_v38  ;;  %7093 = vmatpush3.bf16.msra.mxu0 %v7503_v61  ;;  %s12767_s4 = sld [smem:[#allocation159_spill]]  ;;  %s12550_s24 = smov 125  }
  0x79   : > { %462 = vst.msk [vmem:[#allocation2 + $0x49] sm:$0xff] %vm379_vm0, %v429_v5  ;;  %463 = vst.msk [vmem:[#allocation2 + $0x51] sm:$0xff] %vm379_vm0, %v430_v6  ;;  %7094 = vmatprep.subr.bf16.mxu0 %v7504_v62  ;;  %v7506_v5 = vld [vmem:[%s12762_s1 + $0x58] sm:$0xff]   ;;  %s9350_s16 = sld [smem:[#allocation7 + $0x4]]  ;;  %s12567_s15 = smov 124  }
  0x7a   : > { %407 = vst.msk [vmem:[#allocation2 + $0x11] sm:$0x1] %vm388_vm1, %v7671_v2  ;;  %424 = vst.msk [vmem:[#allocation2 + $0x1a9] sm:$0x1] %vm388_vm1, %v7671_v2  ;;  %s9379_s28 = sld [smem:[#allocation7 + $0x8]]  ;;  %s12565_s26 = smov 123  }
  0x7b   : > { %464 = vst.msk [vmem:[#allocation2 + $0x61] sm:$0xff] %vm379_vm0, %v431_v7  ;;  %465 = vst.msk [vmem:[#allocation2 + $0x69] sm:$0xff] %vm379_vm0, %v432_v8  ;;  %s9386_s17 = sld [smem:[#allocation7 + $0xa]]  ;;  %s12589_s13 = smov 127  }
  0x7c   : > { %466 = vst.msk [vmem:[#allocation2 + $0x79] sm:$0xff] %vm379_vm0, %v433_v9  ;;  %467 = vst.msk [vmem:[#allocation2 + $0x81] sm:$0xff] %vm379_vm0, %v434_v10  ;;  %7095 = vmatpush3.bf16.msra.mxu0 %v7505_v4  ;;  %v7507_v9 = vld [vmem:[%s12762_s1 + $0x18] sm:$0xff]   ;;  %v7508_v10 = vld [vmem:[%s12762_s1 + $0x50] sm:$0xff]   ;;  %s7016_s14 = sld [smem:[#allocation7 + $0x48]] }
  0x7d   : > { %468 = vst.msk [vmem:[#allocation2 + $0x91] sm:$0xff] %vm379_vm0, %v435_v11  ;;  %469 = vst.msk [vmem:[#allocation2 + $0x99] sm:$0xff] %vm379_vm0, %v436_v12  ;;  %v730_v24 = vld [vmem:[#allocation2 + $0x1a] sm:$0xff]  ;;  %v731_v25 = vld [vmem:[#allocation2 + $0x22] sm:$0xff]  ;;  %7096 = vmatprep.subr.bf16.mxu0 %v7506_v5  ;;  %s7018_s5 = sld [smem:[#allocation7 + $0x4a]] }
  0x7e   : > { %470 = vst.msk [vmem:[#allocation2 + $0xa9] sm:$0xff] %vm379_vm0, %v437_v13  ;;  %471 = vst.msk [vmem:[#allocation2 + $0xb1] sm:$0xff] %vm379_vm0, %v438_v14  ;;  %v634_v26 = vld [vmem:[#allocation2 + $0x18] sm:$0xff]  ;;  %v762_v27 = vpack.c.bf16 %v731_v25, %v730_v24  ;;  %v635_v28 = vld [vmem:[#allocation2 + $0x20] sm:$0xff]  ;;  %s7020_s11 = sld [smem:[#allocation7 + $0x4c]] }
  0x7f   : > { %472 = vst.msk [vmem:[#allocation2 + $0xc1] sm:$0xff] %vm379_vm0, %v439_v15  ;;  %473 = vst.msk [vmem:[#allocation2 + $0xc9] sm:$0xff] %vm379_vm0, %v440_v16  ;;  %v539_v29 = vld [vmem:[#allocation2 + $0x9] sm:$0xff]  ;;  %v7953_v30 = vpack.c.bf16 %v635_v28, %v634_v26  ;;  %v540_v32 = vld [vmem:[#allocation2 + $0x19] sm:$0xff]  ;;  %12802 = sst [smem:[#allocation56_spill]] %s9350_s16 }
  0x80   : > { %474 = vst.msk [vmem:[#allocation2 + $0xd9] sm:$0xff] %vm379_vm0, %v441_v17  ;;  %475 = vst.msk [vmem:[#allocation2 + $0xe1] sm:$0xff] %vm379_vm0, %v442_v18  ;;  %1083 = vrot.lane.b32.xlu0 %v762_v27, %s12546_s29  ;;  %v570_v31 = vpack.c.bf16 %v539_v29, %v538_v22  ;;  %v541_v33 = vld [vmem:[#allocation2 + $0x21] sm:$0xff]  ;;  %v782_v45 = vld [vmem:[#allocation2 + $0x50] sm:$0xff]  ;;  %7097 = vmatpush3.bf16.msra.mxu0 %v7507_v9  ;;  %12805 = sst [smem:[#allocation59_spill]] %s9379_s28 }
  0x81   : > { %1035 = vrot.lane.b32.xlu1 %v7953_v30, %s12544_s25  ;;  %v7958_v39 = vpack.c.bf16 %v541_v33, %v540_v32  ;;  %v587_v42 = vld [vmem:[#allocation2 + $0xa] sm:$0xff]  ;;  %v735_v50 = vld [vmem:[#allocation2 + $0x52] sm:$0xff]  ;;  %476 = vst.msk [vmem:[#allocation2 + $0xf1] sm:$0xff] %vm379_vm0, %v443_v52  ;;  %477 = vst.msk [vmem:[#allocation2 + $0xf9] sm:$0xff] %vm379_vm0, %v444_v54  ;;  %7098 = vmatprep.subr.bf16.mxu0 %v7508_v10  ;;  %12806 = sst [smem:[#allocation60_spill]] %s9386_s17 }
  0x82   : > { %v618_v43 = vpack.c.bf16 %v587_v42, %v586_v41  ;;  %v781_v44 = vld [vmem:[#allocation2 + $0x48] sm:$0xff]  ;;  %v830_v48 = vld [vmem:[#allocation2 + $0x51] sm:$0xff]  ;;  %v783_v57 = vld [vmem:[#allocation2 + $0x60] sm:$0xff]  ;;  %478 = vst.msk [vmem:[#allocation2 + $0x109] sm:$0xff] %vm379_vm0, %v445_v63  ;;  %s7036_s0 = sld [smem:[#allocation7 + $0x5c]] }
  0x83   : > { %v7970_v46 = vpack.c.bf16 %v782_v45, %v781_v44  ;;  %v829_v47 = vld [vmem:[#allocation2 + $0x49] sm:$0xff]  ;;  %479 = vst.msk [vmem:[#allocation2 + $0x111] sm:$0xff] %vm379_vm0, %v446_v0  ;;  %v831_v2 = vld [vmem:[#allocation2 + $0x61] sm:$0xff]  ;;  %v785_v11 = vld [vmem:[#allocation2 + $0x78] sm:$0xff]  ;;  %s9609_s10 = sld [smem:[#allocation7 + $0x2f]] }
  0x84   : > { %939 = vrot.lane.b32.xlu0 %v570_v31, %s12546_s29  ;;  %v734_v49 = vld [vmem:[#allocation2 + $0x4a] sm:$0xff]  ;;  %v7979_v53 = vpack.c.bf16 %v830_v48, %v829_v47  ;;  %v736_v7 = vld [vmem:[#allocation2 + $0x62] sm:$0xff]  ;;  %v833_v18 = vld [vmem:[#allocation2 + $0x79] sm:$0xff]  ;;  %487 = vst.msk [vmem:[#allocation2 + $0x171] sm:$0xff] %vm379_vm0, %v454_v34  ;;  %s9611_s12 = sld [smem:[#allocation7 + $0x31]] }
  0x85   : > { %941 = vrot.lane.b32.xlu1 %v7958_v39, %s12546_s29  ;;  %v7997_v59 = vpack.c.bf16 %v735_v50, %v734_v49  ;;  %v784_v60 = vld [vmem:[#allocation2 + $0x68] sm:$0xff]  ;;  %v786_v12 = vld [vmem:[#allocation2 + $0x80] sm:$0xff]  ;;  %v7509_v14 = vld [vmem:[%s12762_s1 + $0x10] sm:$0xff]   ;;  %488 = vst.msk [vmem:[#allocation2 + $0x181] sm:$0xff] %vm379_vm0, %v455_v35  ;;  %s9614_s22 = sld [smem:[#allocation7 + $0x33]] }
  0x86   : > { %v8013_v1 = vpack.c.bf16 %v784_v60, %v783_v57  ;;  %v832_v3 = vld [vmem:[#allocation2 + $0x69] sm:$0xff]  ;;  %v447_v16 = vld [vmem:[%s7860_s18 + $0xb0] sm:$0xff]  ;;  %v8052_v21 = vpack.c.bf16 %v786_v12, %v785_v11  ;;  %7099 = vmatpush3.bf16.msra.mxu0 %v7509_v14  ;;  %489 = vst.msk [vmem:[#allocation2 + $0x189] sm:$0xff] %vm379_vm0, %v456_v36  ;;  %v788_v42 = vld [vmem:[#allocation2 + $0x98] sm:$0xff]  ;;  %s9617_s30 = sld [smem:[#allocation7 + $0x35]] }
  0x87   : > { %v8024_v6 = vpack.c.bf16 %v832_v3, %v831_v2  ;;  %v737_v8 = vld [vmem:[#allocation2 + $0x6a] sm:$0xff]  ;;  %480 = vst.msk [vmem:[#allocation2 + $0x121] sm:$0xff] %vm379_vm0, %v447_v16  ;;  %v834_v19 = vld [vmem:[#allocation2 + $0x81] sm:$0xff]  ;;  %v836_v47 = vld [vmem:[#allocation2 + $0x99] sm:$0xff]  ;;  %s9622_s9 = sld [smem:[#allocation7 + $0x37]] }
  0x88   : > { %1179 = vrot.lane.b32.xlu0 %v7961_v40, %s12544_s25  ;;  %v765_v13 = vpack.c.bf16 %v737_v8, %v736_v7  ;;  %v7510_v15 = vld [vmem:[%s12762_s1 + $0x48] sm:$0xff]   ;;  %v7512_v24 = vld [vmem:[%s12762_s1 + $0x40] sm:$0xff]   ;;  %v449_v26 = vld [vmem:[%s7860_s18 + $0xc0] sm:$0xff]  ;;  %v8074_v33 = vpack.c.bf16 %v834_v19, %v833_v18  ;;  %s9627_s8 = sld [smem:[#allocation7 + $0x3b]] }
  0x89   : > { %987 = vrot.lane.b32.xlu1 %v618_v43, %s12548_s23  ;;  %v448_v17 = vld [vmem:[%s7860_s18 + $0xb8] sm:$0xff]  ;;  %7100 = vmatprep.subr.bf16.mxu0 %v7510_v15  ;;  %v7515_v25 = vld [vmem:[%s12762_s1 + $0x80] sm:$0xff]   ;;  %482 = vst.msk [vmem:[#allocation2 + $0x139] sm:$0xff] %vm379_vm0, %v449_v26  ;;  %v453_v32 = vld [vmem:[%s7860_s18 + $0xe0] sm:$0xff]  ;;  %s9632_s21 = sld [smem:[#allocation7 + $0x3d]] }
  0x8a   : > { %481 = vst.msk [vmem:[#allocation2 + $0x129] sm:$0xff] %vm379_vm0, %v448_v17  ;;  %v7513_v22 = vld [vmem:[%s12762_s1 + $0x88] sm:$0xff]   ;;  %v738_v28 = vld [vmem:[#allocation2 + $0x7a] sm:$0xff]  ;;  %486 = vst.msk [vmem:[#allocation2 + $0x169] sm:$0xff] %vm379_vm0, %v453_v32  ;;  %7101 = vmatpush3.bf16.msra.mxu0 %v7511_v20  ;;  %s9635_s27 = sld [smem:[#allocation7 + $0x3f]] }
  0x8b   : > { %7348 = vmatprep.subr.bf16.mxu1 %v7513_v22  ;;  %v451_v29 = vld [vmem:[%s7860_s18 + $0xd0] sm:$0xff]  ;;  %v452_v31 = vld [vmem:[%s7860_s18 + $0xd8] sm:$0xff]  ;;  %7102 = vmatprep.subr.bf16.mxu0 %v7512_v24  ;;  %v787_v41 = vld [vmem:[#allocation2 + $0x90] sm:$0xff]  ;;  %s9637_s7 = sld [smem:[#allocation7 + $0x41]] }
  0x8c   : > { %1085 = vrot.lane.b32.xlu0 %v763_v38, %s12546_s29  ;;  %7349 = vmatpush3.bf16.msra.mxu1 %v7513_v22  ;;  %484 = vst.msk [vmem:[#allocation2 + $0x151] sm:$0xff] %vm379_vm0, %v451_v29  ;;  %485 = vst.msk [vmem:[#allocation2 + $0x159] sm:$0xff] %vm379_vm0, %v452_v31  ;;  %v739_v37 = vld [vmem:[#allocation2 + $0x82] sm:$0xff]  ;;  %v815_v44 = vpack.c.bf16 %v788_v42, %v787_v41  ;;  %v835_v45 = vld [vmem:[#allocation2 + $0x91] sm:$0xff]  ;;  %s9642_s6 = sld [smem:[#allocation7 + $0x43]] }
  0x8d   : > { %989 = vrot.lane.b32.xlu1 %v762_v27, %s12548_s23  ;;  %v450_v27 = vld [vmem:[%s7860_s18 + $0xc8] sm:$0xff]  ;;  %7350 = vmatprep.subr.bf16.mxu1 %v7515_v25  ;;  %v766_v43 = vpack.c.bf16 %v739_v37, %v738_v28  ;;  %v8100_v50 = vpack.c.bf16 %v836_v47, %v835_v45  ;;  %v789_v52 = vld [vmem:[#allocation2 + $0xa8] sm:$0xff]  ;;  %v790_v54 = vld [vmem:[#allocation2 + $0xb0] sm:$0xff]  ;;  %s9366_s18 = sld [smem:[#allocation7 + $0x6]] }
  0x8e   : > { %483 = vst.msk [vmem:[#allocation2 + $0x141] sm:$0xff] %vm379_vm0, %v450_v27  ;;  %v740_v48 = vld [vmem:[#allocation2 + $0x92] sm:$0xff]  ;;  %v741_v49 = vld [vmem:[#allocation2 + $0x9a] sm:$0xff]  ;;  %v742_v55 = vld [vmem:[#allocation2 + $0xaa] sm:$0xff]  ;;  %v816_v61 = vpack.c.bf16 %v790_v54, %v789_v52 }
  0x8f   : > { %v767_v51 = vpack.c.bf16 %v741_v49, %v740_v48  ;;  %v743_v56 = vld [vmem:[#allocation2 + $0xb2] sm:$0xff]  ;;  %v744_v57 = vld [vmem:[#allocation2 + $0xc2] sm:$0xff]  ;;  %v745_v58 = vld [vmem:[#allocation2 + $0xca] sm:$0xff] }
  0x90   : > { %1133 = vrot.lane.b32.xlu0 %v7970_v46, %s12548_s23  ;;  %7351 = vmatpush3.bf16.msra.mxu1 %v7515_v25  ;;  %v838_v60 = vld [vmem:[#allocation2 + $0xb1] sm:$0xff]  ;;  %v768_v62 = vpack.c.bf16 %v743_v56, %v742_v55  ;;  %v8111_v63 = vpack.c.bf16 %v745_v58, %v744_v57  ;;  %v746_v2 = vld [vmem:[#allocation2 + $0xda] sm:$0xff]  ;;  %v747_v3 = vld [vmem:[#allocation2 + $0xe2] sm:$0xff] }
  0x91   : > { %1037 = vrot.lane.b32.xlu1 %v7949_v23, %s12544_s25  ;;  %v748_v4 = vld [vmem:[#allocation2 + $0xf2] sm:$0xff]  ;;  %v749_v5 = vld [vmem:[#allocation2 + $0xfa] sm:$0xff]  ;;  %v8123_v7 = vpack.c.bf16 %v747_v3, %v746_v2  ;;  %v792_v9 = vld [vmem:[#allocation2 + $0xc8] sm:$0xff] }
  0x92   : > { %v791_v8 = vld [vmem:[#allocation2 + $0xc0] sm:$0xff]  ;;  %v8125_v10 = vpack.c.bf16 %v749_v5, %v748_v4  ;;  %v750_v14 = vld [vmem:[#allocation2 + $0x10a] sm:$0xff]  ;;  %v751_v15 = vld [vmem:[#allocation2 + $0x112] sm:$0xff] }
  0x93   : > { %7353 = vmatmul.mubr.msk.bf16.vlgmr.msra.gmra.mxu1 %vm379_vm0, %v7997_v59  ;;  %v817_v11 = vpack.c.bf16 %v792_v9, %v791_v8  ;;  %v839_v12 = vld [vmem:[#allocation2 + $0xc1] sm:$0xff]  ;;  %v753_v17 = vld [vmem:[#allocation2 + $0x12a] sm:$0xff]  ;;  %v8138_v19 = vpack.c.bf16 %v751_v15, %v750_v14  ;;  %v793_v22 = vld [vmem:[#allocation2 + $0xd8] sm:$0xff]  ;;  %12803 = sst [smem:[#allocation57_spill]] %s9366_s18 }
  0x94   : > { %1181 = vrot.lane.b32.xlu0 %v7979_v53, %s12544_s25  ;;  %7356 = vmatprep.mubr.msk.bf16.mxu1 %vm379_vm0, %v765_v13  ;;  %v752_v16 = vld [vmem:[#allocation2 + $0x122] sm:$0xff]  ;;  %v756_v27 = vld [vmem:[#allocation2 + $0x152] sm:$0xff]  ;;  %v757_v28 = vld [vmem:[#allocation2 + $0x15a] sm:$0xff] }
  0x95   : > { %943 = vrot.lane.b32.xlu1 %v7961_v40, %s12546_s29  ;;  %v8140_v20 = vpack.c.bf16 %v753_v17, %v752_v16  ;;  %v794_v24 = vld [vmem:[#allocation2 + $0xe0] sm:$0xff]  ;;  %v8155_v35 = vpack.c.bf16 %v757_v28, %v756_v27  ;;  %v758_v37 = vld [vmem:[#allocation2 + $0x16a] sm:$0xff]  ;;  %v796_v45 = vld [vmem:[#allocation2 + $0xf8] sm:$0xff] }
  0x96   : > { %v754_v25 = vld [vmem:[#allocation2 + $0x13a] sm:$0xff]  ;;  %v755_v26 = vld [vmem:[#allocation2 + $0x142] sm:$0xff]  ;;  %v818_v29 = vpack.c.bf16 %v794_v24, %v793_v22  ;;  %v761_v42 = vld [vmem:[#allocation2 + $0x18a] sm:$0xff] }
  0x97   : > { %v8153_v31 = vpack.c.bf16 %v755_v26, %v754_v25  ;;  %v841_v32 = vld [vmem:[#allocation2 + $0xd9] sm:$0xff]  ;;  %v842_v34 = vld [vmem:[#allocation2 + $0xe1] sm:$0xff]  ;;  %v843_v49 = vld [vmem:[#allocation2 + $0xf1] sm:$0xff] }
  0x98   : > { %1087 = vrot.lane.b32.xlu0 %v7997_v59, %s12546_s29  ;;  %v8163_v36 = vpack.c.bf16 %v842_v34, %v841_v32  ;;  %v760_v41 = vld [vmem:[#allocation2 + $0x182] sm:$0xff]  ;;  %v798_v55 = vld [vmem:[#allocation2 + $0x110] sm:$0xff]  ;;  %v801_v27 = vld [vmem:[#allocation2 + $0x138] sm:$0xff] }
  0x99   : > { %991 = vrot.lane.b32.xlu1 %v763_v38, %s12548_s23  ;;  %v7514_v38 = vld [vmem:[%s12762_s1] sm:$0xff]   ;;  %v8170_v47 = vpack.c.bf16 %v761_v42, %v760_v41  ;;  %v797_v54 = vld [vmem:[#allocation2 + $0x108] sm:$0xff]  ;;  %v846_v58 = vld [vmem:[#allocation2 + $0x111] sm:$0xff]  ;;  %s7038_s1 = sld [smem:[#allocation7 + $0x5e]] }
  0x9a   : > { %7103 = vmatpush3.bf16.msra.mxu0 %v7514_v38  ;;  %v759_v38 = vld [vmem:[#allocation2 + $0x172] sm:$0xff]  ;;  %v8195_v56 = vpack.c.bf16 %v798_v55, %v797_v54  ;;  %v845_v57 = vld [vmem:[#allocation2 + $0x109] sm:$0xff]  ;;  %v490_v5 = vld [vmem:[#allocation2] sm:$0xff] }
  0x9b   : > { %7357 = vmatmul.mubr.msk.bf16.gmra.mxu1 %vm379_vm0, %v766_v43  ;;  %v800_v2 = vld [vmem:[#allocation2 + $0x128] sm:$0xff]  ;;  %v802_v28 = vld [vmem:[#allocation2 + $0x140] sm:$0xff] }
  0x9c   : > { %1135 = vrot.lane.b32.xlu0 %v8013_v1, %s12548_s23  ;;  %7360 = vmatprep.mubr.msk.bf16.mxu1 %vm379_vm0, %v767_v51  ;;  %v491_v3 = vld [vmem:[#allocation2 + $0x8] sm:$0xff]  ;;  %v8236_v34 = vpack.c.bf16 %v802_v28, %v801_v27  ;;  %v849_v42 = vld [vmem:[#allocation2 + $0x139] sm:$0xff]  ;;  %v854_v27 = vld [vmem:[#allocation2 + $0x171] sm:$0xff] }
  0x9d   : > { %1039 = vrot.lane.b32.xlu1 %v7970_v46, %s12544_s25  ;;  %v522_v9 = vpack.c.bf16 %v491_v3, %v490_v5  ;;  %v852_v5 = vld [vmem:[#allocation2 + $0x159] sm:$0xff] }
  0xa0   : > { %1183 = vrot.lane.b32.xlu0 %v8024_v6, %s12544_s25 }
  0xa1   : > { %945 = vrot.lane.b32.xlu1 %v7979_v53, %s12546_s29 }
  0xa3   : > { %7361 = vmatmul.mubr.msk.bf16.gmra.mxu1 %vm379_vm0, %v768_v62 }
  0xa4   : > { %1089 = vrot.lane.b32.xlu0 %v765_v13, %s12546_s29  ;;  %7364 = vmatprep.mubr.msk.bf16.mxu1 %vm379_vm0, %v8111_v63 }
  0xa5   : > { %993 = vrot.lane.b32.xlu1 %v7997_v59, %s12548_s23  ;;  %v837_v59 = vld [vmem:[#allocation2 + $0xa9] sm:$0xff] }
  0xa6   : > { %v8118_v0 = vpack.c.bf16 %v838_v60, %v837_v59  ;;  %v8201_v59 = vpack.c.bf16 %v846_v58, %v845_v57  ;;  %v803_v58 = vld [vmem:[#allocation2 + $0x150] sm:$0xff] }
  0xa8   : > { %1137 = vrot.lane.b32.xlu0 %v8052_v21, %s12548_s23 }
  0xa9   : > { %1041 = vrot.lane.b32.xlu1 %v8013_v1, %s12544_s25 }
  0xab   : > { %7365 = vmatmul.mubr.msk.bf16.gmra.mxu1 %vm379_vm0, %v8123_v7 }
  0xac   : > { %1185 = vrot.lane.b32.xlu0 %v8074_v33, %s12544_s25  ;;  %7368 = vmatprep.mubr.msk.bf16.mxu1 %vm379_vm0, %v8125_v10 }
  0xad   : > { %947 = vrot.lane.b32.xlu1 %v8024_v6, %s12546_s29 }
  0xb0   : > { %1091 = vrot.lane.b32.xlu0 %v766_v43, %s12546_s29 }
  0xb1   : > { %995 = vrot.lane.b32.xlu1 %v765_v13, %s12548_s23  ;;  %v840_v13 = vld [vmem:[#allocation2 + $0xc9] sm:$0xff] }
  0xb2   : > { %v8136_v18 = vpack.c.bf16 %v840_v13, %v839_v12  ;;  %v847_v12 = vld [vmem:[#allocation2 + $0x121] sm:$0xff]  ;;  %v848_v13 = vld [vmem:[#allocation2 + $0x129] sm:$0xff] }
  0xb3   : > { %7369 = vmatmul.mubr.msk.bf16.gmra.mxu1 %vm379_vm0, %v8138_v19  ;;  %v8221_v16 = vpack.c.bf16 %v848_v13, %v847_v12 }
  0xb4   : > { %1139 = vrot.lane.b32.xlu0 %v815_v44, %s12548_s23  ;;  %7372 = vmatprep.mubr.msk.bf16.mxu1 %vm379_vm0, %v8140_v20 }
  0xb5   : > { %1043 = vrot.lane.b32.xlu1 %v8052_v21, %s12544_s25 }
  0xb8   : > { %1187 = vrot.lane.b32.xlu0 %v8100_v50, %s12544_s25 }
  0xb9   : > { %949 = vrot.lane.b32.xlu1 %v8074_v33, %s12546_s29 }
  0xbb   : > { %7373 = vmatmul.mubr.msk.bf16.gmra.mxu1 %vm379_vm0, %v8153_v31 }
  0xbc   : > { %1093 = vrot.lane.b32.xlu0 %v767_v51, %s12546_s29  ;;  %7376 = vmatprep.mubr.msk.bf16.mxu1 %vm379_vm0, %v8155_v35 }
  0xbd   : > { %997 = vrot.lane.b32.xlu1 %v766_v43, %s12548_s23  ;;  %v8168_v43 = vpack.c.bf16 %v759_v38, %v758_v37 }
  0xc0   : > { %1141 = vrot.lane.b32.xlu0 %v816_v61, %s12548_s23 }
  0xc1   : > { %1045 = vrot.lane.b32.xlu1 %v815_v44, %s12544_s25  ;;  %v795_v44 = vld [vmem:[#allocation2 + $0xf0] sm:$0xff] }
  0xc2   : > { %v8180_v48 = vpack.c.bf16 %v796_v45, %v795_v44  ;;  %v850_v44 = vld [vmem:[#allocation2 + $0x141] sm:$0xff] }
  0xc3   : > { %7377 = vmatmul.mubr.msk.bf16.gmra.mxu1 %vm379_vm0, %v8168_v43 }
  0xc4   : > { %1189 = vrot.lane.b32.xlu0 %v8118_v0, %s12544_s25  ;;  %7380 = vmatprep.mubr.msk.bf16.mxu1 %vm379_vm0, %v8170_v47 }
  0xc5   : > { %951 = vrot.lane.b32.xlu1 %v8100_v50, %s12546_s29 }
  0xc8   : > { %1095 = vrot.lane.b32.xlu0 %v768_v62, %s12546_s29 }
  0xc9   : > { %999 = vrot.lane.b32.xlu1 %v767_v51, %s12548_s23  ;;  %v844_v51 = vld [vmem:[#allocation2 + $0xf9] sm:$0xff] }
  0xca   : > { %v8186_v52 = vpack.c.bf16 %v844_v51, %v843_v49 }
  0xcc   : > { %1143 = vrot.lane.b32.xlu0 %v817_v11, %s12548_s23 }
  0xcd   : > { %1047 = vrot.lane.b32.xlu1 %v816_v61, %s12544_s25 }
  0xd0   : > { %1191 = vrot.lane.b32.xlu0 %v8136_v18, %s12544_s25 }
  0xd1   : > { %953 = vrot.lane.b32.xlu1 %v8118_v0, %s12546_s29 }
  0xd4   : > { %1097 = vrot.lane.b32.xlu0 %v8111_v63, %s12546_s29 }
  0xd5   : > { %1001 = vrot.lane.b32.xlu1 %v768_v62, %s12548_s23 }
  0xd8   : > { %1145 = vrot.lane.b32.xlu0 %v818_v29, %s12548_s23 }
  0xd9   : > { %1049 = vrot.lane.b32.xlu1 %v817_v11, %s12544_s25 }
  0xdc   : > { %1193 = vrot.lane.b32.xlu0 %v8163_v36, %s12544_s25 }
  0xdd   : > { %955 = vrot.lane.b32.xlu1 %v8136_v18, %s12546_s29 }
  0xe0   : > { %1099 = vrot.lane.b32.xlu0 %v8123_v7, %s12546_s29 }
  0xe1   : > { %1003 = vrot.lane.b32.xlu1 %v8111_v63, %s12548_s23  ;;  %v1132_v60 = vpop.permute.xlu1 %1131  ;;  %v799_v63 = vld [vmem:[#allocation2 + $0x120] sm:$0xff] }
  0xe2   : > { %v8213_v8 = vpack.c.bf16 %v800_v2, %v799_v63 }
  0xe4   : > { %1147 = vrot.lane.b32.xlu0 %v8180_v48, %s12548_s23 }
  0xe5   : > { %1051 = vrot.lane.b32.xlu1 %v818_v29, %s12544_s25 }
  0xe8   : > { %1195 = vrot.lane.b32.xlu0 %v8186_v52, %s12544_s25 }
  0xe9   : > { %957 = vrot.lane.b32.xlu1 %v8163_v36, %s12546_s29 }
  0xec   : > { %1101 = vrot.lane.b32.xlu0 %v8125_v10, %s12546_s29 }
  0xed   : > { %1005 = vrot.lane.b32.xlu1 %v8123_v7, %s12548_s23 }
  0xf0   : > { %1149 = vrot.lane.b32.xlu0 %v8195_v56, %s12548_s23 }
  0xf1   : > { %1053 = vrot.lane.b32.xlu1 %v8180_v48, %s12544_s25 }
  0xf2   : > { %v1084_v61 = vpop.permute.xlu0 %1083 }
  0xf3   : > { %v1036_v62 = vpop.permute.xlu1 %1035  ;;  %v1343_v7 = vsel %vm379_vm0, %v7958_v39, %v1084_v61 }
  0xf4   : > { %1197 = vrot.lane.b32.xlu0 %v8201_v59, %s12544_s25  ;;  %v1390_v15 = vsel %vm1259_vm3, %v1343_v7, %v1132_v60 }
  0xf5   : > { %959 = vrot.lane.b32.xlu1 %v8186_v52, %s12546_s29 }
  0xf6   : > { %v940_v4 = vpop.permute.xlu0 %939 }
  0xf7   : > { %v942_v11 = vpop.permute.xlu1 %941  ;;  %v1213_v17 = vsel %vm379_vm0, %v522_v9, %v940_v4  ;;  %v851_v4 = vld [vmem:[#allocation2 + $0x151] sm:$0xff] }
  0xf8   : > { %1103 = vrot.lane.b32.xlu0 %v8138_v19, %s12546_s29  ;;  %v1216_v32 = vsel %vm379_vm0, %v7953_v30, %v942_v11 }
  0xf9   : > { %1007 = vrot.lane.b32.xlu1 %v8125_v10, %s12548_s23 }
  0xfa   : > { %v1180_v14 = vpop.permute.xlu0 %1179 }
  0xfb   : > { %v1422_v39 = vsel %vm1292_vm4, %v1390_v15, %v1180_v14  ;;  %v988_v22 = vpop.permute.xlu1 %987  ;;  %v805_v15 = vld [vmem:[#allocation2 + $0x168] sm:$0xff] }
  0xfc   : > { %1151 = vrot.lane.b32.xlu0 %v8213_v8, %s12548_s23  ;;  %1700 = vmatprep.mubr.bf16.mxu0 %v1422_v39  ;;  %v1261_v24 = vsel %vm1259_vm3, %v1213_v17, %v988_v22 }
  0xfd   : > { %1055 = vrot.lane.b32.xlu1 %v8195_v56, %s12544_s25  ;;  %v1294_v26 = vsel %vm1292_vm4, %v1261_v24, %v1036_v62 }
  0xfe   : > { %v1086_v25 = vpop.permute.xlu0 %1085  ;;  %1701 = vmatmul.mubr.bf16.vlgmr.msra.gmra.mxu0 %v1294_v26 }
  0xff   : > { %v990_v10 = vpop.permute.xlu1 %989  ;;  %v1346_v37 = vsel %vm379_vm0, %v7961_v40, %v1086_v25  ;;  %v8248_v40 = vpack.c.bf16 %v850_v44, %v849_v42  ;;  %v807_v42 = vld [vmem:[#allocation2 + $0x180] sm:$0xff] }
 0x100   : > { %1199 = vrot.lane.b32.xlu0 %v8221_v16, %s12544_s25  ;;  %v1263_v38 = vsel %vm1259_vm3, %v1216_v32, %v990_v10  ;;  %v853_v10 = vld [vmem:[#allocation2 + $0x169] sm:$0xff] }
 0x101   : > { %961 = vrot.lane.b32.xlu1 %v8201_v59, %s12546_s29 }
 0x102   : > { %v1134_v29 = vpop.permute.xlu0 %1133 }
 0x103   : > { %v1038_v41 = vpop.permute.xlu1 %1037  ;;  %v1392_v45 = vsel %vm1259_vm3, %v1346_v37, %v1134_v29 }
 0x104   : > { %1105 = vrot.lane.b32.xlu0 %v8140_v20, %s12546_s29  ;;  %v1297_v51 = vsel %vm1292_vm4, %v1263_v38, %v1038_v41 }
 0x105   : > { %1009 = vrot.lane.b32.xlu1 %v8138_v19, %s12548_s23  ;;  %v804_v19 = vld [vmem:[#allocation2 + $0x158] sm:$0xff] }
 0x106   : > { %v1182_v49 = vpop.permute.xlu0 %1181  ;;  %v8260_v62 = vpack.c.bf16 %v804_v19, %v803_v58  ;;  %v855_v19 = vld [vmem:[#allocation2 + $0x181] sm:$0xff] }
 0x107   : > { %v1425_v30 = vsel %vm1292_vm4, %v1392_v45, %v1182_v49  ;;  %v944_v54 = vpop.permute.xlu1 %943  ;;  %v905_v45 = vld [vmem:[#allocation2 + $0x19a] sm:$0xff]  ;;  %v906_v49 = vld [vmem:[#allocation2 + $0x1a2] sm:$0xff] }
 0x108   : > { %1153 = vrot.lane.b32.xlu0 %v8236_v34, %s12548_s23  ;;  %1708 = vmatprep.mubr.bf16.mxu0 %v1425_v30  ;;  %v1219_v61 = vsel %vm379_vm0, %v7949_v23, %v944_v54 }
 0x109   : > { %1709 = vmatmul.mubr.bf16.gmra.mxu0 %v1297_v51  ;;  %1057 = vrot.lane.b32.xlu1 %v8213_v8, %s12544_s25  ;;  %v922_v51 = vpack.c.bf16 %v906_v49, %v905_v45  ;;  %v505_v45 = vld [vmem:[#allocation2 + $0xb0] sm:$0xff] }
 0x10a   : > { %v1088_v55 = vpop.permute.xlu0 %1087 }
 0x10b   : > { %v992_v57 = vpop.permute.xlu1 %991  ;;  %v1349_v63 = vsel %vm379_vm0, %v7979_v53, %v1088_v55  ;;  %v8272_v53 = vpack.c.bf16 %v852_v5, %v851_v4  ;;  %7381 = vmatmul.mubr.msk.bf16.gmra.mxu1 %vm379_vm0, %v922_v51 }
 0x10c   : > { %1201 = vrot.lane.b32.xlu0 %v8248_v40, %s12544_s25  ;;  %v1265_v2 = vsel %vm1259_vm3, %v1219_v61, %v992_v57 }
 0x10d   : > { %963 = vrot.lane.b32.xlu1 %v8221_v16, %s12546_s29 }
 0x10e   : > { %v1136_v60 = vpop.permute.xlu0 %1135 }
 0x10f   : > { %v1040_v3 = vpop.permute.xlu1 %1039  ;;  %v1394_v7 = vsel %vm1259_vm3, %v1349_v63, %v1136_v60  ;;  %v856_v60 = vld [vmem:[#allocation2 + $0x189] sm:$0xff] }
 0x110   : > { %1107 = vrot.lane.b32.xlu0 %v8153_v31, %s12546_s29  ;;  %v1300_v11 = vsel %vm1292_vm4, %v1265_v2, %v1040_v3 }
 0x111   : > { %1011 = vrot.lane.b32.xlu1 %v8140_v20, %s12548_s23  ;;  %v806_v20 = vld [vmem:[#allocation2 + $0x170] sm:$0xff] }
 0x112   : > { %v1184_v9 = vpop.permute.xlu0 %1183  ;;  %v8284_v22 = vpack.c.bf16 %v806_v20, %v805_v15  ;;  %v857_v15 = vld [vmem:[#allocation2 + $0x199] sm:$0xff]  ;;  %v858_v20 = vld [vmem:[#allocation2 + $0x1a1] sm:$0xff] }
 0x113   : > { %v1428_v23 = vsel %vm1292_vm4, %v1394_v7, %v1184_v9  ;;  %v946_v12 = vpop.permute.xlu1 %945  ;;  %v809_v7 = vld [vmem:[#allocation2 + $0x198] sm:$0xff]  ;;  %v810_v9 = vld [vmem:[#allocation2 + $0x1a0] sm:$0xff] }
 0x114   : > { %1155 = vrot.lane.b32.xlu0 %v8260_v62, %s12548_s23  ;;  %1716 = vmatprep.mubr.bf16.mxu0 %v1428_v23  ;;  %v1222_v17 = vsel %vm379_vm0, %v7970_v46, %v946_v12  ;;  %v826_v23 = vpack.c.bf16 %v810_v9, %v809_v7 }
 0x115   : > { %1717 = vmatmul.mubr.bf16.gmra.mxu0 %v1300_v11  ;;  %1059 = vrot.lane.b32.xlu1 %v8236_v34, %s12544_s25 }
 0x116   : > { %v1090_v13 = vpop.permute.xlu0 %1089 }
 0x117   : > { %v994_v14 = vpop.permute.xlu1 %993  ;;  %v1352_v24 = vsel %vm379_vm0, %v8024_v6, %v1090_v13  ;;  %v8296_v6 = vpack.c.bf16 %v854_v27, %v853_v10 }
 0x118   : > { %1203 = vrot.lane.b32.xlu0 %v8272_v53, %s12544_s25  ;;  %v1267_v25 = vsel %vm1259_vm3, %v1222_v17, %v994_v14 }
 0x119   : > { %965 = vrot.lane.b32.xlu1 %v8248_v40, %s12546_s29 }
 0x11a   : > { %v1138_v39 = vpop.permute.xlu0 %1137 }
 0x11b   : > { %v1042_v26 = vpop.permute.xlu1 %1041  ;;  %v1396_v28 = vsel %vm1259_vm3, %v1352_v24, %v1138_v39 }
 0x11c   : > { %1109 = vrot.lane.b32.xlu0 %v8155_v35, %s12546_s29  ;;  %v1303_v32 = vsel %vm1292_vm4, %v1267_v25, %v1042_v26  ;;  %v503_v25 = vld [vmem:[#allocation2 + $0x98] sm:$0xff] }
 0x11d   : > { %1013 = vrot.lane.b32.xlu1 %v8153_v31, %s12548_s23  ;;  %v808_v31 = vld [vmem:[#allocation2 + $0x188] sm:$0xff] }
 0x11e   : > { %v1186_v29 = vpop.permute.xlu0 %1185  ;;  %v825_v54 = vpack.c.bf16 %v808_v31, %v807_v42 }
 0x11f   : > { %v1431_v46 = vsel %vm1292_vm4, %v1396_v28, %v1186_v29  ;;  %v948_v37 = vpop.permute.xlu1 %947 }
 0x120   : > { %1157 = vrot.lane.b32.xlu0 %v8284_v22, %s12548_s23  ;;  %1724 = vmatprep.mubr.bf16.mxu0 %v1431_v46  ;;  %v1225_v30 = vsel %vm379_vm0, %v8013_v1, %v948_v37 }
 0x121   : > { %1725 = vmatmul.mubr.bf16.gmra.mxu0 %v1303_v32  ;;  %1061 = vrot.lane.b32.xlu1 %v8260_v62, %s12544_s25 }
 0x122   : > { %v1092_v38 = vpop.permute.xlu0 %1091 }
 0x123   : > { %v996_v41 = vpop.permute.xlu1 %995  ;;  %v1355_v55 = vsel %vm379_vm0, %v8074_v33, %v1092_v38  ;;  %v8318_v33 = vpack.c.bf16 %v856_v60, %v855_v19 }
 0x124   : > { %1205 = vrot.lane.b32.xlu0 %v8296_v6, %s12544_s25  ;;  %v1269_v57 = vsel %vm1259_vm3, %v1225_v30, %v996_v41 }
 0x125   : > { %967 = vrot.lane.b32.xlu1 %v8272_v53, %s12546_s29 }
 0x126   : > { %v1140_v44 = vpop.permute.xlu0 %1139 }
 0x127   : > { %v1044_v58 = vpop.permute.xlu1 %1043  ;;  %v1398_v61 = vsel %vm1259_vm3, %v1355_v55, %v1140_v44  ;;  %v504_v44 = vld [vmem:[#allocation2 + $0xa8] sm:$0xff] }
 0x128   : > { %1111 = vrot.lane.b32.xlu0 %v8168_v43, %s12546_s29  ;;  %v1306_v2 = vsel %vm1292_vm4, %v1269_v57, %v1044_v58  ;;  %v529_v30 = vpack.c.bf16 %v505_v45, %v504_v44 }
 0x129   : > { %1015 = vrot.lane.b32.xlu1 %v8155_v35, %s12548_s23 }
 0x12a   : > { %v1188_v63 = vpop.permute.xlu0 %1187 }
 0x12b   : > { %v1434_v1 = vsel %vm1292_vm4, %v1398_v61, %v1188_v63  ;;  %v950_v3 = vpop.permute.xlu1 %949 }
 0x12c   : > { %1159 = vrot.lane.b32.xlu0 %v825_v54, %s12548_s23  ;;  %1732 = vmatprep.mubr.bf16.mxu0 %v1434_v1  ;;  %v1228_v11 = vsel %vm379_vm0, %v8052_v21, %v950_v3  ;;  %v506_v1 = vld [vmem:[#allocation2 + $0xc0] sm:$0xff]  ;;  %v507_v3 = vld [vmem:[#allocation2 + $0xc8] sm:$0xff] }
 0x12d   : > { %1733 = vmatmul.mubr.bf16.gmra.mxu0 %v1306_v2  ;;  %1063 = vrot.lane.b32.xlu1 %v8284_v22, %s12544_s25  ;;  %v530_v7 = vpack.c.bf16 %v507_v3, %v506_v1 }
 0x12e   : > { %v1094_v4 = vpop.permute.xlu0 %1093 }
 0x12f   : > { %v998_v5 = vpop.permute.xlu1 %997  ;;  %v1358_v12 = vsel %vm379_vm0, %v8100_v50, %v1094_v4  ;;  %v502_v50 = vld [vmem:[#allocation2 + $0x90] sm:$0xff] }
 0x130   : > { %1207 = vrot.lane.b32.xlu0 %v8318_v33, %s12544_s25  ;;  %v1271_v13 = vsel %vm1259_vm3, %v1228_v11, %v998_v5  ;;  %v528_v27 = vpack.c.bf16 %v503_v25, %v502_v50 }
 0x131   : > { %969 = vrot.lane.b32.xlu1 %v8296_v6, %s12546_s29 }
 0x132   : > { %v1142_v35 = vpop.permute.xlu0 %1141 }
 0x133   : > { %v1046_v14 = vpop.permute.xlu1 %1045  ;;  %v1400_v39 = vsel %vm1259_vm3, %v1358_v12, %v1142_v35 }
 0x134   : > { %1113 = vrot.lane.b32.xlu0 %v8170_v47, %s12546_s29  ;;  %v1309_v24 = vsel %vm1292_vm4, %v1271_v13, %v1046_v14  ;;  %v874_v47 = vpack.c.bf16 %v858_v20, %v857_v15  ;;  %s7026_s29 = sld [smem:[#allocation7 + $0x52]] }
 0x135   : > { %1017 = vrot.lane.b32.xlu1 %v8168_v43, %s12548_s23 }
 0x136   : > { %v1190_v17 = vpop.permute.xlu0 %1189 }
 0x137   : > { %v1437_v21 = vsel %vm1292_vm4, %v1400_v39, %v1190_v17  ;;  %v952_v26 = vpop.permute.xlu1 %951  ;;  %v508_v39 = vld [vmem:[#allocation2 + $0xd8] sm:$0xff]  ;;  %v509_v17 = vld [vmem:[#allocation2 + $0xe0] sm:$0xff] }
 0x138   : > { %1161 = vrot.lane.b32.xlu0 %v826_v23, %s12548_s23  ;;  %1740 = vmatprep.mubr.bf16.mxu0 %v1437_v21  ;;  %v1231_v43 = vsel %vm379_vm0, %v528_v27, %v952_v26  ;;  %s7030_s23 = sld [smem:[#allocation7 + $0x56]] }
 0x139   : > { %1741 = vmatmul.mubr.bf16.gmra.mxu0 %v1309_v24  ;;  %1065 = vrot.lane.b32.xlu1 %v825_v54, %s12544_s25 }
 0x13a   : > { %v1096_v10 = vpop.permute.xlu0 %1095 }
 0x13b   : > { %v1000_v28 = vpop.permute.xlu1 %999  ;;  %v1361_v32 = vsel %vm379_vm0, %v8118_v0, %v1096_v10 }
 0x13c   : > { %1209 = vrot.lane.b32.xlu0 %v874_v47, %s12544_s25  ;;  %v1273_v46 = vsel %vm1259_vm3, %v1231_v43, %v1000_v28  ;;  %v531_v47 = vpack.c.bf16 %v509_v17, %v508_v39  ;;  %s7024_s25 = sld [smem:[#allocation7 + $0x50]] }
 0x13e   : > { %v1144_v29 = vpop.permute.xlu0 %1143 }
 0x13f   : > { %v1048_v37 = vpop.permute.xlu1 %1047  ;;  %v1402_v38 = vsel %vm1259_vm3, %v1361_v32, %v1144_v29 }
 0x140   : > { %v1312_v42 = vsel %vm1292_vm4, %v1273_v46, %v1048_v37 }
 0x142   : > { %v1192_v41 = vpop.permute.xlu0 %1191 }
 0x143   : > { %v1440_v31 = vsel %vm1292_vm4, %v1402_v38, %v1192_v41  ;;  %v954_v49 = vpop.permute.xlu1 %953 }
 0x144   : > { %1748 = vmatprep.mubr.bf16.mxu0 %v1440_v31  ;;  %v1234_v0 = vsel %vm379_vm0, %v529_v30, %v954_v49 }
 0x145   : > { %1749 = vmatmul.mubr.bf16.gmra.mxu0 %v1312_v42 }
 0x146   : > { %v1098_v51 = vpop.permute.xlu0 %1097 }
 0x147   : > { %v1002_v54 = vpop.permute.xlu1 %1001  ;;  %v1364_v57 = vsel %vm379_vm0, %v8136_v18, %v1098_v51 }
 0x148   : > { %v1275_v58 = vsel %vm1259_vm3, %v1234_v0, %v1002_v54 }
 0x14a   : > { %v1146_v55 = vpop.permute.xlu0 %1145 }
 0x14b   : > { %v1050_v19 = vpop.permute.xlu1 %1049  ;;  %v1404_v60 = vsel %vm1259_vm3, %v1364_v57, %v1146_v55 }
 0x14c   : > { %v1315_v63 = vsel %vm1292_vm4, %v1275_v58, %v1050_v19 }
 0x14e   : > { %v1194_v61 = vpop.permute.xlu0 %1193 }
 0x14f   : > { %v1443_v2 = vsel %vm1292_vm4, %v1404_v60, %v1194_v61  ;;  %v956_v4 = vpop.permute.xlu1 %955 }
 0x150   : > { %1756 = vmatprep.mubr.bf16.mxu0 %v1443_v2  ;;  %v1237_v18 = vsel %vm379_vm0, %v530_v7, %v956_v4 }
 0x151   : > { %1757 = vmatmul.mubr.bf16.gmra.mxu0 %v1315_v63 }
 0x152   : > { %v1100_v5 = vpop.permute.xlu0 %1099 }
 0x153   : > { %v1004_v9 = vpop.permute.xlu1 %1003  ;;  %v1367_v11 = vsel %vm379_vm0, %v8163_v36, %v1100_v5 }
 0x154   : > { %v1277_v23 = vsel %vm1259_vm3, %v1237_v18, %v1004_v9 }
 0x156   : > { %v1148_v35 = vpop.permute.xlu0 %1147 }
 0x157   : > { %v1052_v12 = vpop.permute.xlu1 %1051  ;;  %v1406_v13 = vsel %vm1259_vm3, %v1367_v11, %v1148_v35 }
 0x158   : > { %v1318_v15 = vsel %vm1292_vm4, %v1277_v23, %v1052_v12 }
 0x15a   : > { %v1196_v14 = vpop.permute.xlu0 %1195 }
 0x15b   : > { %v1446_v20 = vsel %vm1292_vm4, %v1406_v13, %v1196_v14  ;;  %v958_v24 = vpop.permute.xlu1 %957 }
 0x15c   : > { %1764 = vmatprep.mubr.bf16.mxu0 %v1446_v20  ;;  %v1240_v36 = vsel %vm379_vm0, %v531_v47, %v958_v24 }
 0x15d   : > { %1765 = vmatmul.mubr.bf16.gmra.mxu0 %v1318_v15 }
 0x15e   : > { %v1102_v21 = vpop.permute.xlu0 %1101 }
 0x15f   : > { %v1006_v50 = vpop.permute.xlu1 %1005  ;;  %v1370_v26 = vsel %vm379_vm0, %v8186_v52, %v1102_v21 }
 0x160   : > { %v1279_v10 = vsel %vm1259_vm3, %v1240_v36, %v1006_v50 }
 0x162   : > { %v1150_v25 = vpop.permute.xlu0 %1149 }
 0x163   : > { %v1054_v27 = vpop.permute.xlu1 %1053  ;;  %v1408_v28 = vsel %vm1259_vm3, %v1370_v26, %v1150_v25 }
 0x164   : > { %v1321_v43 = vsel %vm1292_vm4, %v1279_v10, %v1054_v27 }
 0x166   : > { %v1198_v29 = vpop.permute.xlu0 %1197 }
 0x167   : > { %v1449_v32 = vsel %vm1292_vm4, %v1408_v28, %v1198_v29  ;;  %v960_v46 = vpop.permute.xlu1 %959 }
 0x168   : > { %1772 = vmatprep.mubr.bf16.mxu0 %v1449_v32  ;;  %v1243_v42 = vsel %vm379_vm0, %v8180_v48, %v960_v46 }
 0x169   : > { %1773 = vmatmul.mubr.bf16.gmra.mxu0 %v1321_v43 }
 0x16a   : > { %v1104_v37 = vpop.permute.xlu0 %1103 }
 0x16b   : > { %v1008_v38 = vpop.permute.xlu1 %1007  ;;  %v1373_v52 = vsel %vm379_vm0, %v8201_v59, %v1104_v37 }
 0x16c   : > { %v1281_v31 = vsel %vm1259_vm3, %v1243_v42, %v1008_v38 }
 0x16e   : > { %v1152_v41 = vpop.permute.xlu0 %1151 }
 0x16f   : > { %v1056_v44 = vpop.permute.xlu1 %1055  ;;  %v1410_v45 = vsel %vm1259_vm3, %v1373_v52, %v1152_v41 }
 0x170   : > { %v1324_v51 = vsel %vm1292_vm4, %v1281_v31, %v1056_v44 }
 0x172   : > { %v1200_v49 = vpop.permute.xlu0 %1199 }
 0x173   : > { %v1452_v30 = vsel %vm1292_vm4, %v1410_v45, %v1200_v49  ;;  %v962_v54 = vpop.permute.xlu1 %961 }
 0x174   : > { %1780 = vmatprep.mubr.bf16.mxu0 %v1452_v30  ;;  %v1246_v48 = vsel %vm379_vm0, %v8195_v56, %v962_v54 }
 0x175   : > { %1781 = vmatmul.mubr.bf16.gmra.mxu0 %v1324_v51 }
 0x176   : > { %v1106_v55 = vpop.permute.xlu0 %1105 }
 0x177   : > { %v1010_v0 = vpop.permute.xlu1 %1009  ;;  %v1376_v59 = vsel %vm379_vm0, %v8221_v16, %v1106_v55 }
 0x178   : > { %v1283_v58 = vsel %vm1259_vm3, %v1246_v48, %v1010_v0 }
 0x17a   : > { %v1154_v57 = vpop.permute.xlu0 %1153 }
 0x17b   : > { %v1058_v19 = vpop.permute.xlu1 %1057  ;;  %v1412_v60 = vsel %vm1259_vm3, %v1376_v59, %v1154_v57 }
 0x17c   : > { %v1327_v63 = vsel %vm1292_vm4, %v1283_v58, %v1058_v19 }
 0x17e   : > { %v1202_v61 = vpop.permute.xlu0 %1201 }
 0x17f   : > { %v1455_v2 = vsel %vm1292_vm4, %v1412_v60, %v1202_v61  ;;  %v964_v1 = vpop.permute.xlu1 %963 }
 0x180   : > { %1788 = vmatprep.mubr.bf16.mxu0 %v1455_v2  ;;  %v1249_v56 = vsel %vm379_vm0, %v8213_v8, %v964_v1 }
 0x181   : > { %1789 = vmatmul.mubr.bf16.gmra.mxu0 %v1327_v63 }
 0x182   : > { %v1108_v3 = vpop.permute.xlu0 %1107 }
 0x183   : > { %v1012_v4 = vpop.permute.xlu1 %1011  ;;  %v1379_v16 = vsel %vm379_vm0, %v8248_v40, %v1108_v3 }
 0x184   : > { %v1285_v7 = vsel %vm1259_vm3, %v1249_v56, %v1012_v4 }
 0x186   : > { %v1156_v5 = vpop.permute.xlu0 %1155 }
 0x187   : > { %v1060_v9 = vpop.permute.xlu1 %1059  ;;  %v1414_v35 = vsel %vm1259_vm3, %v1379_v16, %v1156_v5 }
 0x188   : > { %v1330_v11 = vsel %vm1292_vm4, %v1285_v7, %v1060_v9  ;;  %v7354_v9 = vpop.f32.mrf.mxu1 }
 0x18a   : > { %v1204_v18 = vpop.permute.xlu0 %1203 }
 0x18b   : > { %v1458_v23 = vsel %vm1292_vm4, %v1414_v35, %v1204_v18  ;;  %v966_v12 = vpop.permute.xlu1 %965  ;;  %v1863_v18 = vpop.f32.mrf.mxu1 }
 0x18c   : > { %1796 = vmatprep.mubr.bf16.mxu0 %v1458_v23  ;;  %v1252_v8 = vsel %vm379_vm0, %v8236_v34, %v966_v12 }
 0x18d   : > { %1797 = vmatmul.mubr.bf16.gmra.mxu0 %v1330_v11  ;;  %v7355_v12 = vpop.f32.mrf.mxu1 }
 0x18e   : > { %v1110_v13 = vpop.permute.xlu0 %1109 }
 0x18f   : > { %v1014_v14 = vpop.permute.xlu1 %1013  ;;  %v1382_v40 = vsel %vm379_vm0, %v8272_v53, %v1110_v13 }
 0x190   : > { %v1287_v20 = vsel %vm1259_vm3, %v1252_v8, %v1014_v14  ;;  %v1866_v14 = vpop.f32.mrf.mxu1 }
 0x192   : > { %v1158_v15 = vpop.permute.xlu0 %1157  ;;  %v8443_v8 = vpop.f32.mrf.mxu1 }
 0x193   : > { %v1062_v39 = vpop.permute.xlu1 %1061  ;;  %v1416_v17 = vsel %vm1259_vm3, %v1382_v40, %v1158_v15 }
 0x194   : > { %v1333_v21 = vsel %vm1292_vm4, %v1287_v20, %v1062_v39  ;;  %v1879_v20 = vpop.f32.mrf.mxu1 }
 0x196   : > { %v1206_v24 = vpop.permute.xlu0 %1205 }
 0x197   : > { %v1461_v47 = vsel %vm1292_vm4, %v1416_v17, %v1206_v24  ;;  %v968_v50 = vpop.permute.xlu1 %967  ;;  %v8451_v24 = vpop.f32.mrf.mxu1 }
 0x198   : > { %1804 = vmatprep.mubr.bf16.mxu0 %v1461_v47  ;;  %v1255_v34 = vsel %vm379_vm0, %v8260_v62, %v968_v50 }
 0x199   : > { %1805 = vmatmul.mubr.bf16.gmra.mxu0 %v1333_v21  ;;  %v1882_v47 = vpop.f32.mrf.mxu1 }
 0x19a   : > { %v1112_v25 = vpop.permute.xlu0 %1111 }
 0x19b   : > { %v1016_v36 = vpop.permute.xlu1 %1015  ;;  %v1385_v53 = vsel %vm379_vm0, %v8296_v6, %v1112_v25  ;;  %v8455_v50 = vpop.f32.mrf.mxu1 }
 0x19c   : > { %v1289_v10 = vsel %vm1259_vm3, %v1255_v34, %v1016_v36 }
 0x19e   : > { %v1160_v26 = vpop.permute.xlu0 %1159 }
 0x19f   : > { %v1064_v27 = vpop.permute.xlu1 %1063  ;;  %v1418_v28 = vsel %vm1259_vm3, %v1385_v53, %v1160_v26  ;;  %v8461_v26 = vpop.f32.mrf.mxu1 }
 0x1a0   : > { %v1336_v43 = vsel %vm1292_vm4, %v1289_v10, %v1064_v27 }
 0x1a1   : > { %v8465_v10 = vpop.f32.mrf.mxu1 }
 0x1a2   : > { %v1208_v29 = vpop.permute.xlu0 %1207 }
 0x1a3   : > { %v1464_v32 = vsel %vm1292_vm4, %v1418_v28, %v1208_v29  ;;  %v970_v46 = vpop.permute.xlu1 %969  ;;  %v8472_v28 = vld [vmem:[%s12763_s2] ss:$0 sm:$0xff]  ;;  %s7040_s2 = sld [smem:[#allocation7 + $0x60]] }
 0x1a4   : > { %1812 = vmatprep.mubr.bf16.mxu0 %v1464_v32  ;;  %v1258_v62 = vsel %vm379_vm0, %v8284_v22, %v970_v46 }
 0x1a5   : > { %1813 = vmatmul.mubr.bf16.gmra.mxu0 %v1336_v43  ;;  %v8475_v43 = vpop.f32.mrf.mxu1 }
 0x1a6   : > { %v1114_v37 = vpop.permute.xlu0 %1113 }
 0x1a7   : > { %v1018_v38 = vpop.permute.xlu1 %1017  ;;  %v1388_v6 = vsel %vm379_vm0, %v8318_v33, %v1114_v37 }
 0x1a8   : > { %v1291_v42 = vsel %vm1259_vm3, %v1258_v62, %v1018_v38  ;;  %v8479_v38 = vpop.f32.mrf.mxu1 }
 0x1aa   : > { %v1162_v41 = vpop.permute.xlu0 %1161 }
 0x1ab   : > { %v1066_v52 = vpop.permute.xlu1 %1065  ;;  %v1420_v31 = vsel %vm1259_vm3, %v1388_v6, %v1162_v41 }
 0x1ac   : > { %v1339_v45 = vsel %vm1292_vm4, %v1291_v42, %v1066_v52 }
 0x1ae   : > { %v1210_v44 = vpop.permute.xlu0 %1209 }
 0x1af   : > { %v1467_v49 = vsel %vm1292_vm4, %v1420_v31, %v1210_v44 }
 0x1b0   : > { %1820 = vmatprep.mubr.bf16.mxu0 %v1467_v49  ;;  %v8488_v49 = vpop.f32.mrf.mxu1 }
 0x1b1   : > { %1821 = vmatmul.mubr.bf16.gmra.mxu0 %v1339_v45 }
 0x1be   : > { %v7104_v51 = vpop.f32.mrf.mxu0 }
 0x1c0   : > { %v7105_v30 = vpop.f32.mrf.mxu0 }
 0x1c1   : > { %v7106_v54 = vadd.f32 %v7105_v30, %v7104_v51 }
 0x1c2   : > { %v7107_v55 = vpop.f32.mrf.mxu0 }
 0x1c3   : > { %v1703_v62 = vadd.f32 %v7106_v54, %v8472_v28 }
 0x1c4   : > { %v7108_v22 = vpop.f32.mrf.mxu0 }
 0x1c5   : > { %v7109_v53 = vadd.f32 %v7108_v22, %v7107_v55  ;;  %v1864_v51 = vadd.f32 %v1863_v18, %v1703_v62 }
 0x1c7   : > { %v1706_v29 = vadd.f32 %v7109_v53, %v8472_v28  ;;  %vm1990_vm6 = vcmp.gt.f32.partialorder %v1864_v51, 0.0 }
 0x1c9   : > { %v7110_v0 = vpop.f32.mrf.mxu0  ;;  %v1867_v6 = vadd.f32 %v1866_v14, %v1706_v29  ;;  %v2022_v14 = vmul.f32 0.01, %v1864_v51 }
 0x1cb   : > { %v7111_v57 = vpop.f32.mrf.mxu0  ;;  %v2023_v30 = vmul.f32 0.01, %v1867_v6  ;;  %vm1991_vm5 = vcmp.gt.f32.partialorder %v1867_v6, 0.0 }
 0x1cc   : > { %v7112_v46 = vadd.f32 %v7111_v57, %v7110_v0 }
 0x1cd   : > { %v7113_v33 = vpop.f32.mrf.mxu0 }
 0x1ce   : > { %v1711_v52 = vadd.f32 %v7112_v46, %v8472_v28 }
 0x1cf   : > { %v7114_v48 = vpop.f32.mrf.mxu0 }
 0x1d0   : > { %v7115_v37 = vadd.f32 %v7114_v48, %v7113_v33  ;;  %v1872_v22 = vadd.f32 %v7354_v9, %v1711_v52  ;;  %v8494_v48 = vpop.f32.mrf.mxu1 }
 0x1d2   : > { %v1714_v31 = vadd.f32 %v7115_v37, %v8472_v28  ;;  %vm1992_vm7 = vcmp.gt.f32.partialorder %v1872_v22, 0.0  ;;  %v8512_v37 = vsel %vm1990_vm6, %v1864_v51, %v2022_v14 }
 0x1d4   : > { %v1875_v0 = vadd.f32 %v7355_v12, %v1714_v31 }
 0x1d5   : > { %v7116_v59 = vpop.f32.mrf.mxu0 }
 0x1d6   : > { %vm1993_vm8 = vcmp.gt.f32.partialorder %v1875_v0, 0.0 }
 0x1d7   : > { %v7117_v58 = vpop.f32.mrf.mxu0 }
 0x1d8   : > { %v7118_v44 = vadd.f32 %v7117_v58, %v7116_v59  ;;  %v8496_v59 = vsel %vm1991_vm5, %v1867_v6, %v2023_v30 }
 0x1d9   : > { %v7119_v19 = vpop.f32.mrf.mxu0 }
 0x1da   : > { %v1719_v54 = vadd.f32 %v7118_v44, %v8472_v28 }
 0x1db   : > { %v7120_v60 = vpop.f32.mrf.mxu0 }
 0x1dc   : > { %v7121_v45 = vadd.f32 %v7120_v60, %v7119_v19  ;;  %v2024_v19 = vmul.f32 0.01, %v1872_v22  ;;  %v2025_v60 = vmul.f32 0.01, %v1875_v0  ;;  %v1880_v9 = vadd.f32 %v1879_v20, %v1719_v54 }
 0x1dd   : > { %v2087_v20 = vsel %vm379_vm0, %v8496_v59, 0.0 }
 0x1de   : > { %v1722_v57 = vadd.f32 %v7121_v45, %v8472_v28  ;;  %v8514_v62 = vsel %vm1992_vm7, %v1872_v22, %v2024_v19  ;;  %v2026_v6 = vmul.f32 0.01, %v1880_v9  ;;  %vm1994_vm9 = vcmp.gt.f32.partialorder %v1880_v9, 0.0 }
 0x1df   : > { %v2086_v45 = vsel %vm379_vm0, %v8512_v37, 0.0 }
 0x1e0   : > { %v1883_v18 = vadd.f32 %v1882_v47, %v1722_v57  ;;  %v8518_v47 = vsel %vm1993_vm8, %v1875_v0, %v2025_v60  ;;  %v2088_v22 = vadd.f32 %v2087_v20, %v2086_v45  ;;  %v8536_v54 = vsel %vm1994_vm9, %v1880_v9, %v2026_v6 }
 0x1e1   : > { %v7122_v61 = vpop.f32.mrf.mxu0  ;;  %v2091_v0 = vsel %vm379_vm0, %v8518_v47, 0.0 }
 0x1e2   : > { %vm1995_vm10 = vcmp.gt.f32.partialorder %v1883_v18, 0.0 }
 0x1e3   : > { %v7123_v63 = vpop.f32.mrf.mxu0 }
 0x1e4   : > { %v7124_v33 = vadd.f32 %v7123_v63, %v7122_v61  ;;  %v8503_v61 = vpop.f32.mrf.mxu1 }
 0x1e5   : > { %v8417_v2 = vpop.f32.mrf.mxu0 }
 0x1e6   : > { %v1727_v12 = vadd.f32 %v7124_v33, %v8472_v28  ;;  %v8507_v29 = vpop.f32.mrf.mxu1 }
 0x1e7   : > { %v8419_v1 = vpop.f32.mrf.mxu0 }
 0x1e8   : > { %v7127_v53 = vadd.f32 %v8419_v1, %v8417_v2  ;;  %v2027_v2 = vmul.f32 0.01, %v1883_v18  ;;  %v1888_v1 = vadd.f32 %v8443_v8, %v1727_v12  ;;  %v8528_v51 = vpop.f32.mrf.mxu1  ;;  %v2089_v8 = vsel %vm379_vm0, %v8514_v62, 0.0 }
 0x1e9   : > { %v2090_v14 = vadd.f32 %v2089_v8, %v2088_v22 }
 0x1ea   : > { %v1730_v52 = vadd.f32 %v7127_v53, %v8472_v28  ;;  %vm1996_vm11 = vcmp.gt.f32.partialorder %v1888_v1, 0.0  ;;  %v8547_v60 = vpop.f32.mrf.mxu1 }
 0x1ed   : > { %v8421_v3 = vpop.f32.mrf.mxu0 }
 0x1ef   : > { %v8423_v4 = vpop.f32.mrf.mxu0 }
 0x1f0   : > { %v7130_v31 = vadd.f32 %v8423_v4, %v8421_v3  ;;  %v8538_v3 = vsel %vm1995_vm10, %v1883_v18, %v2027_v2  ;;  %v2028_v4 = vmul.f32 0.01, %v1888_v1  ;;  %v2093_v18 = vsel %vm379_vm0, %v8536_v54, 0.0 }
 0x1f1   : > { %v8425_v5 = vpop.f32.mrf.mxu0  ;;  %v2095_v12 = vsel %vm379_vm0, %v8538_v3, 0.0 }
 0x1f2   : > { %v8555_v53 = vsel %vm1996_vm11, %v1888_v1, %v2028_v4 }
 0x1f3   : > { %v8427_v56 = vpop.f32.mrf.mxu0  ;;  %v2097_v45 = vsel %vm379_vm0, %v8555_v53, 0.0 }
 0x1f4   : > { %v7133_v44 = vadd.f32 %v8427_v56, %v8425_v5  ;;  %v1891_v5 = vadd.f32 %v8451_v24, %v1730_v52  ;;  %v1735_v56 = vadd.f32 %v7130_v31, %v8472_v28  ;;  %v2092_v24 = vadd.f32 %v2091_v0, %v2090_v14  ;;  %v8567_v31 = vpop.f32.mrf.mxu1 }
 0x1f6   : > { %v1738_v57 = vadd.f32 %v7133_v44, %v8472_v28  ;;  %v2029_v20 = vmul.f32 0.01, %v1891_v5  ;;  %vm1997_vm12 = vcmp.gt.f32.partialorder %v1891_v5, 0.0  ;;  %v8579_v8 = vpop.f32.mrf.mxu1 }
 0x1f8   : > { %v8577_v22 = vsel %vm1997_vm12, %v1891_v5, %v2029_v20  ;;  %v8589_v5 = vsel %vm379_vm0, %v8512_v37, -inf }
 0x1f9   : > { %v8429_v16 = vpop.f32.mrf.mxu0 }
 0x1fb   : > { %v8431_v7 = vpop.f32.mrf.mxu0 }
 0x1fc   : > { %v7136_v33 = vadd.f32 %v8431_v7, %v8429_v16  ;;  %v1896_v16 = vadd.f32 %v8461_v26, %v1735_v56  ;;  %v1899_v7 = vadd.f32 %v8475_v43, %v1738_v57  ;;  %v8573_v26 = vsel %vm379_vm0, %v8536_v54, -inf }
 0x1fd   : > { %v8433_v35 = vpop.f32.mrf.mxu0  ;;  %v8593_v57 = vsel %vm379_vm0, %v8514_v62, -inf }
 0x1fe   : > { %vm1998_vm13 = vcmp.gt.f32.partialorder %v1896_v16, 0.0  ;;  %vm1999_vm14 = vcmp.gt.f32.partialorder %v1899_v7, 0.0 }
 0x1ff   : > { %v8435_v11 = vpop.f32.mrf.mxu0 }
 0x200   : > { %v7139_v19 = vadd.f32 %v8435_v11, %v8433_v35  ;;  %v1743_v35 = vadd.f32 %v7136_v33, %v8472_v28  ;;  %v2094_v11 = vadd.f32 %v2093_v18, %v2092_v24  ;;  %v8603_v33 = vsel %vm379_vm0, %v8518_v47, -inf  ;;  %v8609_v24 = vpop.f32.mrf.mxu1 }
 0x201   : > { %v2099_v18 = vsel %vm379_vm0, %v8577_v22, 0.0 }
 0x202   : > { %v1746_v2 = vadd.f32 %v7139_v19, %v8472_v28  ;;  %v2096_v43 = vadd.f32 %v2095_v12, %v2094_v11 }
 0x204   : > { %v2098_v19 = vadd.f32 %v2097_v45, %v2096_v43  ;;  %v8639_v43 = vpop.f32.mrf.mxu1 }
 0x205   : > { %v8437_v23 = vpop.f32.mrf.mxu0 }
 0x207   : > { %v8439_v13 = vpop.f32.mrf.mxu0 }
 0x208   : > { %v7142_v52 = vadd.f32 %v8439_v13, %v8437_v23  ;;  %v2030_v23 = vmul.f32 0.01, %v1896_v16  ;;  %v2031_v13 = vmul.f32 0.01, %v1899_v7 }
 0x209   : > { %v8441_v15 = vpop.f32.mrf.mxu0 }
 0x20a   : > { %v1751_v0 = vadd.f32 %v7142_v52, %v8472_v28  ;;  %v8612_v12 = vsel %vm1998_vm13, %v1896_v16, %v2030_v23  ;;  %v8614_v20 = vsel %vm1999_vm14, %v1899_v7, %v2031_v13 }
 0x20b   : > { %v8445_v40 = vpop.f32.mrf.mxu0  ;;  %v2101_v23 = vsel %vm379_vm0, %v8612_v12, 0.0 }
 0x20c   : > { %v7145_v1 = vadd.f32 %v8445_v40, %v8441_v15  ;;  %v1904_v15 = vadd.f32 %v8455_v50, %v1743_v35  ;;  %v1907_v40 = vadd.f32 %v8465_v10, %v1746_v2  ;;  %v8597_v50 = vsel %vm379_vm0, %v8496_v59, -inf }
 0x20d   : > { %v1912_v11 = vadd.f32 %v8488_v49, %v1751_v0  ;;  %v2100_v49 = vadd.f32 %v2099_v18, %v2098_v19 }
 0x20e   : > { %v1754_v4 = vadd.f32 %v7145_v1, %v8472_v28  ;;  %v2032_v35 = vmul.f32 0.01, %v1904_v15  ;;  %vm2000_vm15 = vcmp.gt.f32.partialorder %v1904_v15, 0.0  ;;  %v8624_v1 = vsel %vm379_vm0, %v8538_v3, -inf }
 0x20f   : > { %vm2001_vm2 = vcmp.gt.f32.partialorder %v1907_v40, 0.0  ;;  %vm2002_vm5 = vcmp.gt.f32.partialorder %v1912_v11, 0.0 }
 0x210   : > { %v1915_v2 = vadd.f32 %v8503_v61, %v1754_v4  ;;  %v2034_v4 = vmul.f32 0.01, %v1912_v11 }
 0x211   : > { %v8447_v39 = vpop.f32.mrf.mxu0 }
 0x212   : > { %vm2003_vm6 = vcmp.gt.f32.partialorder %v1915_v2, 0.0 }
 0x213   : > { %v8449_v17 = vpop.f32.mrf.mxu0 }
 0x214   : > { %v7148_v10 = vadd.f32 %v8449_v17, %v8447_v39  ;;  %v2033_v17 = vmul.f32 0.01, %v1907_v40 }
 0x215   : > { %v8453_v21 = vpop.f32.mrf.mxu0 }
 0x216   : > { %v1759_v16 = vadd.f32 %v7148_v10, %v8472_v28  ;;  %v8651_v0 = vsel %vm2001_vm2, %v1907_v40, %v2033_v17  ;;  %v1946_v17 = vpop.f32.mrf.mxu1 }
 0x217   : > { %v8457_v25 = vpop.f32.mrf.mxu0 }
 0x218   : > { %v7151_v39 = vadd.f32 %v8457_v25, %v8453_v21  ;;  %v8631_v21 = vsel %vm379_vm0, %v8555_v53, -inf  ;;  %v8635_v25 = vsel %vm379_vm0, %v8577_v22, -inf  ;;  %v1920_v10 = vadd.f32 %v8479_v38, %v1759_v16 }
 0x219   : > { %v2166_v14 = vmax.f32 %v8593_v57, %v8631_v21 }
 0x21a   : > { %v1762_v13 = vadd.f32 %v7151_v39, %v8472_v28  ;;  %vm2004_vm7 = vcmp.gt.f32.partialorder %v1920_v10, 0.0 }
 0x21d   : > { %v8459_v36 = vpop.f32.mrf.mxu0 }
 0x21f   : > { %v8463_v34 = vpop.f32.mrf.mxu0 }
 0x220   : > { %v7154_v7 = vadd.f32 %v8463_v34, %v8459_v36  ;;  %v2103_v36 = vsel %vm379_vm0, %v8614_v20, 0.0  ;;  %v8648_v34 = vsel %vm2000_vm15, %v1904_v15, %v2032_v35  ;;  %v2164_v15 = vmax.f32 %v8597_v50, %v8624_v1 }
 0x221   : > { %v8467_v27 = vpop.f32.mrf.mxu0  ;;  %v2102_v35 = vadd.f32 %v2101_v23, %v2100_v49  ;;  %v2105_v16 = vsel %vm379_vm0, %v8648_v34, 0.0  ;;  %v8672_v50 = vsel %vm2002_vm5, %v1912_v11, %v2034_v4  ;;  %v2107_v1 = vsel %vm379_vm0, %v8651_v0, 0.0 }
 0x222   : > { %v1767_v19 = vadd.f32 %v7154_v7, %v8472_v28  ;;  %v8679_v7 = vpop.f32.mrf.mxu1  ;;  %v2036_v49 = vmul.f32 0.01, %v1920_v10  ;;  %v2109_v4 = vsel %vm379_vm0, %v8672_v50, 0.0 }
 0x223   : > { %v8477_v32 = vpop.f32.mrf.mxu0 }
 0x224   : > { %v7157_v61 = vadd.f32 %v8477_v32, %v8467_v27  ;;  %v2035_v27 = vmul.f32 0.01, %v1915_v2 }
 0x226   : > { %v1770_v40 = vadd.f32 %v7157_v61, %v8472_v28  ;;  %v1928_v61 = vadd.f32 %v8528_v51, %v1767_v19  ;;  %v2171_v19 = vsel %vm379_vm0, %v8614_v20, -inf }
 0x228   : > { %v1931_v11 = vadd.f32 %v8567_v31, %v1770_v40  ;;  %v2038_v40 = vmul.f32 0.01, %v1928_v61  ;;  %vm2006_vm9 = vcmp.gt.f32.partialorder %v1928_v61, 0.0 }
 0x229   : > { %v8481_v41 = vpop.f32.mrf.mxu0 }
 0x22a   : > { %vm2007_vm10 = vcmp.gt.f32.partialorder %v1931_v11, 0.0 }
 0x22b   : > { %v8484_v42 = vpop.f32.mrf.mxu0 }
 0x22c   : > { %v7160_v18 = vadd.f32 %v8484_v42, %v8481_v41  ;;  %v1923_v41 = vadd.f32 %v8494_v48, %v1762_v13  ;;  %v2104_v42 = vadd.f32 %v2103_v36, %v2102_v35  ;;  %v8699_v35 = vsel %vm2004_vm7, %v1920_v10, %v2036_v49 }
 0x22d   : > { %v8490_v55 = vpop.f32.mrf.mxu0  ;;  %v12764_v49 = vmax.f32 %v8589_v5, %v8573_v26 }
 0x22e   : > { %v1775_v23 = vadd.f32 %v7160_v18, %v8472_v28  ;;  %v2106_v36 = vadd.f32 %v2105_v16, %v2104_v42  ;;  %vm2005_vm8 = vcmp.gt.f32.partialorder %v1923_v41, 0.0  ;;  %v8697_v18 = vpop.f32.mrf.mxu1 }
 0x22f   : > { %v8498_v58 = vpop.f32.mrf.mxu0 }
 0x230   : > { %v7163_v39 = vadd.f32 %v8498_v58, %v8490_v55  ;;  %v8677_v55 = vsel %vm2003_vm6, %v1915_v2, %v2035_v27  ;;  %v2169_v2 = vsel %vm379_vm0, %v8612_v12, -inf  ;;  %v2037_v27 = vmul.f32 0.01, %v1923_v41 }
 0x232   : > { %v1778_v13 = vadd.f32 %v7163_v39, %v8472_v28  ;;  %v1936_v39 = vadd.f32 %v8507_v29, %v1775_v23  ;;  %v8712_v29 = vmax.f32 %v12764_v49, %v2169_v2  ;;  %v8714_v23 = vmax.f32 %v2164_v15, %v2171_v19 }
 0x234   : > { %vm2008_vm11 = vcmp.gt.f32.partialorder %v1936_v39, 0.0 }
 0x235   : > { %v8505_v63 = vpop.f32.mrf.mxu0 }
 0x237   : > { %v8509_v46 = vpop.f32.mrf.mxu0 }
 0x238   : > { %v7166_v48 = vadd.f32 %v8509_v46, %v8505_v63  ;;  %v2108_v63 = vadd.f32 %v2107_v1, %v2106_v36  ;;  %v2111_v46 = vsel %vm379_vm0, %v8677_v55, 0.0  ;;  %v8704_v36 = vsel %vm2005_vm8, %v1923_v41, %v2037_v27 }
 0x239   : > { %v8530_v30 = vpop.f32.mrf.mxu0  ;;  %v2040_v27 = vmul.f32 0.01, %v1936_v39 }
 0x23a   : > { %v1783_v16 = vadd.f32 %v7166_v48, %v8472_v28  ;;  %v2110_v42 = vadd.f32 %v2109_v4, %v2108_v63  ;;  %v8720_v4 = vsel %vm2006_vm9, %v1928_v61, %v2038_v40 }
 0x23b   : > { %v8549_v9 = vpop.f32.mrf.mxu0 }
 0x23c   : > { %v7169_v51 = vadd.f32 %v8549_v9, %v8530_v30  ;;  %v2039_v30 = vmul.f32 0.01, %v1931_v11  ;;  %v1939_v9 = vadd.f32 %v8547_v60, %v1778_v13  ;;  %v2112_v48 = vadd.f32 %v2111_v46, %v2110_v42  ;;  %v8718_v13 = vpop.f32.mrf.mxu1 }
 0x23d   : > { %v2113_v60 = vsel %vm379_vm0, %v8699_v35, 0.0  ;;  %v8738_v46 = vsel %vm2008_vm11, %v1936_v39, %v2040_v27 }
 0x23e   : > { %v1786_v38 = vadd.f32 %v7169_v51, %v8472_v28  ;;  %v1944_v51 = vadd.f32 %v8609_v24, %v1783_v16  ;;  %v8727_v26 = vsel %vm2007_vm10, %v1931_v11, %v2039_v30  ;;  %v2041_v5 = vmul.f32 0.01, %v1939_v9  ;;  %v1962_v63 = vpop.f32.mrf.mxu1 }
 0x23f   : > { %vm2009_vm12 = vcmp.gt.f32.partialorder %v1939_v9, 0.0  ;;  %v2173_v24 = vsel %vm379_vm0, %v8648_v34, -inf  ;;  %v2117_v11 = vsel %vm379_vm0, %v8720_v4, 0.0 }
 0x240   : > { %v1947_v2 = vadd.f32 %v1946_v17, %v1786_v38  ;;  %v2042_v40 = vmul.f32 0.01, %v1944_v51  ;;  %vm2010_vm13 = vcmp.gt.f32.partialorder %v1944_v51, 0.0  ;;  %v8745_v30 = vpop.f32.mrf.mxu1 }
 0x241   : > { %v8557_v6 = vpop.f32.mrf.mxu0 }
 0x242   : > { %vm2011_vm14 = vcmp.gt.f32.partialorder %v1947_v2, 0.0 }
 0x243   : > { %v8569_v44 = vpop.f32.mrf.mxu0 }
 0x244   : > { %v7172_v10 = vadd.f32 %v8569_v44, %v8557_v6  ;;  %v2115_v44 = vsel %vm379_vm0, %v8704_v36, 0.0 }
 0x245   : > { %v8585_v56 = vpop.f32.mrf.mxu0 }
 0x246   : > { %v1791_v19 = vadd.f32 %v7172_v10, %v8472_v28  ;;  %v2043_v10 = vmul.f32 0.01, %v1947_v2 }
 0x247   : > { %v8620_v52 = vpop.f32.mrf.mxu0 }
 0x248   : > { %v7175_v6 = vadd.f32 %v8620_v52, %v8585_v56  ;;  %v2175_v56 = vsel %vm379_vm0, %v8651_v0, -inf  ;;  %v2114_v52 = vadd.f32 %v2113_v60, %v2112_v48  ;;  %v1952_v49 = vadd.f32 %v8579_v8, %v1791_v19 }
 0x249   : > { %v8751_v60 = vsel %vm379_vm0, %v8672_v50, -inf  ;;  %v8762_v8 = vmax.f32 %v2166_v14, %v2173_v24 }
 0x24a   : > { %v1794_v17 = vadd.f32 %v7175_v6, %v8472_v28  ;;  %v2116_v16 = vadd.f32 %v2115_v44, %v2114_v52  ;;  %v2044_v52 = vmul.f32 0.01, %v1952_v49  ;;  %v2178_v14 = vmax.f32 %v8712_v29, %v8751_v60 }
 0x24b   : > { %vm2012_vm15 = vcmp.gt.f32.partialorder %v1952_v49, 0.0 }
 0x24c   : > { %v1955_v27 = vadd.f32 %v8639_v43, %v1794_v17  ;;  %v8771_v43 = vsel %vm2011_vm14, %v1947_v2, %v2043_v10  ;;  %v2181_v10 = vsel %vm379_vm0, %v8699_v35, -inf  ;;  %vm2708_vm14 = vcmask 1045509  }
 0x24d   : > { %v8641_v45 = vpop.f32.mrf.mxu0  ;;  %v2127_v17 = vsel %vm379_vm0, %v8771_v43, 0.0 }
 0x24e   : > { %v2045_v24 = vmul.f32 0.01, %v1955_v27  ;;  %vm2013_vm2 = vcmp.gt.f32.partialorder %v1955_v27, 0.0 }
 0x24f   : > { %v8653_v32 = vpop.f32.mrf.mxu0 }
 0x250   : > { %v7178_v61 = vadd.f32 %v8653_v32, %v8641_v45  ;;  %v2119_v45 = vsel %vm379_vm0, %v8727_v26, 0.0  ;;  %v8743_v32 = vsel %vm2009_vm12, %v1939_v9, %v2041_v5  ;;  %v8755_v9 = vsel %vm2010_vm13, %v1944_v51, %v2042_v40 }
 0x251   : > { %v7179_v58 = vpop.f32.mrf.mxu0  ;;  %v2123_v51 = vsel %vm379_vm0, %v8743_v32, 0.0  ;;  %v2179_v40 = vsel %vm379_vm0, %v8677_v55, -inf  ;;  %vm2706_vm13 = vcmask 1044484  }
 0x252   : > { %v1799_v39 = vadd.f32 %v7178_v61, %v8472_v28  ;;  %v1975_v61 = vpop.f32.mrf.mxu1 }
 0x253   : > { %v7180_v31 = vpop.f32.mrf.mxu0 }
 0x254   : > { %v7181_v38 = vadd.f32 %v7180_v31, %v7179_v58  ;;  %v2118_v58 = vadd.f32 %v2117_v11, %v2116_v16  ;;  %v2121_v31 = vsel %vm379_vm0, %v8738_v46, 0.0  ;;  %v8786_v16 = vsel %vm2012_vm15, %v1952_v49, %v2044_v52 }
 0x255   : > { %vm2710_vm15 = vcmask 1046534  }
 0x256   : > { %v1802_v6 = vadd.f32 %v7181_v38, %v8472_v28  ;;  %v2120_v5 = vadd.f32 %v2119_v45, %v2118_v58  ;;  %v8784_v38 = vpop.f32.mrf.mxu1  ;;  %v8794_v58 = vsel %vm2013_vm2, %v1955_v27, %v2045_v24  ;;  %vm2712_vm2 = vcmask 1047559  }
 0x258   : > { %v2122_v21 = vadd.f32 %v2121_v31, %v2120_v5  ;;  %v1978_v5 = vpop.f32.mrf.mxu1 }
 0x259   : > { %v7182_v1 = vpop.f32.mrf.mxu0 }
 0x25b   : > { %v7183_v41 = vpop.f32.mrf.mxu0 }
 0x25c   : > { %v7184_v48 = vadd.f32 %v7183_v41, %v7182_v1  ;;  %v12765_v1 = vmax.f32 %v8603_v33, %v8635_v25  ;;  %v2125_v33 = vsel %vm379_vm0, %v8755_v9, 0.0 }
 0x25d   : > { %v7185_v15 = vpop.f32.mrf.mxu0 }
 0x25e   : > { %v8767_v41 = vmax.f32 %v12765_v1, %v2175_v56  ;;  %v1807_v57 = vadd.f32 %v7184_v48, %v8472_v28  ;;  %v1963_v56 = vadd.f32 %v1962_v63, %v1802_v6  ;;  %v2129_v1 = vsel %vm379_vm0, %v8786_v16, 0.0 }
 0x25f   : > { %v7186_v42 = vpop.f32.mrf.mxu0 }
 0x260   : > { %v7187_v44 = vadd.f32 %v7186_v42, %v7185_v15  ;;  %v1960_v15 = vadd.f32 %v8697_v18, %v1799_v39  ;;  %v2124_v18 = vadd.f32 %v2123_v51, %v2122_v21  ;;  %v1968_v42 = vadd.f32 %v8679_v7, %v1807_v57 }
 0x261   : > { %v2183_v39 = vsel %vm379_vm0, %v8704_v36, -inf  ;;  %v2047_v31 = vmul.f32 0.01, %v1963_v56  ;;  %v2185_v7 = vsel %vm379_vm0, %v8720_v4, -inf  ;;  %vm2015_vm6 = vcmp.gt.f32.partialorder %v1963_v56, 0.0 }
 0x262   : > { %v1810_v11 = vadd.f32 %v7187_v44, %v8472_v28  ;;  %v2046_v45 = vmul.f32 0.01, %v1960_v15  ;;  %v2126_v48 = vadd.f32 %v2125_v33, %v2124_v18  ;;  %vm2014_vm5 = vcmp.gt.f32.partialorder %v1960_v15, 0.0 }
 0x263   : > { %v2180_v57 = vmax.f32 %v8714_v23, %v2179_v40  ;;  %v2131_v21 = vsel %vm379_vm0, %v8794_v58, 0.0  ;;  %vm2016_vm7 = vcmp.gt.f32.partialorder %v1968_v42, 0.0  ;;  %v2187_v23 = vsel %vm379_vm0, %v8727_v26, -inf }
 0x264   : > { %v1971_v49 = vadd.f32 %v8718_v13, %v1810_v11  ;;  %v2128_v44 = vadd.f32 %v2127_v17, %v2126_v48  ;;  %v8801_v51 = vsel %vm2014_vm5, %v1960_v15, %v2046_v45  ;;  %v2182_v13 = vmax.f32 %v8762_v8, %v2181_v10 }
 0x265   : > { %v7188_v19 = vpop.f32.mrf.mxu0  ;;  %v2184_v15 = vmax.f32 %v8767_v41, %v2183_v39  ;;  %v2188_v48 = vmax.f32 %v2180_v57, %v2187_v23  ;;  %v2199_v23 = vsel %vm379_vm0, %v8794_v58, -inf  ;;  %vm2728_vm5 = vcmask 1042432  }
 0x266   : > { %v2130_v33 = vadd.f32 %v2129_v1, %v2128_v44  ;;  %v2049_v24 = vmul.f32 0.01, %v1971_v49  ;;  %vm2017_vm8 = vcmp.gt.f32.partialorder %v1971_v49, 0.0 }
 0x267   : > { %v7189_v25 = vpop.f32.mrf.mxu0 }
 0x268   : > { %v7190_v2 = vadd.f32 %v7189_v25, %v7188_v19  ;;  %v2048_v19 = vmul.f32 0.01, %v1968_v42  ;;  %v8808_v25 = vsel %vm2015_vm6, %v1963_v56, %v2047_v31  ;;  %v2132_v8 = vadd.f32 %v2131_v21, %v2130_v33 }
 0x269   : > { %v7191_v29 = vpop.f32.mrf.mxu0  ;;  %v2189_v56 = vsel %vm379_vm0, %v8738_v46, -inf  ;;  %v2135_v41 = vsel %vm379_vm0, %v8808_v25, 0.0  ;;  %vm2714_vm6 = vcmask 1041409  }
 0x26a   : > { %v1815_v63 = vadd.f32 %v7190_v2, %v8472_v28  ;;  %v2186_v2 = vmax.f32 %v2178_v14, %v2185_v7  ;;  %v8815_v40 = vsel %vm2016_vm7, %v1968_v42, %v2048_v19  ;;  %v2193_v42 = vsel %vm379_vm0, %v8755_v9, -inf }
 0x26b   : > { %v7192_v60 = vpop.f32.mrf.mxu0  ;;  %v2190_v1 = vmax.f32 %v2182_v13, %v2189_v56  ;;  %v2197_v19 = vsel %vm379_vm0, %v8786_v16, -inf  ;;  %vm2716_vm7 = vcmask 1042434  }
 0x26c   : > { %v7193_v6 = vadd.f32 %v7192_v60, %v7191_v29  ;;  %v1976_v52 = vadd.f32 %v1975_v61, %v1815_v63  ;;  %v2133_v61 = vsel %vm379_vm0, %v8801_v51, 0.0  ;;  %v2191_v29 = vsel %vm379_vm0, %v8743_v32, -inf }
 0x26d   : > { %v2134_v45 = vadd.f32 %v2133_v61, %v2132_v8  ;;  %v8823_v63 = vsel %vm2017_vm8, %v1971_v49, %v2049_v24  ;;  %v2137_v60 = vsel %vm379_vm0, %v8815_v40, 0.0  ;;  %v2198_v56 = vmax.f32 %v2190_v1, %v2197_v19 }
 0x26e   : > { %v1818_v27 = vadd.f32 %v7193_v6, %v8472_v28  ;;  %v2050_v17 = vmul.f32 0.01, %v1976_v52  ;;  %vm2018_vm9 = vcmp.gt.f32.partialorder %v1976_v52, 0.0  ;;  %v2195_v6 = vsel %vm379_vm0, %v8771_v43, -inf }
 0x26f   : > { %v2136_v7 = vadd.f32 %v2135_v41, %v2134_v45  ;;  %vm2718_vm8 = vcmask 1043459  }
 0x270   : > { %v1979_v11 = vadd.f32 %v1978_v5, %v1818_v27  ;;  %v8831_v44 = vsel %vm2018_vm9, %v1976_v52, %v2050_v17  ;;  %v2192_v5 = vmax.f32 %v2184_v15, %v2191_v29  ;;  %v2139_v27 = vsel %vm379_vm0, %v8823_v63, 0.0 }
 0x271   : > { %v7194_v18 = vpop.f32.mrf.mxu0  ;;  %v2138_v21 = vadd.f32 %v2137_v60, %v2136_v7  ;;  %v2196_v52 = vmax.f32 %v2188_v48, %v2195_v6  ;;  %v2141_v13 = vsel %vm379_vm0, %v8831_v44, 0.0  ;;  %v2205_v29 = vsel %vm379_vm0, %v8815_v40, -inf }
 0x272   : > { %v2051_v10 = vmul.f32 0.01, %v1979_v11  ;;  %vm2019_vm10 = vcmp.gt.f32.partialorder %v1979_v11, 0.0  ;;  %v2206_v7 = vmax.f32 %v2198_v56, %v2205_v29  ;;  %vm2742_vm9 = vcmask 23552  }
 0x273   : > { %v7195_v14 = vpop.f32.mrf.mxu0  ;;  %v2140_v15 = vadd.f32 %v2139_v27, %v2138_v21 }
 0x274   : > { %v7196_v39 = vadd.f32 %v7195_v14, %v7194_v18  ;;  %v8838_v33 = vsel %vm2019_vm10, %v1979_v11, %v2051_v10  ;;  %v2194_v18 = vmax.f32 %v2186_v2, %v2193_v42  ;;  %v2201_v11 = vsel %vm379_vm0, %v8801_v51, -inf }
 0x275   : > { %v7197_v31 = vpop.f32.mrf.mxu0  ;;  %v2143_v2 = vsel %vm379_vm0, %v8838_v33, 0.0  ;;  %v2142_v41 = vadd.f32 %v2141_v13, %v2140_v15  ;;  %v2200_v10 = vmax.f32 %v2192_v5, %v2199_v23  ;;  %vm2746_vm10 = vcmask 154624  }
 0x276   : > { %v1823_v49 = vadd.f32 %v7196_v39, %v8472_v28  ;;  %v2211_v39 = vsel %vm379_vm0, %v8838_v33, -inf  ;;  %v2202_v6 = vmax.f32 %v2194_v18, %v2201_v11 }
 0x277   : > { %v7198_v57 = vpop.f32.mrf.mxu0  ;;  %v2144_v60 = vadd.f32 %v2143_v2, %v2142_v41 }
 0x278   : > { %v1984_v24 = vadd.f32 %v8745_v30, %v1823_v49  ;;  %v7199_v61 = vadd.f32 %v7198_v57, %v7197_v31  ;;  %v2203_v30 = vsel %vm379_vm0, %v8808_v25, -inf  ;;  %v2209_v49 = vsel %vm379_vm0, %v8831_v44, -inf }
 0x279   : > { %v2204_v42 = vmax.f32 %v2196_v52, %v2203_v30 }
 0x27a   : > { %vm2020_vm11 = vcmp.gt.f32.partialorder %v1984_v24, 0.0  ;;  %v2052_v8 = vmul.f32 0.01, %v1984_v24  ;;  %v1826_v17 = vadd.f32 %v7199_v61, %v8472_v28  ;;  %v2207_v28 = vsel %vm379_vm0, %v8823_v63, -inf }
 0x27b   : > { %v2208_v1 = vmax.f32 %v2200_v10, %v2207_v28  ;;  %v2212_v5 = vmax.f32 %v2204_v42, %v2211_v39  ;;  %v2235_v28 = vld [vmem:[%s12766_s3 + $0x1] sm:$0x1]  ;;  %v2226_v39 = vld [vmem:[%s12766_s3] sm:$0x1]  ;;  %s9605_s3 = sld [smem:[#allocation7 + $0x29]] }
 0x27c   : > { %v8854_v14 = vsel %vm2020_vm11, %v1984_v24, %v2052_v8  ;;  %v1987_v45 = vadd.f32 %v8784_v38, %v1826_v17  ;;  %v2210_v24 = vmax.f32 %v2202_v6, %v2209_v49  ;;  %vm4583_vm11 = vcmask 1041408  }
 0x27d   : > { %v2145_v48 = vsel %vm379_vm0, %v8854_v14, 0.0  ;;  %v2213_v38 = vsel %vm379_vm0, %v8854_v14, -inf }
 0x27e   : > { %vm2021_vm12 = vcmp.gt.f32.partialorder %v1987_v45, 0.0  ;;  %v2053_v31 = vmul.f32 0.01, %v1987_v45  ;;  %v2146_v19 = vadd.f32 %v2145_v48, %v2144_v60  ;;  %v2214_v61 = vmax.f32 %v2206_v7, %v2213_v38 }
 0x27f   : > { %v2217_v23 = vmax.f32 %v2210_v24, %v2212_v5 }
 0x280   : > { %v8867_v27 = vsel %vm2021_vm12, %v1987_v45, %v2053_v31  ;;  %vm3436_vm12 = vcmask 1045504  }
 0x281   : > { %v2147_v57 = vsel %vm379_vm0, %v8867_v27, 0.0  ;;  %v2215_v21 = vsel %vm379_vm0, %v8867_v27, -inf }
 0x282   : > { %v2216_v18 = vmax.f32 %v2208_v1, %v2215_v21  ;;  %v2148_v52 = vadd.f32 %v2147_v57, %v2146_v19 }
 0x284   : > { %v2149_v13 = vrot.slane %v2148_v52, 4  ;;  %v2218_v15 = vmax.f32 %v2214_v61, %v2216_v18 }
 0x286   : > { %v2150_v8 = vadd.f32 %v2149_v13, %v2148_v52  ;;  %v2219_v17 = vmax.f32 %v2217_v23, %v2218_v15  ;;  %v2241_v52 = vld [vmem:[%s12767_s4 + $0x1] sm:$0x1]  ;;  %v2232_v23 = vld [vmem:[%s12767_s4] sm:$0x1]  ;;  %s9607_s4 = sld [smem:[#allocation7 + $0x2d]] }
 0x288   : > { %v2151_v56 = vrot.slane %v2150_v8, 2  ;;  %v2220_v11 = vrot.slane %v2219_v17, 4 }
 0x28a   : > { %v2152_v30 = vadd.f32 %v2151_v56, %v2150_v8  ;;  %v2221_v2 = vmax.f32 %v2219_v17, %v2220_v11 }
 0x28c   : > { %v2153_v29 = vrot.slane %v2152_v30, 1  ;;  %v2222_v41 = vrot.slane %v2221_v2, 2 }
 0x28e   : > { %v2154_v45 = vadd.f32 %v2153_v29, %v2152_v30  ;;  %v2223_v10 = vmax.f32 %v2221_v2, %v2222_v41 }
 0x290   : > { %v2156_v48 = vmul.f32 0.00390625, %v2154_v45  ;;  %v2224_v42 = vrot.slane %v2223_v10, 1 }
 0x292   : > { %v2236_v60 = vmul.f32 %v2235_v28, %v2156_v48  ;;  %v2227_v31 = vmul.f32 %v2226_v39, %v2156_v48  ;;  %v2225_v6 = vmax.f32 %v2223_v10, %v2224_v42 }
 0x294   : > { %v2237_v7 = vsel %vm388_vm1, %v2236_v60, 0.0  ;;  %v2228_v49 = vsel %vm388_vm1, %v2227_v31, 0.0  ;;  %v2244_v38 = vmul.f32 %v2226_v39, %v2225_v6  ;;  %v2251_v5 = vmul.f32 %v2235_v28, %v2225_v6 }
 0x295   : > { %2238 = vadd.xlane.f32.xlu1 %v2237_v7  ;;  %2229 = vadd.xlane.f32.xlu0 %v2228_v49  ;;  %v2265_v39 = vlaneseq }
 0x296   : > { %v2245_v1 = vsel %vm388_vm1, %v2244_v38, 0.0  ;;  %v2252_v19 = vsel %vm388_vm1, %v2251_v5, 0.0  ;;  %vm2569_vm1 = vcmask 130112  }
 0x297   : > { %v8890_v48 = vshrl.u32 %v2265_v39, 7 }
 0x299   : > { %2246 = vadd.xlane.f32.xlu0 %v2245_v1  ;;  %12768 = vst [vmem:[#allocation22_spill] sm:$0xff] %v8890_v48  ;;  %v8893_v42 = vsub.s32 0, %v8890_v48 }
 0x29b   : > { %12769 = vst [vmem:[#allocation23_spill] sm:$0xff] %v8893_v42 }
 0x29d   : > { %2253 = vadd.xlane.f32.xlu0 %v2252_v19 }
 0x31e   : > { %v2230_v57 = vpop.xlane.xlu0 %2229  ;;  %v2239_v21 = vpop.xlane.xlu1 %2238 }
 0x31f   : > { %v2240_v61 = vmax.f32 %v2239_v21, 0.0  ;;  %v2231_v18 = vmax.f32 %v2230_v57, 0.0 }
 0x321   : > { %v2242_v8 = vmul.f32 %v2241_v52, %v2240_v61  ;;  %v2233_v17 = vmul.f32 %v2232_v23, %v2231_v18 }
 0x322   : > { %v2247_v24 = vpop.xlane.xlu0 %2246 }
 0x323   : > { %v2248_v13 = vmax.f32 %v2247_v24, 0.0  ;;  %v2243_v2 = vadd.f32 %v2242_v8, %v2233_v17 }
 0x325   : > { %v2249_v11 = vmul.f32 %v2248_v13, %v2232_v23 }
 0x326   : > { %v2254_v15 = vpop.xlane.xlu0 %2253 }
 0x327   : > { %v2255_v56 = vmax.f32 %v2254_v15, 0.0 }
 0x329   : > { %v2256_v30 = vmul.f32 %v2255_v56, %v2241_v52 }
 0x32b   : > { %v2257_v29 = vadd.f32 %v2256_v30, %v2249_v11 }
 0x32d   : > { %v2258_v41 = vadd.f32 %v2257_v29, %v2243_v2 }
 0x32f   : > { %v6944_v45 = vmul.f32 -1.442695, %v2258_v41 }
 0x331   : > { %7534 = vpow2.f32 %v6944_v45 }
 0x33e   : > { %v7535_v10 = vpop.eup %7534 }
 0x33f   : > { %v2262_v28 = vadd.f32 1.0, %v7535_v10 }
 0x341   : > { %7536 = vrcp.f32 %v2262_v28 }
 0x34e   : > { %v7537_v60 = vpop.eup %7536 }
 0x34f   : > { %v8896_v31 = vrot.slane %v7537_v60, %v8893_v42  ;;  %v9791_v42 = vstv %s9622_s9  ;;  %s9812_s9 = sld [smem:[#allocation7 + $0xf]] }
 0x351   : > { %v8900_v6 = vmul.f32 %v8896_v31, %v8496_v59  ;;  %v8904_v7 = vmul.f32 %v8896_v31, %v8512_v37  ;;  %v8912_v1 = vmul.f32 %v8896_v31, %v8518_v47  ;;  %v8916_v5 = vmul.f32 %v8896_v31, %v8514_v62 }
 0x352   : > { %v8924_v19 = vmul.f32 %v8896_v31, %v8538_v3  ;;  %v8928_v47 = vmul.f32 %v8896_v31, %v8536_v54  ;;  %v8936_v21 = vmul.f32 %v8896_v31, %v8577_v22  ;;  %v8940_v3 = vmul.f32 %v8896_v31, %v8555_v53 }
 0x353   : > { %12770 = vst [vmem:[#allocation24_spill] sm:$0xff] %v8900_v6  ;;  %12771 = vst [vmem:[#allocation25_spill] sm:$0xff] %v8904_v7  ;;  %v2304_v49 = vsel %vm379_vm0, %v8900_v6, 0.0  ;;  %v2301_v38 = vsel %vm379_vm0, %v8904_v7, 0.0  ;;  %v2310_v59 = vsel %vm379_vm0, %v8912_v1, 0.0  ;;  %v2307_v37 = vsel %vm379_vm0, %v8916_v5, 0.0 }
 0x354   : > { %12772 = vst [vmem:[#allocation26_spill] sm:$0xff] %v8912_v1  ;;  %12773 = vst [vmem:[#allocation27_spill] sm:$0xff] %v8916_v5  ;;  %2305 = vadd.xlane.f32.xlu0 %v2304_v49  ;;  %2302 = vadd.xlane.f32.xlu1 %v2301_v38  ;;  %v2316_v62 = vsel %vm379_vm0, %v8924_v19, 0.0  ;;  %v2313_v57 = vsel %vm379_vm0, %v8928_v47, 0.0  ;;  %v2322_v54 = vsel %vm379_vm0, %v8936_v21, 0.0  ;;  %v2319_v24 = vsel %vm379_vm0, %v8940_v3, 0.0 }
 0x355   : > { %12774 = vst [vmem:[#allocation28_spill] sm:$0xff] %v8924_v19  ;;  %12775 = vst [vmem:[#allocation29_spill] sm:$0xff] %v8928_v47  ;;  %v8948_v61 = vmul.f32 %v8896_v31, %v8614_v20  ;;  %v8952_v22 = vmul.f32 %v8896_v31, %v8612_v12  ;;  %v2433_v52 = vsel %vm379_vm0, %v8900_v6, -inf  ;;  %v2430_v20 = vsel %vm379_vm0, %v8904_v7, -inf }
 0x356   : > { %12776 = vst [vmem:[#allocation30_spill] sm:$0xff] %v8936_v21  ;;  %12777 = vst [vmem:[#allocation31_spill] sm:$0xff] %v8940_v3  ;;  %v2439_v12 = vsel %vm379_vm0, %v8912_v1, -inf  ;;  %v2436_v23 = vsel %vm379_vm0, %v8916_v5, -inf  ;;  %v2445_v13 = vsel %vm379_vm0, %v8924_v19, -inf  ;;  %v2442_v15 = vsel %vm379_vm0, %v8928_v47, -inf }
 0x357   : > { %12778 = vst [vmem:[#allocation32_spill] sm:$0xff] %v8948_v61  ;;  %12779 = vst [vmem:[#allocation33_spill] sm:$0xff] %v8952_v22  ;;  %v2328_v53 = vsel %vm379_vm0, %v8948_v61, 0.0  ;;  %v2325_v18 = vsel %vm379_vm0, %v8952_v22, 0.0  ;;  %v2451_v8 = vsel %vm379_vm0, %v8936_v21, -inf  ;;  %v2448_v17 = vsel %vm379_vm0, %v8940_v3, -inf }
 0x358   : > { %2311 = vadd.xlane.f32.xlu0 %v2310_v59  ;;  %2308 = vadd.xlane.f32.xlu1 %v2307_v37  ;;  %v2457_v56 = vsel %vm379_vm0, %v8948_v61, -inf  ;;  %v2454_v11 = vsel %vm379_vm0, %v8952_v22, -inf  ;;  %v8980_v30 = vmul.f32 %v8896_v31, %v8651_v0  ;;  %v8984_v2 = vmul.f32 %v8896_v31, %v8648_v34 }
 0x359   : > { %v8992_v45 = vmul.f32 %v8896_v31, %v8677_v55  ;;  %v8996_v0 = vmul.f32 %v8896_v31, %v8672_v50  ;;  %v9004_v28 = vmul.f32 %v8896_v31, %v8704_v36  ;;  %v9008_v55 = vmul.f32 %v8896_v31, %v8699_v35 }
 0x35a   : > { %12780 = vst [vmem:[#allocation34_spill] sm:$0xff] %v8980_v30  ;;  %12781 = vst [vmem:[#allocation35_spill] sm:$0xff] %v8984_v2  ;;  %v2334_v29 = vsel %vm379_vm0, %v8980_v30, 0.0  ;;  %v2331_v41 = vsel %vm379_vm0, %v8984_v2, 0.0  ;;  %v9016_v49 = vmul.f32 %v8896_v31, %v8727_v26  ;;  %v9020_v36 = vmul.f32 %v8896_v31, %v8720_v4 }
 0x35b   : > { %12782 = vst [vmem:[#allocation36_spill] sm:$0xff] %v8992_v45  ;;  %12783 = vst [vmem:[#allocation37_spill] sm:$0xff] %v8996_v0  ;;  %v2340_v34 = vsel %vm379_vm0, %v8992_v45, 0.0  ;;  %v2337_v10 = vsel %vm379_vm0, %v8996_v0, 0.0  ;;  %v2346_v50 = vsel %vm379_vm0, %v9004_v28, 0.0  ;;  %v2343_v60 = vsel %vm379_vm0, %v9008_v55, 0.0 }
 0x35c   : > { %2317 = vadd.xlane.f32.xlu0 %v2316_v62  ;;  %2314 = vadd.xlane.f32.xlu1 %v2313_v57  ;;  %12784 = vst [vmem:[#allocation38_spill] sm:$0xff] %v9004_v28  ;;  %12785 = vst [vmem:[#allocation39_spill] sm:$0xff] %v9008_v55  ;;  %v2352_v35 = vsel %vm379_vm0, %v9016_v49, 0.0  ;;  %v2349_v38 = vsel %vm379_vm0, %v9020_v36, 0.0  ;;  %v9028_v59 = vmul.f32 %v8896_v31, %v8743_v32  ;;  %v9772_v1 = vstv %s9609_s10 }
 0x35d   : > { %12786 = vst [vmem:[#allocation40_spill] sm:$0xff] %v9016_v49  ;;  %12787 = vst [vmem:[#allocation41_spill] sm:$0xff] %v9020_v36  ;;  %v9032_v26 = vmul.f32 %v8896_v31, %v8738_v46  ;;  %v9040_v62 = vmul.f32 %v8896_v31, %v8771_v43  ;;  %v9044_v32 = vmul.f32 %v8896_v31, %v8755_v9  ;;  %v2460_v43 = vsel %vm379_vm0, %v8984_v2, -inf }
 0x35e   : > { %12788 = vst [vmem:[#allocation42_spill] sm:$0xff] %v9028_v59  ;;  %v2358_v4 = vsel %vm379_vm0, %v9028_v59, 0.0  ;;  %v2469_v9 = vsel %vm379_vm0, %v8992_v45, -inf  ;;  %v9780_v7 = vstv %s9611_s12  ;;  %s9827_s12 = sld [smem:[#allocation7 + $0x61]] }
 0x35f   : > { %12789 = vst [vmem:[#allocation43_spill] sm:$0xff] %v9032_v26  ;;  %v2355_v37 = vsel %vm379_vm0, %v9032_v26, 0.0  ;;  %12790 = vst [vmem:[#allocation44_spill] sm:$0xff] %v9040_v62  ;;  %v2364_v46 = vsel %vm379_vm0, %v9040_v62, 0.0  ;;  %v2361_v57 = vsel %vm379_vm0, %v9044_v32, 0.0 }
 0x360   : > { %2323 = vadd.xlane.f32.xlu0 %v2322_v54  ;;  %2320 = vadd.xlane.f32.xlu1 %v2319_v24  ;;  %12791 = vst [vmem:[#allocation45_spill] sm:$0xff] %v9044_v32  ;;  %v2463_v54 = vsel %vm379_vm0, %v8980_v30, -inf  ;;  %v2466_v24 = vsel %vm379_vm0, %v8996_v0, -inf }
 0x364   : > { %2329 = vadd.xlane.f32.xlu0 %v2328_v53  ;;  %2326 = vadd.xlane.f32.xlu1 %v2325_v18  ;;  %v9060_v53 = vmul.f32 %v8896_v31, %v8794_v58  ;;  %v9064_v18 = vmul.f32 %v8896_v31, %v8786_v16  ;;  %v2472_v58 = vsel %vm379_vm0, %v9008_v55, -inf  ;;  %v9076_v16 = vmul.f32 %v8896_v31, %v8808_v25 }
 0x365   : > { %v2478_v25 = vsel %vm379_vm0, %v9020_v36, -inf }
 0x366   : > { %12792 = vst [vmem:[#allocation46_spill] sm:$0xff] %v9060_v53  ;;  %12793 = vst [vmem:[#allocation47_spill] sm:$0xff] %v9064_v18 }
 0x367   : > { %12794 = vst [vmem:[#allocation48_spill] sm:$0xff] %v9076_v16 }
 0x368   : > { %2434 = vmax.xlane.f32.xlu0 %v2433_v52  ;;  %2431 = vmax.xlane.f32.xlu1 %v2430_v20  ;;  %v2370_v52 = vsel %vm379_vm0, %v9060_v53, 0.0  ;;  %v2367_v20 = vsel %vm379_vm0, %v9064_v18, 0.0 }
 0x36c   : > { %2440 = vmax.xlane.f32.xlu0 %v2439_v12  ;;  %2437 = vmax.xlane.f32.xlu1 %v2436_v23  ;;  %v2475_v12 = vsel %vm379_vm0, %v9004_v28, -inf  ;;  %v9080_v23 = vmul.f32 %v8896_v31, %v8801_v51  ;;  %v2487_v51 = vsel %vm379_vm0, %v9028_v59, -inf }
 0x36e   : > { %12795 = vst [vmem:[#allocation49_spill] sm:$0xff] %v9080_v23 }
 0x370   : > { %2446 = vmax.xlane.f32.xlu0 %v2445_v13  ;;  %2443 = vmax.xlane.f32.xlu1 %v2442_v15  ;;  %v2376_v13 = vsel %vm379_vm0, %v9076_v16, 0.0  ;;  %v2373_v15 = vsel %vm379_vm0, %v9080_v23, 0.0 }
 0x374   : > { %2452 = vmax.xlane.f32.xlu0 %v2451_v8  ;;  %2449 = vmax.xlane.f32.xlu1 %v2448_v17  ;;  %v2481_v8 = vsel %vm379_vm0, %v9016_v49, -inf  ;;  %v2484_v17 = vsel %vm379_vm0, %v9032_v26, -inf }
 0x378   : > { %2458 = vmax.xlane.f32.xlu0 %v2457_v56  ;;  %2455 = vmax.xlane.f32.xlu1 %v2454_v11  ;;  %v2493_v56 = vsel %vm379_vm0, %v9040_v62, -inf  ;;  %v2490_v11 = vsel %vm379_vm0, %v9044_v32, -inf }
 0x37c   : > { %2335 = vadd.xlane.f32.xlu0 %v2334_v29  ;;  %2332 = vadd.xlane.f32.xlu1 %v2331_v41  ;;  %v2499_v29 = vsel %vm379_vm0, %v9060_v53, -inf  ;;  %v2496_v41 = vsel %vm379_vm0, %v9064_v18, -inf }
 0x380   : > { %2341 = vadd.xlane.f32.xlu0 %v2340_v34  ;;  %2338 = vadd.xlane.f32.xlu1 %v2337_v10  ;;  %v2505_v34 = vsel %vm379_vm0, %v9076_v16, -inf  ;;  %v2502_v10 = vsel %vm379_vm0, %v9080_v23, -inf }
 0x384   : > { %2347 = vadd.xlane.f32.xlu0 %v2346_v50  ;;  %2344 = vadd.xlane.f32.xlu1 %v2343_v60  ;;  %v9108_v50 = vmul.f32 %v8896_v31, %v8823_v63  ;;  %v9112_v60 = vmul.f32 %v8896_v31, %v8815_v40  ;;  %v9124_v63 = vmul.f32 %v8896_v31, %v8831_v44 }
 0x386   : > { %12796 = vst [vmem:[#allocation50_spill] sm:$0xff] %v9108_v50  ;;  %12797 = vst [vmem:[#allocation51_spill] sm:$0xff] %v9112_v60 }
 0x387   : > { %12799 = vst [vmem:[#allocation53_spill] sm:$0xff] %v9124_v63 }
 0x388   : > { %2353 = vadd.xlane.f32.xlu0 %v2352_v35  ;;  %2350 = vadd.xlane.f32.xlu1 %v2349_v38  ;;  %v2382_v35 = vsel %vm379_vm0, %v9108_v50, 0.0  ;;  %v2379_v38 = vsel %vm379_vm0, %v9112_v60, 0.0 }
 0x38c   : > { %2359 = vadd.xlane.f32.xlu0 %v2358_v4  ;;  %2356 = vadd.xlane.f32.xlu1 %v2355_v37  ;;  %v9120_v4 = vmul.f32 %v8896_v31, %v8838_v33  ;;  %v2385_v37 = vsel %vm379_vm0, %v9124_v63, 0.0  ;;  %v9136_v33 = vmul.f32 %v8896_v31, %v8854_v14 }
 0x38e   : > { %12798 = vst [vmem:[#allocation52_spill] sm:$0xff] %v9120_v4  ;;  %v2388_v40 = vsel %vm379_vm0, %v9120_v4, 0.0  ;;  %12801 = vst [vmem:[#allocation55_spill] sm:$0xff] %v9136_v33  ;;  %v2517_v14 = vsel %vm379_vm0, %v9120_v4, -inf }
 0x390   : > { %2365 = vadd.xlane.f32.xlu0 %v2364_v46  ;;  %2362 = vadd.xlane.f32.xlu1 %v2361_v57  ;;  %v9132_v46 = vmul.f32 %v8896_v31, %v8867_v27  ;;  %v2391_v57 = vsel %vm379_vm0, %v9136_v33, 0.0  ;;  %v2508_v27 = vsel %vm379_vm0, %v9112_v60, -inf  ;;  %v2514_v31 = vsel %vm379_vm0, %v9124_v63, -inf }
 0x392   : > { %12800 = vst [vmem:[#allocation54_spill] sm:$0xff] %v9132_v46  ;;  %v2394_v44 = vsel %vm379_vm0, %v9132_v46, 0.0 }
 0x394   : > { %2464 = vmax.xlane.f32.xlu0 %v2463_v54  ;;  %2461 = vmax.xlane.f32.xlu1 %v2460_v43  ;;  %v2511_v54 = vsel %vm379_vm0, %v9108_v50, -inf  ;;  %v2523_v43 = vsel %vm379_vm0, %v9132_v46, -inf }
 0x398   : > { %2470 = vmax.xlane.f32.xlu0 %v2469_v9  ;;  %2467 = vmax.xlane.f32.xlu1 %v2466_v24  ;;  %v2520_v9 = vsel %vm379_vm0, %v9136_v33, -inf }
 0x39c   : > { %2371 = vadd.xlane.f32.xlu0 %v2370_v52  ;;  %2368 = vadd.xlane.f32.xlu1 %v2367_v20  ;;  %v2559_v20 = vand.u32 127, %v2265_v39 }
 0x3a0   : > { %2476 = vmax.xlane.f32.xlu0 %v2475_v12  ;;  %2473 = vmax.xlane.f32.xlu1 %v2472_v58 }
 0x3a4   : > { %2377 = vadd.xlane.f32.xlu0 %v2376_v13  ;;  %2374 = vadd.xlane.f32.xlu1 %v2373_v15  ;;  %v2564_v13 = vadd.s32 4294967288, %v2559_v20 }
 0x3a8   : > { %2482 = vmax.xlane.f32.xlu0 %v2481_v8  ;;  %2479 = vmax.xlane.f32.xlu1 %v2478_v25 }
 0x3ac   : > { %2488 = vmax.xlane.f32.xlu0 %v2487_v51  ;;  %2485 = vmax.xlane.f32.xlu1 %v2484_v17 }
 0x3b0   : > { %2494 = vmax.xlane.f32.xlu0 %v2493_v56  ;;  %2491 = vmax.xlane.f32.xlu1 %v2490_v11  ;;  %v9156_v11 = vsub.s32 %v2564_v13, %v8890_v48 }
 0x3b4   : > { %2500 = vmax.xlane.f32.xlu0 %v2499_v29  ;;  %2497 = vmax.xlane.f32.xlu1 %v2496_v41  ;;  %v9159_v41 = vsub.s32 %v2559_v20, %v8890_v48  ;;  %v9788_v48 = vstv %s9617_s30 }
 0x3b8   : > { %2506 = vmax.xlane.f32.xlu0 %v2505_v34  ;;  %2503 = vmax.xlane.f32.xlu1 %v2502_v10 }
 0x3bc   : > { %2383 = vadd.xlane.f32.xlu0 %v2382_v35  ;;  %2380 = vadd.xlane.f32.xlu1 %v2379_v38 }
 0x3c0   : > { %2389 = vadd.xlane.f32.xlu0 %v2388_v40  ;;  %2386 = vadd.xlane.f32.xlu1 %v2385_v37 }
 0x3c4   : > { %2395 = vadd.xlane.f32.xlu0 %v2394_v44  ;;  %2392 = vadd.xlane.f32.xlu1 %v2391_v57 }
 0x3c8   : > { %2512 = vmax.xlane.f32.xlu0 %v2511_v54  ;;  %2509 = vmax.xlane.f32.xlu1 %v2508_v27 }
 0x3cc   : > { %2518 = vmax.xlane.f32.xlu0 %v2517_v14  ;;  %2515 = vmax.xlane.f32.xlu1 %v2514_v31 }
 0x3d0   : > { %2524 = vmax.xlane.f32.xlu0 %v2523_v43  ;;  %2521 = vmax.xlane.f32.xlu1 %v2520_v9 }
 0x3dd   : > { %v2306_v24 = vpop.xlane.xlu0 %2305  ;;  %v2303_v52 = vpop.xlane.xlu1 %2302 }
 0x3de   : > { %v2399_v29 = vmul.f32 0.03125, %v2306_v24  ;;  %v2398_v34 = vmul.f32 0.03125, %v2303_v52 }
 0x3e0   : > { %v2568_v54 = vrot.slane %v2399_v29, %v9156_v11  ;;  %v2563_v27 = vrot.slane %v2398_v34, %v9159_v41 }
 0x3e1   : > { %v2312_v12 = vpop.xlane.xlu0 %2311  ;;  %v2309_v58 = vpop.xlane.xlu1 %2308 }
 0x3e2   : > { %v2401_v15 = vmul.f32 0.03125, %v2312_v12  ;;  %v2400_v8 = vmul.f32 0.03125, %v2309_v58  ;;  %v2570_v58 = vsel %vm2569_vm1, %v2568_v54, %v2563_v27 }
 0x3e4   : > { %v2578_v10 = vrot.slane %v2401_v15, %v9156_v11  ;;  %v2574_v39 = vrot.slane %v2400_v8, %v9159_v41 }
 0x3e5   : > { %v2318_v25 = vpop.xlane.xlu0 %2317  ;;  %v2315_v51 = vpop.xlane.xlu1 %2314 }
 0x3e6   : > { %v2403_v17 = vmul.f32 0.03125, %v2318_v25  ;;  %v2402_v56 = vmul.f32 0.03125, %v2315_v51  ;;  %v2579_v43 = vsel %vm2569_vm1, %v2578_v10, %v2574_v39 }
 0x3e7   : > { %v2707_v15 = vsel %vm2706_vm13, %v2579_v43, %v2570_v58 }
 0x3e8   : > { %v2587_v40 = vrot.slane %v2403_v17, %v9156_v11  ;;  %v2583_v37 = vrot.slane %v2402_v56, %v9159_v41 }
 0x3e9   : > { %v2324_v35 = vpop.xlane.xlu0 %2323  ;;  %v2321_v38 = vpop.xlane.xlu1 %2320 }
 0x3ea   : > { %v2405_v44 = vmul.f32 0.03125, %v2324_v35  ;;  %v2404_v57 = vmul.f32 0.03125, %v2321_v38  ;;  %v2588_v52 = vsel %vm2569_vm1, %v2587_v40, %v2583_v37 }
 0x3eb   : > { %v2709_v56 = vsel %vm2708_vm14, %v2588_v52, %v2707_v15 }
 0x3ec   : > { %v2596_v14 = vrot.slane %v2405_v44, %v9156_v11  ;;  %v2592_v31 = vrot.slane %v2404_v57, %v9159_v41 }
 0x3ed   : > { %v2330_v9 = vpop.xlane.xlu0 %2329  ;;  %v2327_v24 = vpop.xlane.xlu1 %2326 }
 0x3ee   : > { %v2407_v20 = vmul.f32 0.03125, %v2330_v9  ;;  %v2406_v12 = vmul.f32 0.03125, %v2327_v24  ;;  %v2597_v13 = vsel %vm2569_vm1, %v2596_v14, %v2592_v31 }
 0x3ef   : > { %v2711_v34 = vsel %vm2710_vm15, %v2597_v13, %v2709_v56 }
 0x3f0   : > { %v2605_v8 = vrot.slane %v2407_v20, %v9156_v11  ;;  %v2601_v25 = vrot.slane %v2406_v12, %v9159_v41 }
 0x3f1   : > { %v9176_v51 = vpop.xlane.xlu0 %2434  ;;  %v9178_v17 = vpop.xlane.xlu1 %2431 }
 0x3f2   : > { %v2606_v29 = vsel %vm2569_vm1, %v2605_v8, %v2601_v25 }
 0x3f3   : > { %v2713_v10 = vsel %vm2712_vm2, %v2606_v29, %v2711_v34 }
 0x3f4   : > { %v2729_v39 = vsel %vm2728_vm5, 0.0, %v2713_v10 }
 0x3f5   : > { %v9185_v35 = vpop.xlane.xlu0 %2440  ;;  %2733 = vrot.lane.b32.xlu1 %v2729_v39, %s7675_s20  ;;  %v9188_v38 = vpop.xlane.xlu1 %2437 }
 0x3f9   : > { %v9190_v40 = vpop.xlane.xlu0 %2446  ;;  %v9192_v37 = vpop.xlane.xlu1 %2443 }
 0x3fd   : > { %v9194_v44 = vpop.xlane.xlu0 %2452  ;;  %v9196_v57 = vpop.xlane.xlu1 %2449 }
 0x401   : > { %v9198_v54 = vpop.xlane.xlu0 %2458  ;;  %v9200_v27 = vpop.xlane.xlu1 %2455 }
 0x405   : > { %v2336_v14 = vpop.xlane.xlu0 %2335  ;;  %v2333_v31 = vpop.xlane.xlu1 %2332 }
 0x406   : > { %v2409_v63 = vmul.f32 0.03125, %v2336_v14  ;;  %v2408_v4 = vmul.f32 0.03125, %v2333_v31 }
 0x408   : > { %v2614_v14 = vrot.slane %v2409_v63, %v9156_v11  ;;  %v2610_v31 = vrot.slane %v2408_v4, %v9159_v41 }
 0x409   : > { %v2342_v43 = vpop.xlane.xlu0 %2341  ;;  %v2339_v9 = vpop.xlane.xlu1 %2338 }
 0x40a   : > { %v2411_v10 = vmul.f32 0.03125, %v2342_v43  ;;  %v2410_v39 = vmul.f32 0.03125, %v2339_v9 }
 0x40c   : > { %v2623_v32 = vrot.slane %v2411_v10, %v9156_v11  ;;  %v2619_v62 = vrot.slane %v2410_v39, %v9159_v41 }
 0x40d   : > { %v2348_v24 = vpop.xlane.xlu0 %2347  ;;  %v2345_v52 = vpop.xlane.xlu1 %2344 }
 0x40e   : > { %v2413_v33 = vmul.f32 0.03125, %v2348_v24  ;;  %v2412_v46 = vmul.f32 0.03125, %v2345_v52 }
 0x410   : > { %v2632_v49 = vrot.slane %v2413_v33, %v9156_v11  ;;  %v2628_v43 = vrot.slane %v2412_v46, %v9159_v41 }
 0x411   : > { %v2354_v20 = vpop.xlane.xlu0 %2353  ;;  %v2351_v12 = vpop.xlane.xlu1 %2350 }
 0x412   : > { %v2415_v60 = vmul.f32 0.03125, %v2354_v20  ;;  %v2414_v50 = vmul.f32 0.03125, %v2351_v12 }
 0x414   : > { %v2641_v52 = vrot.slane %v2415_v60, %v9156_v11  ;;  %v2637_v20 = vrot.slane %v2414_v50, %v9159_v41  ;;  %v2633_v60 = vsel %vm2569_vm1, %v2632_v49, %v2628_v43 }
 0x415   : > { %v2360_v58 = vpop.xlane.xlu0 %2359  ;;  %v2357_v13 = vpop.xlane.xlu1 %2356 }
 0x416   : > { %v2417_v23 = vmul.f32 0.03125, %v2360_v58  ;;  %v2416_v16 = vmul.f32 0.03125, %v2357_v13  ;;  %v2642_v4 = vsel %vm2569_vm1, %v2641_v52, %v2637_v20 }
 0x418   : > { %v2650_v12 = vrot.slane %v2417_v23, %v9156_v11  ;;  %v2646_v58 = vrot.slane %v2416_v16, %v9159_v41  ;;  %v2615_v16 = vsel %vm2569_vm1, %v2614_v14, %v2610_v31 }
 0x419   : > { %v2366_v15 = vpop.xlane.xlu0 %2365  ;;  %v2363_v8 = vpop.xlane.xlu1 %2362 }
 0x41a   : > { %v2419_v59 = vmul.f32 0.03125, %v2366_v15  ;;  %v2418_v26 = vmul.f32 0.03125, %v2363_v8 }
 0x41c   : > { %v2655_v63 = vrot.slane %v2418_v26, %v9159_v41 }
 0x41d   : > { %v9202_v25 = vpop.xlane.xlu0 %2464  ;;  %v9204_v56 = vpop.xlane.xlu1 %2461 }
 0x421   : > { %v9206_v29 = vpop.xlane.xlu0 %2470  ;;  %v9208_v34 = vpop.xlane.xlu1 %2467 }
 0x425   : > { %v2372_v18 = vpop.xlane.xlu0 %2371  ;;  %v2369_v53 = vpop.xlane.xlu1 %2368 }
 0x426   : > { %v2421_v9 = vmul.f32 0.03125, %v2372_v18  ;;  %v2420_v24 = vmul.f32 0.03125, %v2369_v53  ;;  %v2624_v18 = vsel %vm2569_vm1, %v2623_v32, %v2619_v62  ;;  %v2659_v53 = vrot.slane %v2419_v59, %v9156_v11 }
 0x427   : > { %v2715_v46 = vsel %vm2714_vm6, %v2624_v18, %v2615_v16  ;;  %v2651_v62 = vsel %vm2569_vm1, %v2650_v12, %v2646_v58 }
 0x428   : > { %v2668_v50 = vrot.slane %v2421_v9, %v9156_v11  ;;  %v2664_v23 = vrot.slane %v2420_v24, %v9159_v41  ;;  %v2717_v26 = vsel %vm2716_vm7, %v2633_v60, %v2715_v46  ;;  %v2660_v33 = vsel %vm2569_vm1, %v2659_v53, %v2655_v63 }
 0x429   : > { %v9220_v13 = vpop.xlane.xlu0 %2476  ;;  %v9222_v15 = vpop.xlane.xlu1 %2473  ;;  %v2719_v10 = vsel %vm2718_vm8, %v2642_v4, %v2717_v26 }
 0x42a   : > { %v2669_v39 = vsel %vm2569_vm1, %v2668_v50, %v2664_v23  ;;  %v2720_v24 = vsel %vm2706_vm13, %v2651_v62, %v2719_v10  ;;  %v2807_v10 = vrot.slane %v9190_v40, %v9156_v11  ;;  %v2825_v40 = vrot.slane %v9198_v54, %v9156_v11 }
 0x42b   : > { %v2721_v52 = vsel %vm2708_vm14, %v2660_v33, %v2720_v24  ;;  %v2816_v24 = vrot.slane %v9194_v44, %v9156_v11 }
 0x42c   : > { %v2722_v12 = vsel %vm2710_vm15, %v2669_v39, %v2721_v52  ;;  %v2803_v39 = vrot.slane %v9192_v37, %v9159_v41  ;;  %v2821_v37 = vrot.slane %v9200_v27, %v9159_v41 }
 0x42d   : > { %v2378_v32 = vpop.xlane.xlu0 %2377  ;;  %v2375_v59 = vpop.xlane.xlu1 %2374 }
 0x42e   : > { %v2423_v49 = vmul.f32 0.03125, %v2378_v32  ;;  %v2422_v8 = vmul.f32 0.03125, %v2375_v59 }
 0x430   : > { %v2677_v43 = vrot.slane %v2423_v49, %v9156_v11  ;;  %v2673_v9 = vrot.slane %v2422_v8, %v9159_v41  ;;  %v2798_v49 = vrot.slane %v9185_v35, %v9156_v11  ;;  %v2794_v8 = vrot.slane %v9188_v38, %v9159_v41 }
 0x431   : > { %v9241_v14 = vpop.xlane.xlu0 %2482  ;;  %v9243_v31 = vpop.xlane.xlu1 %2479  ;;  %v2812_v35 = vrot.slane %v9196_v57, %v9159_v41 }
 0x432   : > { %v2678_v20 = vsel %vm2569_vm1, %v2677_v43, %v2673_v9  ;;  %v2789_v43 = vrot.slane %v9176_v51, %v9156_v11  ;;  %v2785_v9 = vrot.slane %v9178_v17, %v9159_v41  ;;  %v2808_v51 = vsel %vm2569_vm1, %v2807_v10, %v2803_v39 }
 0x433   : > { %v2723_v58 = vsel %vm2712_vm2, %v2678_v20, %v2722_v12  ;;  %v2799_v20 = vsel %vm2569_vm1, %v2798_v49, %v2794_v8  ;;  %v2817_v44 = vsel %vm2569_vm1, %v2816_v24, %v2812_v35  ;;  %v2826_v49 = vsel %vm2569_vm1, %v2825_v40, %v2821_v37 }
 0x434   : > { %2735 = vrot.lane.b32.xlu1 %v2723_v58, %s7675_s20  ;;  %v2790_v17 = vsel %vm2569_vm1, %v2789_v43, %v2785_v9 }
 0x435   : > { %v9250_v18 = vpop.xlane.xlu0 %2488  ;;  %v9252_v53 = vpop.xlane.xlu1 %2485  ;;  %v2926_v12 = vsel %vm2706_vm13, %v2799_v20, %v2790_v17 }
 0x436   : > { %v2927_v36 = vsel %vm2708_vm14, %v2808_v51, %v2926_v12 }
 0x437   : > { %v2928_v24 = vsel %vm2710_vm15, %v2817_v44, %v2927_v36  ;;  %v2843_v36 = vrot.slane %v9206_v29, %v9156_v11  ;;  %v2839_v44 = vrot.slane %v9208_v34, %v9159_v41  ;;  %v2857_v34 = vrot.slane %v9243_v31, %v9159_v41 }
 0x438   : > { %v2929_v37 = vsel %vm2712_vm2, %v2826_v49, %v2928_v24  ;;  %v2848_v49 = vrot.slane %v9222_v15, %v9159_v41  ;;  %v2866_v15 = vrot.slane %v9252_v53, %v9159_v41 }
 0x439   : > { %v9254_v63 = vpop.xlane.xlu0 %2494  ;;  %v9256_v60 = vpop.xlane.xlu1 %2491 }
 0x43a   : > { %v2879_v31 = vrot.slane %v9254_v63, %v9156_v11 }
 0x43d   : > { %v9258_v50 = vpop.xlane.xlu0 %2500  ;;  %v9260_v23 = vpop.xlane.xlu1 %2497 }
 0x43e   : > { %v2884_v53 = vrot.slane %v9260_v23, %v9159_v41 }
 0x441   : > { %v9262_v16 = vpop.xlane.xlu0 %2506  ;;  %v9264_v4 = vpop.xlane.xlu1 %2503 }
 0x442   : > { %v2897_v63 = vrot.slane %v9262_v16, %v9156_v11 }
 0x445   : > { %v2384_v46 = vpop.xlane.xlu0 %2383  ;;  %v2381_v62 = vpop.xlane.xlu1 %2380 }
 0x446   : > { %v2425_v35 = vmul.f32 0.03125, %v2384_v46  ;;  %v2424_v20 = vmul.f32 0.03125, %v2381_v62 }
 0x448   : > { %v2682_v29 = vrot.slane %v2424_v20, %v9159_v41 }
 0x449   : > { %v2390_v32 = vpop.xlane.xlu0 %2389  ;;  %v2387_v59 = vpop.xlane.xlu1 %2386 }
 0x44a   : > { %v2427_v28 = vmul.f32 0.03125, %v2390_v32  ;;  %v2426_v27 = vmul.f32 0.03125, %v2387_v59  ;;  %v2834_v32 = vrot.slane %v9202_v25, %v9156_v11  ;;  %v2830_v59 = vrot.slane %v9204_v56, %v9159_v41 }
 0x44c   : > { %v2695_v46 = vrot.slane %v2427_v28, %v9156_v11  ;;  %v2691_v62 = vrot.slane %v2426_v27, %v9159_v41 }
 0x44d   : > { %v2396_v26 = vpop.xlane.xlu0 %2395  ;;  %v2393_v33 = vpop.xlane.xlu1 %2392 }
 0x44e   : > { %v2429_v43 = vmul.f32 0.03125, %v2396_v26  ;;  %v2428_v9 = vmul.f32 0.03125, %v2393_v33  ;;  %v2696_v27 = vsel %vm2569_vm1, %v2695_v46, %v2691_v62 }
 0x450   : > { %v2700_v25 = vrot.slane %v2428_v9, %v9159_v41  ;;  %v2875_v9 = vrot.slane %v9256_v60, %v9159_v41  ;;  %v2893_v60 = vrot.slane %v9264_v4, %v9159_v41 }
 0x451   : > { %v2513_v52 = vpop.xlane.xlu0 %2512  ;;  %v2510_v38 = vpop.xlane.xlu1 %2509 }
 0x452   : > { %v2906_v10 = vrot.slane %v2513_v52, %v9156_v11  ;;  %v2902_v39 = vrot.slane %v2510_v38, %v9159_v41  ;;  %v2704_v38 = vrot.slane %v2429_v43, %v9156_v11 }
 0x454   : > { %v2907_v33 = vsel %vm2569_vm1, %v2906_v10, %v2902_v39  ;;  %v2941_v10 = vsel %vm2728_vm5, 0.0, %v2929_v37  ;;  %v2835_v39 = vsel %vm2569_vm1, %v2834_v32, %v2830_v59  ;;  %v2705_v43 = vsel %vm2569_vm1, %v2704_v38, %v2700_v25 }
 0x455   : > { %v2519_v58 = vpop.xlane.xlu0 %2518  ;;  %v2516_v57 = vpop.xlane.xlu1 %2515  ;;  %v2880_v37 = vsel %vm2569_vm1, %v2879_v31, %v2875_v9  ;;  %v2898_v59 = vsel %vm2569_vm1, %v2897_v63, %v2893_v60  ;;  %v12563_v25 = vstv %s9366_s18  ;;  %s12852_s18 = smov 125  }
 0x456   : > { %v2915_v8 = vrot.slane %v2519_v58, %v9156_v11  ;;  %v2911_v54 = vrot.slane %v2516_v57, %v9159_v41  ;;  %v2686_v58 = vrot.slane %v2425_v35, %v9156_v11  ;;  %v2852_v57 = vrot.slane %v9220_v13, %v9156_v11 }
 0x457   : > { %v2870_v13 = vrot.slane %v9250_v18, %v9156_v11  ;;  %v2888_v18 = vrot.slane %v9258_v50, %v9156_v11 }
 0x458   : > { %v2916_v51 = vsel %vm2569_vm1, %v2915_v8, %v2911_v54  ;;  %v2861_v54 = vrot.slane %v9241_v14, %v9156_v11  ;;  %v2844_v14 = vsel %vm2569_vm1, %v2843_v36, %v2839_v44  ;;  %v2687_v24 = vsel %vm2569_vm1, %v2686_v58, %v2682_v29 }
 0x459   : > { %v2525_v17 = vpop.xlane.xlu0 %2524  ;;  %v2522_v40 = vpop.xlane.xlu1 %2521  ;;  %v2937_v56 = vsel %vm2714_vm6, %v2916_v51, %v2907_v33  ;;  %v2853_v35 = vsel %vm2569_vm1, %v2852_v57, %v2848_v49  ;;  %v2724_v20 = vsel %vm2714_vm6, %v2696_v27, %v2687_v24  ;;  %v2930_v50 = vsel %vm2714_vm6, %v2844_v14, %v2835_v39 }
 0x45a   : > { %v2924_v52 = vrot.slane %v2525_v17, %v9156_v11  ;;  %v2920_v26 = vrot.slane %v2522_v40, %v9159_v41  ;;  %v2862_v51 = vsel %vm2569_vm1, %v2861_v54, %v2857_v34  ;;  %v2725_v17 = vsel %vm2716_vm7, %v2705_v43, %v2724_v20 }
 0x45b   : > { %v2871_v23 = vsel %vm2569_vm1, %v2870_v13, %v2866_v15  ;;  %v2931_v40 = vsel %vm2716_vm7, %v2853_v35, %v2930_v50  ;;  %v2889_v11 = vsel %vm2569_vm1, %v2888_v18, %v2884_v53  ;;  %v2730_v41 = vsel %vm2728_vm5, %v2725_v17, 0.0 }
 0x45c   : > { %v2925_v12 = vsel %vm2569_vm1, %v2924_v52, %v2920_v26  ;;  %v2932_v32 = vsel %vm2718_vm8, %v2862_v51, %v2931_v40  ;;  %v12564_v33 = vstv %s9350_s16  ;;  %v12561_v58 = vstv %s9386_s17  ;;  %s9648_s17 = sld [smem:[#allocation7 + $0x45]] }
 0x45d   : > { %v2938_v28 = vsel %vm2716_vm7, %v2925_v12, %v2937_v56  ;;  %v2933_v16 = vsel %vm2706_vm13, %v2871_v23, %v2932_v32  ;;  %v12562_v56 = vstv %s9379_s28  ;;  %v9403_v57 = vstv %s7016_s14  ;;  %s9591_s14 = sld [smem:[#allocation7 + $0x23]] }
 0x45e   : > { %v2942_v8 = vsel %vm2728_vm5, %v2938_v28, 0.0  ;;  %v2934_v26 = vsel %vm2708_vm14, %v2880_v37, %v2933_v16  ;;  %12807 = vst [vmem:[#allocation61_spill] sm:$0xff] %v9403_v57  ;;  %v9405_v49 = vstv %s7018_s5  ;;  %v9411_v34 = vstv %s7024_s25  ;;  %s9580_s25 = sld [smem:[#allocation7 + $0x7]] }
 0x45f   : > { %2949 = vrot.lane.b32.xlu0 %v2942_v8, %s7675_s20  ;;  %v2935_v36 = vsel %vm2710_vm15, %v2889_v11, %v2934_v26  ;;  %12808 = vst [vmem:[#allocation62_spill] sm:$0xff] %v9405_v49  ;;  %v9407_v8 = vstv %s7020_s11  ;;  %12811 = vst [vmem:[#allocation65_spill] sm:$0xff] %v9411_v34  ;;  %v9413_v27 = vstv %s7026_s29  ;;  %v9439_v20 = vstv %s7036_s0  ;;  %s9528_s0 = sld [smem:[#allocation7 + $0x2]] }
 0x460   : > { %v2936_v62 = vsel %vm2712_vm2, %v2898_v59, %v2935_v36  ;;  %12809 = vst [vmem:[#allocation63_spill] sm:$0xff] %v9407_v8  ;;  %12812 = vst [vmem:[#allocation66_spill] sm:$0xff] %v9413_v27  ;;  %v9441_v51 = vstv %s7038_s1  ;;  %v9443_v17 = vstv %s7040_s2  ;;  %s9543_s1 = sld [smem:[#allocation7 + $0xc]]  ;;  %vm3723_vm1 = vcmask 1044480  }
 0x461   : > { %12817 = vst [vmem:[#allocation71_spill] sm:$0xff] %v9439_v20  ;;  %12818 = vst [vmem:[#allocation72_spill] sm:$0xff] %v9441_v51  ;;  %s9551_s2 = sld [smem:[#allocation7]]  ;;  %vm4010_vm13 = vcmask 1043456   ;;  %vm3149_vm14 = vcmask 1046528  }
 0x462   : > { %12819 = vst [vmem:[#allocation73_spill] sm:$0xff] %v9443_v17  ;;  %s9568_s29 = sld [smem:[#allocation7 + $0x5]] }
 0x463   : > { %2945 = vrot.lane.b32.xlu0 %v2941_v10, %s7675_s20  ;;  %v9415_v10 = vstv %s7030_s23  ;;  %s9555_s23 = sld [smem:[#allocation7 + $0x3]]  ;;  %v9687_v61 = vstv %s9591_s14  ;;  %s12857_s14 = smov 127  }
 0x464   : > { %12813 = vst [vmem:[#allocation67_spill] sm:$0xff] %v9415_v10  ;;  %12846 = sst [smem:[#allocation100_spill]] %s9580_s25 }
 0x465   : > { %s9593_s5 = sld [smem:[#allocation7 + $0x9]] }
 0x466   : > { %s9595_s11 = sld [smem:[#allocation7 + $0xb]] }
 0x467   : > { %2737 = vrot.lane.b32.xlu0 %v2730_v41, %s7675_s20  ;;  %v2734_v4 = vpop.permute.xlu1 %2733  ;;  %12839 = sst [smem:[#allocation93_spill]] %s9551_s2  ;;  %s7681_s2 = smov 122  }
 0x468   : > { %v2743_v52 = vsel %vm2742_vm9, 0.0, %v2734_v4  ;;  %12843 = sst [smem:[#allocation97_spill]] %s9568_s29 }
 0x469   : > { %v9375_v46 = vsel %vm2746_vm10, %v2743_v52, 0.0  ;;  %12840 = sst [smem:[#allocation94_spill]] %s9555_s23 }
 0x46a   : > { %12804 = vst [vmem:[#allocation58_spill] sm:$0xff] %v9375_v46  ;;  %v3003_v38 = vmul.f32 %v12564_v33, %v9375_v46  ;;  %v3031_v12 = vmul.f32 %v12563_v25, %v9375_v46  ;;  %v3059_v44 = vmul.f32 %v12562_v56, %v9375_v46  ;;  %v3087_v29 = vmul.f32 %v12561_v58, %v9375_v46  ;;  %s9654_s28 = sld [smem:[#allocation7 + $0x11]] }
 0x46b   : > { %2947 = vrot.lane.b32.xlu0 %v2936_v62, %s7675_s20  ;;  %s7022_s20 = sld [smem:[#allocation7 + $0x4e]]  ;;  %v4325_v13 = vmul.f32 %v9403_v57, %v9375_v46  ;;  %v4367_v15 = vmul.f32 %v9405_v49, %v9375_v46  ;;  %v4409_v43 = vmul.f32 %v9407_v8, %v9375_v46  ;;  %v4493_v31 = vmul.f32 %v9411_v34, %v9375_v46 }
 0x46c   : > { %v4535_v9 = vmul.f32 %v9413_v27, %v9375_v46  ;;  %v4612_v24 = vmul.f32 %v9415_v10, %v9375_v46  ;;  %v4738_v26 = vmul.f32 %v9439_v20, %v9375_v46  ;;  %12848 = sst [smem:[#allocation102_spill]] %s9593_s5  ;;  %v12612_v3 = vstv %s9595_s11 }
 0x46d   : > { %v4331_v63 = vrot.slane %v4325_v13, 5  ;;  %v4373_v60 = vrot.slane %v4367_v15, 5  ;;  %v4415_v50 = vrot.slane %v4409_v43, 5  ;;  %v4499_v40 = vrot.slane %v4493_v31, 5  ;;  %12849 = sst [smem:[#allocation103_spill]] %s9595_s11 }
 0x46e   : > { %v4541_v11 = vrot.slane %v4535_v9, 5  ;;  %v4618_v41 = vrot.slane %v4612_v24, 6  ;;  %s9689_s16 = sld [smem:[#allocation7 + $0x4d]] }
 0x46f   : > { %3007 = vrot.lane.b32.xlu0 %v3003_v38, %s12552_s19  ;;  %s7034_s19 = sld [smem:[#allocation7 + $0x5a]] }
 0x470   : > { %s9739_s11 = sld [smem:[#allocation7 + $0x57]] }
 0x471   : > { %v9409_v54 = vstv %s7022_s20  ;;  %s9597_s20 = sld [smem:[#allocation7 + $0xd]] }
 0x472   : > { %12810 = vst [vmem:[#allocation64_spill] sm:$0xff] %v9409_v54  ;;  %v4451_v14 = vmul.f32 %v9409_v54, %v9375_v46 }
 0x473   : > { %3035 = vrot.lane.b32.xlu0 %v3031_v12, %s12550_s24  ;;  %s7032_s24 = sld [smem:[#allocation7 + $0x58]]  ;;  %v4780_v12 = vmul.f32 %v9441_v51, %v9375_v46 }
 0x474   : > { %v4457_v23 = vrot.slane %v4451_v14, 5  ;;  %v4822_v14 = vmul.f32 %v9443_v17, %v9375_v46  ;;  %12854 = sst [smem:[#allocation106_spill]] %s9689_s16 }
 0x475   : > { %v9437_v53 = vstv %s7034_s19  ;;  %v4786_v58 = vrot.slane %v4780_v12, 6  ;;  %s9587_s19 = sld [smem:[#allocation7 + $0x1f]] }
 0x476   : > { %12816 = vst [vmem:[#allocation70_spill] sm:$0xff] %v9437_v53  ;;  %v4696_v16 = vmul.f32 %v9437_v53, %v9375_v46  ;;  %v4828_v33 = vrot.slane %v4822_v14, 6  ;;  %v12586_v14 = vstv %s9555_s23  ;;  %s9702_s23 = sld [smem:[#allocation7 + $0x17]] }
 0x477   : > { %3063 = vrot.lane.b32.xlu0 %v3059_v44, %s12567_s15  ;;  %12850 = sst [smem:[#allocation104_spill]] %s9597_s20 }
 0x478   : > { %s9601_s15 = sld [smem:[#allocation7 + $0x27]] }
 0x479   : > { %v9432_v35 = vstv %s7032_s24  ;;  %s9589_s24 = sld [smem:[#allocation7 + $0x21]] }
 0x47a   : > { %12814 = vst [vmem:[#allocation68_spill] sm:$0xff] %v9432_v35  ;;  %v4654_v37 = vmul.f32 %v9432_v35, %v9375_v46  ;;  %s9706_s16 = sld [smem:[#allocation7 + $0x4f]] }
 0x47b   : > { %3091 = vrot.lane.b32.xlu0 %v3087_v29, %s12565_s26  ;;  %s9599_s26 = sld [smem:[#allocation7 + $0x25]] }
 0x47c   : > { %12856 = sst [smem:[#allocation107_spill]] %s9702_s23 }
 0x47d   : > { %s9716_s23 = sld [smem:[#allocation7 + $0x51]] }
 0x47e   : > { %s12867_s30 = sld [smem:[#allocation106_spill]] }
 0x47f   : > { %v9660_v45 = vstv %s9589_s24  ;;  %s9678_s24 = sld [smem:[#allocation7 + $0x4b]] }
 0x480   : > { %s12869_s10 = sld [smem:[#allocation107_spill]] }
 0x483   : > { %12860 = sst [smem:[#allocation109_spill]] %s9716_s23 }
 0x484   : > { %s9733_s23 = sld [smem:[#allocation7 + $0x53]] }
 0x4a6   : > { %v2736_v28 = vpop.permute.xlu1 %2735 }
 0x4a7   : > { %v2744_v39 = vsel %vm2742_vm9, 0.0, %v2736_v28 }
 0x4a8   : > { %v9435_v18 = vsel %vm2746_vm10, %v2744_v39, 0.0 }
 0x4a9   : > { %12815 = vst [vmem:[#allocation69_spill] sm:$0xff] %v9435_v18  ;;  %v9449_v32 = vmul.f32 %v9403_v57, %v9435_v18  ;;  %v9455_v4 = vmul.f32 %v9405_v49, %v9435_v18  ;;  %v9459_v59 = vmul.f32 %v9407_v8, %v9435_v18  ;;  %v9463_v52 = vmul.f32 %v9409_v54, %v9435_v18 }
 0x4aa   : > { %v9470_v62 = vmul.f32 %v9411_v34, %v9435_v18  ;;  %v9474_v38 = vmul.f32 %v9413_v27, %v9435_v18  ;;  %v9483_v39 = vmul.f32 %v9415_v10, %v9435_v18 }
 0x4ab   : > { %12820 = vst [vmem:[#allocation74_spill] sm:$0xff] %v9449_v32  ;;  %12821 = vst [vmem:[#allocation75_spill] sm:$0xff] %v9455_v4  ;;  %v12554_v36 = vrot.slane %v9449_v32, 5  ;;  %v12559_v44 = vrot.slane %v9455_v4, 5  ;;  %v12558_v29 = vrot.slane %v9459_v59, 5  ;;  %v12557_v28 = vrot.slane %v9463_v52, 5 }
 0x4ac   : > { %12822 = vst [vmem:[#allocation76_spill] sm:$0xff] %v9459_v59  ;;  %12823 = vst [vmem:[#allocation77_spill] sm:$0xff] %v9463_v52  ;;  %v12555_v15 = vrot.slane %v9470_v62, 5  ;;  %v12556_v43 = vrot.slane %v9474_v38, 5 }
 0x4ad   : > { %12824 = vst [vmem:[#allocation78_spill] sm:$0xff] %v9470_v62  ;;  %12825 = vst [vmem:[#allocation79_spill] sm:$0xff] %v9474_v38  ;;  %v9488_v13 = vsel %vm2728_vm5, %v4331_v63, %v12554_v36  ;;  %v9497_v31 = vsel %vm2728_vm5, %v4373_v60, %v12559_v44  ;;  %v9502_v9 = vsel %vm2728_vm5, %v4415_v50, %v12558_v29  ;;  %v12560_v63 = vrot.slane %v9483_v39, 6 }
 0x4ae   : > { %12826 = vst [vmem:[#allocation80_spill] sm:$0xff] %v9483_v39  ;;  %12827 = vst [vmem:[#allocation81_spill] sm:$0xff] %v9488_v13  ;;  %v9507_v24 = vsel %vm2728_vm5, %v4457_v23, %v12557_v28  ;;  %v9513_v36 = vsel %vm2728_vm5, %v4499_v40, %v12555_v15  ;;  %v9518_v60 = vsel %vm2728_vm5, %v4541_v11, %v12556_v43  ;;  %v4660_v15 = vrot.slane %v4654_v37, 6 }
 0x4af   : > { %12828 = vst [vmem:[#allocation82_spill] sm:$0xff] %v9497_v31  ;;  %12829 = vst [vmem:[#allocation83_spill] sm:$0xff] %v9502_v9  ;;  %v9522_v50 = vmul.f32 %v9432_v35, %v9435_v18  ;;  %v9526_v23 = vmul.f32 %v9437_v53, %v9435_v18  ;;  %v9533_v40 = vsel %vm4583_vm11, %v4618_v41, %v12560_v63  ;;  %v4702_v29 = vrot.slane %v4696_v16, 6 }
 0x4b0   : > { %12830 = vst [vmem:[#allocation84_spill] sm:$0xff] %v9507_v24  ;;  %12831 = vst [vmem:[#allocation85_spill] sm:$0xff] %v9513_v36  ;;  %v9537_v11 = vmul.f32 %v9439_v20, %v9435_v18  ;;  %v9541_v43 = vmul.f32 %v9441_v51, %v9435_v18  ;;  %v9549_v41 = vmul.f32 %v9443_v17, %v9435_v18  ;;  %v4744_v37 = vrot.slane %v4738_v26, 6 }
 0x4b1   : > { %12832 = vst [vmem:[#allocation86_spill] sm:$0xff] %v9518_v60  ;;  %12833 = vst [vmem:[#allocation87_spill] sm:$0xff] %v9522_v50  ;;  %v12585_v28 = vrot.slane %v9522_v50, 6  ;;  %v12577_v44 = vrot.slane %v9526_v23, 6  ;;  %v9833_v24 = vstv %s9654_s28  ;;  %v9844_v31 = vstv %s9678_s24  ;;  %s9898_s28 = sld [smem:[#allocation7 + $0x47]]  ;;  %s12910_s24 = smov 126  }
 0x4b2   : > { %12834 = vst [vmem:[#allocation88_spill] sm:$0xff] %v9526_v23  ;;  %12835 = vst [vmem:[#allocation89_spill] sm:$0xff] %v9533_v40  ;;  %v12576_v63 = vrot.slane %v9537_v11, 6  ;;  %v12574_v56 = vrot.slane %v9541_v43, 6  ;;  %v12573_v26 = vrot.slane %v9549_v41, 6  ;;  %v12868_v40 = vstv %s9543_s1 }
 0x4b3   : > { %12836 = vst [vmem:[#allocation90_spill] sm:$0xff] %v9537_v11  ;;  %12837 = vst [vmem:[#allocation91_spill] sm:$0xff] %v9541_v43  ;;  %v9560_v16 = vsel %vm4583_vm11, %v4660_v15, %v12585_v28  ;;  %v9565_v25 = vsel %vm4583_vm11, %v4702_v29, %v12577_v44  ;;  %v12592_v44 = vstv %s9568_s29  ;;  %v12599_v28 = vstv %s9580_s25  ;;  %s9662_s29 = sld [smem:[#allocation7 + $0x49]] }
 0x4b4   : > { %12838 = vst [vmem:[#allocation92_spill] sm:$0xff] %v9549_v41  ;;  %12841 = vst [vmem:[#allocation95_spill] sm:$0xff] %v9560_v16  ;;  %v9573_v12 = vsel %vm4583_vm11, %v4744_v37, %v12576_v63  ;;  %v9578_v15 = vsel %vm4583_vm11, %v4786_v58, %v12574_v56  ;;  %v9585_v29 = vsel %vm4583_vm11, %v4828_v33, %v12573_v26  ;;  %s9684_s25 = sld [smem:[#allocation7 + $0x15]]  ;;  %v9810_v16 = vstv %s9635_s27 }
 0x4b5   : > { %12842 = vst [vmem:[#allocation96_spill] sm:$0xff] %v9565_v25  ;;  %12844 = vst [vmem:[#allocation98_spill] sm:$0xff] %v9573_v12  ;;  %v3115_v60 = vmul.f32 %v12868_v40, %v9375_v46  ;;  %v9825_v12 = vstv %s9648_s17  ;;  %v9861_v17 = vstv %s12869_s10  ;;  %v9865_v11 = vstv %s9706_s16  ;;  %s9873_s27 = sld [smem:[#allocation7 + $0x2b]] }
 0x4b6   : > { %12845 = vst [vmem:[#allocation99_spill] sm:$0xff] %v9578_v15  ;;  %12847 = vst [vmem:[#allocation101_spill] sm:$0xff] %v9585_v29  ;;  %v9794_v29 = vstv %s9627_s8  ;;  %s9884_s16 = sld [smem:[#allocation7 + $0x39]]  ;;  %v9887_v50 = vstv %s9739_s11 }
 0x4b7   : > { %12875 = vst [vmem:[#allocation112_spill] sm:$0xff] %v9861_v17  ;;  %12876 = vst [vmem:[#allocation113_spill] sm:$0xff] %v9865_v11  ;;  %s12888_s17 = sld [smem:[#allocation56_spill]] }
 0x4b8   : > { %12882 = vst [vmem:[#allocation118_spill] sm:$0xff] %v9887_v50  ;;  %s9919_s11 = sld [smem:[#allocation7 + $0x55]] }
 0x4b9   : > { %v9836_v40 = vstv %s9662_s29  ;;  %s12893_s29 = sld [smem:[#allocation59_spill]] }
 0x4ba   : > { %12853 = sst [smem:[#allocation105_spill]] %s9684_s25  ;;  %s12858_s25 = smov 124  }
 0x4bb   : > { %s12866_s8 = sld [smem:[#allocation105_spill]] }
 0x4bc   : > { %s6968_s10 = sld [smem:[#allocation7 + $0x18]] }
 0x4bd   : > { %v12899_v27 = vstv %s12888_s17  ;;  %s6990_s17 = sld [smem:[#allocation7 + $0x2e]] }
 0x4c1   : > { %v9847_v13 = vstv %s12866_s8  ;;  %s6962_s8 = sld [smem:[#allocation7 + $0x12]] }
 0x4c2   : > { %12872 = vst [vmem:[#allocation110_spill] sm:$0xff] %v9847_v13 }
 0x4d1   : > { %v9603_v33 = vpop.permute.xlu0 %2949 }
 0x4d5   : > { %v2946_v58 = vpop.permute.xlu0 %2945 }
 0x4d6   : > { %v2954_v37 = vsel %vm2742_vm9, 0.0, %v2946_v58 }
 0x4d7   : > { %v9620_v26 = vsel %vm2746_vm10, %v2954_v37, 0.0 }
 0x4d8   : > { %v2988_v56 = vmul.f32 %v12586_v14, %v9620_v26  ;;  %v3016_v58 = vmul.f32 %v12592_v44, %v9620_v26  ;;  %v9646_v14 = vstv %s9587_s19  ;;  %v3044_v0 = vmul.f32 %v12599_v28, %v9620_v26  ;;  %s9675_s19 = sld [smem:[#allocation7 + $0x13]] }
 0x4d9   : > { %v9629_v63 = vpop.permute.xlu0 %2737  ;;  %v3527_v28 = vmul.f32 %v9660_v45, %v9620_v26 }
 0x4da   : > { %2992 = vrot.lane.b32.xlu1 %v2988_v56, %s12589_s13  ;;  %s12851_s13 = smov 126   ;;  %v3485_v56 = vmul.f32 %v9646_v14, %v9620_v26 }
 0x4dc   : > { %v3491_v30 = vrot.slane %v3485_v56, 2 }
 0x4dd   : > { %v2948_v37 = vpop.permute.xlu0 %2947 }
 0x4de   : > { %v2955_v55 = vsel %vm2742_vm9, 0.0, %v2948_v37  ;;  %3020 = vrot.lane.b32.xlu1 %v3016_v58, %s12851_s13  ;;  %v9841_v9 = vstv %s9675_s19  ;;  %s12895_s19 = sld [smem:[#allocation93_spill]] }
 0x4df   : > { %v9657_v44 = vsel %vm2746_vm10, %v2955_v55, 0.0 }
 0x4e0   : > { %v9669_v58 = vmul.f32 %v9646_v14, %v9657_v44  ;;  %v9673_v37 = vmul.f32 %v9660_v45, %v9657_v44  ;;  %v9700_v21 = vmul.f32 %v9687_v61, %v9657_v44  ;;  %v9956_v59 = vmul.f32 %v9780_v7, %v9657_v44 }
 0x4e1   : > { %v10011_v8 = vmul.f32 %v9791_v42, %v9657_v44 }
 0x4e2   : > { %3048 = vrot.lane.b32.xlu1 %v3044_v0, %s12852_s18  ;;  %v12608_v2 = vrot.slane %v9669_v58, 2  ;;  %v12855_v0 = vstv %s9593_s5  ;;  %v12611_v22 = vrot.slane %v9673_v37, 2  ;;  %s9711_s5 = sld [smem:[#allocation7 + $0x19]]  ;;  %v12862_v47 = vrot.slane %v9700_v21, 2 }
 0x4e3   : > { %v3072_v56 = vmul.f32 %v12855_v0, %v9620_v26  ;;  %v3569_v0 = vmul.f32 %v9687_v61, %v9620_v26 }
 0x4e4   : > { %v3493_v55 = vsel %vm3436_vm12, %v3491_v30, %v12608_v2  ;;  %v3533_v30 = vrot.slane %v3527_v28, 2  ;;  %v9714_v2 = vstv %s9599_s26  ;;  %v3100_v28 = vmul.f32 %v12612_v3, %v9620_v26  ;;  %s9729_s26 = sld [smem:[#allocation7 + $0x1b]] }
 0x4e5   : > { %3496 = vrot.lane.b32.xlu0 %v3493_v55, %s12857_s14  ;;  %v9727_v19 = vmul.f32 %v9714_v2, %v9657_v44 }
 0x4e6   : > { %3076 = vrot.lane.b32.xlu1 %v3072_v56, %s12858_s25  ;;  %v3535_v55 = vsel %vm3436_vm12, %v3533_v30, %v12611_v22  ;;  %v3575_v30 = vrot.slane %v3569_v0, 2  ;;  %v3611_v22 = vmul.f32 %v9714_v2, %v9620_v26  ;;  %v9742_v56 = vstv %s9601_s15  ;;  %s9759_s15 = sld [smem:[#allocation7 + $0x5b]] }
 0x4e7   : > { %v12863_v0 = vstv %s9597_s20  ;;  %v9757_v3 = vmul.f32 %v9742_v56, %v9657_v44  ;;  %s9774_s20 = sld [smem:[#allocation7 + $0x5d]] }
 0x4e8   : > { %12859 = sst [smem:[#allocation108_spill]] %s9711_s5  ;;  %s12861_s5 = smov 123   ;;  %v3128_v5 = vmul.f32 %v12863_v0, %v9620_v26  ;;  %v9769_v0 = vstv %s9607_s4  ;;  %v3617_v6 = vrot.slane %v3611_v22, 2  ;;  %v12865_v22 = vrot.slane %v9727_v19, 2 }
 0x4e9   : > { %3538 = vrot.lane.b32.xlu0 %v3535_v55, %s12851_s13  ;;  %s9745_s13 = sld [smem:[#allocation7 + $0x59]]  ;;  %v12864_v55 = vstv %s9528_s0  ;;  %v9858_v43 = vmul.f32 %v9769_v0, %v9657_v44 }
 0x4ea   : > { %3104 = vrot.lane.b32.xlu1 %v3100_v28, %s12861_s5  ;;  %v3577_v28 = vsel %vm3436_vm12, %v3575_v30, %v12862_v47  ;;  %v2975_v47 = vmul.f32 %v12864_v55, %v9375_v46  ;;  %v9766_v30 = vstv %s9605_s3  ;;  %v9783_v55 = vstv %s9614_s22  ;;  %s9785_s3 = sld [smem:[#allocation7 + $0x5f]] }
 0x4eb   : > { %s9799_s4 = sld [smem:[#allocation7 + $0x1]]  ;;  %v3619_v15 = vsel %vm3436_vm12, %v3617_v6, %v12865_v22  ;;  %v9807_v25 = vmul.f32 %v9766_v30, %v9657_v44  ;;  %v9819_v6 = vstv %s9637_s7  ;;  %v9822_v22 = vstv %s9642_s6 }
 0x4ec   : > { %s12871_s22 = sld [smem:[#allocation109_spill]]  ;;  %v9879_v41 = vstv %s9729_s26  ;;  %v9893_v39 = vstv %s9759_s15 }
 0x4ed   : > { %3580 = vrot.lane.b32.xlu0 %v3577_v28, %s12852_s18  ;;  %v3653_v28 = vmul.f32 %v9742_v56, %v9620_v26  ;;  %s9838_s6 = sld [smem:[#allocation7 + $0x1d]]  ;;  %12880 = vst [vmem:[#allocation116_spill] sm:$0xff] %v9879_v41  ;;  %12884 = vst [vmem:[#allocation120_spill] sm:$0xff] %v9893_v39  ;;  %v9909_v39 = vmul.f32 %v9772_v1, %v9657_v44 }
 0x4ee   : > { %3132 = vrot.lane.b32.xlu1 %v3128_v5, %s7681_s2  ;;  %v9797_v5 = vstv %s9632_s21  ;;  %s12870_s21 = sld [smem:[#allocation108_spill]] }
 0x4ef   : > { %v3659_v36 = vrot.slane %v3653_v28, 2  ;;  %v12874_v28 = vrot.slane %v9757_v3, 2  ;;  %s12877_s7 = sld [smem:[#allocation94_spill]]  ;;  %v9890_v20 = vstv %s9745_s13 }
 0x4f0   : > { %12883 = vst [vmem:[#allocation119_spill] sm:$0xff] %v9890_v20  ;;  %s12889_s13 = sld [smem:[#allocation57_spill]]  ;;  %v2956_v20 = vsel %vm2742_vm9, 0.0, %v9603_v33 }
 0x4f1   : > { %3622 = vrot.lane.b32.xlu0 %v3619_v15, %s12858_s25  ;;  %v3695_v15 = vmul.f32 %v9766_v30, %v9620_v26  ;;  %v3661_v46 = vsel %vm3436_vm12, %v3659_v36, %v12874_v28  ;;  %v3772_v28 = vmul.f32 %v9769_v0, %v9620_v26  ;;  %v9980_v54 = vsel %vm2746_vm10, %v2956_v20, 0.0  ;;  %s12918_s26 = sld [smem:[#allocation103_spill]] }
 0x4f2   : > { %2979 = vrot.lane.b32.xlu1 %v2975_v47, %s12857_s14  ;;  %v9850_v47 = vstv %s12867_s30  ;;  %v9871_v23 = vstv %s12871_s22  ;;  %v10000_v20 = vstv %s9898_s28  ;;  %v10034_v41 = vmul.f32 %v9841_v9, %v9980_v54  ;;  %s12920_s15 = sld [smem:[#allocation104_spill]] }
 0x4f3   : > { %12873 = vst [vmem:[#allocation111_spill] sm:$0xff] %v9850_v47  ;;  %12879 = vst [vmem:[#allocation115_spill] sm:$0xff] %v9871_v23  ;;  %v3701_v36 = vrot.slane %v3695_v15, 2  ;;  %v12886_v15 = vrot.slane %v9807_v25, 2  ;;  %v9928_v62 = vstv %s9838_s6  ;;  %v12921_v23 = vrot.slane %v9956_v59, 3  ;;  %s6966_s30 = sld [smem:[#allocation7 + $0x16]] }
 0x4f4   : > { %v9868_v51 = vstv %s12870_s21  ;;  %12897 = vst [vmem:[#allocation125_spill] sm:$0xff] %v9928_v62  ;;  %12913 = vst [vmem:[#allocation130_spill] sm:$0xff] %v10000_v20  ;;  %v3940_v20 = vmul.f32 %v9788_v48, %v9620_v26  ;;  %v3529_v49 = vmul.f32 %v9660_v45, %v9980_v54  ;;  %s6974_s21 = sld [smem:[#allocation7 + $0x1e]] }
 0x4f5   : > { %3664 = vrot.lane.b32.xlu0 %v3661_v46, %s12861_s5  ;;  %12878 = vst [vmem:[#allocation114_spill] sm:$0xff] %v9868_v51  ;;  %v9882_v46 = vstv %s9733_s23  ;;  %v3703_v53 = vsel %vm3436_vm12, %v3701_v36, %v12886_v15  ;;  %v12887_v38 = vstv %s12877_s7  ;;  %s12890_s23 = sld [smem:[#allocation97_spill]]  ;;  %v9917_v36 = vstv %s9812_s9  ;;  %12919 = vst [vmem:[#allocation132_spill] sm:$0xff] %v10034_v41 }
 0x4f6   : > { %3119 = vrot.lane.b32.xlu1 %v3115_v60, %s7681_s2  ;;  %12881 = vst [vmem:[#allocation117_spill] sm:$0xff] %v9882_v46  ;;  %v9896_v60 = vstv %s9774_s20  ;;  %v2989_v35 = vmul.f32 %v12887_v38, %v9657_v44  ;;  %12892 = vst [vmem:[#allocation123_spill] sm:$0xff] %v9917_v36  ;;  %s12894_s20 = sld [smem:[#allocation60_spill]]  ;;  %v3778_v38 = vrot.slane %v3772_v28, 3  ;;  %v3814_v15 = vmul.f32 %v9772_v1, %v9620_v26 }
 0x4f7   : > { %12885 = vst [vmem:[#allocation121_spill] sm:$0xff] %v9896_v60  ;;  %v9913_v60 = vstv %s9785_s3  ;;  %v12900_v28 = vstv %s12889_s13  ;;  %v3946_v17 = vrot.slane %v3940_v20, 3  ;;  %s10665_s3 = sld [smem:[#allocation7 + $0x10]] }
 0x4f8   : > { %12891 = vst [vmem:[#allocation122_spill] sm:$0xff] %v9913_v60  ;;  %v12898_v60 = vstv %s9528_s0  ;;  %v9945_v52 = vmul.f32 %v12900_v28, %v9435_v18  ;;  %s12903_s0 = sld [smem:[#allocation100_spill]] }
 0x4f9   : > { %3706 = vrot.lane.b32.xlu0 %v3703_v53, %s7681_s2  ;;  %v9925_v53 = vstv %s9827_s12  ;;  %v9935_v10 = vmul.f32 %v12898_v60, %v9435_v18  ;;  %v12909_v60 = vstv %s12895_s19  ;;  %s6964_s9 = sld [smem:[#allocation7 + $0x14]] }
 0x4fa   : > { %2994 = vrot.lane.b32.xlu1 %v2989_v35, %s12857_s14  ;;  %12896 = vst [vmem:[#allocation124_spill] sm:$0xff] %v9925_v53  ;;  %v9940_v35 = vmul.f32 %v12899_v27, %v9435_v18  ;;  %v12901_v53 = vrot.slane %v9858_v43, 3  ;;  %v12904_v27 = vstv %s12893_s29  ;;  %v9977_v4 = vmul.f32 %v12909_v60, %v9435_v18  ;;  %s6970_s12 = sld [smem:[#allocation7 + $0x1a]] }
 0x4fb   : > { %v12902_v34 = vstv %s12890_s23  ;;  %v9962_v28 = vmul.f32 %v12904_v27, %v9435_v18  ;;  %v3856_v27 = vmul.f32 %v9780_v7, %v9620_v26  ;;  %v9994_v60 = vmul.f32 %v9788_v48, %v9657_v44  ;;  %s6976_s22 = sld [smem:[#allocation7 + $0x20]] }
 0x4fc   : > { %v3780_v62 = vsel %vm3723_vm1, %v3778_v38, %v12901_v53  ;;  %v3017_v33 = vmul.f32 %v12902_v34, %v9657_v44  ;;  %v12905_v38 = vstv %s12894_s20  ;;  %v12907_v34 = vstv %s9543_s1  ;;  %s12916_s1 = sld [smem:[#allocation102_spill]] }
 0x4fd   : > { %3783 = vrot.lane.b32.xlu0 %v3780_v62, %s12857_s14  ;;  %v9967_v53 = vmul.f32 %v12905_v38, %v9435_v18  ;;  %v9972_v50 = vmul.f32 %v12907_v34, %v9435_v18  ;;  %v3820_v62 = vrot.slane %v3814_v15, 3  ;;  %v9986_v38 = vstv %s9873_s27  ;;  %s6978_s6 = sld [smem:[#allocation7 + $0x22]] }
 0x4fe   : > { %3022 = vrot.lane.b32.xlu1 %v3017_v33, %s12910_s24  ;;  %12911 = vst [vmem:[#allocation128_spill] sm:$0xff] %v9986_v38  ;;  %v9990_v34 = vmul.f32 %v9783_v55, %v9657_v44  ;;  %v9997_v18 = vstv %s9884_s16  ;;  %v12914_v15 = vrot.slane %v9909_v39, 3  ;;  %v12915_v32 = vstv %s12903_s0  ;;  %s6980_s7 = sld [smem:[#allocation7 + $0x24]] }
 0x4ff   : > { %12906 = vst [vmem:[#allocation126_spill] sm:$0xff] %v9967_v53  ;;  %12908 = vst [vmem:[#allocation127_spill] sm:$0xff] %v9972_v50  ;;  %v3045_v46 = vmul.f32 %v12915_v32, %v9657_v44  ;;  %v10023_v32 = vstv %s9919_s11  ;;  %v10030_v38 = vmul.f32 %v9794_v29, %v9657_v44  ;;  %v10054_v53 = vmul.f32 %v9797_v5, %v9657_v44  ;;  %s6982_s27 = sld [smem:[#allocation7 + $0x26]] }
 0x500   : > { %12912 = vst [vmem:[#allocation129_spill] sm:$0xff] %v9997_v18  ;;  %v3822_v33 = vsel %vm3723_vm1, %v3820_v62, %v12914_v15  ;;  %v3898_v18 = vmul.f32 %v9783_v55, %v9620_v26  ;;  %v10020_v62 = vmul.f32 %v9833_v24, %v9980_v54  ;;  %12917 = vst [vmem:[#allocation131_spill] sm:$0xff] %v10023_v32  ;;  %v3862_v15 = vrot.slane %v3856_v27, 3  ;;  %s6984_s16 = sld [smem:[#allocation7 + $0x28]] }
 0x501   : > { %3825 = vrot.lane.b32.xlu0 %v3822_v33, %s12910_s24  ;;  %v3982_v33 = vmul.f32 %v9791_v42, %v9620_v26  ;;  %v3487_v27 = vmul.f32 %v9646_v14, %v9980_v54  ;;  %v10058_v14 = vmul.f32 %v9847_v13, %v9980_v54  ;;  %v12927_v41 = vrot.slane %v9994_v60, 3  ;;  %s6988_s28 = sld [smem:[#allocation7 + $0x2c]] }
 0x502   : > { %3050 = vrot.lane.b32.xlu1 %v3045_v46, %s12852_s18  ;;  %v4059_v46 = vmul.f32 %v9794_v29, %v9620_v26  ;;  %v3864_v57 = vsel %vm3723_vm1, %v3862_v15, %v12921_v23  ;;  %v12922_v51 = vstv %s12916_s1  ;;  %v3904_v32 = vrot.slane %v3898_v18, 3  ;;  %s6992_s13 = sld [smem:[#allocation7 + $0x30]] }
 0x503   : > { %v3073_v50 = vmul.f32 %v12922_v51, %v9657_v44  ;;  %12923 = vst [vmem:[#allocation133_spill] sm:$0xff] %v10058_v14  ;;  %v12924_v51 = vstv %s12918_s26  ;;  %v12925_v15 = vstv %s12920_s15  ;;  %v3988_v11 = vrot.slane %v3982_v33, 3  ;;  %s6994_s23 = sld [smem:[#allocation7 + $0x32]] }
 0x504   : > { %v3101_v23 = vmul.f32 %v12924_v51, %v9657_v44  ;;  %v3129_v45 = vmul.f32 %v12925_v15, %v9657_v44  ;;  %v12926_v18 = vrot.slane %v9990_v34, 3  ;;  %v3948_v13 = vsel %vm3723_vm1, %v3946_v17, %v12927_v41  ;;  %s6996_s29 = sld [smem:[#allocation7 + $0x34]] }
 0x505   : > { %3867 = vrot.lane.b32.xlu0 %v3864_v57, %s12852_s18  ;;  %v4065_v14 = vrot.slane %v4059_v46, 4  ;;  %v12928_v51 = vrot.slane %v10011_v8, 3  ;;  %v10081_v33 = vmul.f32 %v9810_v16, %v9620_v26  ;;  %v3494_v15 = vrot.slane %v3487_v27, 2  ;;  %s6958_s11 = sld [smem:[#allocation7 + $0xe]] }
 0x506   : > { %3078 = vrot.lane.b32.xlu1 %v3073_v50, %s12858_s25  ;;  %v3906_v20 = vsel %vm3723_vm1, %v3904_v32, %v12926_v18  ;;  %v4101_v50 = vmul.f32 %v9797_v5, %v9620_v26  ;;  %v3536_v57 = vrot.slane %v3529_v49, 2  ;;  %v10087_v17 = vmul.f32 %v9810_v16, %v9657_v44  ;;  %s11030_s20 = sld [smem:[#allocation7 + $0x36]] }
 0x507   : > { %v3990_v47 = vsel %vm3723_vm1, %v3988_v11, %v12928_v51  ;;  %v10091_v41 = vmul.f32 %v9819_v6, %v9657_v44  ;;  %v3571_v11 = vmul.f32 %v9687_v61, %v9980_v54  ;;  %v12929_v46 = vrot.slane %v10030_v38, 4  ;;  %s7006_s0 = sld [smem:[#allocation7 + $0x3e]] }
 0x508   : > { %v12930_v27 = vrot.slane %v9669_v58, 2  ;;  %v3613_v32 = vmul.f32 %v9714_v2, %v9980_v54  ;;  %v4107_v61 = vrot.slane %v4101_v50, 4  ;;  %v3697_v2 = vmul.f32 %v9766_v30, %v9980_v54  ;;  %s7008_s1 = sld [smem:[#allocation7 + $0x40]] }
 0x509   : > { %3909 = vrot.lane.b32.xlu0 %v3906_v20, %s12858_s25  ;;  %v4067_v49 = vsel %vm4010_vm13, %v4065_v14, %v12929_v46  ;;  %v12931_v20 = vrot.slane %v9673_v37, 2  ;;  %v10117_v14 = vmul.f32 %v9825_v12, %v9657_v44  ;;  %v3578_v58 = vrot.slane %v3571_v11, 2  ;;  %s7010_s26 = sld [smem:[#allocation7 + $0x42]] }
 0x50a   : > { %3106 = vrot.lane.b32.xlu1 %v3101_v23, %s12861_s5  ;;  %v10102_v18 = vsel %vm3436_vm12, %v12930_v27, %v3494_v15  ;;  %v10113_v23 = vmul.f32 %v9822_v22, %v9657_v44  ;;  %v10121_v15 = vmul.f32 %v9819_v6, %v9620_v26  ;;  %v3620_v37 = vrot.slane %v3613_v32, 2  ;;  %s7012_s15 = sld [smem:[#allocation7 + $0x44]] }
 0x50b   : > { %v10107_v51 = vsel %vm3436_vm12, %v12931_v20, %v3536_v57  ;;  %v3655_v57 = vmul.f32 %v9742_v56, %v9980_v54  ;;  %v12933_v50 = vrot.slane %v10054_v53, 4  ;;  %v4150_v27 = vrot.slane %v10087_v17, 4 }
 0x50c   : > { %12932 = vst [vmem:[#allocation134_spill] sm:$0xff] %v10107_v51  ;;  %v12934_v20 = vrot.slane %v9700_v21, 2  ;;  %v12935_v56 = vrot.slane %v9727_v19, 2  ;;  %v3704_v51 = vrot.slane %v3697_v2, 2  ;;  %v4276_v11 = vrot.slane %v10117_v14, 4  ;;  %v12963_v14 = vld [vmem:[#allocation127_spill] sm:$0xff] }
 0x50d   : > { %3951 = vrot.lane.b32.xlu0 %v3948_v13, %s12861_s5  ;;  %v4109_v46 = vsel %vm4010_vm13, %v4107_v61, %v12933_v50  ;;  %v3662_v13 = vrot.slane %v3655_v57, 2  ;;  %v3774_v61 = vmul.f32 %v9769_v0, %v9980_v54  ;;  %v4234_v50 = vrot.slane %v10113_v23, 4 }
 0x50e   : > { %v10136_v32 = vsel %vm3436_vm12, %v12934_v20, %v3578_v58  ;;  %3134 = vrot.lane.b32.xlu1 %v3129_v45, %s7681_s2  ;;  %v10142_v30 = vsel %vm3436_vm12, %v12935_v56, %v3620_v37  ;;  %v10150_v21 = vmul.f32 %v9836_v40, %v9657_v44  ;;  %v3816_v19 = vmul.f32 %v9772_v1, %v9980_v54 }
 0x50f   : > { %v12936_v45 = vrot.slane %v9757_v3, 2  ;;  %v12937_v37 = vrot.slane %v9807_v25, 2  ;;  %v3781_v57 = vrot.slane %v3774_v61, 3  ;;  %v3858_v2 = vmul.f32 %v9780_v7, %v9980_v54 }
 0x510   : > { %v10169_v20 = vmul.f32 %v9917_v36, %v9657_v44  ;;  %v3823_v1 = vrot.slane %v3816_v19, 3  ;;  %v3900_v3 = vmul.f32 %v9783_v55, %v9980_v54  ;;  %v3942_v25 = vmul.f32 %v9788_v48, %v9980_v54 }
 0x511   : > { %v10157_v58 = vsel %vm3436_vm12, %v12936_v45, %v3662_v13  ;;  %v10162_v0 = vsel %vm3436_vm12, %v12937_v37, %v3704_v51  ;;  %3993 = vrot.lane.b32.xlu0 %v3990_v47, %s7681_s2  ;;  %v12939_v51 = vrot.slane %v9858_v43, 3  ;;  %v3865_v47 = vrot.slane %v3858_v2, 3 }
 0x512   : > { %12938 = vst [vmem:[#allocation135_spill] sm:$0xff] %v10169_v20  ;;  %2981 = vrot.lane.b32.xlu1 %v9935_v10, %s12857_s14  ;;  %v12940_v56 = vstv %s9799_s4  ;;  %v3984_v61 = vmul.f32 %v9791_v42, %v9980_v54  ;;  %v12941_v55 = vrot.slane %v9909_v39, 3  ;;  %v3907_v19 = vrot.slane %v3900_v3, 3 }
 0x513   : > { %v10180_v7 = vsel %vm3723_vm1, %v12939_v51, %v3781_v57  ;;  %v2969_v13 = vmul.f32 %v12940_v56, %v9657_v44  ;;  %v3949_v10 = vrot.slane %v3942_v25, 3  ;;  %v4061_v43 = vmul.f32 %v9794_v29, %v9980_v54 }
 0x514   : > { %v10190_v48 = vsel %vm3723_vm1, %v12941_v55, %v3823_v1  ;;  %v12942_v45 = vrot.slane %v9956_v59, 3  ;;  %v3991_v2 = vrot.slane %v3984_v61, 3  ;;  %v4103_v42 = vmul.f32 %v9797_v5, %v9980_v54 }
 0x515   : > { %v10200_v57 = vadd.f32 %v2969_v13, %v9977_v4  ;;  %4070 = vrot.lane.b32.xlu0 %v4067_v49, %s12857_s14  ;;  %v12943_v39 = vrot.slane %v9990_v34, 3  ;;  %v12944_v29 = vrot.slane %v9994_v60, 3  ;;  %v4068_v3 = vrot.slane %v4061_v43, 4 }
 0x516   : > { %v10197_v37 = vsel %vm3723_vm1, %v12942_v45, %v3865_v47  ;;  %v4145_v4 = vmul.f32 %v9810_v16, %v9980_v54  ;;  %3009 = vrot.lane.b32.xlu1 %v9940_v35, %s12910_s24  ;;  %v12675_v5 = vrot.slane %v10169_v20, 1  ;;  %v12945_v49 = vrot.slane %v10011_v8, 3 }
 0x517   : > { %v10208_v1 = vsel %vm3723_vm1, %v12943_v39, %v3907_v19  ;;  %v10213_v59 = vsel %vm3723_vm1, %v12944_v29, %v3949_v10  ;;  %v4110_v25 = vrot.slane %v4103_v42, 4  ;;  %v4187_v60 = vmul.f32 %v9819_v6, %v9980_v54 }
 0x518   : > { %v10223_v34 = vsel %vm3723_vm1, %v12945_v49, %v3991_v2  ;;  %v12946_v51 = vrot.slane %v10030_v38, 4  ;;  %v4152_v16 = vrot.slane %v4145_v4, 4  ;;  %v3162_v35 = vmul.f32 %v9917_v36, %v9980_v54 }
 0x519   : > { %v4229_v56 = vmul.f32 %v9822_v22, %v9980_v54  ;;  %v4352_v8 = vrot.slane %v10150_v21, 5  ;;  %v12947_v13 = vrot.slane %v10054_v53, 4  ;;  %v4194_v6 = vrot.slane %v4187_v60, 4  ;;  %4112 = vrot.lane.b32.xlu0 %v4109_v46, %s12910_s24  ;;  %v12965_v21 = vld [vmem:[#allocation114_spill] sm:$0xff] }
 0x51a   : > { %v10230_v47 = vsel %vm4010_vm13, %v12946_v51, %v4068_v3  ;;  %v4271_v38 = vmul.f32 %v9825_v12, %v9980_v54  ;;  %v10248_v55 = vsel %vm4010_vm13, %v4150_v27, %v4152_v16  ;;  %v3169_v19 = vrot.slane %v3162_v35, 1  ;;  %3037 = vrot.lane.b32.xlu1 %v9945_v52, %s12852_s18 }
 0x51b   : > { %v10240_v61 = vsel %vm4010_vm13, %v12947_v13, %v4110_v25  ;;  %12948 = vst [vmem:[#allocation136_spill] sm:$0xff] %v10248_v55  ;;  %v4236_v10 = vrot.slane %v4229_v56, 4  ;;  %v4347_v43 = vmul.f32 %v9836_v40, %v9980_v54  ;;  %v4149_v53 = vrot.slane %v10081_v33, 4  ;;  %v12955_v56 = vld [vmem:[#allocation111_spill] sm:$0xff]  ;;  %v12956_v13 = vld [vmem:[#allocation132_spill] sm:$0xff] }
 0x51c   : > { %v10257_v45 = vmul.f32 %v9844_v31, %v9657_v44  ;;  %v12949_v46 = vrot.slane %v10091_v41, 4  ;;  %v4278_v42 = vrot.slane %v4271_v38, 4  ;;  %v4227_v39 = vmul.f32 %v9822_v22, %v9620_v26 }
 0x51d   : > { %v10269_v29 = vsel %vm3149_vm14, %v12675_v5, %v3169_v19  ;;  %v10274_v52 = vsel %vm4010_vm13, %v4234_v50, %v4236_v10  ;;  %v4354_v33 = vrot.slane %v4347_v43, 5  ;;  %v2745_v3 = vsel %vm2742_vm9, 0.0, %v9629_v63 }
 0x51e   : > { %v10262_v2 = vsel %vm4010_vm13, %v12949_v46, %v4194_v6  ;;  %12951 = vst [vmem:[#allocation138_spill] sm:$0xff] %v10269_v29  ;;  %12952 = vst [vmem:[#allocation139_spill] sm:$0xff] %v10274_v52  ;;  %v4151_v4 = vsel %vm4010_vm13, %v4149_v53, %v4150_v27  ;;  %v10285_v49 = vsel %vm4010_vm13, %v4276_v11, %v4278_v42  ;;  %v4191_v25 = vrot.slane %v10121_v15, 4  ;;  %v12958_v42 = vld [vmem:[#allocation110_spill] sm:$0xff]  ;;  %v12970_v6 = vld [vmem:[#allocation63_spill] sm:$0xff] }
 0x51f   : > { %12950 = vst [vmem:[#allocation137_spill] sm:$0xff] %v10262_v2  ;;  %12953 = vst [vmem:[#allocation140_spill] sm:$0xff] %v10285_v49  ;;  %4154 = vrot.lane.b32.xlu0 %v4151_v4, %s12852_s18  ;;  %v4269_v60 = vmul.f32 %v9825_v12, %v9620_v26  ;;  %v3198_v63 = vmul.f32 %v9833_v24, %v9620_v26  ;;  %v10296_v17 = vsel %vm2728_vm5, %v4352_v8, %v4354_v33  ;;  %v12961_v4 = vld [vmem:[#allocation112_spill] sm:$0xff] }
 0x520   : > { %12954 = vst [vmem:[#allocation141_spill] sm:$0xff] %v10296_v17  ;;  %3065 = vrot.lane.b32.xlu1 %v9962_v28, %s12858_s25  ;;  %v10302_v27 = vmul.f32 %v9833_v24, %v9657_v44  ;;  %v10306_v15 = vmul.f32 %v9841_v9, %v9657_v44  ;;  %v4394_v12 = vrot.slane %v10257_v45, 5  ;;  %v4389_v51 = vmul.f32 %v9844_v31, %v9980_v54  ;;  %v13005_v17 = vld [vmem:[#allocation122_spill] sm:$0xff]  ;;  %v13006_v49 = vld [vmem:[#allocation124_spill] sm:$0xff] }
 0x521   : > { %v10312_v16 = vsel %vm2746_vm10, %v2745_v3, 0.0  ;;  %v4233_v35 = vrot.slane %v4227_v39, 4  ;;  %v4430_v28 = vmul.f32 %v12955_v56, %v9657_v44  ;;  %v12957_v24 = vmov %v12949_v46  ;;  %v12959_v39 = vld [vmem:[#allocation126_spill] sm:$0xff] }
 0x522   : > { %v4193_v38 = vsel %vm4010_vm13, %v4191_v25, %v12957_v24  ;;  %v4345_v19 = vmul.f32 %v9836_v40, %v9620_v26  ;;  %v3240_v10 = vmul.f32 %v9841_v9, %v9620_v26  ;;  %v4396_v43 = vrot.slane %v4389_v51, 5 }
 0x523   : > { %4196 = vrot.lane.b32.xlu0 %v4193_v38, %s12858_s25  ;;  %v4235_v53 = vsel %vm4010_vm13, %v4233_v35, %v4234_v50  ;;  %v4275_v45 = vrot.slane %v4269_v60, 4  ;;  %v3204_v46 = vrot.slane %v3198_v63, 1  ;;  %v10330_v41 = vmul.f32 %v12958_v42, %v9657_v44  ;;  %v12962_v38 = vld [vmem:[#allocation113_spill] sm:$0xff] }
 0x524   : > { %3093 = vrot.lane.b32.xlu1 %v12959_v39, %s12861_s5  ;;  %v12678_v40 = vrot.slane %v10302_v27, 1  ;;  %v12676_v9 = vrot.slane %v10306_v15, 1  ;;  %v4387_v33 = vmul.f32 %v9844_v31, %v9620_v26  ;;  %v10339_v23 = vsel %vm2728_vm5, %v4394_v12, %v4396_v43 }
 0x525   : > { %12960 = vst [vmem:[#allocation111_spill] sm:$0xff] %v10339_v23  ;;  %v3282_v50 = vmul.f32 %v12958_v42, %v9620_v26  ;;  %v4436_v3 = vrot.slane %v4430_v28, 5  ;;  %v10345_v25 = vmul.f32 %v12961_v4, %v9657_v44  ;;  %v4431_v60 = vmul.f32 %v12955_v56, %v9980_v54  ;;  %v12976_v23 = vld [vmem:[#allocation75_spill] sm:$0xff] }
 0x526   : > { %v4277_v63 = vsel %vm4010_vm13, %v4275_v45, %v4276_v11  ;;  %v4351_v51 = vrot.slane %v4345_v19, 5  ;;  %v3246_v31 = vrot.slane %v3240_v10, 1  ;;  %v4429_v35 = vmul.f32 %v12955_v56, %v9620_v26 }
 0x527   : > { %4238 = vrot.lane.b32.xlu0 %v4235_v53, %s12861_s5  ;;  %v12677_v28 = vrot.slane %v10330_v41, 1  ;;  %v3324_v24 = vmul.f32 %v12961_v4, %v9620_v26  ;;  %v4471_v43 = vmul.f32 %v12962_v38, %v9620_v26  ;;  %v4438_v42 = vrot.slane %v4431_v60, 5 }
 0x528   : > { %3121 = vrot.lane.b32.xlu1 %v12963_v14, %s7681_s2  ;;  %v3206_v11 = vsel %vm3149_vm14, %v3204_v46, %v12678_v40  ;;  %v4353_v56 = vsel %vm2728_vm5, %v4351_v51, %v4352_v8  ;;  %v4393_v19 = vrot.slane %v4387_v33, 5  ;;  %v4472_v10 = vmul.f32 %v12962_v38, %v9657_v44 }
 0x529   : > { %v3248_v53 = vsel %vm3149_vm14, %v3246_v31, %v12676_v9  ;;  %v3288_v45 = vrot.slane %v3282_v50, 1  ;;  %v12679_v39 = vrot.slane %v10345_v25, 1  ;;  %v10375_v60 = vsel %vm2728_vm5, %v4436_v3, %v4438_v42  ;;  %v12966_v42 = vld [vmem:[#allocation61_spill] sm:$0xff] }
 0x52a   : > { %12964 = vst [vmem:[#allocation132_spill] sm:$0xff] %v10375_v60  ;;  %v4395_v46 = vsel %vm2728_vm5, %v4393_v19, %v4394_v12  ;;  %v4435_v14 = vrot.slane %v4429_v35, 5  ;;  %v3366_v8 = vmul.f32 %v12965_v21, %v9620_v26  ;;  %v10382_v33 = vmul.f32 %v12965_v21, %v9657_v44  ;;  %v12967_v19 = vld [vmem:[#allocation115_spill] sm:$0xff] }
 0x52b   : > { %4280 = vrot.lane.b32.xlu0 %v4277_v63, %s7681_s2  ;;  %v3290_v50 = vsel %vm3149_vm14, %v3288_v45, %v12677_v28  ;;  %v3330_v51 = vrot.slane %v3324_v24, 1  ;;  %v4477_v31 = vrot.slane %v4471_v43, 5  ;;  %v4327_v5 = vmul.f32 %v12966_v42, %v10312_v16  ;;  %v12968_v45 = vld [vmem:[#allocation62_spill] sm:$0xff] }
 0x52c   : > { %3209 = vrot.lane.b32.xlu1 %v3206_v11, %s12857_s14  ;;  %v4437_v12 = vsel %vm2728_vm5, %v4435_v14, %v4436_v3  ;;  %v4478_v35 = vrot.slane %v4472_v10, 5  ;;  %v4513_v9 = vmul.f32 %v12967_v19, %v9620_v26  ;;  %v10396_v63 = vmul.f32 %v12967_v19, %v9657_v44  ;;  %v12969_v14 = vld [vmem:[#allocation116_spill] sm:$0xff] }
 0x52d   : > { %v3332_v24 = vsel %vm3149_vm14, %v3330_v51, %v12679_v39  ;;  %v4334_v43 = vrot.slane %v4327_v5, 5  ;;  %v4369_v42 = vmul.f32 %v12968_v45, %v10312_v16  ;;  %v4473_v11 = vmul.f32 %v12962_v38, %v9980_v54  ;;  %v12971_v5 = vld [vmem:[#allocation117_spill] sm:$0xff]  ;;  %v12972_v45 = vld [vmem:[#allocation74_spill] sm:$0xff] }
 0x52e   : > { %v3372_v3 = vrot.slane %v3366_v8, 1  ;;  %v10408_v28 = vmul.f32 %v12969_v14, %v9657_v44  ;;  %v4411_v40 = vmul.f32 %v12970_v6, %v10312_v16  ;;  %v10415_v51 = vmul.f32 %v12971_v5, %v9657_v44 }
 0x52f   : > { %4356 = vrot.lane.b32.xlu0 %v4353_v56, %s12857_s14  ;;  %v12973_v39 = vrot.slane %v12972_v45, 5  ;;  %v4376_v8 = vrot.slane %v4369_v42, 5  ;;  %v4480_v22 = vrot.slane %v4473_v11, 5  ;;  %v4520_v10 = vrot.slane %v10396_v63, 5  ;;  %v12975_v56 = vld [vmem:[#allocation64_spill] sm:$0xff]  ;;  %v12980_v42 = vld [vmem:[#allocation118_spill] sm:$0xff] }
 0x530   : > { %3251 = vrot.lane.b32.xlu1 %v3248_v53, %s12910_s24  ;;  %v3408_v6 = vmul.f32 %v12969_v14, %v9620_v26  ;;  %v4418_v60 = vrot.slane %v4411_v40, 5  ;;  %v4453_v20 = vmul.f32 %v12975_v56, %v10312_v16  ;;  %v4519_v36 = vrot.slane %v4513_v9, 5  ;;  %v12981_v11 = vld [vmem:[#allocation76_spill] sm:$0xff]  ;;  %v12985_v63 = vld [vmem:[#allocation65_spill] sm:$0xff] }
 0x531   : > { %v10420_v38 = vsel %vm2728_vm5, %v12973_v39, %v4334_v43  ;;  %v4555_v45 = vmul.f32 %v12971_v5, %v9620_v26  ;;  %v12977_v39 = vrot.slane %v12976_v23, 5  ;;  %v10436_v53 = vsel %vm2728_vm5, %v4478_v35, %v4480_v22 }
 0x532   : > { %12974 = vst [vmem:[#allocation110_spill] sm:$0xff] %v10420_v38  ;;  %12979 = vst [vmem:[#allocation112_spill] sm:$0xff] %v10436_v53  ;;  %v10441_v40 = vmul.f32 %v12980_v42, %v9620_v26  ;;  %v12982_v56 = vrot.slane %v12981_v11, 5  ;;  %v4460_v38 = vrot.slane %v4453_v20, 5  ;;  %v4479_v23 = vsel %vm2728_vm5, %v4477_v31, %v4478_v35  ;;  %v12989_v31 = vld [vmem:[#allocation66_spill] sm:$0xff] }
 0x533   : > { %v10433_v43 = vsel %vm2728_vm5, %v12977_v39, %v4376_v8  ;;  %4398 = vrot.lane.b32.xlu0 %v4395_v46, %s12910_s24  ;;  %v12984_v8 = vrot.slane %v10382_v33, 1  ;;  %v4562_v39 = vrot.slane %v10415_v51, 5  ;;  %v4495_v53 = vmul.f32 %v12985_v63, %v10312_v16 }
 0x534   : > { %12978 = vst [vmem:[#allocation126_spill] sm:$0xff] %v10433_v43  ;;  %v10446_v9 = vsel %vm2728_vm5, %v12982_v56, %v4418_v60  ;;  %3293 = vrot.lane.b32.xlu1 %v3290_v50, %s12852_s18  ;;  %v4521_v11 = vsel %vm2728_vm5, %v4519_v36, %v4520_v10  ;;  %v3414_v60 = vrot.slane %v3408_v6, 1  ;;  %v12986_v56 = vld [vmem:[#allocation77_spill] sm:$0xff]  ;;  %v4537_v35 = vmul.f32 %v12989_v31, %v10312_v16 }
 0x535   : > { %12983 = vst [vmem:[#allocation113_spill] sm:$0xff] %v10446_v9  ;;  %v3374_v22 = vsel %vm3149_vm14, %v3372_v3, %v12984_v8  ;;  %v12987_v20 = vrot.slane %v12986_v56, 5  ;;  %v4561_v9 = vrot.slane %v4555_v45, 5  ;;  %v12990_v3 = vrot.slane %v10020_v62, 1  ;;  %v12993_v45 = vld [vmem:[#allocation67_spill] sm:$0xff] }
 0x536   : > { %v12991_v51 = vrot.slane %v10302_v27, 1  ;;  %v10474_v36 = vmul.f32 %v12980_v42, %v9657_v44  ;;  %v4502_v50 = vrot.slane %v4495_v53, 5  ;;  %v12992_v6 = vrot.slane %v10408_v28, 1  ;;  %v13001_v8 = vld [vmem:[#allocation79_spill] sm:$0xff] }
 0x537   : > { %v10461_v46 = vsel %vm2728_vm5, %v12987_v20, %v4460_v38  ;;  %v4544_v56 = vrot.slane %v4537_v35, 5  ;;  %v4614_v62 = vmul.f32 %v12993_v45, %v10312_v16  ;;  %4440 = vrot.lane.b32.xlu0 %v4437_v12, %s12852_s18  ;;  %v4563_v27 = vsel %vm2728_vm5, %v4561_v9, %v4562_v39  ;;  %v12994_v20 = vld [vmem:[#allocation119_spill] sm:$0xff]  ;;  %v12999_v35 = vld [vmem:[#allocation120_spill] sm:$0xff]  ;;  %v13000_v12 = vld [vmem:[#allocation121_spill] sm:$0xff] }
 0x538   : > { %12988 = vst [vmem:[#allocation127_spill] sm:$0xff] %v10461_v46  ;;  %v10470_v63 = vsel %vm3149_vm14, %v12991_v51, %v12990_v3  ;;  %v3416_v38 = vsel %vm3149_vm14, %v3414_v60, %v12992_v6  ;;  %v10486_v31 = vmul.f32 %v12994_v20, %v9657_v44  ;;  %v12995_v3 = vld [vmem:[#allocation78_spill] sm:$0xff]  ;;  %v12998_v60 = vld [vmem:[#allocation68_spill] sm:$0xff]  ;;  %3335 = vrot.lane.b32.xlu1 %v3332_v24, %s12858_s25  ;;  %v13002_v46 = vrot.slane %v13001_v8, 5 }
 0x539   : > { %v12996_v53 = vrot.slane %v12995_v3, 5  ;;  %v4656_v6 = vmul.f32 %v12998_v60, %v10312_v16  ;;  %v10498_v45 = vmul.f32 %v12999_v35, %v9657_v44  ;;  %v10502_v9 = vmul.f32 %v13000_v12, %v9657_v44  ;;  %v13004_v60 = vld [vmem:[#allocation70_spill] sm:$0xff] }
 0x53a   : > { %v10507_v3 = vsel %vm2728_vm5, %v13002_v46, %v4544_v56  ;;  %v4698_v24 = vmul.f32 %v13004_v60, %v10312_v16  ;;  %v4515_v43 = vmul.f32 %v12967_v19, %v9980_v54  ;;  %v10516_v29 = vmul.f32 %v13005_v17, %v9657_v44  ;;  %v13007_v46 = vld [vmem:[#allocation80_spill] sm:$0xff]  ;;  %v13011_v60 = vld [vmem:[#allocation87_spill] sm:$0xff] }
 0x53b   : > { %v10491_v51 = vsel %vm2728_vm5, %v12996_v53, %v4502_v50  ;;  %13003 = vst [vmem:[#allocation61_spill] sm:$0xff] %v10507_v3  ;;  %v4621_v50 = vrot.slane %v4614_v62, 6  ;;  %v4639_v53 = vrot.slane %v10474_v36, 6  ;;  %v10520_v8 = vmul.f32 %v13006_v49, %v9657_v44  ;;  %v13010_v36 = vld [vmem:[#allocation71_spill] sm:$0xff]  ;;  %4482 = vrot.lane.b32.xlu0 %v4479_v23, %s12858_s25  ;;  %v13014_v23 = vld [vmem:[#allocation88_spill] sm:$0xff] }
 0x53c   : > { %12997 = vst [vmem:[#allocation114_spill] sm:$0xff] %v10491_v51  ;;  %v4663_v51 = vrot.slane %v4656_v6, 6  ;;  %v13008_v56 = vrot.slane %v13007_v46, 6  ;;  %v4740_v6 = vmul.f32 %v13010_v36, %v10312_v16  ;;  %v13012_v19 = vrot.slane %v13011_v60, 6  ;;  %3377 = vrot.lane.b32.xlu1 %v3374_v22, %s12861_s5  ;;  %v13019_v46 = vld [vmem:[#allocation90_spill] sm:$0xff] }
 0x53d   : > { %v4705_v52 = vrot.slane %v4698_v24, 6  ;;  %v4522_v2 = vrot.slane %v4515_v43, 5  ;;  %v4557_v55 = vmul.f32 %v12971_v5, %v9980_v54  ;;  %v13018_v5 = vld [vmem:[#allocation72_spill] sm:$0xff] }
 0x53e   : > { %v10525_v62 = vsel %vm4583_vm11, %v13008_v56, %v4621_v50  ;;  %v10533_v3 = vsel %vm4583_vm11, %v13012_v19, %v4663_v51  ;;  %v4747_v36 = vrot.slane %v4740_v6, 6  ;;  %v4782_v24 = vmul.f32 %v13018_v5, %v10312_v16 }
 0x53f   : > { %13009 = vst [vmem:[#allocation115_spill] sm:$0xff] %v10525_v62  ;;  %13013 = vst [vmem:[#allocation62_spill] sm:$0xff] %v10533_v3  ;;  %v13015_v62 = vrot.slane %v13014_v23, 6  ;;  %v10547_v51 = vsel %vm2728_vm5, %v4520_v10, %v4522_v2  ;;  %v4564_v43 = vrot.slane %v4557_v55, 5  ;;  %v13020_v50 = vrot.slane %v13019_v46, 6  ;;  %4524 = vrot.lane.b32.xlu0 %v4521_v11, %s12861_s5  ;;  %v13023_v10 = vld [vmem:[#allocation73_spill] sm:$0xff] }
 0x540   : > { %13017 = vst [vmem:[#allocation63_spill] sm:$0xff] %v10547_v51  ;;  %v4789_v55 = vrot.slane %v4782_v24, 6  ;;  %v4676_v23 = vmul.f32 %v12994_v20, %v9980_v54  ;;  %3419 = vrot.lane.b32.xlu1 %v3416_v38, %s7681_s2  ;;  %v13026_v11 = vld [vmem:[#allocation91_spill] sm:$0xff]  ;;  %v4802_v38 = vmul.f32 %v13005_v17, %v9980_v54  ;;  %v4844_v56 = vmul.f32 %v13006_v49, %v9980_v54 }
 0x541   : > { %v10544_v60 = vsel %vm4583_vm11, %v13015_v62, %v4705_v52  ;;  %v10556_v6 = vsel %vm4583_vm11, %v13020_v50, %v4747_v36  ;;  %v4634_v52 = vmul.f32 %v12980_v42, %v9980_v54  ;;  %v10562_v2 = vsel %vm2728_vm5, %v4562_v39, %v4564_v43  ;;  %v13024_v50 = vld [vmem:[#allocation125_spill] sm:$0xff] }
 0x542   : > { %13016 = vst [vmem:[#allocation116_spill] sm:$0xff] %v10544_v60  ;;  %13021 = vst [vmem:[#allocation117_spill] sm:$0xff] %v10556_v6  ;;  %v4824_v62 = vmul.f32 %v13023_v10, %v10312_v16  ;;  %v10571_v46 = vmul.f32 %v13024_v50, %v9657_v44  ;;  %v4718_v42 = vmul.f32 %v12999_v35, %v9980_v54  ;;  %v13027_v43 = vrot.slane %v13026_v11, 6 }
 0x543   : > { %13022 = vst [vmem:[#allocation74_spill] sm:$0xff] %v10562_v2  ;;  %v4641_v36 = vrot.slane %v4634_v52, 6  ;;  %v4760_v39 = vmul.f32 %v13000_v12, %v9980_v54  ;;  %v4683_v10 = vrot.slane %v4676_v23, 6  ;;  %v10589_v2 = vpop.permute.xlu0 %3007  ;;  %4566 = vrot.lane.b32.xlu0 %v4563_v27, %s7681_s2  ;;  %v4674_v27 = vmul.f32 %v12994_v20, %v9620_v26 }
 0x544   : > { %13025 = vst [vmem:[#allocation64_spill] sm:$0xff] %v10571_v46  ;;  %v10580_v5 = vsel %vm4583_vm11, %v13027_v43, %v4789_v55  ;;  %v4831_v24 = vrot.slane %v4824_v62, 6  ;;  %v4725_v52 = vrot.slane %v4718_v42, 6  ;;  %v13030_v55 = vld [vmem:[#allocation128_spill] sm:$0xff]  ;;  %3211 = vrot.lane.b32.xlu1 %v10470_v63, %s12857_s14  ;;  %v13043_v20 = vrot.slane %v10516_v29, 6 }
 0x545   : > { %13028 = vst [vmem:[#allocation75_spill] sm:$0xff] %v10580_v5  ;;  %v10585_v19 = vsel %vm4583_vm11, %v4639_v53, %v4641_v36  ;;  %v4767_v22 = vrot.slane %v4760_v39, 6  ;;  %v10594_v11 = vmul.f32 %v13030_v55, %v9657_v44  ;;  %v13032_v62 = vld [vmem:[#allocation92_spill] sm:$0xff]  ;;  %v13035_v36 = vrot.slane %v10486_v31, 6 }
 0x546   : > { %13029 = vst [vmem:[#allocation118_spill] sm:$0xff] %v10585_v19  ;;  %v13033_v23 = vrot.slane %v13032_v62, 6  ;;  %v4809_v39 = vrot.slane %v4802_v38, 6  ;;  %v13037_v19 = vrot.slane %v10498_v45, 6  ;;  %v13042_v38 = vrot.slane %v10306_v15, 1  ;;  %v13046_v15 = vld [vmem:[#allocation129_spill] sm:$0xff] }
 0x547   : > { %13031 = vst [vmem:[#allocation76_spill] sm:$0xff] %v10594_v11  ;;  %v10604_v42 = vsel %vm4583_vm11, %v13035_v36, %v4683_v10  ;;  %v13041_v10 = vrot.slane %v12956_v13, 1  ;;  %v4716_v13 = vmul.f32 %v12999_v35, %v9620_v26  ;;  %v3736_v35 = vmul.f32 %v13030_v55, %v9980_v54 }
 0x548   : > { %v10599_v43 = vsel %vm4583_vm11, %v13033_v23, %v4831_v24  ;;  %13036 = vst [vmem:[#allocation77_spill] sm:$0xff] %v10604_v42  ;;  %v10613_v5 = vsel %vm4583_vm11, %v13037_v19, %v4725_v52  ;;  %v13039_v24 = vrot.slane %v10502_v9, 6  ;;  %v4851_v23 = vrot.slane %v4844_v56, 6 }
 0x549   : > { %13034 = vst [vmem:[#allocation65_spill] sm:$0xff] %v10599_v43  ;;  %13038 = vst [vmem:[#allocation66_spill] sm:$0xff] %v10613_v5  ;;  %v3250_v63 = vsel %vm3149_vm14, %v13042_v38, %v13041_v10  ;;  %v10629_v42 = vsel %vm4583_vm11, %v13043_v20, %v4809_v39  ;;  %v3449_v19 = vmul.f32 %v13024_v50, %v9980_v54  ;;  %v4680_v20 = vrot.slane %v4674_v27, 6  ;;  %v13100_v50 = vld [vmem:[#allocation136_spill] sm:$0xff] }
 0x54a   : > { %v10618_v62 = vsel %vm4583_vm11, %v13039_v24, %v4767_v22  ;;  %13044 = vst [vmem:[#allocation119_spill] sm:$0xff] %v10629_v42  ;;  %v13045_v22 = vrot.slane %v10441_v40, 6  ;;  %v10640_v52 = vmul.f32 %v13046_v15, %v9657_v44  ;;  %v13048_v24 = vrot.slane %v10520_v8, 6  ;;  %v13050_v40 = vld [vmem:[#allocation130_spill] sm:$0xff]  ;;  %3253 = vrot.lane.b32.xlu1 %v3250_v63, %s12910_s24 }
 0x54b   : > { %13040 = vst [vmem:[#allocation67_spill] sm:$0xff] %v10618_v62  ;;  %v10651_v38 = vmul.f32 %v13050_v40, %v9657_v44  ;;  %v3326_v39 = vmul.f32 %v12961_v4, %v9980_v54  ;;  %v3743_v63 = vrot.slane %v3736_v35, 3  ;;  %v13057_v27 = vrot.slane %v10486_v31, 6 }
 0x54c   : > { %v4640_v56 = vsel %vm4583_vm11, %v13045_v22, %v4639_v53  ;;  %13047 = vst [vmem:[#allocation78_spill] sm:$0xff] %v10640_v52  ;;  %v10645_v10 = vsel %vm4583_vm11, %v13048_v24, %v4851_v23  ;;  %v3456_v53 = vrot.slane %v3449_v19, 2  ;;  %v13052_v22 = vld [vmem:[#allocation133_spill] sm:$0xff]  ;;  %v13053_v23 = vld [vmem:[#allocation131_spill] sm:$0xff]  ;;  %v13055_v19 = vrot.slane %v10571_v46, 2 }
 0x54d   : > { %13049 = vst [vmem:[#allocation68_spill] sm:$0xff] %v10645_v10  ;;  %4643 = vrot.lane.b32.xlu0 %v4640_v56, %s12857_s14  ;;  %13051 = vst [vmem:[#allocation120_spill] sm:$0xff] %v10651_v38  ;;  %v3291_v36 = vrot.slane %v13052_v22, 1  ;;  %v10659_v24 = vmul.f32 %v13053_v23, %v9657_v44  ;;  %v10661_v56 = vpop.permute.xlu0 %3035  ;;  %v4682_v22 = vsel %vm4583_vm11, %v4680_v20, %v13057_v27  ;;  %v13058_v44 = vrot.slane %v10330_v41, 1 }
 0x54e   : > { %v10670_v10 = vsel %vm3436_vm12, %v13055_v19, %v3456_v53  ;;  %v12683_v62 = vrot.slane %v10640_v52, 4  ;;  %v4023_v4 = vmul.f32 %v13046_v15, %v9980_v54  ;;  %v4722_v5 = vrot.slane %v4716_v13, 6 }
 0x54f   : > { %13054 = vst [vmem:[#allocation121_spill] sm:$0xff] %v10659_v24  ;;  %13056 = vst [vmem:[#allocation79_spill] sm:$0xff] %v10670_v10  ;;  %v3292_v42 = vsel %vm3149_vm14, %v13058_v44, %v3291_v36  ;;  %v12682_v53 = vrot.slane %v10651_v38, 5  ;;  %v13059_v35 = vrot.slane %v10594_v11, 3  ;;  %v4309_v41 = vmul.f32 %v13050_v40, %v9980_v54  ;;  %v10698_v44 = vpop.permute.xlu1 %2992 }
 0x550   : > { %3295 = vrot.lane.b32.xlu1 %v3292_v42, %s12852_s18  ;;  %v4758_v36 = vmul.f32 %v13000_v12, %v9620_v26  ;;  %v4030_v19 = vrot.slane %v4023_v4, 4  ;;  %v4596_v13 = vmul.f32 %v13053_v23, %v9980_v54  ;;  %v3333_v27 = vrot.slane %v3326_v39, 1 }
 0x551   : > { %4685 = vrot.lane.b32.xlu0 %v4682_v22, %s12910_s24  ;;  %v10686_v31 = vsel %vm3723_vm1, %v13059_v35, %v3743_v63  ;;  %v3368_v22 = vmul.f32 %v12965_v21, %v9980_v54  ;;  %v4316_v63 = vrot.slane %v4309_v41, 5  ;;  %v13061_v42 = vrot.slane %v10498_v45, 6  ;;  %v10708_v20 = vpop.permute.xlu0 %3063 }
 0x552   : > { %13060 = vst [vmem:[#allocation70_spill] sm:$0xff] %v10686_v31  ;;  %v10706_v12 = vsel %vm4010_vm13, %v12683_v62, %v4030_v19  ;;  %v4603_v4 = vrot.slane %v4596_v13, 6  ;;  %v13063_v21 = vrot.slane %v10345_v25, 1  ;;  %v4800_v41 = vmul.f32 %v13005_v17, %v9620_v26 }
 0x553   : > { %v4724_v35 = vsel %vm4583_vm11, %v4722_v5, %v13061_v42  ;;  %13062 = vst [vmem:[#allocation122_spill] sm:$0xff] %v10706_v12  ;;  %v10717_v45 = vsel %vm2728_vm5, %v12682_v53, %v4316_v63  ;;  %v4764_v5 = vrot.slane %v4758_v36, 6  ;;  %v13065_v19 = vrot.slane %v10659_v24, 6  ;;  %v10732_v63 = vpop.permute.xlu1 %3020 }
 0x554   : > { %v3334_v39 = vsel %vm3149_vm14, %v13063_v21, %v3333_v27  ;;  %13064 = vst [vmem:[#allocation124_spill] sm:$0xff] %v10717_v45  ;;  %v3375_v42 = vrot.slane %v3368_v22, 1  ;;  %v3410_v25 = vmul.f32 %v12969_v14, %v9980_v54  ;;  %v10730_v27 = vstv %s10665_s3  ;;  %v13068_v21 = vld [vmem:[#allocation69_spill] sm:$0xff]  ;;  %v13070_v14 = vld [vmem:[#allocation58_spill] sm:$0xff]  ;;  %s6972_s3 = sld [smem:[#allocation7 + $0x1c]] }
 0x555   : > { %4727 = vrot.lane.b32.xlu0 %v4724_v35, %s12852_s18  ;;  %3337 = vrot.lane.b32.xlu1 %v3334_v39, %s12858_s25  ;;  %v10725_v13 = vsel %vm4583_vm11, %v13065_v19, %v4603_v4  ;;  %v13067_v35 = vrot.slane %v10502_v9, 6  ;;  %v10739_v17 = vmul.f32 %v10730_v27, %v13068_v21  ;;  %v13069_v22 = vrot.slane %v10382_v33, 1  ;;  %v10748_v19 = vpop.permute.xlu0 %3091 }
 0x556   : > { %13066 = vst [vmem:[#allocation80_spill] sm:$0xff] %v10725_v13  ;;  %v4806_v54 = vrot.slane %v4800_v41, 6  ;;  %v3178_v39 = vmul.f32 %v10730_v27, %v13070_v14  ;;  %v3417_v9 = vrot.slane %v3410_v25, 1  ;;  %v10790_v62 = vstv %s6966_s30  ;;  %s7000_s30 = sld [smem:[#allocation7 + $0x38]] }
 0x557   : > { %v4766_v36 = vsel %vm4583_vm11, %v4764_v5, %v13067_v35  ;;  %v3376_v4 = vsel %vm3149_vm14, %v13069_v22, %v3375_v42  ;;  %v10750_v5 = vstv %s6962_s8  ;;  %v10752_v35 = vpop.permute.xlu1 %3048  ;;  %v12684_v42 = vrot.slane %v10739_v17, 1  ;;  %s13168_s8 = smov 64  }
 0x558   : > { %v10760_v41 = vmul.f32 %v10750_v5, %v13068_v21  ;;  %v13072_v22 = vrot.slane %v10408_v28, 1  ;;  %v3304_v45 = vmul.f32 %v10790_v62, %v13070_v14  ;;  %v10809_v24 = vstv %s6968_s10 }
 0x559   : > { %4769 = vrot.lane.b32.xlu0 %v4766_v36, %s12858_s25  ;;  %3379 = vrot.lane.b32.xlu1 %v3376_v4, %s12861_s5  ;;  %v13071_v36 = vrot.slane %v10516_v29, 6  ;;  %v3184_v4 = vrot.slane %v3178_v39, 1  ;;  %v3220_v29 = vmul.f32 %v10750_v5, %v13070_v14  ;;  %v10769_v53 = vpop.permute.xlu0 %3496  ;;  %v10828_v38 = vstv %s6970_s12 }
 0x55a   : > { %v3418_v25 = vsel %vm3149_vm14, %v13072_v22, %v3417_v9  ;;  %13073 = vst [vmem:[#allocation71_spill] sm:$0xff] %v10769_v53  ;;  %v12686_v28 = vrot.slane %v10760_v41, 1  ;;  %v3388_v10 = vmul.f32 %v10828_v38, %v13070_v14  ;;  %v10860_v52 = vstv %s6974_s21 }
 0x55b   : > { %v4808_v33 = vsel %vm4583_vm11, %v4806_v54, %v13071_v36  ;;  %v10771_v54 = vstv %s6964_s9  ;;  %v10773_v36 = vpop.permute.xlu1 %3076  ;;  %v3226_v39 = vrot.slane %v3220_v29, 1  ;;  %v13075_v29 = vld [vmem:[#allocation134_spill] sm:$0xff]  ;;  %s6986_s9 = sld [smem:[#allocation7 + $0x2a]] }
 0x55c   : > { %v10781_v9 = vmul.f32 %v10771_v54, %v13068_v21  ;;  %v3262_v22 = vmul.f32 %v10771_v54, %v13070_v14 }
 0x55d   : > { %4811 = vrot.lane.b32.xlu0 %v4808_v33, %s12861_s5  ;;  %3421 = vrot.lane.b32.xlu1 %v3418_v25, %s7681_s2  ;;  %v3186_v33 = vsel %vm3149_vm14, %v3184_v4, %v12684_v42  ;;  %v10788_v25 = vpop.permute.xlu0 %3538  ;;  %v3228_v42 = vsel %vm3149_vm14, %v3226_v39, %v12686_v28 }
 0x55e   : > { %13074 = vst [vmem:[#allocation87_spill] sm:$0xff] %v10788_v25  ;;  %v3268_v13 = vrot.slane %v3262_v22, 1  ;;  %v3310_v22 = vrot.slane %v3304_v45, 1 }
 0x55f   : > { %v10792_v4 = vpop.permute.xlu1 %3104 }
 0x561   : > { %3189 = vrot.lane.b32.xlu0 %v3186_v33, %s12857_s14  ;;  %3498 = vrot.lane.b32.xlu1 %v10102_v18, %s12857_s14  ;;  %v12689_v33 = vrot.slane %v10781_v9, 1  ;;  %v10800_v18 = vmul.f32 %v10790_v62, %v13068_v21  ;;  %v10807_v12 = vpop.permute.xlu0 %3580 }
 0x562   : > { %13076 = vst [vmem:[#allocation88_spill] sm:$0xff] %v10807_v12  ;;  %v10973_v12 = vstv %s6988_s28  ;;  %s13309_s28 = sld [smem:[#allocation21_spill]] }
 0x563   : > { %v10811_v39 = vpop.permute.xlu1 %3132  ;;  %v3270_v28 = vsel %vm3149_vm14, %v3268_v13, %v12689_v33  ;;  %v12691_v31 = vrot.slane %v10800_v18, 1 }
 0x565   : > { %3231 = vrot.lane.b32.xlu0 %v3228_v42, %s12910_s24  ;;  %3540 = vrot.lane.b32.xlu1 %v13075_v29, %s12910_s24  ;;  %v10819_v42 = vmul.f32 %v10809_v24, %v13068_v21  ;;  %v3346_v29 = vmul.f32 %v10809_v24, %v13070_v14  ;;  %v10826_v23 = vpop.permute.xlu0 %3622  ;;  %v3312_v33 = vsel %vm3149_vm14, %v3310_v22, %v12691_v31 }
 0x566   : > { %13077 = vst [vmem:[#allocation72_spill] sm:$0xff] %v10826_v23 }
 0x567   : > { %v10830_v13 = vpop.permute.xlu1 %2979  ;;  %v3352_v45 = vrot.slane %v3346_v29, 1 }
 0x569   : > { %3273 = vrot.lane.b32.xlu0 %v3270_v28, %s12852_s18  ;;  %3582 = vrot.lane.b32.xlu1 %v10136_v32, %s12852_s18  ;;  %v12694_v28 = vrot.slane %v10819_v42, 1  ;;  %v10838_v32 = vmul.f32 %v10828_v38, %v13068_v21  ;;  %v10845_v40 = vpop.permute.xlu0 %3664 }
 0x56a   : > { %13078 = vst [vmem:[#allocation90_spill] sm:$0xff] %v10845_v40  ;;  %v10954_v40 = vstv %s6984_s16  ;;  %s13292_s16 = sld [smem:[#allocation162_spill]] }
 0x56b   : > { %v10847_v43 = vpop.permute.xlu1 %3119  ;;  %v3354_v22 = vsel %vm3149_vm14, %v3352_v45, %v12694_v28  ;;  %v12695_v31 = vrot.slane %v10838_v32, 1  ;;  %v10878_v28 = vstv %s6976_s22 }
 0x56c   : > { %v3507_v51 = vmul.f32 %v10878_v28, %v13070_v14 }
 0x56d   : > { %3315 = vrot.lane.b32.xlu0 %v3312_v33, %s12858_s25  ;;  %3624 = vrot.lane.b32.xlu1 %v10142_v30, %s12858_s25  ;;  %v3394_v30 = vrot.slane %v3388_v10, 1  ;;  %v4842_v33 = vmul.f32 %v13006_v49, %v9620_v26  ;;  %v10858_v29 = vpop.permute.xlu0 %3706  ;;  %v3465_v49 = vmul.f32 %v10860_v52, %v13070_v14 }
 0x56e   : > { %13079 = vst [vmem:[#allocation73_spill] sm:$0xff] %v10858_v29  ;;  %v10935_v29 = vstv %s6982_s27  ;;  %s13252_s27 = smov 96  }
 0x56f   : > { %v10862_v15 = vpop.permute.xlu1 %2994  ;;  %v3396_v45 = vsel %vm3149_vm14, %v3394_v30, %v12695_v31  ;;  %v13081_v30 = vrot.slane %v10520_v8, 6  ;;  %v10897_v8 = vstv %s6978_s6 }
 0x570   : > { %v3549_v3 = vmul.f32 %v10897_v8, %v13070_v14 }
 0x571   : > { %3357 = vrot.lane.b32.xlu0 %v3354_v22, %s12861_s5  ;;  %3666 = vrot.lane.b32.xlu1 %v10157_v58, %s12861_s5  ;;  %v10869_v22 = vmul.f32 %v10860_v52, %v13068_v21  ;;  %v4848_v58 = vrot.slane %v4842_v33, 6  ;;  %v10876_v10 = vpop.permute.xlu0 %3783  ;;  %v3471_v33 = vrot.slane %v3465_v49, 2  ;;  %v3513_v49 = vrot.slane %v3507_v51, 2 }
 0x572   : > { %13080 = vst [vmem:[#allocation91_spill] sm:$0xff] %v10876_v10  ;;  %v10916_v10 = vstv %s6980_s7  ;;  %v3555_v51 = vrot.slane %v3549_v3, 2 }
 0x573   : > { %v10880_v6 = vpop.permute.xlu1 %3022  ;;  %v4850_v31 = vsel %vm4583_vm11, %v4848_v58, %v13081_v30 }
 0x575   : > { %3399 = vrot.lane.b32.xlu0 %v3396_v45, %s7681_s2  ;;  %3708 = vrot.lane.b32.xlu1 %v10162_v0, %s7681_s2  ;;  %v12696_v45 = vrot.slane %v10869_v22, 2  ;;  %v10888_v0 = vmul.f32 %v10878_v28, %v13068_v21  ;;  %v10895_v60 = vpop.permute.xlu0 %3825 }
 0x576   : > { %13082 = vst [vmem:[#allocation92_spill] sm:$0xff] %v10895_v60 }
 0x577   : > { %v10899_v58 = vpop.permute.xlu1 %3050  ;;  %v3473_v30 = vsel %vm3436_vm12, %v3471_v33, %v12696_v45 }
 0x579   : > { %4853 = vrot.lane.b32.xlu0 %v4850_v31, %s7681_s2  ;;  %3785 = vrot.lane.b32.xlu1 %v10180_v7, %s12857_s14  ;;  %v12698_v31 = vrot.slane %v10888_v0, 2  ;;  %v10907_v7 = vmul.f32 %v10897_v8, %v13068_v21  ;;  %v10914_v60 = vpop.permute.xlu0 %3867 }
 0x57a   : > { %13083 = vst [vmem:[#allocation133_spill] sm:$0xff] %v10914_v60  ;;  %v3591_v60 = vmul.f32 %v10916_v10, %v13070_v14 }
 0x57b   : > { %v10918_v33 = vpop.permute.xlu1 %3078  ;;  %v3515_v45 = vsel %vm3436_vm12, %v3513_v49, %v12698_v31 }
 0x57c   : > { %v3597_v3 = vrot.slane %v3591_v60, 2 }
 0x57d   : > { %3476 = vrot.lane.b32.xlu0 %v3473_v30, %s12857_s14  ;;  %3827 = vrot.lane.b32.xlu1 %v10190_v48, %s12910_s24  ;;  %v12700_v30 = vrot.slane %v10907_v7, 2  ;;  %v10926_v48 = vmul.f32 %v10916_v10, %v13068_v21  ;;  %v10933_v11 = vpop.permute.xlu0 %3909 }
 0x57e   : > { %13084 = vst [vmem:[#allocation69_spill] sm:$0xff] %v10933_v11  ;;  %v3633_v11 = vmul.f32 %v10935_v29, %v13070_v14 }
 0x57f   : > { %v10937_v49 = vpop.permute.xlu1 %3106  ;;  %v3557_v31 = vsel %vm3436_vm12, %v3555_v51, %v12700_v30 }
 0x580   : > { %v3639_v60 = vrot.slane %v3633_v11, 2 }
 0x581   : > { %3518 = vrot.lane.b32.xlu0 %v3515_v45, %s12910_s24  ;;  %3869 = vrot.lane.b32.xlu1 %v10197_v37, %s12852_s18  ;;  %v12701_v45 = vrot.slane %v10926_v48, 2  ;;  %v10945_v37 = vmul.f32 %v10935_v29, %v13068_v21  ;;  %v10952_v55 = vpop.permute.xlu0 %3951 }
 0x582   : > { %13085 = vst [vmem:[#allocation58_spill] sm:$0xff] %v10952_v55  ;;  %v3675_v55 = vmul.f32 %v10954_v40, %v13070_v14 }
 0x583   : > { %v10956_v51 = vpop.permute.xlu1 %3134  ;;  %v3599_v30 = vsel %vm3436_vm12, %v3597_v3, %v12701_v45 }
 0x584   : > { %v3681_v11 = vrot.slane %v3675_v55, 2 }
 0x585   : > { %3560 = vrot.lane.b32.xlu0 %v3557_v31, %s12852_s18  ;;  %3911 = vrot.lane.b32.xlu1 %v10208_v1, %s12858_s25  ;;  %v12702_v31 = vrot.slane %v10945_v37, 2  ;;  %v10964_v1 = vmul.f32 %v10954_v40, %v13068_v21  ;;  %v10971_v23 = vpop.permute.xlu0 %3993 }
 0x586   : > { %13086 = vst [vmem:[#allocation134_spill] sm:$0xff] %v10971_v23  ;;  %v3752_v23 = vmul.f32 %v10973_v12, %v13070_v14 }
 0x587   : > { %v2982_v3 = vpop.permute.xlu1 %2981  ;;  %v3641_v45 = vsel %vm3436_vm12, %v3639_v60, %v12702_v31  ;;  %v10992_v31 = vstv %s6990_s17  ;;  %v13088_v46 = vrot.slane %v10964_v1, 2  ;;  %s6906_s17 = sshll.u32 %s13309_s28, 6 }
 0x589   : > { %3602 = vrot.lane.b32.xlu0 %v3599_v30, %s12858_s25  ;;  %3953 = vrot.lane.b32.xlu1 %v10213_v59, %s12861_s5  ;;  %v10981_v30 = vmul.f32 %v10973_v12, %v13068_v21  ;;  %v2986_v59 = vadd.f32 %v2982_v3, %v10200_v57  ;;  %v10990_v60 = vpop.permute.xlu0 %4070  ;;  %v3683_v57 = vsel %vm3436_vm12, %v3681_v11, %v13088_v46  ;;  %v11010_v11 = vstv %s6992_s13  ;;  %s12441_s13 = scalar_lea.vmem [#allocation8], %s6906_s17 }
 0x58a   : > { %13087 = vst [vmem:[#allocation142_spill] sm:$0xff] %v10990_v60  ;;  %v3794_v3 = vmul.f32 %v10992_v31, %v13070_v14  ;;  %13091 = vst [vmem:[#allocation145_spill] sm:$0xff] %v11010_v11 }
 0x58b   : > { %v2999_v53 = vadd.f32 %v10862_v15, %v2986_v59  ;;  %v3010_v25 = vpop.permute.xlu1 %3009  ;;  %v3758_v15 = vrot.slane %v3752_v23, 3  ;;  %v11018_v23 = vmul.f32 %v11010_v11, %v13068_v21 }
 0x58d   : > { %3644 = vrot.lane.b32.xlu0 %v3641_v45, %s12861_s5  ;;  %3995 = vrot.lane.b32.xlu1 %v10223_v34, %s7681_s2  ;;  %v11000_v34 = vmul.f32 %v10992_v31, %v13068_v21  ;;  %v3014_v55 = vadd.f32 %v3010_v25, %v2999_v53  ;;  %v11008_v59 = vpop.permute.xlu0 %4112  ;;  %v13092_v53 = vrot.slane %v10981_v30, 3  ;;  %13093 = vst [vmem:[#allocation146_spill] sm:$0xff] %v11018_v23 }
 0x58e   : > { %13090 = vst [vmem:[#allocation144_spill] sm:$0xff] %v11008_v59 }
 0x58f   : > { %13089 = vst [vmem:[#allocation143_spill] sm:$0xff] %v11000_v34  ;;  %v3027_v46 = vadd.f32 %v10880_v6, %v3014_v55  ;;  %v3038_v45 = vpop.permute.xlu1 %3037  ;;  %v3760_v25 = vsel %vm3723_vm1, %v3758_v15, %v13092_v53  ;;  %v3800_v6 = vrot.slane %v3794_v3, 3  ;;  %v3836_v55 = vmul.f32 %v11010_v11, %v13070_v14 }
 0x590   : > { %v11028_v53 = vstv %s6994_s23  ;;  %s13310_s23 = sld [smem:[#allocation16_spill]] }
 0x591   : > { %3686 = vrot.lane.b32.xlu0 %v3683_v57, %s7681_s2  ;;  %4072 = vrot.lane.b32.xlu1 %v10230_v47, %s12857_s14  ;;  %v3042_v57 = vadd.f32 %v3038_v45, %v3027_v46  ;;  %v11026_v15 = vpop.permute.xlu0 %4154  ;;  %13095 = vst [vmem:[#allocation148_spill] sm:$0xff] %v11028_v53  ;;  %v13096_v45 = vstv %s9799_s4  ;;  %v11041_v60 = vmul.f32 %v11028_v53, %v13068_v21  ;;  %s11062_s4 = sld [smem:[#allocation7 + $0x3a]] }
 0x592   : > { %13094 = vst [vmem:[#allocation147_spill] sm:$0xff] %v11026_v15  ;;  %v2968_v46 = vmul.f32 %v13096_v45, %v9620_v26  ;;  %v3842_v45 = vrot.slane %v3836_v55, 3  ;;  %v13102_v55 = vrot.slane %v11018_v23, 3 }
 0x593   : > { %v3055_v59 = vadd.f32 %v10899_v58, %v3042_v57  ;;  %v3066_v47 = vpop.permute.xlu1 %3065  ;;  %13098 = vst [vmem:[#allocation149_spill] sm:$0xff] %v11041_v60  ;;  %v13099_v57 = vstv %s12895_s19  ;;  %s11086_s19 = sld [smem:[#allocation7 + $0x3c]] }
 0x594   : > { %v2963_v15 = vmul.f32 %v13099_v57, %v13070_v14 }
 0x595   : > { %3763 = vrot.lane.b32.xlu0 %v3760_v25, %s12857_s14  ;;  %4114 = vrot.lane.b32.xlu1 %v10240_v61, %s12910_s24  ;;  %v13097_v25 = vrot.slane %v11000_v34, 3  ;;  %v3070_v58 = vadd.f32 %v3066_v47, %v3055_v59  ;;  %v3878_v34 = vmul.f32 %v11028_v53, %v13070_v14  ;;  %v11056_v11 = vpop.permute.xlu0 %4196 }
 0x596   : > { %13101 = vst [vmem:[#allocation136_spill] sm:$0xff] %v11056_v11 }
 0x597   : > { %v3802_v61 = vsel %vm3723_vm1, %v3800_v6, %v13097_v25  ;;  %v11051_v6 = vstv %s6996_s29  ;;  %v11053_v25 = vstv %s6958_s11  ;;  %v3083_v3 = vadd.f32 %v10918_v33, %v3070_v58  ;;  %v3094_v47 = vpop.permute.xlu1 %3093  ;;  %s13311_s29 = sld [smem:[#allocation19_spill]]  ;;  %s6783_s11 = sshll.u32 %s12441_s13, 4  ;;  %s12454_s11 = int_to_ptr.vmem [resolvable:$true] %s6783_s11 }
 0x598   : > { %v11060_v59 = vmul.f32 %v11051_v6, %v13068_v21  ;;  %v3145_v57 = vmul.f32 %v11053_v25, %v10312_v16  ;;  %v12709_v33 = vrot.slane %v11041_v60, 3  ;;  %v11074_v53 = vmul.f32 %v11053_v25, %v13068_v21 }
 0x599   : > { %3805 = vrot.lane.b32.xlu0 %v3802_v61, %s12910_s24  ;;  %4156 = vrot.lane.b32.xlu1 %v13100_v50, %s12852_s18  ;;  %v2970_v50 = vadd.f32 %v2968_v46, %v2963_v15  ;;  %v3844_v61 = vsel %vm3723_vm1, %v3842_v45, %v13102_v55  ;;  %v3098_v58 = vadd.f32 %v3094_v47, %v3083_v3  ;;  %v13103_v15 = vld [vmem:[#allocation137_spill] sm:$0xff]  ;;  %v3884_v46 = vrot.slane %v3878_v34, 3  ;;  %v11081_v23 = vpop.permute.xlu0 %4238 }
 0x59a   : > { %v3920_v45 = vmul.f32 %v11051_v6, %v13070_v14  ;;  %13104 = vst [vmem:[#allocation137_spill] sm:$0xff] %v11081_v23  ;;  %v11084_v3 = vstv %s11030_s20  ;;  %v11107_v60 = vstv %s11062_s4  ;;  %s7087_s20 = sshll.u32 %s13310_s23, 10 }
 0x59b   : > { %v2985_v11 = vadd.f32 %v10830_v13, %v2970_v50  ;;  %v3111_v55 = vadd.f32 %v10937_v49, %v3098_v58  ;;  %v3153_v13 = vrot.slane %v3145_v57, 1  ;;  %v3122_v50 = vpop.permute.xlu1 %3121  ;;  %v3886_v47 = vsel %vm3723_vm1, %v3884_v46, %v12709_v33  ;;  %v13105_v57 = vld [vmem:[#allocation139_spill] sm:$0xff] }
 0x59c   : > { %v3926_v23 = vrot.slane %v3920_v45, 3  ;;  %v3962_v46 = vmul.f32 %v11084_v3, %v13070_v14 }
 0x59d   : > { %3847 = vrot.lane.b32.xlu0 %v3844_v61, %s12852_s18  ;;  %4198 = vrot.lane.b32.xlu1 %v13103_v15, %s12858_s25  ;;  %v11094_v61 = vmul.f32 %v11084_v3, %v13068_v21  ;;  %v3126_v49 = vadd.f32 %v3122_v50, %v3111_v55  ;;  %v2998_v58 = vadd.f32 %v10698_v44, %v2985_v11  ;;  %v12711_v15 = vrot.slane %v11074_v53, 1  ;;  %v11104_v34 = vpop.permute.xlu0 %4280  ;;  %p13313_p0 = scmp.ne.s32.totalorder %s13311_s29, 0 }
 0x59e   : > { %13106 = vst [vmem:[#allocation139_spill] sm:$0xff] %v11104_v34  ;;  %v13107_v55 = vrot.slane %v11060_v59, 3 }
 0x59f   : > { %v3139_v33 = vadd.f32 %v10956_v51, %v3126_v49  ;;  %v3154_v44 = vsel %vm3149_vm14, %v12711_v15, %v3153_v13  ;;  %v11112_v11 = vpop.permute.xlu1 %3209  ;;  %v11120_v51 = vmul.f32 %v11107_v60, %v13068_v21  ;;  %v3180_v49 = vmul.f32 %v10730_v27, %v10312_v16 }
 0x5a0   : > { %v3928_v45 = vsel %vm3723_vm1, %v3926_v23, %v13107_v55  ;;  %v3013_v13 = vadd.f32 %v10589_v2, %v2998_v58  ;;  %v3968_v15 = vrot.slane %v3962_v46, 3  ;;  %v4039_v23 = vmul.f32 %v11107_v60, %v13070_v14  ;;  %v13110_v55 = vld [vmem:[#allocation138_spill] sm:$0xff] }
 0x5a1   : > { %3889 = vrot.lane.b32.xlu0 %v3886_v47, %s12858_s25  ;;  %4240 = vrot.lane.b32.xlu1 %v13105_v57, %s12861_s5  ;;  %13108 = vst [vmem:[#allocation150_spill] sm:$0xff] %v11120_v51  ;;  %v3158_v47 = vadd.f32 %v3154_v44, %v3139_v33  ;;  %v13109_v57 = vld [vmem:[#allocation140_spill] sm:$0xff]  ;;  %v11133_v34 = vpop.permute.xlu0 %4356  ;;  %v11136_v33 = vstv %s11086_s19  ;;  %v13114_v27 = vrot.slane %v11094_v61, 3  ;;  %v11158_v58 = vstv %s7006_s0  ;;  %s13312_s0 = sld [smem:[#allocation163_spill]] }
 0x5a2   : > { %13112 = vst [vmem:[#allocation138_spill] sm:$0xff] %v11133_v34  ;;  %13113 = vst [vmem:[#allocation151_spill] sm:$0xff] %v11136_v33  ;;  %v11146_v46 = vmul.f32 %v11136_v33, %v13068_v21  ;;  %v4045_v34 = vrot.slane %v4039_v23, 4  ;;  %v13118_v23 = vrot.slane %v10739_v17, 1 }
 0x5a3   : > { %v11131_v50 = vadd.f32 %v13110_v55, %v3158_v47  ;;  %v11138_v44 = vpop.permute.xlu1 %3251  ;;  %v3970_v2 = vsel %vm3723_vm1, %v3968_v15, %v13114_v27  ;;  %v3222_v47 = vmul.f32 %v10750_v5, %v10312_v16  ;;  %v13115_v55 = vld [vmem:[#allocation141_spill] sm:$0xff]  ;;  %v4081_v15 = vmul.f32 %v11136_v33, %v13070_v14 }
 0x5a4   : > { %v11182_v33 = vstv %s7008_s1 }
 0x5a5   : > { %3931 = vrot.lane.b32.xlu0 %v3928_v45, %s12861_s5  ;;  %4282 = vrot.lane.b32.xlu1 %v13109_v57, %s7681_s2  ;;  %13111 = vst [vmem:[#allocation140_spill] sm:$0xff] %v11131_v50  ;;  %v3187_v45 = vrot.slane %v3180_v49, 1  ;;  %v3026_v57 = vadd.f32 %v10732_v63, %v3013_v13  ;;  %v11156_v27 = vpop.permute.xlu0 %4398  ;;  %v13117_v49 = vrot.slane %v11120_v51, 4  ;;  %v11168_v13 = vmul.f32 %v11158_v58, %v13068_v21 }
 0x5a6   : > { %13116 = vst [vmem:[#allocation141_spill] sm:$0xff] %v11156_v27  ;;  %v3264_v27 = vmul.f32 %v10771_v54, %v10312_v16 }
 0x5a7   : > { %v11160_v50 = vpop.permute.xlu1 %3293  ;;  %v4047_v5 = vsel %vm4010_vm13, %v4045_v34, %v13117_v49  ;;  %v3041_v51 = vadd.f32 %v10661_v56, %v3026_v57  ;;  %v4087_v34 = vrot.slane %v4081_v15, 4  ;;  %v4123_v49 = vmul.f32 %v11158_v58, %v13070_v14  ;;  %s12460_s1 = scalar_lea.hbm %s13312_s0, %s7087_s20 }
 0x5a8   : > { %v11192_v56 = vmul.f32 %v11182_v33, %v13068_v21  ;;  %v13121_v57 = vrot.slane %v10760_v41, 1  ;;  %v13123_v41 = vrot.slane %v11168_v13, 4 }
 0x5a9   : > { %3973 = vrot.lane.b32.xlu0 %v3970_v2, %s7681_s2  ;;  %4358 = vrot.lane.b32.xlu1 %v13115_v55, %s12857_s14  ;;  %v3188_v2 = vsel %vm3149_vm14, %v13118_v23, %v3187_v45  ;;  %v3229_v55 = vrot.slane %v3222_v47, 1  ;;  %v11180_v63 = vpop.permute.xlu0 %4440  ;;  %v13120_v45 = vrot.slane %v11146_v46, 4  ;;  %v3306_v23 = vmul.f32 %v10790_v62, %v10312_v16 }
 0x5aa   : > { %13119 = vst [vmem:[#allocation152_spill] sm:$0xff] %v11180_v63  ;;  %v11206_v63 = vstv %s7010_s26  ;;  %s6765_s26 = scalar_lea.sflag [#allocation5], %s13309_s28 }
 0x5ab   : > { %v11184_v17 = vpop.permute.xlu1 %3335  ;;  %v4089_v47 = vsel %vm4010_vm13, %v4087_v34, %v13120_v45  ;;  %v3230_v15 = vsel %vm3149_vm14, %v13121_v57, %v3229_v55  ;;  %v4129_v34 = vrot.slane %v4123_v49, 4  ;;  %v4165_v45 = vmul.f32 %v11182_v33, %v13070_v14 }
 0x5ac   : > { %v3313_v49 = vrot.slane %v3306_v23, 1  ;;  %v3348_v57 = vmul.f32 %v10809_v24, %v10312_v16  ;;  %v13127_v23 = vrot.slane %v10800_v18, 1 }
 0x5ad   : > { %4050 = vrot.lane.b32.xlu0 %v4047_v5, %s12857_s14  ;;  %3191 = vrot.lane.b32.xlu1 %v3188_v2, %s12857_s14  ;;  %v3271_v5 = vrot.slane %v3264_v27, 1  ;;  %v3054_v2 = vadd.f32 %v10752_v35, %v3041_v51  ;;  %v11204_v54 = vpop.permute.xlu0 %4482  ;;  %v4131_v27 = vsel %vm4010_vm13, %v4129_v34, %v13123_v41  ;;  %v11216_v35 = vmul.f32 %v11206_v63, %v13068_v21 }
 0x5ae   : > { %13122 = vst [vmem:[#allocation153_spill] sm:$0xff] %v11204_v54  ;;  %v13124_v51 = vrot.slane %v10781_v9, 1  ;;  %v4171_v34 = vrot.slane %v4165_v45, 4  ;;  %v4207_v41 = vmul.f32 %v11206_v63, %v13070_v14  ;;  %v11230_v54 = vstv %s7012_s15  ;;  %s7597_s15 = scalar_lea.vmem %s12454_s11, 1024 }
 0x5af   : > { %v13126_v9 = vrot.slane %v11192_v56, 4  ;;  %v3355_v45 = vrot.slane %v3348_v57, 1  ;;  %v13128_v18 = vrot.slane %v11216_v35, 4  ;;  %p7598_p12 = scmp.ne.s32.totalorder %s12454_s11, %s7597_s15 }
 0x5b0   : > { %v3272_v55 = vsel %vm3149_vm14, %v13124_v51, %v3271_v5  ;;  %v3390_v51 = vmul.f32 %v10828_v38, %v10312_v16  ;;  %v13129_v38 = vrot.slane %v10819_v42, 1  ;;  %v13130_v42 = vrot.slane %v10838_v32, 1 }
 0x5b1   : > { %4092 = vrot.lane.b32.xlu0 %v4089_v47, %s12910_s24  ;;  %3233 = vrot.lane.b32.xlu1 %v3230_v15, %s12910_s24  ;;  %v11208_v47 = vpop.permute.xlu1 %3377  ;;  %v3069_v15 = vadd.f32 %v10708_v20, %v3054_v2  ;;  %v11228_v62 = vpop.permute.xlu0 %4524  ;;  %v4173_v5 = vsel %vm4010_vm13, %v4171_v34, %v13126_v9  ;;  %v11240_v20 = vmul.f32 %v11230_v54, %v13068_v21  ;;  %v4213_v34 = vrot.slane %v4207_v41, 4  ;;  %p7599_p2 = pnand %p7598_p12, %p13313_p0 }
 0x5b2   : > { %13125 = vst [vmem:[#allocation154_spill] sm:$0xff] %v11228_v62  ;;  %v3314_v2 = vsel %vm3149_vm14, %v13127_v23, %v3313_v49  ;;  %v4249_v9 = vmul.f32 %v11230_v54, %v13070_v14  ;;  %v3509_v32 = vmul.f32 %v10878_v28, %v10312_v16 }
 0x5b3   : > { %v4215_v49 = vsel %vm4010_vm13, %v4213_v34, %v13128_v18  ;;  %v4256_v57 = vrot.slane %v11240_v20, 4  ;;  %v13131_v18 = vld [vmem:[#allocation81_spill] sm:$0xff]  ;;  %p7600_p7 = pneg %p7599_p2 }
 0x5b4   : > { %v3516_v28 = vrot.slane %v3509_v32, 2  ;;  %v13137_v32 = vld [vmem:[#allocation83_spill] sm:$0xff] }
 0x5b5   : > { %4134 = vrot.lane.b32.xlu0 %v4131_v27, %s12852_s18  ;;  %3275 = vrot.lane.b32.xlu1 %v3272_v55, %s12852_s18  ;;  %v11232_v27 = vpop.permute.xlu1 %3419  ;;  %v3082_v55 = vadd.f32 %v10773_v36, %v3069_v15  ;;  %v11252_v24 = vpop.permute.xlu0 %4566  ;;  %v3356_v36 = vsel %vm3149_vm14, %v13129_v38, %v3355_v45  ;;  %v3397_v15 = vrot.slane %v3390_v51, 1 }
 0x5b7   : > { %v3097_v41 = vadd.f32 %v10748_v19, %v3082_v55  ;;  %v3398_v45 = vsel %vm3149_vm14, %v13130_v42, %v3397_v15  ;;  %v3467_v19 = vmul.f32 %v10860_v52, %v10312_v16  ;;  %v3143_v52 = vmul.f32 %v11053_v25, %v13070_v14 }
 0x5b9   : > { %4176 = vrot.lane.b32.xlu0 %v4173_v5, %s12858_s25  ;;  %3317 = vrot.lane.b32.xlu1 %v3314_v2, %s12858_s25  ;;  %v11254_v62 = vpop.permute.xlu1 %3211  ;;  %v4255_v5 = vrot.slane %v4249_v9, 4  ;;  %v3110_v51 = vadd.f32 %v10792_v4, %v3097_v41  ;;  %v13133_v41 = vld [vmem:[#allocation82_spill] sm:$0xff]  ;;  %v3150_v25 = vrot.slane %v3143_v52, 1 }
 0x5bb   : > { %v4257_v34 = vsel %vm4010_vm13, %v4255_v5, %v4256_v57  ;;  %v3125_v38 = vadd.f32 %v10847_v43, %v3110_v51  ;;  %v13134_v5 = vrot.slane %v10869_v22, 2  ;;  %v3551_v43 = vmul.f32 %v10897_v8, %v10312_v16 }
 0x5bc   : > { %v13136_v22 = vrot.slane %v11074_v53, 1  ;;  %v13138_v8 = vrot.slane %v10888_v0, 2  ;;  %v13141_v0 = vld [vmem:[#allocation84_spill] sm:$0xff] }
 0x5bd   : > { %4218 = vrot.lane.b32.xlu0 %v4215_v49, %s12861_s5  ;;  %3359 = vrot.lane.b32.xlu1 %v3356_v36, %s12861_s5  ;;  %v11268_v2 = vpop.permute.xlu1 %3253  ;;  %v3474_v49 = vrot.slane %v3467_v19, 2  ;;  %v13132_v36 = vld [vmem:[#allocation111_spill] sm:$0xff]  ;;  %v3138_v42 = vadd.f32 %v10811_v39, %v3125_v38  ;;  %v3558_v38 = vrot.slane %v3551_v43, 2 }
 0x5be   : > { %v3517_v39 = vsel %vm3436_vm12, %v13138_v8, %v3516_v28  ;;  %v13142_v28 = vrot.slane %v10907_v7, 2  ;;  %v13143_v8 = vld [vmem:[#allocation85_spill] sm:$0xff] }
 0x5bf   : > { %v11266_v23 = vpop.permute.xlu0 %4643 }
 0x5c0   : > { %v3559_v43 = vsel %vm3436_vm12, %v13142_v28, %v3558_v38  ;;  %v3677_v38 = vmul.f32 %v10954_v40, %v10312_v16 }
 0x5c1   : > { %4260 = vrot.lane.b32.xlu0 %v4257_v34, %s7681_s2  ;;  %3401 = vrot.lane.b32.xlu1 %v3398_v45, %s7681_s2  ;;  %v3475_v34 = vsel %vm3436_vm12, %v13134_v5, %v3474_v49  ;;  %v13135_v45 = vld [vmem:[#allocation123_spill] sm:$0xff]  ;;  %v3152_v49 = vsel %vm3149_vm14, %v3150_v25, %v13136_v22 }
 0x5c2   : > { %v11283_v9 = vpop.permute.xlu1 %3295  ;;  %v3160_v19 = vmul.f32 %v13135_v45, %v9620_v26  ;;  %v3157_v52 = vadd.f32 %v3152_v49, %v3138_v42  ;;  %v3635_v42 = vmul.f32 %v10935_v29, %v10312_v16 }
 0x5c3   : > { %v11281_v55 = vpop.permute.xlu0 %4685 }
 0x5c5   : > { %4336 = vrot.lane.b32.xlu0 %v13131_v18, %s12857_s14  ;;  %4400 = vrot.lane.b32.xlu1 %v13132_v36, %s12910_s24  ;;  %v3593_v36 = vmul.f32 %v10916_v10, %v10312_v16 }
 0x5c7   : > { %v11294_v4 = vpop.permute.xlu0 %4727  ;;  %v11296_v15 = vpop.permute.xlu1 %3337  ;;  %v3600_v10 = vrot.slane %v3593_v36, 2 }
 0x5c9   : > { %4378 = vrot.lane.b32.xlu0 %v13133_v41, %s12910_s24  ;;  %3478 = vrot.lane.b32.xlu1 %v3475_v34, %s12857_s14  ;;  %v3166_v41 = vrot.slane %v3160_v19, 1  ;;  %v13139_v34 = vld [vmem:[#allocation135_spill] sm:$0xff] }
 0x5ca   : > { %v13140_v25 = vrot.slane %v13139_v34, 1 }
 0x5cb   : > { %v11309_v51 = vpop.permute.xlu0 %4769  ;;  %v11311_v18 = vpop.permute.xlu1 %3379 }
 0x5cc   : > { %v3168_v45 = vsel %vm3149_vm14, %v3166_v41, %v13140_v25  ;;  %v3642_v41 = vrot.slane %v3635_v42, 2  ;;  %v13145_v25 = vld [vmem:[#allocation86_spill] sm:$0xff]  ;;  %v13148_v42 = vrot.slane %v10964_v1, 2  ;;  %v3796_v1 = vmul.f32 %v10992_v31, %v10312_v16 }
 0x5cd   : > { %4420 = vrot.lane.b32.xlu0 %v13137_v32, %s12852_s18  ;;  %3520 = vrot.lane.b32.xlu1 %v3517_v39, %s12910_s24  ;;  %v3173_v19 = vadd.f32 %v3168_v45, %v3157_v52  ;;  %v13144_v39 = vrot.slane %v10926_v48, 2  ;;  %v13146_v45 = vrot.slane %v10945_v37, 2  ;;  %v3754_v37 = vmul.f32 %v10973_v12, %v10312_v16 }
 0x5ce   : > { %v11379_v12 = vstv %s6972_s3  ;;  %v13152_v31 = vrot.slane %v10981_v30, 3  ;;  %s7683_s3 = smov [#allocation8]  }
 0x5cf   : > { %v11324_v5 = vpop.permute.xlu0 %4811  ;;  %v11326_v53 = vpop.permute.xlu1 %3421  ;;  %v3601_v7 = vsel %vm3436_vm12, %v13144_v39, %v3600_v10  ;;  %v3643_v48 = vsel %vm3436_vm12, %v13146_v45, %v3642_v41  ;;  %v13147_v10 = vld [vmem:[#allocation89_spill] sm:$0xff]  ;;  %v3430_v45 = vmul.f32 %v11379_v12, %v13070_v14 }
 0x5d0   : > { %v13149_v39 = vld [vmem:[#allocation95_spill] sm:$0xff] }
 0x5d1   : > { %4462 = vrot.lane.b32.xlu0 %v13141_v0, %s12858_s25  ;;  %3562 = vrot.lane.b32.xlu1 %v3559_v43, %s12852_s18  ;;  %v3684_v0 = vrot.slane %v3677_v38, 2  ;;  %v13150_v38 = vld [vmem:[#allocation132_spill] sm:$0xff] }
 0x5d3   : > { %v3190_v22 = vpop.permute.xlu0 %3189  ;;  %v11339_v32 = vpop.permute.xlu1 %3498 }
 0x5d4   : > { %v3195_v49 = vadd.f32 %v3190_v22, %v3173_v19  ;;  %v3685_v19 = vsel %vm3436_vm12, %v13148_v42, %v3684_v0  ;;  %v13153_v0 = vld [vmem:[#allocation145_spill] sm:$0xff] }
 0x5d5   : > { %4504 = vrot.lane.b32.xlu0 %v13143_v8, %s12861_s5  ;;  %3604 = vrot.lane.b32.xlu1 %v3601_v7, %s12858_s25  ;;  %v3761_v7 = vrot.slane %v3754_v37, 3  ;;  %v13154_v42 = vld [vmem:[#allocation125_spill] sm:$0xff] }
 0x5d6   : > { %v3215_v29 = vadd.f32 %v11112_v11, %v3195_v49 }
 0x5d7   : > { %v3232_v36 = vpop.permute.xlu0 %3231  ;;  %v11350_v34 = vpop.permute.xlu1 %3540 }
 0x5d8   : > { %v3237_v52 = vadd.f32 %v3232_v36, %v3215_v29  ;;  %v11383_v29 = vmul.f32 %v11379_v12, %v13068_v21 }
 0x5d9   : > { %4546 = vrot.lane.b32.xlu0 %v13145_v25, %s7681_s2  ;;  %3646 = vrot.lane.b32.xlu1 %v3643_v48, %s12861_s5  ;;  %v13151_v25 = vld [vmem:[#allocation96_spill] sm:$0xff]  ;;  %v3803_v48 = vrot.slane %v3796_v1, 3  ;;  %v13158_v1 = vld [vmem:[#allocation148_spill] sm:$0xff] }
 0x5da   : > { %v3257_v28 = vadd.f32 %v11138_v44, %v3237_v52 }
 0x5db   : > { %v3274_v40 = vpop.permute.xlu0 %3273  ;;  %v11359_v43 = vpop.permute.xlu1 %3582 }
 0x5dc   : > { %v3279_v11 = vadd.f32 %v3274_v40, %v3257_v28  ;;  %v3838_v28 = vmul.f32 %v13153_v0, %v10312_v16 }
 0x5dd   : > { %4623 = vrot.lane.b32.xlu0 %v13147_v10, %s12857_s14  ;;  %3688 = vrot.lane.b32.xlu1 %v3685_v19, %s7681_s2  ;;  %v3447_v19 = vmul.f32 %v13154_v42, %v9620_v26 }
 0x5de   : > { %v3299_v22 = vadd.f32 %v11160_v50, %v3279_v11  ;;  %v3438_v11 = vrot.slane %v11383_v29, 2 }
 0x5df   : > { %v3316_v44 = vpop.permute.xlu0 %3315  ;;  %v11370_v8 = vpop.permute.xlu1 %3624 }
 0x5e0   : > { %v3321_v49 = vadd.f32 %v3316_v44, %v3299_v22  ;;  %v3437_v22 = vrot.slane %v3430_v45, 2  ;;  %v13155_v44 = vld [vmem:[#allocation98_spill] sm:$0xff]  ;;  %v13159_v45 = vld [vmem:[#allocation99_spill] sm:$0xff] }
 0x5e1   : > { %4665 = vrot.lane.b32.xlu0 %v13149_v39, %s12910_s24  ;;  %4442 = vrot.lane.b32.xlu1 %v13150_v38, %s12852_s18 }
 0x5e2   : > { %v3341_v41 = vadd.f32 %v11184_v17, %v3321_v49  ;;  %v3762_v17 = vsel %vm3723_vm1, %v13152_v31, %v3761_v7  ;;  %v13156_v49 = vld [vmem:[#allocation143_spill] sm:$0xff] }
 0x5e3   : > { %v3358_v50 = vpop.permute.xlu0 %3357  ;;  %v11385_v52 = vpop.permute.xlu1 %3666  ;;  %v13157_v39 = vrot.slane %v13156_v49, 3 }
 0x5e4   : > { %v3363_v36 = vadd.f32 %v3358_v50, %v3341_v41  ;;  %v3880_v41 = vmul.f32 %v13158_v1, %v10312_v16  ;;  %v3439_v50 = vsel %vm3436_vm12, %v3437_v22, %v3438_v11  ;;  %v5503_v22 = vld [vmem:[#allocation2 + $0x198] sm:$0xff]  ;;  %v13164_v1 = vld [vmem:[#allocation101_spill] sm:$0xff] }
 0x5e5   : > { %4707 = vrot.lane.b32.xlu0 %v13151_v25, %s12852_s18  ;;  %3765 = vrot.lane.b32.xlu1 %v3762_v17, %s12857_s14  ;;  %v3804_v7 = vsel %vm3723_vm1, %v13157_v39, %v3803_v48  ;;  %v3453_v25 = vrot.slane %v3447_v19, 2  ;;  %v13160_v48 = vld [vmem:[#allocation146_spill] sm:$0xff] }
 0x5e6   : > { %v3383_v40 = vadd.f32 %v11208_v47, %v3363_v36  ;;  %v3845_v47 = vrot.slane %v3838_v28, 3  ;;  %v13161_v0 = vrot.slane %v13160_v48, 3  ;;  %v3887_v42 = vrot.slane %v3880_v41, 3 }
 0x5e7   : > { %v3400_v10 = vpop.permute.xlu0 %3399  ;;  %v11401_v37 = vpop.permute.xlu1 %3708 }
 0x5e8   : > { %v3405_v30 = vadd.f32 %v3400_v10, %v3383_v40  ;;  %v3846_v28 = vsel %vm3723_vm1, %v13161_v0, %v3845_v47  ;;  %v13165_v47 = vld [vmem:[#allocation149_spill] sm:$0xff] }
 0x5e9   : > { %4749 = vrot.lane.b32.xlu0 %v13155_v44, %s12858_s25  ;;  %3807 = vrot.lane.b32.xlu1 %v3804_v7, %s12910_s24  ;;  %v5504_v44 = vld [vmem:[#allocation2 + $0x1a0] sm:$0xff] }
 0x5ea   : > { %v3425_v38 = vadd.f32 %v11232_v27, %v3405_v30  ;;  %v13162_v27 = vld [vmem:[#allocation64_spill] sm:$0xff]  ;;  %v3922_v30 = vmul.f32 %v11051_v6, %v10312_v16  ;;  %v5520_v41 = vpack.c.bf16 %v5504_v44, %v5503_v22  ;;  %v3964_v6 = vmul.f32 %v11084_v3, %v10312_v16  ;;  %v13171_v44 = vld [vmem:[#allocation110_spill] sm:$0xff] }
 0x5eb   : > { %v11415_v36 = vpop.permute.xlu0 %4853  ;;  %v11417_v17 = vpop.permute.xlu1 %3785  ;;  %v13163_v40 = vrot.slane %v13162_v27, 2  ;;  %v13169_v27 = vrot.slane %v11060_v59, 3  ;;  %v4041_v59 = vmul.f32 %v11107_v60, %v10312_v16 }
 0x5ec   : > { %v3444_v31 = vadd.f32 %v3439_v50, %v3425_v38  ;;  %v13166_v38 = vrot.slane %v13165_v47, 3 }
 0x5ed   : > { %4791 = vrot.lane.b32.xlu0 %v13159_v45, %s12861_s5  ;;  %v3455_v10 = vsel %vm3436_vm12, %v3453_v25, %v13163_v40  ;;  %3849 = vrot.lane.b32.xlu1 %v3846_v28, %s12852_s18  ;;  %v3929_v25 = vrot.slane %v3922_v30, 3 }
 0x5ee   : > { %v3460_v19 = vadd.f32 %v3455_v10, %v3444_v31  ;;  %v3888_v50 = vsel %vm3723_vm1, %v13166_v38, %v3887_v42  ;;  %v13167_v31 = vld [vmem:[#allocation71_spill] sm:$0xff]  ;;  %v3971_v10 = vrot.slane %v3964_v6, 3  ;;  %v4048_v6 = vrot.slane %v4041_v59, 4 }
 0x5ef   : > { %v3477_v49 = vpop.permute.xlu0 %3476  ;;  %v11430_v7 = vpop.permute.xlu1 %3827  ;;  %v3930_v40 = vsel %vm3723_vm1, %v13169_v27, %v3929_v25  ;;  %v13170_v42 = vld [vmem:[#allocation87_spill] sm:$0xff]  ;;  %v13174_v25 = vld [vmem:[#allocation126_spill] sm:$0xff]  ;;  %v4125_v59 = vmul.f32 %v11158_v58, %v10312_v16 }
 0x5f0   : > { %v3482_v39 = vadd.f32 %v3477_v49, %v3460_v19  ;;  %v13172_v49 = vrot.slane %v11094_v61, 3 }
 0x5f1   : > { %4833 = vrot.lane.b32.xlu0 %v13164_v1, %s7681_s2  ;;  %3891 = vrot.lane.b32.xlu1 %v3888_v50, %s12858_s25  ;;  %v13173_v1 = vld [vmem:[#allocation88_spill] sm:$0xff] }
 0x5f2   : > { %v3502_v45 = vadd.f32 %v13167_v31, %v3482_v39  ;;  %v3972_v39 = vsel %vm3723_vm1, %v13172_v49, %v3971_v10  ;;  %v13175_v31 = vld [vmem:[#allocation151_spill] sm:$0xff] }
 0x5f3   : > { %v3519_v48 = vpop.permute.xlu0 %3518  ;;  %v11441_v28 = vpop.permute.xlu1 %3869  ;;  %v4083_v61 = vmul.f32 %v13175_v31, %v10312_v16 }
 0x5f4   : > { %v3524_v0 = vadd.f32 %v3519_v48, %v3502_v45  ;;  %v13176_v45 = vld [vmem:[#allocation112_spill] sm:$0xff] }
 0x5f5   : > { %5855 = vrot.lane.b32.xlu0 %v5520_v41, %s13168_s8  ;;  %3933 = vrot.lane.b32.xlu1 %v3930_v40, %s12861_s5  ;;  %v13177_v48 = vld [vmem:[#allocation72_spill] sm:$0xff]  ;;  %v4090_v49 = vrot.slane %v4083_v61, 4  ;;  %v13184_v61 = vrot.slane %v11146_v46, 4 }
 0x5f6   : > { %v3544_v30 = vadd.f32 %v13170_v42, %v3524_v0  ;;  %v11469_v0 = vstv %s6986_s9  ;;  %v13186_v46 = vld [vmem:[#allocation76_spill] sm:$0xff]  ;;  %s7601_s9 = sshll.u32 %s7683_s3, 4  ;;  %s7602_s9 = int_to_ptr.vmem [resolvable:$false] %s7601_s9 }
 0x5f7   : > { %v3561_v3 = vpop.permute.xlu0 %3560  ;;  %v11449_v22 = vpop.permute.xlu1 %3911  ;;  %v11473_v40 = vmul.f32 %v11469_v0, %v13068_v21  ;;  %v4091_v58 = vsel %vm4010_vm13, %v13184_v61, %v4090_v49  ;;  %v13187_v49 = vrot.slane %v13186_v46, 3  ;;  %v13193_v46 = vld [vmem:[#allocation115_spill] sm:$0xff]  ;;  %p7604_p8 = scmp.lt.s32.totalorder %s12454_s11, %s7602_s9 }
 0x5f8   : > { %v3566_v19 = vadd.f32 %v3561_v3, %v3544_v30  ;;  %v13178_v30 = vld [vmem:[#allocation113_spill] sm:$0xff]  ;;  %v13179_v3 = vld [vmem:[#allocation150_spill] sm:$0xff] }
 0x5f9   : > { %4338 = vrot.lane.b32.xlu0 %v13171_v44, %s12857_s14  ;;  %3975 = vrot.lane.b32.xlu1 %v3972_v39, %s7681_s2  ;;  %v3717_v39 = vmul.f32 %v11469_v0, %v13070_v14 }
 0x5fa   : > { %v3586_v47 = vadd.f32 %v13173_v1, %v3566_v19  ;;  %v13180_v19 = vrot.slane %v13179_v3, 4  ;;  %v13181_v1 = vld [vmem:[#allocation90_spill] sm:$0xff] }
 0x5fb   : > { %v3603_v38 = vpop.permute.xlu0 %3602  ;;  %v11460_v41 = vpop.permute.xlu1 %3953 }
 0x5fc   : > { %v3608_v50 = vadd.f32 %v3603_v38, %v3586_v47  ;;  %v4049_v44 = vsel %vm4010_vm13, %v13180_v19, %v4048_v6  ;;  %v13183_v6 = vld [vmem:[#allocation127_spill] sm:$0xff] }
 0x5fd   : > { %4380 = vrot.lane.b32.xlu0 %v13174_v25, %s12910_s24  ;;  %4484 = vrot.lane.b32.xlu1 %v13176_v45, %s12858_s25  ;;  %v13182_v25 = vld [vmem:[#allocation128_spill] sm:$0xff] }
 0x5fe   : > { %v3628_v60 = vadd.f32 %v13177_v48, %v3608_v50  ;;  %v3725_v50 = vrot.slane %v11473_v40, 3  ;;  %v3734_v31 = vmul.f32 %v13182_v25, %v9620_v26 }
 0x5ff   : > { %v3645_v27 = vpop.permute.xlu0 %3644  ;;  %v11475_v42 = vpop.permute.xlu1 %3995 }
 0x600   : > { %v3650_v10 = vadd.f32 %v3645_v27, %v3628_v60  ;;  %v3724_v60 = vrot.slane %v3717_v39, 3  ;;  %v4132_v27 = vrot.slane %v4125_v59, 4  ;;  %v13188_v59 = vld [vmem:[#allocation114_spill] sm:$0xff] }
 0x601   : > { %4422 = vrot.lane.b32.xlu0 %v13178_v30, %s12852_s18  ;;  %4052 = vrot.lane.b32.xlu1 %v4049_v44, %s12857_s14  ;;  %v13185_v30 = vld [vmem:[#allocation73_spill] sm:$0xff]  ;;  %v3740_v44 = vrot.slane %v3734_v31, 3 }
 0x602   : > { %v3670_v47 = vadd.f32 %v13181_v1, %v3650_v10  ;;  %v4167_v10 = vmul.f32 %v11182_v33, %v10312_v16  ;;  %v3726_v19 = vsel %vm3723_vm1, %v3724_v60, %v3725_v50  ;;  %v13189_v33 = vrot.slane %v11168_v13, 4 }
 0x603   : > { %v3687_v38 = vpop.permute.xlu0 %3686  ;;  %v11491_v48 = vpop.permute.xlu1 %4072  ;;  %v3742_v39 = vsel %vm3723_vm1, %v3740_v44, %v13187_v49  ;;  %v13194_v49 = vrot.slane %v11216_v35, 4  ;;  %v13197_v35 = vld [vmem:[#allocation133_spill] sm:$0xff] }
 0x604   : > { %v3692_v45 = vadd.f32 %v3687_v38, %v3670_v47  ;;  %v4133_v25 = vsel %vm4010_vm13, %v13189_v33, %v4132_v27  ;;  %v4251_v27 = vmul.f32 %v11230_v54, %v10312_v16 }
 0x605   : > { %4464 = vrot.lane.b32.xlu0 %v13183_v6, %s12858_s25  ;;  %4094 = vrot.lane.b32.xlu1 %v4091_v58, %s12910_s24  ;;  %v4209_v6 = vmul.f32 %v11206_v63, %v10312_v16 }
 0x606   : > { %v3712_v3 = vadd.f32 %v13185_v30, %v3692_v45  ;;  %v4174_v45 = vrot.slane %v4167_v10, 4  ;;  %v13190_v30 = vld [vmem:[#allocation61_spill] sm:$0xff]  ;;  %v13192_v10 = vld [vmem:[#allocation91_spill] sm:$0xff] }
 0x607   : > { %v3764_v1 = vpop.permute.xlu0 %3763  ;;  %v11505_v38 = vpop.permute.xlu1 %4114 }
 0x608   : > { %v3731_v47 = vadd.f32 %v3726_v19, %v3712_v3  ;;  %v13191_v3 = vrot.slane %v11192_v56, 4  ;;  %v4216_v19 = vrot.slane %v4209_v6, 4  ;;  %v13196_v6 = vld [vmem:[#allocation62_spill] sm:$0xff] }
 0x609   : > { %4506 = vrot.lane.b32.xlu0 %v13188_v59, %s12861_s5  ;;  %4136 = vrot.lane.b32.xlu1 %v4133_v25, %s12852_s18  ;;  %v13195_v59 = vld [vmem:[#allocation92_spill] sm:$0xff] }
 0x60a   : > { %v3747_v31 = vadd.f32 %v3742_v39, %v3731_v47  ;;  %v4175_v13 = vsel %vm4010_vm13, %v13191_v3, %v4174_v45  ;;  %v4217_v56 = vsel %vm4010_vm13, %v13194_v49, %v4216_v19  ;;  %v4258_v39 = vrot.slane %v4251_v27, 4  ;;  %v13199_v19 = vld [vmem:[#allocation69_spill] sm:$0xff] }
 0x60b   : > { %v3806_v61 = vpop.permute.xlu0 %3805  ;;  %v11518_v60 = vpop.permute.xlu1 %4156 }
 0x60c   : > { %v3769_v58 = vadd.f32 %v3764_v1, %v3747_v31  ;;  %v4259_v31 = vsel %vm4010_vm13, %v4256_v57, %v4258_v39 }
 0x60d   : > { %4548 = vrot.lane.b32.xlu0 %v13190_v30, %s7681_s2  ;;  %4178 = vrot.lane.b32.xlu1 %v4175_v13, %s12858_s25  ;;  %v13198_v13 = vld [vmem:[#allocation116_spill] sm:$0xff] }
 0x60e   : > { %v3789_v63 = vadd.f32 %v13192_v10, %v3769_v58  ;;  %v13200_v10 = vld [vmem:[#allocation63_spill] sm:$0xff] }
 0x60f   : > { %v3848_v44 = vpop.permute.xlu0 %3847  ;;  %v11529_v1 = vpop.permute.xlu1 %4198 }
 0x610   : > { %v3811_v47 = vadd.f32 %v3806_v61, %v3789_v63  ;;  %v11554_v63 = vstv %s7000_s30  ;;  %s7603_s30 = scalar_lea.vmem %s7602_s9, 2048 }
 0x611   : > { %4625 = vrot.lane.b32.xlu0 %v13193_v46, %s12857_s14  ;;  %4220 = vrot.lane.b32.xlu1 %v4217_v56, %s12861_s5  ;;  %v11558_v57 = vmul.f32 %v11554_v63, %v13068_v21  ;;  %v13201_v46 = vld [vmem:[#allocation117_spill] sm:$0xff]  ;;  %v4004_v49 = vmul.f32 %v11554_v63, %v13070_v14  ;;  %v13202_v56 = vld [vmem:[#allocation58_spill] sm:$0xff]  ;;  %p7605_p9 = scmp.lt.s32.totalorder %s7603_s30, %s7597_s15 }
 0x612   : > { %v3831_v33 = vadd.f32 %v13195_v59, %v3811_v47  ;;  %v13203_v59 = vld [vmem:[#allocation74_spill] sm:$0xff] }
 0x613   : > { %v3890_v54 = vpop.permute.xlu0 %3889  ;;  %v11538_v45 = vpop.permute.xlu1 %4240  ;;  %p7606_p10 = por %p7605_p9, %p7604_p8 }
 0x614   : > { %v3853_v25 = vadd.f32 %v3848_v44, %v3831_v33  ;;  %v4012_v33 = vrot.slane %v11558_v57, 4 }
 0x615   : > { %4667 = vrot.lane.b32.xlu0 %v13196_v6, %s12910_s24  ;;  %4262 = vrot.lane.b32.xlu1 %v4259_v31, %s7681_s2  ;;  %p7607_p1 = pnand %p7606_p10, %p7600_p7 }
 0x616   : > { %v3873_v61 = vadd.f32 %v13197_v35, %v3853_v25 }
 0x617   : > { %v3932_v58 = vpop.permute.xlu0 %3931  ;;  %v11547_v3 = vpop.permute.xlu1 %4282 }
 0x618   : > { %v3895_v30 = vadd.f32 %v3890_v54, %v3873_v61  ;;  %v13204_v54 = vld [vmem:[#allocation129_spill] sm:$0xff]  ;;  %v4011_v61 = vrot.slane %v4004_v49, 4 }
 0x619   : > { %4709 = vrot.lane.b32.xlu0 %v13198_v13, %s12852_s18  ;;  %4526 = vrot.lane.b32.xlu1 %v13200_v10, %s12861_s5  ;;  %v4021_v25 = vmul.f32 %v13204_v54, %v9620_v26  ;;  %v13206_v13 = vld [vmem:[#allocation75_spill] sm:$0xff]  ;;  %v13208_v10 = vld [vmem:[#allocation118_spill] sm:$0xff] }
 0x61a   : > { %v3915_v27 = vadd.f32 %v13199_v19, %v3895_v30  ;;  %v13207_v19 = vld [vmem:[#allocation134_spill] sm:$0xff] }
 0x61b   : > { %v3974_v20 = vpop.permute.xlu0 %3973  ;;  %v11560_v47 = vpop.permute.xlu1 %4358 }
 0x61c   : > { %v3937_v44 = vadd.f32 %v3932_v58, %v3915_v27  ;;  %v13205_v58 = vld [vmem:[#allocation140_spill] sm:$0xff] }
 0x61d   : > { %4751 = vrot.lane.b32.xlu0 %v13201_v46, %s12858_s25  ;;  %4568 = vrot.lane.b32.xlu1 %v13203_v59, %s7681_s2  ;;  %v4027_v46 = vrot.slane %v4021_v25, 4  ;;  %v13209_v59 = vld [vmem:[#allocation78_spill] sm:$0xff] }
 0x61e   : > { %v3957_v39 = vadd.f32 %v13202_v56, %v3937_v44  ;;  %v4013_v44 = vsel %vm4010_vm13, %v4011_v61, %v4012_v33  ;;  %v13210_v54 = vrot.slane %v13209_v59, 4  ;;  %v13214_v59 = vld [vmem:[#allocation66_spill] sm:$0xff] }
 0x61f   : > { %v4051_v6 = vpop.permute.xlu0 %4050  ;;  %v3192_v35 = vpop.permute.xlu1 %3191 }
 0x620   : > { %v3979_v31 = vadd.f32 %v3974_v20, %v3957_v39  ;;  %v3196_v30 = vadd.f32 %v3192_v35, %v13205_v58  ;;  %v4029_v35 = vsel %vm4010_vm13, %v4027_v46, %v13210_v54 }
 0x621   : > { %4793 = vrot.lane.b32.xlu0 %v13206_v13, %s12861_s5  ;;  %4645 = vrot.lane.b32.xlu1 %v13208_v10, %s12857_s14  ;;  %s7014_s14 = sld [smem:[#allocation7 + $0x46]] }
 0x622   : > { %v3999_v27 = vadd.f32 %v13207_v19, %v3979_v31  ;;  %v3216_v56 = vadd.f32 %v11254_v62, %v3196_v30  ;;  %v13211_v31 = vld [vmem:[#allocation65_spill] sm:$0xff] }
 0x623   : > { %v4093_v20 = vpop.permute.xlu0 %4092  ;;  %v3234_v49 = vpop.permute.xlu1 %3233  ;;  %v13212_v19 = vld [vmem:[#allocation77_spill] sm:$0xff] }
 0x624   : > { %v4018_v39 = vadd.f32 %v4013_v44, %v3999_v27  ;;  %v3238_v58 = vadd.f32 %v3234_v49, %v3216_v56  ;;  %v13213_v27 = vld [vmem:[#allocation142_spill] sm:$0xff] }
 0x625   : > { %4835 = vrot.lane.b32.xlu0 %v13211_v31, %s7681_s2  ;;  %4687 = vrot.lane.b32.xlu1 %v13212_v19, %s12910_s24  ;;  %v13216_v19 = vld [vmem:[#allocation67_spill] sm:$0xff]  ;;  %s13242_s24 = sld [smem:[#allocation161_spill]] }
 0x626   : > { %v4034_v13 = vadd.f32 %v4029_v35, %v4018_v39  ;;  %v3258_v61 = vadd.f32 %v11268_v2, %v3238_v58  ;;  %v13215_v35 = vld [vmem:[#allocation144_spill] sm:$0xff] }
 0x627   : > { %v4135_v25 = vpop.permute.xlu0 %4134  ;;  %v3276_v62 = vpop.permute.xlu1 %3275 }
 0x628   : > { %v4056_v10 = vadd.f32 %v4051_v6, %v4034_v13  ;;  %v3280_v30 = vadd.f32 %v3276_v62, %v3258_v61  ;;  %v3432_v61 = vmul.f32 %v11379_v12, %v10312_v16  ;;  %v13217_v62 = vld [vmem:[#allocation147_spill] sm:$0xff]  ;;  %v11607_v12 = vstv %s7014_s14 }
 0x629   : > { %4729 = vrot.lane.b32.xlu1 %v13214_v59, %s12852_s18  ;;  %v5234_v59 = vld [vmem:[#allocation2 + $0x9] sm:$0xff]  ;;  %s13222_s18 = smov 32  }
 0x62a   : > { %v4076_v44 = vadd.f32 %v13213_v27, %v4056_v10  ;;  %v3300_v56 = vadd.f32 %v11283_v9, %v3280_v30 }
 0x62b   : > { %v4177_v46 = vpop.permute.xlu0 %4176  ;;  %v3318_v54 = vpop.permute.xlu1 %3317 }
 0x62c   : > { %v4098_v49 = vadd.f32 %v4093_v20, %v4076_v44  ;;  %v3322_v39 = vadd.f32 %v3318_v54, %v3300_v56  ;;  %v13218_v20 = vld [vmem:[#allocation119_spill] sm:$0xff]  ;;  %v5233_v44 = vld [vmem:[#allocation2 + $0x1] sm:$0xff]  ;;  %v3440_v54 = vrot.slane %v3432_v61, 2 }
 0x62d   : > { %4771 = vrot.lane.b32.xlu1 %v13216_v19, %s12858_s25 }
 0x62e   : > { %v4118_v31 = vadd.f32 %v13215_v35, %v4098_v49  ;;  %v3342_v6 = vadd.f32 %v11296_v15, %v3322_v39  ;;  %v13220_v35 = vld [vmem:[#allocation68_spill] sm:$0xff] }
 0x62f   : > { %v4219_v2 = vpop.permute.xlu0 %4218  ;;  %v3360_v13 = vpop.permute.xlu1 %3359 }
 0x630   : > { %v4140_v58 = vadd.f32 %v4135_v25, %v4118_v31  ;;  %v3364_v10 = vadd.f32 %v3360_v13, %v3342_v6  ;;  %v13219_v25 = vld [vmem:[#allocation136_spill] sm:$0xff]  ;;  %v5265_v31 = vpack.c.bf16 %v5234_v59, %v5233_v44  ;;  %v11612_v6 = vmul.f32 %v11607_v12, %v13068_v21  ;;  %v13223_v59 = vld [vmem:[#allocation130_spill] sm:$0xff] }
 0x631   : > { %4813 = vrot.lane.b32.xlu1 %v13218_v20, %s12861_s5  ;;  %v13221_v20 = vld [vmem:[#allocation137_spill] sm:$0xff] }
 0x632   : > { %v4160_v9 = vadd.f32 %v13217_v62, %v4140_v58  ;;  %v3384_v27 = vadd.f32 %v11311_v18, %v3364_v10  ;;  %v5281_v58 = vld [vmem:[#allocation2 + $0x2] sm:$0xff]  ;;  %v3441_v10 = vsel %vm3436_vm12, %v3438_v11, %v3440_v54  ;;  %v4291_v62 = vmul.f32 %v11607_v12, %v13070_v14 }
 0x633   : > { %v4261_v30 = vpop.permute.xlu0 %4260  ;;  %v3402_v49 = vpop.permute.xlu1 %3401  ;;  %v4298_v44 = vrot.slane %v11612_v6, 5  ;;  %v13241_v6 = vld [vmem:[#allocation22_spill] sm:$0xff] }
 0x634   : > { %v4182_v56 = vadd.f32 %v4177_v46, %v4160_v9  ;;  %v3406_v15 = vadd.f32 %v3402_v49, %v3384_v27  ;;  %v5282_v46 = vld [vmem:[#allocation2 + $0xa] sm:$0xff]  ;;  %v13224_v49 = vld [vmem:[#allocation79_spill] sm:$0xff]  ;;  %v4297_v11 = vrot.slane %v4291_v62, 5 }
 0x635   : > { %4855 = vrot.lane.b32.xlu1 %v13220_v35, %s7681_s2  ;;  %v5313_v27 = vpack.c.bf16 %v5282_v46, %v5281_v58  ;;  %s7028_s2 = sld [smem:[#allocation7 + $0x54]] }
 0x636   : > { %v4202_v39 = vadd.f32 %v13219_v25, %v4182_v56  ;;  %v3426_v19 = vadd.f32 %v11326_v53, %v3406_v15 }
 0x637   : > { %v4337_v18 = vpop.permute.xlu0 %4336  ;;  %v11614_v61 = vpop.permute.xlu1 %4400 }
 0x638   : > { %v4224_v13 = vadd.f32 %v4219_v2, %v4202_v39  ;;  %v3445_v9 = vadd.f32 %v3441_v10, %v3426_v19  ;;  %v4307_v2 = vmul.f32 %v13223_v59, %v9620_v26  ;;  %v13225_v39 = vld [vmem:[#allocation139_spill] sm:$0xff] }
 0x639   : > { %5633 = vrot.lane.b32.xlu1 %v5265_v31, %s13222_s18  ;;  %v4299_v31 = vsel %vm2728_vm5, %v4297_v11, %v4298_v44 }
 0x63a   : > { %v4244_v53 = vadd.f32 %v13221_v20, %v4224_v13  ;;  %v3461_v15 = vadd.f32 %v13224_v49, %v3445_v9  ;;  %v4313_v19 = vrot.slane %v4307_v2, 5  ;;  %v13226_v20 = vld [vmem:[#allocation120_spill] sm:$0xff] }
 0x63b   : > { %v4379_v56 = vpop.permute.xlu0 %4378  ;;  %v3479_v25 = vpop.permute.xlu1 %3478  ;;  %v13227_v9 = vrot.slane %v13226_v20, 5 }
 0x63c   : > { %v4266_v29 = vadd.f32 %v4261_v30, %v4244_v53  ;;  %v3483_v54 = vadd.f32 %v3479_v25, %v3461_v15  ;;  %v13228_v25 = vld [vmem:[#allocation138_spill] sm:$0xff] }
 0x63d   : > { %5681 = vrot.lane.b32.xlu1 %v5313_v27, %s13168_s8  ;;  %v4315_v30 = vsel %vm2728_vm5, %v4313_v19, %v13227_v9 }
 0x63e   : > { %v4286_v35 = vadd.f32 %v13225_v39, %v4266_v29  ;;  %v3503_v46 = vadd.f32 %v11339_v32, %v3483_v54 }
 0x63f   : > { %v4421_v58 = vpop.permute.xlu0 %4420  ;;  %v3521_v10 = vpop.permute.xlu1 %3520 }
 0x640   : > { %v4304_v13 = vadd.f32 %v4299_v31, %v4286_v35  ;;  %v3525_v62 = vadd.f32 %v3521_v10, %v3503_v46  ;;  %v13229_v31 = vld [vmem:[#allocation141_spill] sm:$0xff]  ;;  %v13230_v10 = vld [vmem:[#allocation152_spill] sm:$0xff] }
 0x642   : > { %v4320_v53 = vadd.f32 %v4315_v30, %v4304_v13  ;;  %v3545_v49 = vadd.f32 %v11350_v34, %v3525_v62  ;;  %v3719_v34 = vmul.f32 %v11469_v0, %v10312_v16 }
 0x643   : > { %v4463_v59 = vpop.permute.xlu0 %4462  ;;  %v3563_v15 = vpop.permute.xlu1 %3562 }
 0x644   : > { %v4342_v27 = vadd.f32 %v4337_v18, %v4320_v53  ;;  %v3567_v29 = vadd.f32 %v3563_v15, %v3545_v49  ;;  %v3727_v53 = vrot.slane %v3719_v34, 3 }
 0x646   : > { %v4362_v11 = vadd.f32 %v13228_v25, %v4342_v27  ;;  %v3587_v2 = vadd.f32 %v11359_v43, %v3567_v29  ;;  %v13231_v27 = vld [vmem:[#allocation153_spill] sm:$0xff]  ;;  %v11646_v29 = vstv %s7028_s2 }
 0x647   : > { %v4505_v32 = vpop.permute.xlu0 %4504  ;;  %v3605_v54 = vpop.permute.xlu1 %3604 }
 0x648   : > { %v4384_v39 = vadd.f32 %v4379_v56, %v4362_v11  ;;  %v3609_v35 = vadd.f32 %v3605_v54, %v3587_v2 }
 0x64a   : > { %v4404_v20 = vadd.f32 %v13229_v31, %v4384_v39  ;;  %v3629_v19 = vadd.f32 %v11370_v8, %v3609_v35  ;;  %v11650_v8 = vmul.f32 %v11646_v29, %v13068_v21  ;;  %v13232_v39 = vld [vmem:[#allocation154_spill] sm:$0xff]  ;;  %v13233_v21 = vld [vmem:[#allocation131_spill] sm:$0xff] }
 0x64b   : > { %v3647_v13 = vpop.permute.xlu1 %3646  ;;  %v4547_v30 = vpop.permute.xlu0 %4546  ;;  %v4594_v31 = vmul.f32 %v13233_v21, %v9620_v26 }
 0x64c   : > { %v4426_v46 = vadd.f32 %v4421_v58, %v4404_v20  ;;  %v3651_v18 = vadd.f32 %v3647_v13, %v3629_v19  ;;  %v4585_v35 = vrot.slane %v11650_v8, 6 }
 0x64d   : > { %v4600_v34 = vrot.slane %v4594_v31, 6 }
 0x64e   : > { %v4446_v9 = vadd.f32 %v13230_v10, %v4426_v46  ;;  %v3671_v43 = vadd.f32 %v11385_v52, %v3651_v18  ;;  %v3728_v52 = vsel %vm3723_vm1, %v3725_v50, %v3727_v53 }
 0x64f   : > { %v3689_v62 = vpop.permute.xlu1 %3688  ;;  %v4624_v25 = vpop.permute.xlu0 %4623 }
 0x650   : > { %v4468_v56 = vadd.f32 %v4463_v59, %v4446_v9  ;;  %v3693_v49 = vadd.f32 %v3689_v62, %v3671_v43  ;;  %v4577_v59 = vmul.f32 %v11646_v29, %v13070_v14  ;;  %v13235_v43 = vld [vmem:[#allocation121_spill] sm:$0xff] }
 0x651   : > { %v13236_v26 = vrot.slane %v13235_v43, 6 }
 0x652   : > { %v4488_v15 = vadd.f32 %v13231_v27, %v4468_v56  ;;  %v3713_v0 = vadd.f32 %v11401_v37, %v3693_v49  ;;  %v13234_v37 = vld [vmem:[#allocation70_spill] sm:$0xff]  ;;  %v4584_v46 = vrot.slane %v4577_v59, 6 }
 0x653   : > { %v11653_v11 = vpop.permute.xlu1 %4442  ;;  %v4666_v50 = vpop.permute.xlu0 %4665  ;;  %v4602_v56 = vsel %vm4583_vm11, %v4600_v34, %v13236_v26 }
 0x654   : > { %v4510_v58 = vadd.f32 %v4505_v32, %v4488_v15  ;;  %v3732_v2 = vadd.f32 %v3728_v52, %v3713_v0  ;;  %v4586_v14 = vsel %vm4583_vm11, %v4584_v46, %v4585_v35 }
 0x656   : > { %v4530_v54 = vadd.f32 %v13232_v39, %v4510_v58  ;;  %v3748_v32 = vadd.f32 %v13234_v37, %v3732_v2 }
 0x657   : > { %v3766_v19 = vpop.permute.xlu1 %3765 }
 0x658   : > { %v4552_v20 = vadd.f32 %v4547_v30, %v4530_v54  ;;  %v3770_v13 = vadd.f32 %v3766_v19, %v3748_v32 }
 0x65a   : > { %v4572_v40 = vadd.f32 %v11252_v24, %v4552_v20  ;;  %v3790_v18 = vadd.f32 %v11417_v17, %v3770_v13  ;;  %v4708_v24 = vpop.permute.xlu0 %4707 }
 0x65b   : > { %v3808_v9 = vpop.permute.xlu1 %3807 }
 0x65c   : > { %v4591_v10 = vadd.f32 %v4586_v14, %v4572_v40  ;;  %v3812_v30 = vadd.f32 %v3808_v9, %v3790_v18  ;;  %v13237_v14 = vld [vmem:[#allocation122_spill] sm:$0xff] }
 0x65e   : > { %v4607_v62 = vadd.f32 %v4602_v56, %v4591_v10  ;;  %v3832_v53 = vadd.f32 %v11430_v7, %v3812_v30  ;;  %v4750_v39 = vpop.permute.xlu0 %4749  ;;  %v4006_v7 = vmul.f32 %v11554_v63, %v10312_v16 }
 0x65f   : > { %v3850_v27 = vpop.permute.xlu1 %3849 }
 0x660   : > { %v4629_v49 = vadd.f32 %v4624_v25, %v4607_v62  ;;  %v3854_v15 = vadd.f32 %v3850_v27, %v3832_v53  ;;  %v4014_v19 = vrot.slane %v4006_v7, 4 }
 0x662   : > { %v4649_v0 = vadd.f32 %v11266_v23, %v4629_v49  ;;  %v3874_v58 = vadd.f32 %v11441_v28, %v3854_v15  ;;  %v4792_v28 = vpop.permute.xlu0 %4791  ;;  %v4015_v63 = vsel %vm4010_vm13, %v4012_v33, %v4014_v19  ;;  %v4886_v19 = vsub.s32 1, %v13241_v6 }
 0x663   : > { %v3892_v17 = vpop.permute.xlu1 %3891 }
 0x664   : > { %v4671_v52 = vadd.f32 %v4666_v50, %v4649_v0  ;;  %v3896_v59 = vadd.f32 %v3892_v17, %v3874_v58 }
 0x666   : > { %v4691_v2 = vadd.f32 %v11281_v55, %v4671_v52  ;;  %v3916_v54 = vadd.f32 %v11449_v22, %v3896_v59 }
 0x667   : > { %v3934_v31 = vpop.permute.xlu1 %3933 }
 0x668   : > { %v4713_v21 = vadd.f32 %v4708_v24, %v4691_v2  ;;  %v3938_v25 = vadd.f32 %v3934_v31, %v3916_v54 }
 0x66a   : > { %v4733_v37 = vadd.f32 %v11294_v4, %v4713_v21  ;;  %v3958_v23 = vadd.f32 %v11460_v41, %v3938_v25  ;;  %v4834_v4 = vpop.permute.xlu0 %4833  ;;  %v13239_v21 = vld [vmem:[#allocation124_spill] sm:$0xff] }
 0x66b   : > { %v3976_v20 = vpop.permute.xlu1 %3975 }
 0x66c   : > { %v4755_v32 = vadd.f32 %v4750_v39, %v4733_v37  ;;  %v3980_v46 = vadd.f32 %v3976_v20, %v3958_v23  ;;  %v13240_v20 = vld [vmem:[#allocation23_spill] sm:$0xff] }
 0x66e   : > { %v4775_v55 = vadd.f32 %v11309_v51, %v4755_v32  ;;  %v4000_v13 = vadd.f32 %v11475_v42, %v3980_v46  ;;  %v11693_v26 = vpop.permute.xlu0 %5855 }
 0x66f   : > { %v11684_v40 = vpop.permute.xlu1 %4484  ;;  %13238 = vst [vmem:[#allocation81_spill] sm:$0xff] %v11693_v26 }
 0x670   : > { %v4797_v22 = vadd.f32 %v4792_v28, %v4775_v55  ;;  %v4019_v50 = vadd.f32 %v4015_v63, %v4000_v13  ;;  %v4897_v13 = vsub.s32 2, %v13241_v6 }
 0x672   : > { %v4817_v41 = vadd.f32 %v11324_v5, %v4797_v22  ;;  %v4035_v34 = vadd.f32 %v13237_v14, %v4019_v50  ;;  %v4339_v5 = vpop.permute.xlu0 %4338  ;;  %v11729_v50 = vld [vmem:[%s13242_s24 + $0x80] sm:$0xff]   ;;  %v4908_v14 = vsub.s32 3, %v13241_v6 }
 0x673   : > { %v4053_v10 = vpop.permute.xlu1 %4052 }
 0x674   : > { %v4839_v18 = vadd.f32 %v4834_v4, %v4817_v41  ;;  %v4057_v9 = vadd.f32 %v4053_v10, %v4035_v34  ;;  %v4579_v4 = vmul.f32 %v11646_v29, %v10312_v16  ;;  %v4919_v29 = vsub.s32 4, %v13241_v6 }
 0x676   : > { %v4859_v51 = vadd.f32 %v11415_v36, %v4839_v18  ;;  %v4077_v42 = vadd.f32 %v11491_v48, %v4057_v9  ;;  %v4381_v36 = vpop.permute.xlu0 %4380  ;;  %v4293_v48 = vmul.f32 %v11607_v12, %v10312_v16  ;;  %v4587_v10 = vrot.slane %v4579_v4, 6  ;;  %v7523_v4 = vld [vmem:[%s13242_s24 + $0x28] sm:$0xff]  }
 0x677   : > { %v4095_v56 = vpop.permute.xlu1 %4094 }
 0x678   : > { %v7042_v43 = vmul.f32 -1.442695, %v4859_v51  ;;  %v4099_v57 = vadd.f32 %v4095_v56, %v4077_v42  ;;  %v4588_v56 = vsel %vm4583_vm11, %v4585_v35, %v4587_v10 }
 0x67a   : > { %7538 = vpow2.f32 %v7042_v43  ;;  %v4119_v33 = vadd.f32 %v11505_v38, %v4099_v57  ;;  %v4300_v38 = vrot.slane %v4293_v48, 5  ;;  %v4423_v39 = vpop.permute.xlu0 %4422  ;;  %v4952_v48 = vsub.s32 7, %v13241_v6 }
 0x67b   : > { %v4137_v30 = vpop.permute.xlu1 %4136 }
 0x67c   : > { %v4141_v62 = vadd.f32 %v4137_v30, %v4119_v33  ;;  %v4930_v33 = vsub.s32 5, %v13241_v6 }
 0x67e   : > { %v4161_v53 = vadd.f32 %v11518_v60, %v4141_v62  ;;  %v4465_v12 = vpop.permute.xlu0 %4464 }
 0x67f   : > { %v4179_v49 = vpop.permute.xlu1 %4178 }
 0x680   : > { %v4183_v24 = vadd.f32 %v4179_v49, %v4161_v53 }
 0x682   : > { %v4203_v27 = vadd.f32 %v11529_v1, %v4183_v24  ;;  %v4301_v1 = vsel %vm2728_vm5, %v4298_v44, %v4300_v38  ;;  %v4507_v37 = vpop.permute.xlu0 %4506  ;;  %v4941_v24 = vsub.s32 6, %v13241_v6  ;;  %v7521_v6 = vld [vmem:[%s13242_s24 + $0x30] sm:$0xff]  }
 0x683   : > { %v4221_v15 = vpop.permute.xlu1 %4220 }
 0x684   : > { %v4225_v0 = vadd.f32 %v4221_v15, %v4203_v27 }
 0x686   : > { %v4245_v52 = vadd.f32 %v11538_v45, %v4225_v0  ;;  %v4549_v55 = vpop.permute.xlu0 %4548 }
 0x687   : > { %v7539_v58 = vpop.eup %7538  ;;  %v4263_v59 = vpop.permute.xlu1 %4262 }
 0x688   : > { %v4867_v17 = vadd.f32 1.0, %v7539_v58  ;;  %v4267_v2 = vadd.f32 %v4263_v59, %v4245_v52 }
 0x68a   : > { %7540 = vrcp.f32 %v4867_v17  ;;  %v4287_v60 = vadd.f32 %v11547_v3, %v4267_v2 }
 0x68b   : > { %v4527_v28 = vpop.permute.xlu1 %4526 }
 0x68c   : > { %v4305_v54 = vadd.f32 %v4301_v1, %v4287_v60 }
 0x68e   : > { %v4321_v31 = vadd.f32 %v13239_v21, %v4305_v54 }
 0x68f   : > { %v4569_v63 = vpop.permute.xlu1 %4568 }
 0x690   : > { %v4343_v7 = vadd.f32 %v4339_v5, %v4321_v31  ;;  %v13243_v5 = vld [vmem:[#allocation80_spill] sm:$0xff] }
 0x692   : > { %v4363_v25 = vadd.f32 %v11560_v47, %v4343_v7  ;;  %v11717_v47 = vld [vmem:[%s13242_s24 + $0x88] sm:$0xff]  }
 0x693   : > { %7384 = vmatprep.subr.bf16.mxu0 %v11717_v47  ;;  %v4646_v9 = vpop.permute.xlu1 %4645 }
 0x694   : > { %v4385_v45 = vadd.f32 %v4381_v36, %v4363_v25  ;;  %7385 = vmatpush3.bf16.msra.mxu0 %v11717_v47 }
 0x695   : > { %7386 = vmatprep.subr.bf16.mxu0 %v11729_v50 }
 0x696   : > { %v4405_v32 = vadd.f32 %v11614_v61, %v4385_v45 }
 0x697   : > { %v11707_v23 = vpop.eup %7540  ;;  %v4688_v62 = vpop.permute.xlu1 %4687 }
 0x698   : > { %v4876_v3 = vrot.slane %v11707_v23, %v13240_v20  ;;  %v4427_v44 = vadd.f32 %v4423_v39, %v4405_v32  ;;  %v4887_v61 = vrot.slane %v11707_v23, %v4886_v19  ;;  %v4898_v41 = vrot.slane %v11707_v23, %v4897_v13  ;;  %7387 = vmatpush3.bf16.msra.mxu0 %v11729_v50 }
 0x699   : > { %v4909_v16 = vrot.slane %v11707_v23, %v4908_v14  ;;  %v4920_v57 = vrot.slane %v11707_v23, %v4919_v29  ;;  %v4931_v49 = vrot.slane %v11707_v23, %v4930_v33  ;;  %v4942_v15 = vrot.slane %v11707_v23, %v4941_v24 }
 0x69a   : > { %4878 = vbcast.lane.b32.xlu0 %v4876_v3, 256  ;;  %4882 = vbcast.lane.b32.xlu1 %v4876_v3, 264  ;;  %v4447_v46 = vadd.f32 %v11653_v11, %v4427_v44  ;;  %v4953_v17 = vrot.slane %v11707_v23, %v4952_v48 }
 0x69b   : > { %v4730_v36 = vpop.permute.xlu1 %4729 }
 0x69c   : > { %v4469_v22 = vadd.f32 %v4465_v12, %v4447_v46 }
 0x69e   : > { %4889 = vbcast.lane.b32.xlu0 %v4887_v61, 256  ;;  %4893 = vbcast.lane.b32.xlu1 %v4887_v61, 264  ;;  %v4489_v11 = vadd.f32 %v11684_v40, %v4469_v22  ;;  %v4626_v40 = vpop.permute.xlu0 %4625  ;;  %v7519_v61 = vld [vmem:[%s13242_s24 + $0x38] sm:$0xff]   ;;  %v7520_v22 = vld [vmem:[%s13242_s24 + $0x70] sm:$0xff]  }
 0x69f   : > { %v4772_v59 = vpop.permute.xlu1 %4771 }
 0x6a0   : > { %v4511_v34 = vadd.f32 %v4507_v37, %v4489_v11  ;;  %v7522_v11 = vld [vmem:[%s13242_s24 + $0x68] sm:$0xff]  }
 0x6a2   : > { %4900 = vbcast.lane.b32.xlu0 %v4898_v41, 256  ;;  %4904 = vbcast.lane.b32.xlu1 %v4898_v41, 264  ;;  %v4531_v18 = vadd.f32 %v4527_v28, %v4511_v34  ;;  %v4668_v43 = vpop.permute.xlu0 %4667  ;;  %v7524_v34 = vld [vmem:[%s13242_s24 + $0x60] sm:$0xff]  }
 0x6a3   : > { %v4814_v54 = vpop.permute.xlu1 %4813 }
 0x6a4   : > { %v4553_v51 = vadd.f32 %v4549_v55, %v4531_v18  ;;  %v7526_v18 = vld [vmem:[%s13242_s24 + $0x58] sm:$0xff]  }
 0x6a6   : > { %4911 = vbcast.lane.b32.xlu0 %v4909_v16, 256  ;;  %4915 = vbcast.lane.b32.xlu1 %v4909_v16, 264  ;;  %v4573_v42 = vadd.f32 %v4569_v63, %v4553_v51  ;;  %v4710_v8 = vpop.permute.xlu0 %4709  ;;  %v7528_v16 = vld [vmem:[%s13242_s24 + $0x50] sm:$0xff]  }
 0x6a7   : > { %v4856_v25 = vpop.permute.xlu1 %4855 }
 0x6a8   : > { %v4592_v30 = vadd.f32 %v4588_v56, %v4573_v42  ;;  %v7529_v42 = vld [vmem:[%s13242_s24 + $0x10] sm:$0xff]  }
 0x6aa   : > { %4922 = vbcast.lane.b32.xlu0 %v4920_v57, 256  ;;  %4926 = vbcast.lane.b32.xlu1 %v4920_v57, 264  ;;  %v4608_v53 = vadd.f32 %v13243_v5, %v4592_v30  ;;  %v4752_v52 = vpop.permute.xlu0 %4751  ;;  %v13245_v57 = vld [vmem:[#allocation24_spill] sm:$0xff]  ;;  %v7530_v30 = vld [vmem:[%s13242_s24 + $0x48] sm:$0xff]  }
 0x6ac   : > { %v4630_v27 = vadd.f32 %v4626_v40, %v4608_v53  ;;  %v7525_v40 = vld [vmem:[%s13242_s24 + $0x20] sm:$0xff]   ;;  %v7531_v53 = vld [vmem:[%s13242_s24 + $0x8] sm:$0xff]  }
 0x6ae   : > { %4933 = vbcast.lane.b32.xlu0 %v4931_v49, 256  ;;  %4937 = vbcast.lane.b32.xlu1 %v4931_v49, 264  ;;  %v4650_v35 = vadd.f32 %v4646_v9, %v4630_v27  ;;  %v4794_v60 = vpop.permute.xlu0 %4793  ;;  %v7527_v9 = vld [vmem:[%s13242_s24 + $0x18] sm:$0xff]   ;;  %v13247_v27 = vld [vmem:[#allocation26_spill] sm:$0xff] }
 0x6af   : > { %v13246_v49 = vld [vmem:[#allocation27_spill] sm:$0xff] }
 0x6b0   : > { %v4672_v0 = vadd.f32 %v4668_v43, %v4650_v35  ;;  %v13244_v43 = vld [vmem:[#allocation25_spill] sm:$0xff]  ;;  %v7532_v35 = vld [vmem:[%s13242_s24 + $0x40] sm:$0xff]  }
 0x6b2   : > { %4944 = vbcast.lane.b32.xlu0 %v4942_v15, 256  ;;  %4948 = vbcast.lane.b32.xlu1 %v4942_v15, 264  ;;  %v4692_v58 = vadd.f32 %v4688_v62, %v4672_v0  ;;  %v4836_v12 = vpop.permute.xlu0 %4835  ;;  %v13248_v0 = vld [vmem:[#allocation29_spill] sm:$0xff] }
 0x6b4   : > { %v4714_v38 = vadd.f32 %v4710_v8, %v4692_v58 }
 0x6b6   : > { %4955 = vbcast.lane.b32.xlu0 %v4953_v17, 256  ;;  %4959 = vbcast.lane.b32.xlu1 %v4953_v17, 264  ;;  %v4734_v2 = vadd.f32 %v4730_v36, %v4714_v38 }
 0x6b8   : > { %v4756_v39 = vadd.f32 %v4752_v52, %v4734_v2  ;;  %v13249_v52 = vld [vmem:[#allocation28_spill] sm:$0xff] }
 0x6ba   : > { %v4776_v1 = vadd.f32 %v4772_v59, %v4756_v39 }
 0x6bc   : > { %v4798_v21 = vadd.f32 %v4794_v60, %v4776_v1 }
 0x6be   : > { %v4818_v31 = vadd.f32 %v4814_v54, %v4798_v21 }
 0x6c0   : > { %v4840_v7 = vadd.f32 %v4836_v12, %v4818_v31  ;;  %v13250_v31 = vld [vmem:[#allocation31_spill] sm:$0xff] }
 0x6c2   : > { %v4860_v45 = vadd.f32 %v4856_v25, %v4840_v7  ;;  %v13251_v7 = vld [vmem:[#allocation30_spill] sm:$0xff] }
 0x6c4   : > { %v7043_v37 = vmul.f32 -1.442695, %v4860_v45 }
 0x6c6   : > { %7542 = vpow2.f32 %v7043_v37 }
 0x6d3   : > { %v7543_v32 = vpop.eup %7542 }
 0x6d4   : > { %v4868_v28 = vadd.f32 1.0, %v7543_v32 }
 0x6d6   : > { %7544 = vrcp.f32 %v4868_v28 }
 0x6e3   : > { %v7545_v23 = vpop.eup %7544 }
 0x6e4   : > { %v4964_v3 = vrot.slane %v7545_v23, %v13240_v20  ;;  %v4975_v44 = vrot.slane %v7545_v23, %v4886_v19  ;;  %v4986_v46 = vrot.slane %v7545_v23, %v4897_v13  ;;  %v4997_v55 = vrot.slane %v7545_v23, %v4908_v14  ;;  %v7518_v19 = vld [vmem:[%s13242_s24 + $0x78] sm:$0xff]   ;;  %v11783_v14 = vpop.permute.xlu1 %5633 }
 0x6e5   : > { %v5008_v20 = vrot.slane %v7545_v23, %v4919_v29  ;;  %v5019_v13 = vrot.slane %v7545_v23, %v4930_v33  ;;  %7218 = vmatprep.subr.bf16.mxu1 %v7518_v19  ;;  %v5030_v63 = vrot.slane %v7545_v23, %v4941_v24  ;;  %v5041_v41 = vrot.slane %v7545_v23, %v4952_v48  ;;  %v7533_v48 = vld [vmem:[%s13242_s24] sm:$0xff]  }
 0x6e6   : > { %4970 = vbcast.lane.b32.xlu1 %v4964_v3, 264  ;;  %4966 = vbcast.lane.b32.xlu0 %v4964_v3, 256 }
 0x6e7   : > { %7219 = vmatpush3.bf16.msra.mxu1 %v7519_v61  ;;  %v13253_v61 = vld [vmem:[#allocation33_spill] sm:$0xff] }
 0x6e8   : > { %7220 = vmatprep.subr.bf16.mxu1 %v7520_v22  ;;  %v11794_v10 = vpop.permute.xlu1 %5681  ;;  %v13254_v22 = vld [vmem:[#allocation32_spill] sm:$0xff] }
 0x6ea   : > { %4981 = vbcast.lane.b32.xlu1 %v4975_v44, 264  ;;  %4977 = vbcast.lane.b32.xlu0 %v4975_v44, 256 }
 0x6eb   : > { %7221 = vmatpush3.bf16.msra.mxu1 %v7521_v6 }
 0x6ec   : > { %7222 = vmatprep.subr.bf16.mxu1 %v7522_v11 }
 0x6ee   : > { %4988 = vbcast.lane.b32.xlu1 %v4986_v46, 256  ;;  %4992 = vbcast.lane.b32.xlu0 %v4986_v46, 264 }
 0x6ef   : > { %7223 = vmatpush3.bf16.msra.mxu1 %v7523_v4 }
 0x6f0   : > { %7224 = vmatprep.subr.bf16.mxu1 %v7524_v34 }
 0x6f2   : > { %4999 = vbcast.lane.b32.xlu1 %v4997_v55, 256  ;;  %5003 = vbcast.lane.b32.xlu0 %v4997_v55, 264 }
 0x6f3   : > { %7225 = vmatpush3.bf16.msra.mxu1 %v7525_v40 }
 0x6f4   : > { %7226 = vmatprep.subr.bf16.mxu1 %v7526_v18 }
 0x6f6   : > { %5010 = vbcast.lane.b32.xlu1 %v5008_v20, 256  ;;  %5014 = vbcast.lane.b32.xlu0 %v5008_v20, 264 }
 0x6f7   : > { %7227 = vmatpush3.bf16.msra.mxu1 %v7527_v9 }
 0x6f8   : > { %7228 = vmatprep.subr.bf16.mxu1 %v7528_v16  ;;  %v13256_v16 = vld [vmem:[#allocation35_spill] sm:$0xff] }
 0x6fa   : > { %5021 = vbcast.lane.b32.xlu1 %v5019_v13, 256  ;;  %5025 = vbcast.lane.b32.xlu0 %v5019_v13, 264 }
 0x6fb   : > { %7229 = vmatpush3.bf16.msra.mxu1 %v7529_v42 }
 0x6fc   : > { %7230 = vmatprep.subr.bf16.mxu1 %v7530_v30 }
 0x6fe   : > { %5032 = vbcast.lane.b32.xlu1 %v5030_v63, 256  ;;  %5036 = vbcast.lane.b32.xlu0 %v5030_v63, 264 }
 0x6ff   : > { %7231 = vmatpush3.bf16.msra.mxu1 %v7531_v53  ;;  %v13260_v53 = vld [vmem:[#allocation37_spill] sm:$0xff] }
 0x700   : > { %7232 = vmatprep.subr.bf16.mxu1 %v7532_v35 }
 0x702   : > { %5043 = vbcast.lane.b32.xlu1 %v5041_v41, 256  ;;  %5047 = vbcast.lane.b32.xlu0 %v5041_v41, 264 }
 0x703   : > { %7233 = vmatpush3.bf16.msra.mxu1 %v7533_v48 }
 0x704   : > { %7420 = vmatprep.subr.bf16.mxu1 %v11717_v47 }
 0x70c   : > { %v4879_v29 = vpop.permute.xlu0 %4878  ;;  %v4883_v51 = vpop.permute.xlu1 %4882 }
 0x70d   : > { %v11806_v56 = vmul.f32 %v4879_v29, %v13244_v43  ;;  %v11809_v33 = vmul.f32 %v4883_v51, %v13245_v57  ;;  %v13258_v51 = vld [vmem:[#allocation34_spill] sm:$0xff] }
 0x70f   : > { %5153 = vst.msk [vmem:[#allocation2 + $0x19] sm:$0xff] %vm379_vm0, %v11806_v56  ;;  %5154 = vst.msk [vmem:[#allocation2 + $0x21] sm:$0xff] %vm379_vm0, %v11809_v33 }
 0x710   : > { %v4890_v62 = vpop.permute.xlu0 %4889  ;;  %v4894_v5 = vpop.permute.xlu1 %4893 }
 0x711   : > { %v11822_v24 = vmul.f32 %v4890_v62, %v13246_v49  ;;  %v11825_v8 = vmul.f32 %v4894_v5, %v13247_v27  ;;  %v13262_v27 = vld [vmem:[#allocation36_spill] sm:$0xff] }
 0x713   : > { %5155 = vst.msk [vmem:[#allocation2 + $0x31] sm:$0xff] %vm379_vm0, %v11822_v24  ;;  %5156 = vst.msk [vmem:[#allocation2 + $0x39] sm:$0xff] %vm379_vm0, %v11825_v8 }
 0x714   : > { %v4901_v36 = vpop.permute.xlu0 %4900  ;;  %v4905_v15 = vpop.permute.xlu1 %4904 }
 0x715   : > { %v11838_v58 = vmul.f32 %v4901_v36, %v13248_v0  ;;  %v11841_v17 = vmul.f32 %v4905_v15, %v13249_v52 }
 0x716   : > { %v5425_v38 = vld [vmem:[#allocation2 + $0x1a] sm:$0xff]  ;;  %v5426_v59 = vld [vmem:[#allocation2 + $0x22] sm:$0xff] }
 0x717   : > { %v5329_v2 = vld [vmem:[#allocation2 + $0x18] sm:$0xff]  ;;  %5157 = vst.msk [vmem:[#allocation2 + $0x49] sm:$0xff] %vm379_vm0, %v11838_v58  ;;  %5158 = vst.msk [vmem:[#allocation2 + $0x51] sm:$0xff] %vm379_vm0, %v11841_v17  ;;  %v5457_v39 = vpack.c.bf16 %v5426_v59, %v5425_v38  ;;  %v5330_v60 = vld [vmem:[#allocation2 + $0x20] sm:$0xff] }
 0x718   : > { %v4912_v1 = vpop.permute.xlu0 %4911  ;;  %v4916_v54 = vpop.permute.xlu1 %4915  ;;  %v11847_v21 = vpack.c.bf16 %v5330_v60, %v5329_v2  ;;  %v5235_v45 = vld [vmem:[#allocation2 + $0x19] sm:$0xff]  ;;  %v5236_v37 = vld [vmem:[#allocation2 + $0x21] sm:$0xff] }
 0x719   : > { %v11850_v12 = vmul.f32 %v4912_v1, %v13250_v31  ;;  %v11853_v25 = vmul.f32 %v4916_v54, %v13251_v7  ;;  %5777 = vrot.lane.b32.xlu0 %v5457_v39, %s13222_s18  ;;  %v11863_v20 = vpack.c.bf16 %v5236_v37, %v5235_v45  ;;  %v13266_v1 = vld [vmem:[#allocation38_spill] sm:$0xff] }
 0x71a   : > { %5729 = vrot.lane.b32.xlu1 %v11847_v21, %s13252_s27  ;;  %v5569_v32 = vld [vmem:[#allocation2 + $0x32] sm:$0xff]  ;;  %v5570_v28 = vld [vmem:[#allocation2 + $0x3a] sm:$0xff] }
 0x71b   : > { %v5473_v23 = vld [vmem:[#allocation2 + $0x30] sm:$0xff]  ;;  %5159 = vst.msk [vmem:[#allocation2 + $0x61] sm:$0xff] %vm379_vm0, %v11850_v12  ;;  %5160 = vst.msk [vmem:[#allocation2 + $0x69] sm:$0xff] %vm379_vm0, %v11853_v25  ;;  %v5601_v3 = vpack.c.bf16 %v5570_v28, %v5569_v32  ;;  %v5474_v44 = vld [vmem:[#allocation2 + $0x38] sm:$0xff] }
 0x71c   : > { %v4923_v46 = vpop.permute.xlu0 %4922  ;;  %v4927_v55 = vpop.permute.xlu1 %4926  ;;  %v11865_v19 = vpack.c.bf16 %v5474_v44, %v5473_v23  ;;  %v5521_v63 = vld [vmem:[#allocation2 + $0x31] sm:$0xff]  ;;  %v5522_v11 = vld [vmem:[#allocation2 + $0x39] sm:$0xff] }
 0x71d   : > { %v11868_v13 = vmul.f32 %v4923_v46, %v13253_v61  ;;  %v11871_v6 = vmul.f32 %v4927_v55, %v13254_v22  ;;  %7388 = vmatprep.mubr.msk.bf16.mxu0 %vm379_vm0, %v5601_v3  ;;  %v11884_v9 = vpack.c.bf16 %v5522_v11, %v5521_v63 }
 0x71e   : > { %5635 = vrot.lane.b32.xlu1 %v11863_v20, %s13222_s18  ;;  %5825 = vrot.lane.b32.xlu0 %v11865_v19, %s13168_s8  ;;  %v5571_v4 = vld [vmem:[#allocation2 + $0x4a] sm:$0xff]  ;;  %v5572_v41 = vld [vmem:[#allocation2 + $0x52] sm:$0xff] }
 0x71f   : > { %13255 = vst [vmem:[#allocation111_spill] sm:$0xff] %v11871_v6  ;;  %5161 = vst.msk [vmem:[#allocation2 + $0x79] sm:$0xff] %vm379_vm0, %v11868_v13  ;;  %v11882_v34 = vpack.c.bf16 %v5572_v41, %v5571_v4  ;;  %v5475_v36 = vld [vmem:[#allocation2 + $0x48] sm:$0xff]  ;;  %v5476_v15 = vld [vmem:[#allocation2 + $0x50] sm:$0xff] }
 0x720   : > { %5162 = vst.msk [vmem:[#allocation2 + $0x81] sm:$0xff] %vm379_vm0, %v11871_v6  ;;  %v4934_v40 = vpop.permute.xlu0 %4933  ;;  %v4938_v18 = vpop.permute.xlu1 %4937  ;;  %v11918_v2 = vpack.c.bf16 %v5476_v15, %v5475_v36  ;;  %v5523_v31 = vld [vmem:[#allocation2 + $0x49] sm:$0xff]  ;;  %v5524_v7 = vld [vmem:[#allocation2 + $0x51] sm:$0xff] }
 0x721   : > { %v11887_v29 = vmul.f32 %v4934_v40, %v13256_v16  ;;  %v11890_v42 = vmul.f32 %v4938_v18, %v13258_v51  ;;  %7389 = vmatmul.mubr.msk.bf16.vlgmr.msra.gmra.mxu0 %vm379_vm0, %v11882_v34  ;;  %v11937_v28 = vpack.c.bf16 %v5524_v7, %v5523_v31 }
 0x722   : > { %5683 = vrot.lane.b32.xlu1 %v5457_v39, %s13168_s8  ;;  %5873 = vrot.lane.b32.xlu0 %v11884_v9, %s13252_s27  ;;  %v5573_v43 = vld [vmem:[#allocation2 + $0x62] sm:$0xff]  ;;  %v5574_v57 = vld [vmem:[#allocation2 + $0x6a] sm:$0xff]  ;;  %v13264_v39 = vld [vmem:[#allocation39_spill] sm:$0xff] }
 0x723   : > { %13257 = vst [vmem:[#allocation82_spill] sm:$0xff] %v11887_v29  ;;  %13259 = vst [vmem:[#allocation123_spill] sm:$0xff] %v11890_v42  ;;  %v11901_v30 = vpack.c.bf16 %v5574_v57, %v5573_v43  ;;  %v5477_v55 = vld [vmem:[#allocation2 + $0x60] sm:$0xff]  ;;  %v5478_v61 = vld [vmem:[#allocation2 + $0x68] sm:$0xff] }
 0x724   : > { %5163 = vst.msk [vmem:[#allocation2 + $0x91] sm:$0xff] %vm379_vm0, %v11887_v29  ;;  %5164 = vst.msk [vmem:[#allocation2 + $0x99] sm:$0xff] %vm379_vm0, %v11890_v42  ;;  %v4945_v62 = vpop.permute.xlu0 %4944  ;;  %v4949_v5 = vpop.permute.xlu1 %4948  ;;  %v11954_v11 = vpack.c.bf16 %v5478_v61, %v5477_v55  ;;  %v5525_v4 = vld [vmem:[#allocation2 + $0x61] sm:$0xff]  ;;  %v5526_v41 = vld [vmem:[#allocation2 + $0x69] sm:$0xff] }
 0x725   : > { %v11904_v49 = vmul.f32 %v4945_v62, %v13260_v53  ;;  %v11907_v35 = vmul.f32 %v4949_v5, %v13262_v27  ;;  %7392 = vmatprep.mubr.msk.bf16.mxu0 %vm379_vm0, %v11901_v30  ;;  %v11962_v40 = vpack.c.bf16 %v5526_v41, %v5525_v4  ;;  %v13270_v61 = vld [vmem:[#allocation43_spill] sm:$0xff] }
 0x726   : > { %5779 = vrot.lane.b32.xlu0 %v5601_v3, %s13222_s18  ;;  %5731 = vrot.lane.b32.xlu1 %v11865_v19, %s13252_s27  ;;  %v5479_v18 = vld [vmem:[#allocation2 + $0x78] sm:$0xff] }
 0x727   : > { %13261 = vst [vmem:[#allocation83_spill] sm:$0xff] %v11904_v49  ;;  %13263 = vst [vmem:[#allocation135_spill] sm:$0xff] %v11907_v35  ;;  %v5575_v48 = vld [vmem:[#allocation2 + $0x7a] sm:$0xff]  ;;  %v5576_v0 = vld [vmem:[#allocation2 + $0x82] sm:$0xff] }
 0x728   : > { %5165 = vst.msk [vmem:[#allocation2 + $0xa9] sm:$0xff] %vm379_vm0, %v11904_v49  ;;  %5166 = vst.msk [vmem:[#allocation2 + $0xb1] sm:$0xff] %vm379_vm0, %v11907_v35  ;;  %v5604_v52 = vpack.c.bf16 %v5576_v0, %v5575_v48  ;;  %v4956_v38 = vpop.permute.xlu0 %4955  ;;  %v4960_v59 = vpop.permute.xlu1 %4959  ;;  %v5480_v16 = vld [vmem:[#allocation2 + $0x80] sm:$0xff]  ;;  %v7682_v0 = vmov 0   ;;  %v13287_v35 = vld [vmem:[#allocation54_spill] sm:$0xff] }
 0x729   : > { %v11921_v60 = vmul.f32 %v4956_v38, %v13264_v39  ;;  %v11924_v54 = vmul.f32 %v4960_v59, %v13266_v1  ;;  %v11972_v51 = vpack.c.bf16 %v5480_v16, %v5479_v18  ;;  %v5527_v43 = vld [vmem:[#allocation2 + $0x79] sm:$0xff]  ;;  %v5528_v57 = vld [vmem:[#allocation2 + $0x81] sm:$0xff]  ;;  %7497 = vset.pattern.permute.xlu0 %v7682_v0 }
 0x72a   : > { %7393 = vmatmul.mubr.msk.bf16.gmra.mxu0 %vm379_vm0, %v5604_v52  ;;  %5637 = vrot.lane.b32.xlu1 %v11884_v9, %s13222_s18 }
 0x72b   : > { %13265 = vst [vmem:[#allocation84_spill] sm:$0xff] %v11921_v60  ;;  %13267 = vst [vmem:[#allocation85_spill] sm:$0xff] %v11924_v54  ;;  %5827 = vrot.lane.b32.xlu0 %v11918_v2, %s13168_s8  ;;  %v5577_v45 = vld [vmem:[#allocation2 + $0x92] sm:$0xff]  ;;  %v5578_v37 = vld [vmem:[#allocation2 + $0x9a] sm:$0xff] }
 0x72c   : > { %5167 = vst.msk [vmem:[#allocation2 + $0xc1] sm:$0xff] %vm379_vm0, %v11921_v60  ;;  %5168 = vst.msk [vmem:[#allocation2 + $0xc9] sm:$0xff] %vm379_vm0, %v11924_v54  ;;  %v11935_v32 = vpack.c.bf16 %v5578_v37, %v5577_v45  ;;  %v5481_v62 = vld [vmem:[#allocation2 + $0x90] sm:$0xff]  ;;  %v5482_v5 = vld [vmem:[#allocation2 + $0x98] sm:$0xff] }
 0x72d   : > { %v11987_v53 = vpack.c.bf16 %v5482_v5, %v5481_v62  ;;  %v5529_v27 = vld [vmem:[#allocation2 + $0x91] sm:$0xff]  ;;  %v5530_v36 = vld [vmem:[#allocation2 + $0x99] sm:$0xff]  ;;  %v13285_v54 = vld [vmem:[#allocation53_spill] sm:$0xff] }
 0x72e   : > { %7396 = vmatprep.mubr.msk.bf16.mxu0 %vm379_vm0, %v11935_v32  ;;  %5685 = vrot.lane.b32.xlu1 %v5601_v3, %s13168_s8  ;;  %v13269_v45 = vld [vmem:[#allocation40_spill] sm:$0xff] }
 0x72f   : > { %5875 = vrot.lane.b32.xlu0 %v11937_v28, %s13252_s27  ;;  %v5579_v23 = vld [vmem:[#allocation2 + $0xaa] sm:$0xff]  ;;  %v5580_v44 = vld [vmem:[#allocation2 + $0xb2] sm:$0xff] }
 0x730   : > { %v11944_v46 = vpack.c.bf16 %v5580_v44, %v5579_v23  ;;  %v5483_v15 = vld [vmem:[#allocation2 + $0xa8] sm:$0xff]  ;;  %v5484_v48 = vld [vmem:[#allocation2 + $0xb0] sm:$0xff] }
 0x731   : > { %v12002_v38 = vpack.c.bf16 %v5484_v48, %v5483_v15  ;;  %v5531_v1 = vld [vmem:[#allocation2 + $0xa9] sm:$0xff]  ;;  %v5532_v31 = vld [vmem:[#allocation2 + $0xb1] sm:$0xff] }
 0x732   : > { %7397 = vmatmul.mubr.msk.bf16.gmra.mxu0 %vm379_vm0, %v11944_v46  ;;  %5733 = vrot.lane.b32.xlu1 %v11918_v2, %s13252_s27  ;;  %v12018_v23 = vpack.c.bf16 %v5532_v31, %v5531_v1  ;;  %v13274_v31 = vld [vmem:[#allocation46_spill] sm:$0xff] }
 0x733   : > { %5781 = vrot.lane.b32.xlu0 %v11882_v34, %s13222_s18  ;;  %v5581_v22 = vld [vmem:[#allocation2 + $0xc2] sm:$0xff]  ;;  %v5582_v3 = vld [vmem:[#allocation2 + $0xca] sm:$0xff] }
 0x734   : > { %v11952_v63 = vpack.c.bf16 %v5582_v3, %v5581_v22  ;;  %v13271_v3 = vld [vmem:[#allocation42_spill] sm:$0xff]  ;;  %v5485_v16 = vld [vmem:[#allocation2 + $0xc0] sm:$0xff] }
 0x735   : > { %v5534_v1 = vld [vmem:[#allocation2 + $0xc9] sm:$0xff] }
 0x736   : > { %7400 = vmatprep.mubr.msk.bf16.mxu0 %vm379_vm0, %v11952_v63  ;;  %5639 = vrot.lane.b32.xlu1 %v11937_v28, %s13222_s18 }
 0x737   : > { %5829 = vrot.lane.b32.xlu0 %v11954_v11, %s13168_s8 }
 0x73a   : > { %5687 = vrot.lane.b32.xlu1 %v11882_v34, %s13168_s8  ;;  %v11978_v34 = vpack.c.bf16 %v5528_v57, %v5527_v43  ;;  %v5486_v43 = vld [vmem:[#allocation2 + $0xc8] sm:$0xff]  ;;  %v13272_v57 = vld [vmem:[#allocation44_spill] sm:$0xff] }
 0x73b   : > { %5877 = vrot.lane.b32.xlu0 %v11962_v40, %s13252_s27  ;;  %v12048_v15 = vpack.c.bf16 %v5486_v43, %v5485_v16  ;;  %v13276_v43 = vld [vmem:[#allocation48_spill] sm:$0xff] }
 0x73e   : > { %5735 = vrot.lane.b32.xlu1 %v11954_v11, %s13252_s27 }
 0x73f   : > { %5783 = vrot.lane.b32.xlu0 %v11901_v30, %s13222_s18 }
 0x742   : > { %5641 = vrot.lane.b32.xlu1 %v11962_v40, %s13222_s18 }
 0x743   : > { %5831 = vrot.lane.b32.xlu0 %v11972_v51, %s13168_s8 }
 0x746   : > { %5689 = vrot.lane.b32.xlu1 %v11901_v30, %s13168_s8  ;;  %v11993_v30 = vpack.c.bf16 %v5530_v36, %v5529_v27 }
 0x747   : > { %5879 = vrot.lane.b32.xlu0 %v11978_v34, %s13252_s27 }
 0x74a   : > { %5737 = vrot.lane.b32.xlu1 %v11972_v51, %s13252_s27 }
 0x74b   : > { %5785 = vrot.lane.b32.xlu0 %v5604_v52, %s13222_s18 }
 0x74e   : > { %5643 = vrot.lane.b32.xlu1 %v11978_v34, %s13222_s18 }
 0x74f   : > { %5833 = vrot.lane.b32.xlu0 %v11987_v53, %s13168_s8 }
 0x752   : > { %5691 = vrot.lane.b32.xlu1 %v5604_v52, %s13168_s8  ;;  %v13268_v52 = vld [vmem:[#allocation41_spill] sm:$0xff] }
 0x753   : > { %5881 = vrot.lane.b32.xlu0 %v11993_v30, %s13252_s27 }
 0x756   : > { %5739 = vrot.lane.b32.xlu1 %v11987_v53, %s13252_s27 }
 0x757   : > { %5787 = vrot.lane.b32.xlu0 %v11935_v32, %s13222_s18 }
 0x758   : > { %v4967_v59 = vpop.permute.xlu0 %4966  ;;  %v4971_v39 = vpop.permute.xlu1 %4970 }
 0x759   : > { %v12005_v7 = vmul.f32 %v4967_v59, %v13268_v52  ;;  %v12012_v37 = vmul.f32 %v4971_v39, %v13269_v45  ;;  %v5533_v39 = vld [vmem:[#allocation2 + $0xc1] sm:$0xff]  ;;  %v13275_v45 = vld [vmem:[#allocation47_spill] sm:$0xff] }
 0x75a   : > { %5645 = vrot.lane.b32.xlu1 %v11993_v30, %s13222_s18 }
 0x75b   : > { %5835 = vrot.lane.b32.xlu0 %v12002_v38, %s13168_s8  ;;  %5169 = vst.msk [vmem:[#allocation2 + $0xd9] sm:$0xff] %vm379_vm0, %v12005_v7  ;;  %5170 = vst.msk [vmem:[#allocation2 + $0xe1] sm:$0xff] %vm379_vm0, %v12012_v37 }
 0x75c   : > { %v4978_v44 = vpop.permute.xlu0 %4977  ;;  %v4982_v55 = vpop.permute.xlu1 %4981 }
 0x75d   : > { %v12021_v22 = vmul.f32 %v4978_v44, %v13270_v61  ;;  %v12028_v4 = vmul.f32 %v4982_v55, %v13271_v3  ;;  %v12068_v3 = vpack.c.bf16 %v5534_v1, %v5533_v39 }
 0x75e   : > { %5693 = vrot.lane.b32.xlu1 %v11935_v32, %s13168_s8  ;;  %v13273_v32 = vld [vmem:[#allocation45_spill] sm:$0xff] }
 0x75f   : > { %5883 = vrot.lane.b32.xlu0 %v12018_v23, %s13252_s27  ;;  %5171 = vst.msk [vmem:[#allocation2 + $0xf1] sm:$0xff] %vm379_vm0, %v12021_v22  ;;  %5172 = vst.msk [vmem:[#allocation2 + $0xf9] sm:$0xff] %vm379_vm0, %v12028_v4 }
 0x760   : > { %v4993_v41 = vpop.permute.xlu0 %4992  ;;  %v4989_v18 = vpop.permute.xlu1 %4988 }
 0x761   : > { %v12035_v62 = vmul.f32 %v4993_v41, %v13272_v57  ;;  %v12042_v5 = vmul.f32 %v4989_v18, %v13273_v32  ;;  %v13278_v32 = vld [vmem:[#allocation49_spill] sm:$0xff] }
 0x762   : > { %5741 = vrot.lane.b32.xlu1 %v12002_v38, %s13252_s27  ;;  %v5583_v27 = vld [vmem:[#allocation2 + $0xda] sm:$0xff]  ;;  %v5584_v36 = vld [vmem:[#allocation2 + $0xe2] sm:$0xff] }
 0x763   : > { %5789 = vrot.lane.b32.xlu0 %v11944_v46, %s13222_s18  ;;  %5174 = vst.msk [vmem:[#allocation2 + $0x111] sm:$0xff] %vm379_vm0, %v12035_v62  ;;  %5173 = vst.msk [vmem:[#allocation2 + $0x109] sm:$0xff] %vm379_vm0, %v12042_v5  ;;  %v12050_v48 = vpack.c.bf16 %v5584_v36, %v5583_v27  ;;  %v5487_v1 = vld [vmem:[#allocation2 + $0xd8] sm:$0xff] }
 0x764   : > { %v5004_v0 = vpop.permute.xlu0 %5003  ;;  %v5000_v59 = vpop.permute.xlu1 %4999 }
 0x765   : > { %v12053_v52 = vmul.f32 %v5004_v0, %v13274_v31  ;;  %v12060_v44 = vmul.f32 %v5000_v59, %v13275_v45  ;;  %7401 = vmatmul.mubr.msk.bf16.gmra.mxu0 %vm379_vm0, %v12050_v48  ;;  %v5488_v31 = vld [vmem:[#allocation2 + $0xe0] sm:$0xff]  ;;  %v13279_v45 = vld [vmem:[#allocation50_spill] sm:$0xff] }
 0x766   : > { %5647 = vrot.lane.b32.xlu1 %v12018_v23, %s13222_s18  ;;  %v5585_v55 = vld [vmem:[#allocation2 + $0xf2] sm:$0xff]  ;;  %v5586_v61 = vld [vmem:[#allocation2 + $0xfa] sm:$0xff] }
 0x767   : > { %5837 = vrot.lane.b32.xlu0 %v12048_v15, %s13168_s8  ;;  %5176 = vst.msk [vmem:[#allocation2 + $0x129] sm:$0xff] %vm379_vm0, %v12053_v52  ;;  %5175 = vst.msk [vmem:[#allocation2 + $0x121] sm:$0xff] %vm379_vm0, %v12060_v44  ;;  %v12070_v41 = vpack.c.bf16 %v5586_v61, %v5585_v55  ;;  %v13281_v61 = vld [vmem:[#allocation51_spill] sm:$0xff] }
 0x768   : > { %v5015_v18 = vpop.permute.xlu0 %5014  ;;  %v5011_v16 = vpop.permute.xlu1 %5010 }
 0x769   : > { %v12073_v57 = vmul.f32 %v5015_v18, %v13276_v43  ;;  %v12080_v27 = vmul.f32 %v5011_v16, %v13278_v32  ;;  %7404 = vmatprep.mubr.msk.bf16.mxu0 %vm379_vm0, %v12070_v41  ;;  %v12106_v32 = vpack.c.bf16 %v5488_v31, %v5487_v1 }
 0x76a   : > { %5695 = vrot.lane.b32.xlu1 %v11944_v46, %s13168_s8  ;;  %v5587_v36 = vld [vmem:[#allocation2 + $0x10a] sm:$0xff]  ;;  %v5588_v0 = vld [vmem:[#allocation2 + $0x112] sm:$0xff] }
 0x76b   : > { %13277 = vst [vmem:[#allocation86_spill] sm:$0xff] %v12073_v57  ;;  %5885 = vrot.lane.b32.xlu0 %v12068_v3, %s13252_s27  ;;  %5178 = vst.msk [vmem:[#allocation2 + $0x141] sm:$0xff] %vm379_vm0, %v12073_v57  ;;  %v12088_v59 = vpack.c.bf16 %v5588_v0, %v5587_v36 }
 0x76c   : > { %5177 = vst.msk [vmem:[#allocation2 + $0x139] sm:$0xff] %vm379_vm0, %v12080_v27  ;;  %v5026_v46 = vpop.permute.xlu0 %5025  ;;  %v5022_v39 = vpop.permute.xlu1 %5021 }
 0x76d   : > { %v12091_v55 = vmul.f32 %v5026_v46, %v13279_v45  ;;  %v12098_v18 = vmul.f32 %v5022_v39, %v13281_v61  ;;  %7405 = vmatmul.mubr.msk.bf16.gmra.mxu0 %vm379_vm0, %v12088_v59  ;;  %v5535_v45 = vld [vmem:[#allocation2 + $0xd9] sm:$0xff]  ;;  %v5536_v39 = vld [vmem:[#allocation2 + $0xe1] sm:$0xff] }
 0x76e   : > { %5743 = vrot.lane.b32.xlu1 %v12048_v15, %s13252_s27  ;;  %v5589_v16 = vld [vmem:[#allocation2 + $0x122] sm:$0xff]  ;;  %v5590_v43 = vld [vmem:[#allocation2 + $0x12a] sm:$0xff] }
 0x76f   : > { %13280 = vst [vmem:[#allocation89_spill] sm:$0xff] %v12091_v55  ;;  %5791 = vrot.lane.b32.xlu0 %v11952_v63, %s13222_s18  ;;  %13282 = vst [vmem:[#allocation95_spill] sm:$0xff] %v12098_v18  ;;  %v12108_v36 = vpack.c.bf16 %v5590_v43, %v5589_v16  ;;  %v13283_v61 = vld [vmem:[#allocation52_spill] sm:$0xff]  ;;  %v12126_v16 = vpack.c.bf16 %v5536_v39, %v5535_v45 }
 0x770   : > { %5180 = vst.msk [vmem:[#allocation2 + $0x159] sm:$0xff] %vm379_vm0, %v12091_v55  ;;  %5179 = vst.msk [vmem:[#allocation2 + $0x151] sm:$0xff] %vm379_vm0, %v12098_v18  ;;  %v5037_v0 = vpop.permute.xlu0 %5036  ;;  %v5033_v46 = vpop.permute.xlu1 %5032  ;;  %v5541_v6 = vld [vmem:[#allocation2 + $0x121] sm:$0xff] }
 0x771   : > { %v12111_v26 = vmul.f32 %v5037_v0, %v13283_v61  ;;  %v12118_v60 = vmul.f32 %v5033_v46, %v13285_v54  ;;  %7408 = vmatprep.mubr.msk.bf16.mxu0 %vm379_vm0, %v12108_v36  ;;  %v13289_v46 = vld [vmem:[#allocation55_spill] sm:$0xff] }
 0x772   : > { %5649 = vrot.lane.b32.xlu1 %v12068_v3, %s13222_s18  ;;  %v5592_v31 = vld [vmem:[#allocation2 + $0x142] sm:$0xff] }
 0x773   : > { %13284 = vst [vmem:[#allocation132_spill] sm:$0xff] %v12111_v26  ;;  %5839 = vrot.lane.b32.xlu0 %v12106_v32, %s13168_s8  ;;  %13286 = vst [vmem:[#allocation96_spill] sm:$0xff] %v12118_v60  ;;  %v5591_v1 = vld [vmem:[#allocation2 + $0x13a] sm:$0xff] }
 0x774   : > { %5182 = vst.msk [vmem:[#allocation2 + $0x171] sm:$0xff] %vm379_vm0, %v12111_v26  ;;  %5181 = vst.msk [vmem:[#allocation2 + $0x169] sm:$0xff] %vm379_vm0, %v12118_v60  ;;  %v12128_v43 = vpack.c.bf16 %v5592_v31, %v5591_v1  ;;  %v5048_v0 = vpop.permute.xlu0 %5047  ;;  %v5044_v61 = vpop.permute.xlu1 %5043  ;;  %v5490_v1 = vld [vmem:[#allocation2 + $0xf8] sm:$0xff] }
 0x775   : > { %v12131_v54 = vmul.f32 %v5048_v0, %v13287_v35  ;;  %v12138_v26 = vmul.f32 %v5044_v61, %v13289_v46 }
 0x776   : > { %5697 = vrot.lane.b32.xlu1 %v11952_v63, %s13168_s8  ;;  %7409 = vmatmul.mubr.msk.bf16.gmra.mxu0 %vm379_vm0, %v12128_v43  ;;  %v5489_v63 = vld [vmem:[#allocation2 + $0xf0] sm:$0xff] }
 0x777   : > { %13288 = vst [vmem:[#allocation145_spill] sm:$0xff] %v12131_v54  ;;  %5887 = vrot.lane.b32.xlu0 %v12126_v16, %s13252_s27  ;;  %13290 = vst [vmem:[#allocation125_spill] sm:$0xff] %v12138_v26  ;;  %v5593_v45 = vld [vmem:[#allocation2 + $0x152] sm:$0xff]  ;;  %v5594_v39 = vld [vmem:[#allocation2 + $0x15a] sm:$0xff]  ;;  %v12154_v61 = vpack.c.bf16 %v5490_v1, %v5489_v63 }
 0x778   : > { %5184 = vst.msk [vmem:[#allocation2 + $0x189] sm:$0xff] %vm379_vm0, %v12131_v54  ;;  %5183 = vst.msk [vmem:[#allocation2 + $0x181] sm:$0xff] %vm379_vm0, %v12138_v26  ;;  %v12146_v35 = vpack.c.bf16 %v5594_v39, %v5593_v45  ;;  %v5537_v54 = vld [vmem:[#allocation2 + $0xf1] sm:$0xff]  ;;  %v5538_v45 = vld [vmem:[#allocation2 + $0xf9] sm:$0xff] }
 0x779   : > { %v12164_v39 = vpack.c.bf16 %v5538_v45, %v5537_v54  ;;  %v5491_v63 = vld [vmem:[#allocation2 + $0x108] sm:$0xff]  ;;  %v5492_v1 = vld [vmem:[#allocation2 + $0x110] sm:$0xff] }
 0x77a   : > { %5745 = vrot.lane.b32.xlu1 %v12106_v32, %s13252_s27  ;;  %7412 = vmatprep.mubr.msk.bf16.mxu0 %vm379_vm0, %v12146_v35  ;;  %v5540_v26 = vld [vmem:[#allocation2 + $0x111] sm:$0xff]  ;;  %v5186_v54 = vld [vmem:[#allocation2 + $0x8] sm:$0xff] }
 0x77b   : > { %5793 = vrot.lane.b32.xlu0 %v12050_v48, %s13222_s18  ;;  %v5595_v31 = vld [vmem:[#allocation2 + $0x16a] sm:$0xff]  ;;  %v5596_v0 = vld [vmem:[#allocation2 + $0x172] sm:$0xff] }
 0x77c   : > { %v12156_v46 = vpack.c.bf16 %v5596_v0, %v5595_v31  ;;  %v12174_v31 = vpack.c.bf16 %v5492_v1, %v5491_v63  ;;  %v5539_v0 = vld [vmem:[#allocation2 + $0x109] sm:$0xff] }
 0x77d   : > { %v12180_v49 = vpack.c.bf16 %v5540_v26, %v5539_v0  ;;  %v5493_v26 = vld [vmem:[#allocation2 + $0x120] sm:$0xff]  ;;  %v5494_v0 = vld [vmem:[#allocation2 + $0x128] sm:$0xff] }
 0x77e   : > { %5651 = vrot.lane.b32.xlu1 %v12126_v16, %s13222_s18  ;;  %7413 = vmatmul.mubr.msk.bf16.gmra.mxu0 %vm379_vm0, %v12156_v46  ;;  %13291 = vst [vmem:[#allocation98_spill] sm:$0xff] %v12174_v31 }
 0x77f   : > { %5841 = vrot.lane.b32.xlu0 %v12154_v61, %s13168_s8 }
 0x782   : > { %5699 = vrot.lane.b32.xlu1 %v12050_v48, %s13168_s8  ;;  %v5185_v48 = vld [vmem:[#allocation2] sm:$0xff] }
 0x783   : > { %5889 = vrot.lane.b32.xlu0 %v12164_v39, %s13252_s27  ;;  %v5217_v55 = vpack.c.bf16 %v5186_v54, %v5185_v48 }
 0x785   : > { %v5907_v42 = vsel %vm379_vm0, %v5217_v55, %v11783_v14  ;;  %v12198_v55 = vpack.c.bf16 %v5494_v0, %v5493_v26 }
 0x786   : > { %5747 = vrot.lane.b32.xlu1 %v12154_v61, %s13252_s27  ;;  %v5954_v29 = vsel %vm1259_vm3, %v5907_v42, %v11794_v10 }
 0x787   : > { %5795 = vrot.lane.b32.xlu0 %v12070_v41, %s13222_s18 }
 0x78a   : > { %5653 = vrot.lane.b32.xlu1 %v12164_v39, %s13222_s18 }
 0x78b   : > { %5843 = vrot.lane.b32.xlu0 %v12174_v31, %s13168_s8  ;;  %v5778_v45 = vpop.permute.xlu0 %5777 }
 0x78c   : > { %v5730_v60 = vpop.permute.xlu1 %5729  ;;  %v6035_v48 = vsel %vm379_vm0, %v11863_v20, %v5778_v45 }
 0x78d   : > { %v5986_v57 = vsel %vm1292_vm4, %v5954_v29, %v5730_v60  ;;  %v5495_v60 = vld [vmem:[#allocation2 + $0x138] sm:$0xff] }
 0x78e   : > { %5701 = vrot.lane.b32.xlu1 %v12070_v41, %s13168_s8 }
 0x78f   : > { %5891 = vrot.lane.b32.xlu0 %v12180_v49, %s13252_s27 }
 0x790   : > { %v5826_v63 = vpop.permute.xlu0 %5825  ;;  %v5636_v1 = vpop.permute.xlu1 %5635 }
 0x791   : > { %v6082_v41 = vsel %vm1259_vm3, %v6035_v48, %v5826_v63  ;;  %v5543_v48 = vld [vmem:[#allocation2 + $0x139] sm:$0xff] }
 0x792   : > { %5749 = vrot.lane.b32.xlu1 %v12174_v31, %s13252_s27  ;;  %v5542_v31 = vld [vmem:[#allocation2 + $0x129] sm:$0xff] }
 0x793   : > { %5797 = vrot.lane.b32.xlu0 %v12088_v59, %s13222_s18  ;;  %v12206_v10 = vpack.c.bf16 %v5542_v31, %v5541_v6  ;;  %v5910_v6 = vsel %vm379_vm0, %v11847_v21, %v5636_v1 }
 0x794   : > { %v5874_v54 = vpop.permute.xlu0 %5873  ;;  %v5684_v18 = vpop.permute.xlu1 %5683 }
 0x795   : > { %v6114_v14 = vsel %vm1292_vm4, %v6082_v41, %v5874_v54  ;;  %v5544_v41 = vld [vmem:[#allocation2 + $0x141] sm:$0xff] }
 0x796   : > { %6385 = vmatprep.mubr.bf16.mxu1 %v6114_v14  ;;  %5655 = vrot.lane.b32.xlu1 %v12180_v49, %s13222_s18  ;;  %v12232_v54 = vpack.c.bf16 %v5544_v41, %v5543_v48  ;;  %v5499_v41 = vld [vmem:[#allocation2 + $0x168] sm:$0xff] }
 0x797   : > { %5845 = vrot.lane.b32.xlu0 %v12198_v55, %s13168_s8  ;;  %6386 = vmatmul.mubr.bf16.vlgmr.msra.gmra.mxu1 %v5986_v57  ;;  %v5496_v57 = vld [vmem:[#allocation2 + $0x140] sm:$0xff] }
 0x798   : > { %v5780_v20 = vpop.permute.xlu0 %5779  ;;  %v5732_v45 = vpop.permute.xlu1 %5731  ;;  %7422 = vmatpush3.bf16.msra.mxu1 %v11717_v47  ;;  %v12224_v26 = vpack.c.bf16 %v5496_v57, %v5495_v60 }
 0x799   : > { %7421 = vmatprep.subr.bf16.mxu1 %v11729_v50  ;;  %v6038_v47 = vsel %vm379_vm0, %v11884_v9, %v5780_v20  ;;  %v5497_v20 = vld [vmem:[#allocation2 + $0x150] sm:$0xff] }
 0x79a   : > { %5703 = vrot.lane.b32.xlu1 %v12088_v59, %s13168_s8 }
 0x79b   : > { %5893 = vrot.lane.b32.xlu0 %v12206_v10, %s13252_s27 }
 0x79c   : > { %v5638_v42 = vpop.permute.xlu1 %5637  ;;  %7423 = vmatpush3.bf16.msra.mxu1 %v11729_v50  ;;  %v5956_v50 = vsel %vm1259_vm3, %v5910_v6, %v5684_v18 }
 0x79d   : > { %v5828_v29 = vpop.permute.xlu0 %5827  ;;  %v5989_v9 = vsel %vm1292_vm4, %v5956_v50, %v5732_v45  ;;  %v5498_v45 = vld [vmem:[#allocation2 + $0x158] sm:$0xff]  ;;  %v5913_v60 = vsel %vm379_vm0, %v11865_v19, %v5638_v42 }
 0x79e   : > { %5751 = vrot.lane.b32.xlu1 %v12198_v55, %s13252_s27  ;;  %v6084_v59 = vsel %vm1259_vm3, %v6038_v47, %v5828_v29  ;;  %v5545_v50 = vld [vmem:[#allocation2 + $0x151] sm:$0xff] }
 0x79f   : > { %5799 = vrot.lane.b32.xlu0 %v12108_v36, %s13222_s18 }
 0x7a0   : > { %v5686_v63 = vpop.permute.xlu1 %5685 }
 0x7a1   : > { %v5876_v31 = vpop.permute.xlu0 %5875  ;;  %v5958_v6 = vsel %vm1259_vm3, %v5913_v60, %v5686_v63 }
 0x7a2   : > { %v6117_v0 = vsel %vm1292_vm4, %v6084_v59, %v5876_v31  ;;  %5657 = vrot.lane.b32.xlu1 %v12206_v10, %s13222_s18  ;;  %v12248_v59 = vpack.c.bf16 %v5498_v45, %v5497_v20 }
 0x7a3   : > { %6393 = vmatprep.mubr.bf16.mxu1 %v6117_v0  ;;  %5847 = vrot.lane.b32.xlu0 %v12224_v26, %s13168_s8  ;;  %v5546_v0 = vld [vmem:[#allocation2 + $0x159] sm:$0xff] }
 0x7a4   : > { %6394 = vmatmul.mubr.bf16.gmra.mxu1 %v5989_v9  ;;  %v5734_v1 = vpop.permute.xlu1 %5733  ;;  %v12256_v9 = vpack.c.bf16 %v5546_v0, %v5545_v50  ;;  %v5501_v50 = vld [vmem:[#allocation2 + $0x180] sm:$0xff]  ;;  %v5502_v0 = vld [vmem:[#allocation2 + $0x188] sm:$0xff] }
 0x7a5   : > { %v5782_v21 = vpop.permute.xlu0 %5781 }
 0x7a6   : > { %5705 = vrot.lane.b32.xlu1 %v12108_v36, %s13168_s8  ;;  %v6041_v29 = vsel %vm379_vm0, %v11937_v28, %v5782_v21  ;;  %v5992_v28 = vsel %vm1292_vm4, %v5958_v6, %v5734_v1  ;;  %v5500_v21 = vld [vmem:[#allocation2 + $0x170] sm:$0xff] }
 0x7a7   : > { %5895 = vrot.lane.b32.xlu0 %v12232_v54, %s13252_s27  ;;  %v12272_v60 = vpack.c.bf16 %v5500_v21, %v5499_v41  ;;  %v5548_v6 = vld [vmem:[#allocation2 + $0x171] sm:$0xff] }
 0x7a8   : > { %v5640_v14 = vpop.permute.xlu1 %5639 }
 0x7a9   : > { %v5830_v18 = vpop.permute.xlu0 %5829 }
 0x7aa   : > { %5753 = vrot.lane.b32.xlu1 %v12224_v26, %s13252_s27  ;;  %v6086_v36 = vsel %vm1259_vm3, %v6041_v29, %v5830_v18  ;;  %v5916_v18 = vsel %vm379_vm0, %v11918_v2, %v5640_v14 }
 0x7ab   : > { %5801 = vrot.lane.b32.xlu0 %v12128_v43, %s13222_s18 }
 0x7ac   : > { %v5688_v47 = vpop.permute.xlu1 %5687 }
 0x7ad   : > { %v5878_v57 = vpop.permute.xlu0 %5877  ;;  %v5960_v29 = vsel %vm1259_vm3, %v5916_v18, %v5688_v47 }
 0x7ae   : > { %v6120_v31 = vsel %vm1292_vm4, %v6086_v36, %v5878_v57  ;;  %5659 = vrot.lane.b32.xlu1 %v12232_v54, %s13222_s18  ;;  %v5547_v57 = vld [vmem:[#allocation2 + $0x169] sm:$0xff] }
 0x7af   : > { %6401 = vmatprep.mubr.bf16.mxu1 %v6120_v31  ;;  %5849 = vrot.lane.b32.xlu0 %v12248_v59, %s13168_s8  ;;  %v12280_v31 = vpack.c.bf16 %v5548_v6, %v5547_v57  ;;  %v5551_v6 = vld [vmem:[#allocation2 + $0x199] sm:$0xff] }
 0x7b0   : > { %6402 = vmatmul.mubr.bf16.gmra.mxu1 %v5992_v28  ;;  %v5736_v42 = vpop.permute.xlu1 %5735 }
 0x7b1   : > { %v5784_v19 = vpop.permute.xlu0 %5783 }
 0x7b2   : > { %5707 = vrot.lane.b32.xlu1 %v12128_v43, %s13168_s8  ;;  %v6044_v1 = vsel %vm379_vm0, %v11962_v40, %v5784_v19  ;;  %v5995_v40 = vsel %vm1292_vm4, %v5960_v29, %v5736_v42 }
 0x7b3   : > { %5897 = vrot.lane.b32.xlu0 %v12256_v9, %s13252_s27 }
 0x7b4   : > { %v5642_v48 = vpop.permute.xlu1 %5641 }
 0x7b5   : > { %v5832_v63 = vpop.permute.xlu0 %5831  ;;  %v5919_v42 = vsel %vm379_vm0, %v11954_v11, %v5642_v48 }
 0x7b6   : > { %5755 = vrot.lane.b32.xlu1 %v12248_v59, %s13252_s27  ;;  %v6088_v43 = vsel %vm1259_vm3, %v6044_v1, %v5832_v63  ;;  %v5519_v1 = vpack.c.bf16 %v5502_v0, %v5501_v50 }
 0x7b7   : > { %5803 = vrot.lane.b32.xlu0 %v12146_v35, %s13222_s18 }
 0x7b8   : > { %v5690_v45 = vpop.permute.xlu1 %5689 }
 0x7b9   : > { %v5880_v20 = vpop.permute.xlu0 %5879  ;;  %v5962_v21 = vsel %vm1259_vm3, %v5919_v42, %v5690_v45  ;;  %v5455_v45 = vld [vmem:[#allocation2 + $0x182] sm:$0xff] }
 0x7ba   : > { %v6123_v36 = vsel %vm1292_vm4, %v6088_v43, %v5880_v20  ;;  %5661 = vrot.lane.b32.xlu1 %v12256_v9, %s13222_s18  ;;  %v5549_v43 = vld [vmem:[#allocation2 + $0x181] sm:$0xff]  ;;  %v5550_v20 = vld [vmem:[#allocation2 + $0x189] sm:$0xff] }
 0x7bb   : > { %6409 = vmatprep.mubr.bf16.mxu1 %v6123_v36  ;;  %5851 = vrot.lane.b32.xlu0 %v12272_v60, %s13168_s8  ;;  %v12301_v29 = vpack.c.bf16 %v5550_v20, %v5549_v43  ;;  %v5456_v36 = vld [vmem:[#allocation2 + $0x18a] sm:$0xff] }
 0x7bc   : > { %6410 = vmatmul.mubr.bf16.gmra.mxu1 %v5995_v40  ;;  %v5738_v14 = vpop.permute.xlu1 %5737 }
 0x7bd   : > { %v5786_v2 = vpop.permute.xlu0 %5785 }
 0x7be   : > { %5709 = vrot.lane.b32.xlu1 %v12146_v35, %s13168_s8  ;;  %v6047_v19 = vsel %vm379_vm0, %v11978_v34, %v5786_v2  ;;  %v5998_v34 = vsel %vm1292_vm4, %v5962_v21, %v5738_v14  ;;  %v5552_v2 = vld [vmem:[#allocation2 + $0x1a1] sm:$0xff]  ;;  %v12307_v14 = vpack.c.bf16 %v5456_v36, %v5455_v45 }
 0x7bf   : > { %5899 = vrot.lane.b32.xlu0 %v12280_v31, %s13252_s27 }
 0x7c0   : > { %v5644_v28 = vpop.permute.xlu1 %5643 }
 0x7c1   : > { %v5834_v47 = vpop.permute.xlu0 %5833  ;;  %v5922_v50 = vsel %vm379_vm0, %v11972_v51, %v5644_v28  ;;  %v6739_v51 = vld [vmem:[%s13292_s16] sm:$0x7] }
 0x7c2   : > { %5757 = vrot.lane.b32.xlu1 %v12272_v60, %s13252_s27  ;;  %v6090_v35 = vsel %vm1259_vm3, %v6047_v19, %v5834_v47 }
 0x7c3   : > { %5805 = vrot.lane.b32.xlu0 %v12156_v46, %s13222_s18 }
 0x7c4   : > { %v5692_v41 = vpop.permute.xlu1 %5691 }
 0x7c5   : > { %v5882_v63 = vpop.permute.xlu0 %5881 }
 0x7c6   : > { %v6126_v18 = vsel %vm1292_vm4, %v6090_v35, %v5882_v63  ;;  %5663 = vrot.lane.b32.xlu1 %v12280_v31, %s13222_s18  ;;  %v5964_v35 = vsel %vm1259_vm3, %v5922_v50, %v5692_v41 }
 0x7c7   : > { %6417 = vmatprep.mubr.bf16.mxu1 %v6126_v18  ;;  %5853 = vrot.lane.b32.xlu0 %v5519_v1, %s13168_s8 }
 0x7c8   : > { %6418 = vmatmul.mubr.bf16.gmra.mxu1 %v5998_v34  ;;  %v5740_v48 = vpop.permute.xlu1 %5739 }
 0x7c9   : > { %v5788_v11 = vpop.permute.xlu0 %5787  ;;  %v6001_v21 = vsel %vm1292_vm4, %v5964_v35, %v5740_v48 }
 0x7ca   : > { %5711 = vrot.lane.b32.xlu1 %v12156_v46, %s13168_s8  ;;  %v6050_v47 = vsel %vm379_vm0, %v11993_v30, %v5788_v11  ;;  %v5568_v46 = vpack.c.bf16 %v5552_v2, %v5551_v6 }
 0x7cb   : > { %5901 = vrot.lane.b32.xlu0 %v12301_v29, %s13252_s27 }
 0x7cc   : > { %v5646_v57 = vpop.permute.xlu1 %5645 }
 0x7cd   : > { %v5836_v40 = vpop.permute.xlu0 %5835  ;;  %v5925_v34 = vsel %vm379_vm0, %v11987_v53, %v5646_v57 }
 0x7ce   : > { %5759 = vrot.lane.b32.xlu1 %v5519_v1, %s13252_s27  ;;  %v6092_v0 = vsel %vm1259_vm3, %v6050_v47, %v5836_v40 }
 0x7cf   : > { %5807 = vrot.lane.b32.xlu0 %v12307_v14, %s13222_s18 }
 0x7d0   : > { %v5694_v42 = vpop.permute.xlu1 %5693 }
 0x7d1   : > { %v5884_v19 = vpop.permute.xlu0 %5883  ;;  %v5966_v48 = vsel %vm1259_vm3, %v5925_v34, %v5694_v42 }
 0x7d2   : > { %v6129_v63 = vsel %vm1292_vm4, %v6092_v0, %v5884_v19 }
 0x7d3   : > { %6425 = vmatprep.mubr.bf16.mxu1 %v6129_v63  ;;  %5903 = vrot.lane.b32.xlu0 %v5568_v46, %s13252_s27 }
 0x7d4   : > { %6426 = vmatmul.mubr.bf16.gmra.mxu1 %v6001_v21  ;;  %v5742_v1 = vpop.permute.xlu1 %5741 }
 0x7d5   : > { %v5790_v30 = vpop.permute.xlu0 %5789  ;;  %v6004_v36 = vsel %vm1292_vm4, %v5966_v48, %v5742_v1 }
 0x7d6   : > { %v6053_v41 = vsel %vm379_vm0, %v12018_v23, %v5790_v30 }
 0x7d7   : > { %6742 = vperm.xlu0 %7497, %v6739_v51  }
 0x7d8   : > { %v5648_v18 = vpop.permute.xlu1 %5647 }
 0x7d9   : > { %v5838_v28 = vpop.permute.xlu0 %5837  ;;  %v5928_v53 = vsel %vm379_vm0, %v12002_v38, %v5648_v18 }
 0x7da   : > { %v6094_v43 = vsel %vm1259_vm3, %v6053_v41, %v5838_v28 }
 0x7dc   : > { %v5696_v11 = vpop.permute.xlu1 %5695 }
 0x7dd   : > { %v5886_v20 = vpop.permute.xlu0 %5885  ;;  %v5968_v0 = vsel %vm1259_vm3, %v5928_v53, %v5696_v11 }
 0x7de   : > { %v6132_v45 = vsel %vm1292_vm4, %v6094_v43, %v5886_v20 }
 0x7df   : > { %6433 = vmatprep.mubr.bf16.mxu1 %v6132_v45 }
 0x7e0   : > { %6434 = vmatmul.mubr.bf16.gmra.mxu1 %v6004_v36  ;;  %v5744_v6 = vpop.permute.xlu1 %5743 }
 0x7e1   : > { %v5792_v40 = vpop.permute.xlu0 %5791  ;;  %v6007_v42 = vsel %vm1292_vm4, %v5968_v0, %v5744_v6 }
 0x7e2   : > { %v6056_v23 = vsel %vm379_vm0, %v12068_v3, %v5792_v40 }
 0x7e4   : > { %v5650_v47 = vpop.permute.xlu1 %5649 }
 0x7e5   : > { %v5840_v2 = vpop.permute.xlu0 %5839  ;;  %v5931_v38 = vsel %vm379_vm0, %v12048_v15, %v5650_v47 }
 0x7e6   : > { %v6096_v57 = vsel %vm1259_vm3, %v6056_v23, %v5840_v2 }
 0x7e8   : > { %v5698_v50 = vpop.permute.xlu1 %5697 }
 0x7e9   : > { %v5888_v46 = vpop.permute.xlu0 %5887  ;;  %v5970_v18 = vsel %vm1259_vm3, %v5931_v38, %v5698_v50  ;;  %v13294_v50 = vld [vmem:[#allocation111_spill] sm:$0xff] }
 0x7ea   : > { %v6135_v19 = vsel %vm1292_vm4, %v6096_v57, %v5888_v46 }
 0x7eb   : > { %6441 = vmatprep.mubr.bf16.mxu1 %v6135_v19  ;;  %v13296_v19 = vld [vmem:[#allocation82_spill] sm:$0xff] }
 0x7ec   : > { %6442 = vmatmul.mubr.bf16.gmra.mxu1 %v6007_v42  ;;  %v5746_v63 = vpop.permute.xlu1 %5745  ;;  %v13297_v42 = vld [vmem:[#allocation95_spill] sm:$0xff] }
 0x7ed   : > { %v5794_v35 = vpop.permute.xlu0 %5793  ;;  %v6010_v34 = vsel %vm1292_vm4, %v5970_v18, %v5746_v63  ;;  %v13300_v18 = vld [vmem:[#allocation83_spill] sm:$0xff] }
 0x7ee   : > { %v6059_v3 = vsel %vm379_vm0, %v12126_v16, %v5794_v35 }
 0x7f0   : > { %v5652_v30 = vpop.permute.xlu1 %5651 }
 0x7f1   : > { %v5842_v21 = vpop.permute.xlu0 %5841  ;;  %v5934_v11 = vsel %vm379_vm0, %v12106_v32, %v5652_v30  ;;  %v13299_v30 = vld [vmem:[#allocation89_spill] sm:$0xff] }
 0x7f2   : > { %v6098_v1 = vsel %vm1259_vm3, %v6059_v3, %v5842_v21  ;;  %v13298_v21 = vld [vmem:[#allocation123_spill] sm:$0xff] }
 0x7f4   : > { %v5700_v28 = vpop.permute.xlu1 %5699 }
 0x7f5   : > { %v5890_v51 = vpop.permute.xlu0 %5889  ;;  %5081 = vxpose.xlu0.b32.start [1/16] (narrow) %v11806_v56, 32 }
 0x7f6   : > { %v6138_v41 = vsel %vm1292_vm4, %v6098_v1, %v5890_v51 }
 0x7f7   : > { %6449 = vmatprep.mubr.bf16.mxu1 %v6138_v41  ;;  %5113 = vxpose.xlu1.b32.start [1/16] (narrow) %v12005_v7, 32 }
 0x7f8   : > { %6450 = vmatmul.mubr.bf16.gmra.mxu1 %v6010_v34  ;;  %v5748_v43 = vpop.permute.xlu1 %5747 }
 0x7f9   : > { %v5796_v16 = vpop.permute.xlu0 %5795  ;;  %5082 = vxpose.xlu0.b32.cont [2/16] (narrow) %v11809_v33, 32  ;;  %v5972_v33 = vsel %vm1259_vm3, %v5934_v11, %v5700_v28 }
 0x7fa   : > { %v6062_v56 = vsel %vm379_vm0, %v12164_v39, %v5796_v16  ;;  %v13301_v16 = vld [vmem:[#allocation96_spill] sm:$0xff] }
 0x7fb   : > { %5114 = vxpose.xlu1.b32.cont [2/16] (narrow) %v12012_v37, 32 }
 0x7fc   : > { %v5654_v20 = vpop.permute.xlu1 %5653 }
 0x7fd   : > { %v5844_v15 = vpop.permute.xlu0 %5843  ;;  %5083 = vxpose.xlu0.b32.cont [3/16] (narrow) %v11822_v24, 32  ;;  %v6013_v24 = vsel %vm1292_vm4, %v5972_v33, %v5748_v43 }
 0x7fe   : > { %v6100_v7 = vsel %vm1259_vm3, %v6062_v56, %v5844_v15 }
 0x7ff   : > { %5115 = vxpose.xlu1.b32.cont [3/16] (narrow) %v12021_v22, 32 }
 0x800   : > { %v5702_v45 = vpop.permute.xlu1 %5701 }
 0x801   : > { %v5892_v48 = vpop.permute.xlu0 %5891  ;;  %5084 = vxpose.xlu0.b32.cont [4/16] (narrow) %v11825_v8, 32 }
 0x802   : > { %v6141_v37 = vsel %vm1292_vm4, %v6100_v7, %v5892_v48  ;;  %v13304_v7 = vld [vmem:[#allocation84_spill] sm:$0xff]  ;;  %v13305_v48 = vld [vmem:[#allocation125_spill] sm:$0xff] }
 0x803   : > { %6457 = vmatprep.mubr.bf16.mxu1 %v6141_v37  ;;  %5116 = vxpose.xlu1.b32.cont [4/16] (narrow) %v12028_v4, 32  ;;  %v5937_v4 = vsel %vm379_vm0, %v12154_v61, %v5654_v20  ;;  %v13302_v20 = vld [vmem:[#allocation135_spill] sm:$0xff] }
 0x804   : > { %6458 = vmatmul.mubr.bf16.gmra.mxu1 %v6013_v24  ;;  %v5750_v39 = vpop.permute.xlu1 %5749 }
 0x805   : > { %v5798_v22 = vpop.permute.xlu0 %5797  ;;  %5085 = vxpose.xlu0.b32.cont [5/16] (narrow) %v11838_v58, 32  ;;  %v5974_v58 = vsel %vm1259_vm3, %v5937_v4, %v5702_v45 }
 0x806   : > { %v6065_v8 = vsel %vm379_vm0, %v12180_v49, %v5798_v22 }
 0x807   : > { %5117 = vxpose.xlu1.b32.cont [5/16] (narrow) %v12042_v5, 32 }
 0x808   : > { %v5656_v32 = vpop.permute.xlu1 %5655 }
 0x809   : > { %v5846_v36 = vpop.permute.xlu0 %5845  ;;  %5086 = vxpose.xlu0.b32.cont [6/16] (narrow) %v11841_v17, 32  ;;  %v6016_v17 = vsel %vm1292_vm4, %v5974_v58, %v5750_v39  ;;  %v13306_v39 = vld [vmem:[#allocation85_spill] sm:$0xff] }
 0x80a   : > { %v6102_v6 = vsel %vm1259_vm3, %v6065_v8, %v5846_v36  ;;  %v13307_v8 = vld [vmem:[#allocation145_spill] sm:$0xff] }
 0x80b   : > { %5118 = vxpose.xlu1.b32.cont [6/16] (narrow) %v12035_v62, 32 }
 0x80c   : > { %v5704_v40 = vpop.permute.xlu1 %5703 }
 0x80d   : > { %v5894_v2 = vpop.permute.xlu0 %5893  ;;  %5087 = vxpose.xlu0.b32.cont [7/16] (narrow) %v11850_v12, 32 }
 0x80e   : > { %v6144_v5 = vsel %vm1292_vm4, %v6102_v6, %v5894_v2 }
 0x80f   : > { %6465 = vmatprep.mubr.bf16.mxu1 %v6144_v5  ;;  %5119 = vxpose.xlu1.b32.cont [7/16] (narrow) %v12060_v44, 32  ;;  %v13293_v44 = vld [vmem:[#allocation98_spill] sm:$0xff] }
 0x810   : > { %6466 = vmatmul.mubr.bf16.gmra.mxu1 %v6016_v17  ;;  %v5752_v49 = vpop.permute.xlu1 %5751  ;;  %v5940_v53 = vsel %vm379_vm0, %v13293_v44, %v5656_v32 }
 0x811   : > { %v5800_v62 = vpop.permute.xlu0 %5799  ;;  %5088 = vxpose.xlu0.b32.cont [8/16] (narrow) %v11853_v25, 32  ;;  %v5976_v25 = vsel %vm1259_vm3, %v5940_v53, %v5704_v40  ;;  %v13308_v53 = vld [vmem:[#allocation81_spill] sm:$0xff] }
 0x812   : > { %v6068_v12 = vsel %vm379_vm0, %v12206_v10, %v5800_v62 }
 0x813   : > { %5120 = vxpose.xlu1.b32.cont [8/16] (narrow) %v12053_v52, 32 }
 0x814   : > { %v5658_v61 = vpop.permute.xlu1 %5657 }
 0x815   : > { %v5848_v47 = vpop.permute.xlu0 %5847  ;;  %5089 = vxpose.xlu0.b32.cont [9/16] (narrow) %v11868_v13, 32  ;;  %v13295_v13 = vld [vmem:[#allocation86_spill] sm:$0xff]  ;;  %v5943_v1 = vsel %vm379_vm0, %v12198_v55, %v5658_v61  ;;  %v13303_v55 = vld [vmem:[#allocation132_spill] sm:$0xff] }
 0x816   : > { %v6104_v57 = vsel %vm1259_vm3, %v6068_v12, %v5848_v47 }
 0x817   : > { %5121 = vxpose.xlu1.b32.cont [9/16] (narrow) %v12080_v27, 32  ;;  %v6019_v27 = vsel %vm1292_vm4, %v5976_v25, %v5752_v49 }
 0x818   : > { %v5706_v23 = vpop.permute.xlu1 %5705 }
 0x819   : > { %v5896_v46 = vpop.permute.xlu0 %5895  ;;  %5090 = vxpose.xlu0.b32.cont [10/16] (narrow) %v13294_v50, 32  ;;  %v5978_v41 = vsel %vm1259_vm3, %v5943_v1, %v5706_v23 }
 0x81a   : > { %v6147_v52 = vsel %vm1292_vm4, %v6104_v57, %v5896_v46 }
 0x81b   : > { %6473 = vmatprep.mubr.bf16.mxu1 %v6147_v52  ;;  %5122 = vxpose.xlu1.b32.cont [10/16] (narrow) %v13295_v13, 32  ;;  %v5600_v52 = vld [vmem:[#allocation2 + $0x1a2] sm:$0xff] }
 0x81c   : > { %6474 = vmatmul.mubr.bf16.gmra.mxu1 %v6019_v27  ;;  %v5754_v10 = vpop.permute.xlu1 %5753 }
 0x81d   : > { %v5802_v0 = vpop.permute.xlu0 %5801  ;;  %5091 = vxpose.xlu0.b32.cont [11/16] (narrow) %v13296_v19, 32  ;;  %v6022_v43 = vsel %vm1292_vm4, %v5978_v41, %v5754_v10 }
 0x81e   : > { %v6071_v3 = vsel %vm379_vm0, %v12232_v54, %v5802_v0 }
 0x81f   : > { %5123 = vxpose.xlu1.b32.cont [11/16] (narrow) %v13297_v42, 32 }
 0x820   : > { %v5660_v35 = vpop.permute.xlu1 %5659 }
 0x821   : > { %v5850_v63 = vpop.permute.xlu0 %5849  ;;  %5092 = vxpose.xlu0.b32.cont [12/16] (narrow) %v13298_v21, 32  ;;  %v5946_v37 = vsel %vm379_vm0, %v12224_v26, %v5660_v35 }
 0x822   : > { %v6106_v51 = vsel %vm1259_vm3, %v6071_v3, %v5850_v63 }
 0x823   : > { %5124 = vxpose.xlu1.b32.cont [12/16] (narrow) %v13299_v30, 32 }
 0x824   : > { %v5708_v38 = vpop.permute.xlu1 %5707 }
 0x825   : > { %v5898_v28 = vpop.permute.xlu0 %5897  ;;  %5093 = vxpose.xlu0.b32.cont [13/16] (narrow) %v13300_v18, 32  ;;  %v5980_v32 = vsel %vm1259_vm3, %v5946_v37, %v5708_v38 }
 0x826   : > { %v6150_v34 = vsel %vm1292_vm4, %v6106_v51, %v5898_v28 }
 0x827   : > { %6481 = vmatprep.mubr.bf16.mxu1 %v6150_v34  ;;  %5125 = vxpose.xlu1.b32.cont [13/16] (narrow) %v13301_v16, 32 }
 0x828   : > { %6482 = vmatmul.mubr.bf16.gmra.mxu1 %v6022_v43  ;;  %v5756_v54 = vpop.permute.xlu1 %5755 }
 0x829   : > { %v5804_v15 = vpop.permute.xlu0 %5803  ;;  %5094 = vxpose.xlu0.b32.cont [14/16] (narrow) %v13302_v20, 32  ;;  %v6025_v40 = vsel %vm1292_vm4, %v5980_v32, %v5756_v54 }
 0x82a   : > { %v6074_v45 = vsel %vm379_vm0, %v12256_v9, %v5804_v15 }
 0x82b   : > { %5126 = vxpose.xlu1.b32.cont [14/16] (narrow) %v13303_v55, 32 }
 0x82c   : > { %v5662_v56 = vpop.permute.xlu1 %5661 }
 0x82d   : > { %v5852_v11 = vpop.permute.xlu0 %5851  ;;  %5095 = vxpose.xlu0.b32.cont [15/16] (narrow) %v13304_v7, 32  ;;  %v5949_v58 = vsel %vm379_vm0, %v12248_v59, %v5662_v56 }
 0x82e   : > { %v6108_v24 = vsel %vm1259_vm3, %v6074_v45, %v5852_v11 }
 0x82f   : > { %5127 = vxpose.xlu1.b32.cont [15/16] (narrow) %v13305_v48, 32 }
 0x830   : > { %v5710_v33 = vpop.permute.xlu1 %5709 }
 0x831   : > { %v5900_v22 = vpop.permute.xlu0 %5899  ;;  %5096 = vxpose.xlu0.b32.end [16/16] (narrow) %v13306_v39, 32  ;;  %v5982_v49 = vsel %vm1259_vm3, %v5949_v58, %v5710_v33 }
 0x832   : > { %v6153_v36 = vsel %vm1292_vm4, %v6108_v24, %v5900_v22 }
 0x833   : > { %6489 = vmatprep.mubr.bf16.mxu1 %v6153_v36  ;;  %5128 = vxpose.xlu1.b32.end [16/16] (narrow) %v13307_v8, 32 }
 0x834   : > { %6490 = vmatmul.mubr.bf16.gmra.mxu1 %v6025_v40  ;;  %v5758_v9 = vpop.permute.xlu1 %5757 }
 0x835   : > { %v5806_v4 = vpop.permute.xlu0 %5805  ;;  %v6028_v47 = vsel %vm1292_vm4, %v5982_v49, %v5758_v9 }
 0x836   : > { %v6077_v26 = vsel %vm379_vm0, %v12280_v31, %v5806_v4 }
 0x838   : > { %v5664_v6 = vpop.permute.xlu1 %5663 }
 0x839   : > { %v5854_v2 = vpop.permute.xlu0 %5853  ;;  %v5952_v59 = vsel %vm379_vm0, %v12272_v60, %v5664_v6  ;;  %v7390_v60 = vpop.f32.mrf.mxu0 }
 0x83a   : > { %v6110_v5 = vsel %vm1259_vm3, %v6077_v26, %v5854_v2 }
 0x83b   : > { %v6548_v27 = vpop.f32.mrf.mxu0 }
 0x83c   : > { %v5712_v62 = vpop.permute.xlu1 %5711 }
 0x83d   : > { %v5902_v17 = vpop.permute.xlu0 %5901  ;;  %v5984_v46 = vsel %vm1259_vm3, %v5952_v59, %v5712_v62  ;;  %v7391_v42 = vpop.f32.mrf.mxu0 }
 0x83e   : > { %v6156_v61 = vsel %vm1292_vm4, %v6110_v5, %v5902_v17 }
 0x83f   : > { %6497 = vmatprep.mubr.bf16.mxu1 %v6156_v61  ;;  %v6551_v3 = vpop.f32.mrf.mxu0 }
 0x840   : > { %6498 = vmatmul.mubr.bf16.gmra.mxu1 %v6028_v47  ;;  %v5760_v31 = vpop.permute.xlu1 %5759 }
 0x841   : > { %v5808_v12 = vpop.permute.xlu0 %5807  ;;  %v6031_v25 = vsel %vm1292_vm4, %v5984_v46, %v5760_v31  ;;  %v7394_v34 = vpop.f32.mrf.mxu0 }
 0x842   : > { %v6080_v23 = vsel %vm379_vm0, %v12301_v29, %v5808_v12  ;;  %v5599_v29 = vld [vmem:[#allocation2 + $0x19a] sm:$0xff] }
 0x843   : > { %v6112_v57 = vsel %vm1259_vm3, %v6080_v23, %v13308_v53  ;;  %v5616_v13 = vpack.c.bf16 %v5600_v52, %v5599_v29  ;;  %v6564_v54 = vpop.f32.mrf.mxu0 }
 0x845   : > { %v5904_v44 = vpop.permute.xlu0 %5903  ;;  %v7395_v55 = vpop.f32.mrf.mxu0 }
 0x846   : > { %v6159_v50 = vsel %vm1292_vm4, %v6112_v57, %v5904_v44 }
 0x847   : > { %6505 = vmatprep.mubr.bf16.mxu1 %v6159_v50  ;;  %v6567_v37 = vpop.f32.mrf.mxu0 }
 0x848   : > { %6506 = vmatmul.mubr.bf16.gmra.mxu1 %v6031_v25 }
 0x849   : > { %7416 = vmatprep.mubr.msk.bf16.mxu1 %vm379_vm0, %v12307_v14  ;;  %v7398_v26 = vpop.f32.mrf.mxu0 }
 0x84b   : > { %v6580_v5 = vpop.f32.mrf.mxu0 }
 0x84d   : > { %v7399_v61 = vpop.f32.mrf.mxu0 }
 0x84f   : > { %v6583_v59 = vpop.f32.mrf.mxu0 }
 0x850   : > { %7417 = vmatmul.mubr.msk.bf16.vlgmr.msra.gmra.mxu1 %vm379_vm0, %v5616_v13 }
 0x851   : > { %v7402_v13 = vpop.f32.mrf.mxu0 }
 0x857   : > { %v7234_v10 = vpop.f32.mrf.mxu1 }
 0x859   : > { %v7235_v0 = vpop.f32.mrf.mxu1 }
 0x85a   : > { %v7236_v19 = vadd.f32 %v7235_v0, %v7234_v10  ;;  %v6596_v10 = vpop.f32.mrf.mxu0 }
 0x85b   : > { %v7237_v35 = vpop.f32.mrf.mxu1 }
 0x85c   : > { %v6549_v63 = vadd.f32 %v7236_v19, %v6548_v27  ;;  %v12447_v27 = vpop.permute.xlu0 %6742 }
 0x85d   : > { %v7238_v21 = vpop.f32.mrf.mxu1 }
 0x85e   : > { %v7239_v30 = vadd.f32 %v7238_v21, %v7237_v35  ;;  %6675 = vxpose.xlu1.b32.start [1/16] (narrow) %v6549_v63, 8  ;;  %v7403_v63 = vpop.f32.mrf.mxu0 }
 0x860   : > { %v6552_v38 = vadd.f32 %v7239_v30, %v6551_v3 }
 0x862   : > { %6676 = vxpose.xlu1.b32.cont [2/16] (narrow) %v6552_v38, 8 }
 0x864   : > { %v7240_v14 = vpop.f32.mrf.mxu1 }
 0x866   : > { %v7241_v1 = vpop.f32.mrf.mxu1 }
 0x867   : > { %v7242_v51 = vadd.f32 %v7241_v1, %v7240_v14  ;;  %v6599_v1 = vpop.f32.mrf.mxu0 }
 0x868   : > { %v7243_v28 = vpop.f32.mrf.mxu1 }
 0x869   : > { %v6557_v18 = vadd.f32 %v7390_v60, %v7242_v51 }
 0x86a   : > { %v7244_v41 = vpop.f32.mrf.mxu1 }
 0x86b   : > { %v7245_v16 = vadd.f32 %v7244_v41, %v7243_v28  ;;  %6677 = vxpose.xlu1.b32.cont [3/16] (narrow) %v6557_v18, 8 }
 0x86d   : > { %v6560_v43 = vadd.f32 %v7391_v42, %v7245_v16 }
 0x86f   : > { %6678 = vxpose.xlu1.b32.cont [4/16] (narrow) %v6560_v43, 8 }
 0x870   : > { %v7246_v15 = vpop.f32.mrf.mxu1 }
 0x871   : > { %v5097_v42 = vpop.trf.xlu0 }
 0x872   : > { %v7247_v20 = vpop.f32.mrf.mxu1  ;;  %5145 = vst [vmem:[%s12441_s13] sm:$0xff] %v5097_v42 }
 0x873   : > { %v7248_v56 = vadd.f32 %v7247_v20, %v7246_v15  ;;  %v5129_v7 = vpop.trf.xlu1 }
 0x874   : > { %v7249_v11 = vpop.f32.mrf.mxu1  ;;  %5146 = vst [vmem:[%s12441_s13 + $0x8] sm:$0xff] %v5129_v7 }
 0x875   : > { %v6565_v48 = vadd.f32 %v7248_v56, %v6564_v54  ;;  %v5098_v38 = vpop.trf.xlu0 }
 0x876   : > { %v7250_v45 = vpop.f32.mrf.mxu1  ;;  %5147 = vst [vmem:[%s12441_s13 + $0x10] sm:$0xff] %v5098_v38 }
 0x877   : > { %v7251_v33 = vadd.f32 %v7250_v45, %v7249_v11  ;;  %6679 = vxpose.xlu1.b32.cont [5/16] (narrow) %v6565_v48, 8  ;;  %v5130_v22 = vpop.trf.xlu1 }
 0x878   : > { %5148 = vst [vmem:[%s12441_s13 + $0x18] sm:$0xff] %v5130_v22 }
 0x879   : > { %v6568_v24 = vadd.f32 %v7251_v33, %v6567_v37  ;;  %v5099_v28 = vpop.trf.xlu0 }
 0x87a   : > { %5149 = vst [vmem:[%s12441_s13 + $0x20] sm:$0xff] %v5099_v28 }
 0x87b   : > { %6680 = vxpose.xlu1.b32.cont [6/16] (narrow) %v6568_v24, 8  ;;  %v5131_v36 = vpop.trf.xlu1 }
 0x87c   : > { %v7252_v39 = vpop.f32.mrf.mxu1  ;;  %5150 = vst [vmem:[%s12441_s13 + $0x28] sm:$0xff] %v5131_v36 }
 0x87e   : > { %v7253_v32 = vpop.f32.mrf.mxu1 }
 0x87f   : > { %v7254_v8 = vadd.f32 %v7253_v32, %v7252_v39  ;;  %v5132_v6 = vpop.trf.xlu1 }
 0x880   : > { %v7255_v40 = vpop.f32.mrf.mxu1  ;;  %5152 = vst [vmem:[%s12441_s13 + $0x38] sm:$0xff] %v5132_v6 }
 0x881   : > { %v6573_v9 = vadd.f32 %v7394_v34, %v7254_v8  ;;  %v5100_v34 = vpop.trf.xlu0 }
 0x882   : > { %v7256_v4 = vpop.f32.mrf.mxu1  ;;  %5151 = vst [vmem:[%s12441_s13 + $0x30] sm:$0xff] %v5100_v34 }
 0x883   : > { %v7257_v2 = vadd.f32 %v7256_v4, %v7255_v40  ;;  %6681 = vxpose.xlu1.b32.cont [7/16] (narrow) %v6573_v9, 8 }
 0x885   : > { %v6576_v58 = vadd.f32 %v7395_v55, %v7257_v2  ;;  %v7406_v55 = vpop.f32.mrf.mxu0 }
 0x887   : > { %6682 = vxpose.xlu1.b32.cont [8/16] (narrow) %v6576_v58, 8  ;;  %v6612_v11 = vpop.f32.mrf.mxu0 }
 0x888   : > { %v7258_v17 = vpop.f32.mrf.mxu1 }
 0x889   : > { %v7407_v33 = vpop.f32.mrf.mxu0 }
 0x88a   : > { %v7259_v49 = vpop.f32.mrf.mxu1 }
 0x88b   : > { %v7260_v62 = vadd.f32 %v7259_v49, %v7258_v17  ;;  %v6615_v32 = vpop.f32.mrf.mxu0 }
 0x88c   : > { %v7261_v47 = vpop.f32.mrf.mxu1 }
 0x88d   : > { %v6581_v12 = vadd.f32 %v7260_v62, %v6580_v5  ;;  %v7410_v58 = vpop.f32.mrf.mxu0 }
 0x88e   : > { %v7262_v23 = vpop.f32.mrf.mxu1 }
 0x88f   : > { %v7263_v31 = vadd.f32 %v7262_v23, %v7261_v47  ;;  %6683 = vxpose.xlu1.b32.cont [9/16] (narrow) %v6581_v12, 8  ;;  %v6628_v17 = vpop.f32.mrf.mxu0 }
 0x891   : > { %v6584_v44 = vadd.f32 %v7263_v31, %v6583_v59  ;;  %v7411_v47 = vpop.f32.mrf.mxu0 }
 0x893   : > { %6684 = vxpose.xlu1.b32.cont [10/16] (narrow) %v6584_v44, 8  ;;  %v6631_v44 = vpop.f32.mrf.mxu0 }
 0x894   : > { %v7264_v53 = vpop.f32.mrf.mxu1 }
 0x896   : > { %v7265_v57 = vpop.f32.mrf.mxu1 }
 0x897   : > { %v7266_v46 = vadd.f32 %v7265_v57, %v7264_v53 }
 0x898   : > { %v7267_v50 = vpop.f32.mrf.mxu1 }
 0x899   : > { %v6589_v25 = vadd.f32 %v7398_v26, %v7266_v46 }
 0x89a   : > { %v7268_v29 = vpop.f32.mrf.mxu1 }
 0x89b   : > { %v7269_v52 = vadd.f32 %v7268_v29, %v7267_v50  ;;  %6685 = vxpose.xlu1.b32.cont [11/16] (narrow) %v6589_v25, 8 }
 0x89d   : > { %v6592_v60 = vadd.f32 %v7399_v61, %v7269_v52 }
 0x89f   : > { %6686 = vxpose.xlu1.b32.cont [12/16] (narrow) %v6592_v60, 8  ;;  %v7414_v60 = vpop.f32.mrf.mxu0 }
 0x8a0   : > { %v7270_v0 = vpop.f32.mrf.mxu1 }
 0x8a2   : > { %v7271_v19 = vpop.f32.mrf.mxu1 }
 0x8a3   : > { %v7272_v35 = vadd.f32 %v7271_v19, %v7270_v0  ;;  %v6644_v0 = vpop.f32.mrf.mxu0 }
 0x8a4   : > { %v7273_v21 = vpop.f32.mrf.mxu1 }
 0x8a5   : > { %v6597_v30 = vadd.f32 %v7272_v35, %v6596_v10 }
 0x8a6   : > { %v7274_v3 = vpop.f32.mrf.mxu1 }
 0x8a7   : > { %v7275_v14 = vadd.f32 %v7274_v3, %v7273_v21  ;;  %6687 = vxpose.xlu1.b32.cont [13/16] (narrow) %v6597_v30, 8 }
 0x8a9   : > { %v6600_v51 = vadd.f32 %v7275_v14, %v6599_v1 }
 0x8ab   : > { %6688 = vxpose.xlu1.b32.cont [14/16] (narrow) %v6600_v51, 8 }
 0x8ac   : > { %v7276_v18 = vpop.f32.mrf.mxu1 }
 0x8ae   : > { %v7277_v41 = vpop.f32.mrf.mxu1 }
 0x8af   : > { %v7278_v16 = vadd.f32 %v7277_v41, %v7276_v18 }
 0x8b0   : > { %v7279_v43 = vpop.f32.mrf.mxu1 }
 0x8b1   : > { %v6605_v54 = vadd.f32 %v7402_v13, %v7278_v16 }
 0x8b2   : > { %v7280_v15 = vpop.f32.mrf.mxu1 }
 0x8b3   : > { %v7281_v20 = vadd.f32 %v7280_v15, %v7279_v43  ;;  %6689 = vxpose.xlu1.b32.cont [15/16] (narrow) %v6605_v54, 8 }
 0x8b5   : > { %v6608_v56 = vadd.f32 %v7403_v63, %v7281_v20  ;;  %v7415_v63 = vpop.f32.mrf.mxu0 }
 0x8b7   : > { %6690 = vxpose.xlu1.b32.end [16/16] (narrow) %v6608_v56, 8  ;;  %v6647_v14 = vpop.f32.mrf.mxu0 }
 0x8b8   : > { %v7282_v7 = vpop.f32.mrf.mxu1 }
 0x8ba   : > { %v7283_v48 = vpop.f32.mrf.mxu1 }
 0x8bb   : > { %v7284_v45 = vadd.f32 %v7283_v48, %v7282_v7 }
 0x8bc   : > { %v7285_v37 = vpop.f32.mrf.mxu1 }
 0x8bd   : > { %v6613_v24 = vadd.f32 %v7284_v45, %v6612_v11 }
 0x8be   : > { %v7286_v22 = vpop.f32.mrf.mxu1 }
 0x8bf   : > { %v7287_v39 = vadd.f32 %v7286_v22, %v7285_v37  ;;  %6707 = vxpose.xlu0.b32.start [1/16] (narrow) %v6613_v24, 8 }
 0x8c1   : > { %v6616_v36 = vadd.f32 %v7287_v39, %v6615_v32 }
 0x8c3   : > { %6708 = vxpose.xlu0.b32.cont [2/16] (narrow) %v6616_v36, 8 }
 0x8c4   : > { %v7288_v8 = vpop.f32.mrf.mxu1 }
 0x8c6   : > { %v7289_v40 = vpop.f32.mrf.mxu1 }
 0x8c7   : > { %v7290_v9 = vadd.f32 %v7289_v40, %v7288_v8 }
 0x8c8   : > { %v7291_v4 = vpop.f32.mrf.mxu1 }
 0x8c9   : > { %v6621_v6 = vadd.f32 %v7406_v55, %v7290_v9 }
 0x8ca   : > { %v7292_v2 = vpop.f32.mrf.mxu1 }
 0x8cb   : > { %v7293_v26 = vadd.f32 %v7292_v2, %v7291_v4  ;;  %6709 = vxpose.xlu0.b32.cont [3/16] (narrow) %v6621_v6, 8 }
 0x8cd   : > { %v6624_v5 = vadd.f32 %v7407_v33, %v7293_v26 }
 0x8cf   : > { %6710 = vxpose.xlu0.b32.cont [4/16] (narrow) %v6624_v5, 8 }
 0x8d0   : > { %v7294_v49 = vpop.f32.mrf.mxu1 }
 0x8d2   : > { %v7295_v62 = vpop.f32.mrf.mxu1 }
 0x8d3   : > { %v7296_v61 = vadd.f32 %v7295_v62, %v7294_v49 }
 0x8d4   : > { %v7297_v12 = vpop.f32.mrf.mxu1 }
 0x8d5   : > { %v6629_v23 = vadd.f32 %v7296_v61, %v6628_v17 }
 0x8d6   : > { %v7298_v31 = vpop.f32.mrf.mxu1 }
 0x8d7   : > { %v7299_v59 = vadd.f32 %v7298_v31, %v7297_v12  ;;  %6711 = vxpose.xlu0.b32.cont [5/16] (narrow) %v6629_v23, 8 }
 0x8d9   : > { %v6632_v53 = vadd.f32 %v7299_v59, %v6631_v44 }
 0x8db   : > { %6712 = vxpose.xlu0.b32.cont [6/16] (narrow) %v6632_v53, 8 }
 0x8dc   : > { %v7300_v57 = vpop.f32.mrf.mxu1 }
 0x8de   : > { %v7301_v46 = vpop.f32.mrf.mxu1 }
 0x8df   : > { %v7302_v50 = vadd.f32 %v7301_v46, %v7300_v57 }
 0x8e0   : > { %v7303_v25 = vpop.f32.mrf.mxu1 }
 0x8e1   : > { %v6637_v29 = vadd.f32 %v7410_v58, %v7302_v50 }
 0x8e2   : > { %v7304_v52 = vpop.f32.mrf.mxu1 }
 0x8e3   : > { %v7305_v13 = vadd.f32 %v7304_v52, %v7303_v25  ;;  %6713 = vxpose.xlu0.b32.cont [7/16] (narrow) %v6637_v29, 8 }
 0x8e5   : > { %v6640_v10 = vadd.f32 %v7411_v47, %v7305_v13 }
 0x8e7   : > { %6714 = vxpose.xlu0.b32.cont [8/16] (narrow) %v6640_v10, 8 }
 0x8e8   : > { %v7306_v19 = vpop.f32.mrf.mxu1 }
 0x8ea   : > { %v7307_v42 = vpop.f32.mrf.mxu1 }
 0x8eb   : > { %v7308_v35 = vadd.f32 %v7307_v42, %v7306_v19 }
 0x8ec   : > { %v7309_v21 = vpop.f32.mrf.mxu1 }
 0x8ed   : > { %v6645_v30 = vadd.f32 %v7308_v35, %v6644_v0 }
 0x8ee   : > { %v7310_v3 = vpop.f32.mrf.mxu1 }
 0x8ef   : > { %v7311_v38 = vadd.f32 %v7310_v3, %v7309_v21  ;;  %6715 = vxpose.xlu0.b32.cont [9/16] (narrow) %v6645_v30, 8 }
 0x8f1   : > { %v6648_v1 = vadd.f32 %v7311_v38, %v6647_v14 }
 0x8f3   : > { %6716 = vxpose.xlu0.b32.cont [10/16] (narrow) %v6648_v1, 8 }
 0x8f4   : > { %v7312_v51 = vpop.f32.mrf.mxu1 }
 0x8f6   : > { %v7313_v28 = vpop.f32.mrf.mxu1 }
 0x8f7   : > { %v7314_v18 = vadd.f32 %v7313_v28, %v7312_v51 }
 0x8f8   : > { %v7315_v41 = vpop.f32.mrf.mxu1 }
 0x8f9   : > { %v6653_v34 = vadd.f32 %v7414_v60, %v7314_v18 }
 0x8fa   : > { %v7316_v16 = vpop.f32.mrf.mxu1 }
 0x8fb   : > { %v7317_v43 = vadd.f32 %v7316_v16, %v7315_v41  ;;  %6717 = vxpose.xlu0.b32.cont [11/16] (narrow) %v6653_v34, 8 }
 0x8fd   : > { %v6656_v54 = vadd.f32 %v7415_v63, %v7317_v43 }
 0x8ff   : > { %6718 = vxpose.xlu0.b32.cont [12/16] (narrow) %v6656_v54, 8 }
 0x900   : > { %v7318_v15 = vpop.f32.mrf.mxu1 }
 0x902   : > { %v7319_v20 = vpop.f32.mrf.mxu1 }
 0x904   : > { %v7321_v55 = vpop.f32.mrf.mxu1 }
 0x906   : > { %v7322_v56 = vpop.f32.mrf.mxu1 }
 0x908   : > { %v7324_v11 = vpop.f32.mrf.mxu1 }
 0x909   : > { %7610 = shalt.err (!%p7607_p1)
}
 0x90a   : > { %s7611_s14 = scalar_lea.hbm %s12460_s1, 1024  ;;  %s7615_s5 = scalar_lea.hbm %s13312_s0, 2048 }
 0x90b   : > { %p7612_p4 = scmp.ne.s32.totalorder %s12460_s1, %s7611_s14  ;;  %p7616_p6 = scmp.lt.s32.totalorder %s12460_s1, %s13312_s0 }
 0x90c   : > { %p7617_p13 = scmp.lt.s32.totalorder %s7615_s5, %s7611_s14 }
 0x90d   : > { %p7613_p11 = pnand %p7612_p4, %p13313_p0 }
 0x90e   : > { %p7618_p3 = por %p7617_p13, %p7616_p6 }
 0x90f   : > { %p7614_p5 = pneg %p7613_p11 }
 0x911   : > { %p7619_p12 = pnand %p7618_p3, %p7614_p5 }
 0x913   : > { %7622 = shalt.err (!%p7619_p12)
}
 0x914   : > { %s7684_s21 = smov 256   ;;  %s7685_s22 = smov 16   ;;  %v7325_v7 = vpop.f32.mrf.mxu1  ;;  %v7320_v37 = vadd.f32 %v7319_v20, %v7318_v15  ;;  %v7323_v32 = vadd.f32 %v7322_v56, %v7321_v55  ;;  %v6691_v2 = vpop.trf.xlu1 }
 0x915   : > { %7430 = dma.vmem_to_hbm [thread:$0]  (%p13313_p0), %s12454_s11, 1024, %s12460_s1, %s6765_s26, %s7684_s21, %s7684_s21, %s7685_s22   ;;  %v7326_v40 = vadd.f32 %v7325_v7, %v7324_v11  ;;  %v6745_v26 = vadd.f32 %v12447_v27, %v6691_v2 }
 0x916   : > { %v7327_v48 = vpop.f32.mrf.mxu1  ;;  %p373_p0 = scmp.lt.s32.totalorder %s13310_s23, 1  ;;  %s13314_s8 = sld [smem:[#allocation164_spill]] }
 0x917   : > { %v7078_v58 = vmul.f32 -1.442695, %v6745_v26 }
 0x918   : > { %v7328_v45 = vpop.f32.mrf.mxu1  ;;  %s13325_s23 = smov (!%p373_p0, %s13310_s23), 1 }
 0x919   : > { %v7329_v4 = vadd.f32 %v7328_v45, %v7327_v48  ;;  %7546 = vpow2.f32 %v7078_v58  ;;  %s7086_s6 = sshll.u32 %s13325_s23, 3 }
 0x91a   : > { %v7418_v33 = vpop.f32.mrf.mxu1 }
 0x91b   : > { %v6669_v9 = vadd.f32 %v7418_v33, %v7326_v40 }
 0x91c   : > { %v6660_v24 = vpop.f32.mrf.mxu1  ;;  %s377_s18 = scalar_lea.vmem %s13314_s8, %s7086_s6 }
 0x91d   : > { %v6661_v22 = vadd.f32 %v7320_v37, %v6660_v24 }
 0x91e   : > { %v7419_v39 = vpop.f32.mrf.mxu1 }
 0x91f   : > { %6719 = vxpose.xlu0.b32.cont [13/16] (narrow) %v6661_v22, 8  ;;  %v6672_v6 = vadd.f32 %v7419_v39, %v7329_v4 }
 0x920   : > { %v6663_v36 = vpop.f32.mrf.mxu1 }
 0x921   : > { %v6664_v8 = vadd.f32 %v7323_v32, %v6663_v36 }
 0x923   : > { %6720 = vxpose.xlu0.b32.cont [14/16] (narrow) %v6664_v8, 8 }
 0x926   : > { %v7547_v62 = vpop.eup %7546 }
 0x927   : > { %6721 = vxpose.xlu0.b32.cont [15/16] (narrow) %v6669_v9, 8  ;;  %v6753_v61 = vadd.f32 1.0, %v7547_v62 }
 0x92b   : > { %6722 = vxpose.xlu0.b32.end [16/16] (narrow) %v6672_v6, 8 }
 0x96b   : > { %v6723_v5 = vpop.trf.xlu0 }
 0x96c   : > { %v6746_v17 = vadd.f32 %v12447_v27, %v6723_v5 }
 0x96e   : > { %v7079_v49 = vmul.f32 -1.442695, %v6746_v17 }
 0x970   : > { %7548 = vpow2.f32 %v7079_v49 }
 0x971   : > { %7550 = vrcp.f32 %v6753_v61 }
 0x97d   : > { %v7549_v47 = vpop.eup %7548 }
 0x97e   : > { %v6754_v12 = vadd.f32 1.0, %v7549_v47  ;;  %v7551_v23 = vpop.eup %7550 }
 0x980   : > { %7552 = vrcp.f32 %v6754_v12 }
 0x98d   : > { %v7553_v31 = vpop.eup %7552 }
 0x98e   : > { %v6761_v59 = vcombine.low %v7551_v23, %v7553_v31 }
 0x990   : > { %6763 = vst [vmem:[%s377_s18] sm:$0x77] %v6761_v59 }
 0x991 PF: > { %s13315_s16 = sld [smem:[#allocation12_spill]] }
 0x992   : > { %s13316_s28 = sld [smem:[#allocation20_spill]] }
 0x993   : > { %s13317_s17 = sld [smem:[#allocation15_spill]] }
 0x997   : > { %s6801_s13 = sand.u32 1, %s13315_s16  }
 0x998   : > { %p13318_p2 = scmp.ne.s32.totalorder %s13316_s28, 0  ;;  %s6802_s29 = scalar_lea.sflag [#allocation5], %s6801_s13 }
 0x999   : > { %p13319_p7 = scmp.ge.s32.totalorder %s13317_s17, 2 }
 0x99b   : > { %p7441_p8 = pnand %p13319_p7, %p13318_p2 }
 0x99d   : > { %p7442_p9 = pneg %p7441_p8 }
 0x99f   : > { %7648 = dma.done.wait (%p7442_p9), %s6802_s29, 1024  }
 0x9a0   : > { %7650 = vsyncadd (%p7442_p9), %s6802_s29, 4294966272  ;;  %s13320_s12 = sld [smem:[#allocation17_spill]] }
 0x9a1   : > { %s13321_s30 = sld [smem:[#allocation13_spill]] }
 0x9a2   : > { %s13322_s10 = sld [smem:[#allocation14_spill]] }
 0x9a3   : > { %s13323_s11 = sld [smem:[#allocation18_spill]] }
 0x9a6   : > { %p24_p10 = scmp.ge.s32.totalorder %s13320_s12, 4  }
 0x9a8   :  { %26 = sbr.rel (!%p24_p10) target bundleno = 17 (0x11), region = 117 }
 0x9ad   :  { %6815 = vsyncpa [#allocation4], 1 }
 0x9ae   :  { %6817 = vsyncpa [#allocation4 + $0x1], 1 }
 0x9af   :  { %6818 = vsyncpa [#allocation5], 1 }
 0x9b0   :  { %6820 = vsyncpa [#allocation5 + $0x1], 1 }
 0x9b1   :  { %6821 = vsyncpa [#allocation6], 1 }
 0x9b2   :  { %6823 = vsyncpa [#allocation6 + $0x1], 1 }

</bundles_post_ra>
